<compile_context>
chip_gen: v7x
topology: tpu7x:2x2x1
jax: 0.10.0
libtpu: 0.0.40
codegen_flags: <defaults>
</compile_context>

<pallas_src>
import functools

import jax
import jax.numpy as jnp
from jax.experimental import pallas as pl
from jax.experimental.pallas import tpu as pltpu


def _round_up(x, m):
    return ((x + m - 1) // m) * m


def _fused_conv_kernel(x_ref, w1_ref, b1_ref, w2_ref, b2_ref, o_ref,
                       xs_ref, col_ref, mid_ref,
                       *, TH, W, WP, C_IN, C_MID, C_OUT):
    # x_ref  : (1, H+4, W+2, C_IN)  f32  raw input, padded 2 rows / 1 col per side
    # w1_ref : (9*C_IN, C_MID)      bf16 conv1 taps folded into K (kh, kw, cin)
    # b1_ref : (1, C_MID)           f32
    # w2_ref : (C_MID, 9*C_OUT)     bf16 conv2 taps folded into N (kh, kw, cout)
    # b2_ref : (1, C_OUT)           f32
    # o_ref  : (1, TH, W*C_OUT)     f32  lane-dense output row tile
    # xs_ref : (TH+4, W+2, C_IN)    bf16 relu(x) staged once per tile
    # col_ref: (TH+2, W, 9*C_IN)    bf16 im2col for conv1
    # mid_ref: (TH+2, WP, C_MID)    bf16 relu(conv1): valid cols 8..W+7, zero halos
    t = pl.program_id(1)
    nth = pl.num_programs(1)
    rs = t * TH
    if TH % 8 == 0:
        rs = pl.multiple_of(rs, 8)

    # ---- stage v1 = relu(x) once, cast to bf16 -------------------------------
    xs_ref[...] = jnp.maximum(x_ref[0, pl.ds(rs, TH + 4), :, :], 0.0).astype(jnp.bfloat16)

    # ---- im2col: fold all 9 conv1 taps into the contraction dimension --------
    for kh in range(3):
        for kw in range(3):
            tap = kh * 3 + kw
            col_ref[:, :, tap * C_IN:(tap + 1) * C_IN] = \
                xs_ref[kh:kh + TH + 2, kw:kw + W, :]

    # ---- conv1: single MXU matmul (K = 9*C_IN), bias + relu, bf16 mid --------
    h1 = jnp.dot(col_ref[...].reshape((TH + 2) * W, 9 * C_IN), w1_ref[...],
                 preferred_element_type=jnp.float32)
    h1 = jnp.maximum(h1 + b1_ref[...], 0.0)                     # v3 = relu(conv1+b1)
    mid_ref[:, 8:8 + W, :] = h1.astype(jnp.bfloat16).reshape(TH + 2, W, C_MID)

    # zero pad columns (conv2 SAME padding along W); sublane-aligned blocks
    mid_ref[:, 0:8, :] = jnp.zeros((TH + 2, 8, C_MID), jnp.bfloat16)
    mid_ref[:, W + 8:WP, :] = jnp.zeros((TH + 2, WP - (W + 8), C_MID), jnp.bfloat16)

    # zero halo rows that fall outside the image (conv2 SAME padding along H)
    @pl.when(t == 0)
    def _():
        mid_ref[0:1, :, :] = jnp.zeros((1, WP, C_MID), jnp.bfloat16)

    @pl.when(t == nth - 1)
    def _():
        mid_ref[TH + 1:TH + 2, :, :] = jnp.zeros((1, WP, C_MID), jnp.bfloat16)

    # ---- conv2: tap-major matmul (N = 9*C_OUT) + shifted VPU accumulation ----
    y = jnp.dot(mid_ref[...].reshape((TH + 2) * WP, C_MID), w2_ref[...],
                preferred_element_type=jnp.float32)
    y = y.reshape(TH + 2, WP, 9 * C_OUT)

    acc = jnp.zeros((TH, W, C_OUT), jnp.float32)
    for kh in range(3):
        for kw in range(3):
            tap = kh * 3 + kw
            acc = acc + y[kh:kh + TH, 7 + kw:7 + kw + W,
                          tap * C_OUT:(tap + 1) * C_OUT]

    out = jax.nn.sigmoid(acc + b2_ref[...].reshape(1, 1, C_OUT))  # v5
    o_ref[...] = out.reshape(1, TH, W * C_OUT).astype(o_ref.dtype)


def fused_double_conv(x_nhwc, w1, b1, w2, b2):
    N, H, W, C_IN = x_nhwc.shape
    C_MID = w1.shape[-1]
    C_OUT = w2.shape[-1]
    assert W % 8 == 0, "kernel assumes width is a multiple of 8"

    # Row-tile size: 32 at the module's real 64x64 (>=2 grid steps for v7x's
    # two cores, small halo); 16/8 at smaller test sizes.
    if H % 32 == 0 and H >= 64:
        TH = 32
    elif H % 16 == 0:
        TH = 16
    elif H % 8 == 0:
        TH = 8
    else:
        TH = H
    nth = H // TH
    WP = _round_up(W + 9, 8)          # padded mid width (valid data at cols 8..W+7)

    # One padding pass: 2 rows per side (conv1 SAME pad + conv2 row halo),
    # 1 col per side (conv1 SAME pad).  relu(0) == 0, so relu commutes with it.
    xp = jnp.pad(x_nhwc, ((0, 0), (2, 2), (1, 1), (0, 0)))
    w1f = w1.reshape(9 * C_IN, C_MID).astype(jnp.bfloat16)                  # (kh,kw,cin)-major K
    w2f = jnp.transpose(w2, (2, 0, 1, 3)).reshape(C_MID, 9 * C_OUT).astype(jnp.bfloat16)
    b1r = b1.reshape(1, C_MID).astype(jnp.float32)
    b2r = b2.reshape(1, C_OUT).astype(jnp.float32)

    kernel = functools.partial(_fused_conv_kernel, TH=TH, W=W, WP=WP,
                               C_IN=C_IN, C_MID=C_MID, C_OUT=C_OUT)

    out = pl.pallas_call(
        kernel,
        out_shape=jax.ShapeDtypeStruct((N, H, W * C_OUT), x_nhwc.dtype),
        grid_spec=pltpu.PrefetchScalarGridSpec(
            num_scalar_prefetch=0,
            grid=(N, nth),
            in_specs=[
                # Full padded frame per batch element (constant in t -> fetched
                # once per n and reused across row tiles).
                pl.BlockSpec((1, H + 4, W + 2, C_IN), lambda n, t: (n, 0, 0, 0)),
                pl.BlockSpec((9 * C_IN, C_MID), lambda n, t: (0, 0)),
                pl.BlockSpec((1, C_MID), lambda n, t: (0, 0)),
                pl.BlockSpec((C_MID, 9 * C_OUT), lambda n, t: (0, 0)),
                pl.BlockSpec((1, C_OUT), lambda n, t: (0, 0)),
            ],
            out_specs=pl.BlockSpec((1, TH, W * C_OUT), lambda n, t: (n, t, 0)),
            scratch_shapes=[
                pltpu.VMEM((TH + 4, W + 2, C_IN), jnp.bfloat16),   # staged relu(x)
                pltpu.VMEM((TH + 2, W, 9 * C_IN), jnp.bfloat16),   # conv1 im2col
                pltpu.VMEM((TH + 2, WP, C_MID), jnp.bfloat16),     # relu(conv1)
            ],
        ),
        compiler_params=pltpu.CompilerParams(
            dimension_semantics=("parallel", "parallel"),
            vmem_limit_bytes=48 * 1024 * 1024),
    )(xp, w1f, b1r, w2f, b2r)

    return out.reshape(N, H, W, C_OUT)


def model_forward(x_nchw, params):
    x = jnp.transpose(x_nchw, (0, 2, 3, 1))                  # NCHW -> NHWC
    y = fused_double_conv(x, params["w1"], params["b1"],
                          params["w2"], params["b2"])
    return jnp.transpose(y, (0, 3, 1, 2))                    # NHWC -> NCHW


def _ref_forward(x_nchw, params):
    # Plain-JAX f32 reference for correctness checking.
    x = jnp.transpose(x_nchw, (0, 2, 3, 1))
    v1 = jnp.maximum(x, 0.0)
    v2 = jax.lax.conv_general_dilated(
        v1, params["w1"], (1, 1), "SAME",
        dimension_numbers=("NHWC", "HWIO", "NHWC")) + params["b1"]
    v3 = jnp.maximum(v2, 0.0)
    v4 = jax.lax.conv_general_dilated(
        v3, params["w2"], (1, 1), "SAME",
        dimension_numbers=("NHWC", "HWIO", "NHWC")) + params["b2"]
    v5 = jax.nn.sigmoid(v4)
    return jnp.transpose(v5, (0, 3, 1, 2))


if __name__ == "__main__":
    key = jax.random.PRNGKey(0)
    k_x, k_w1, k_b1, k_w2, k_b2 = jax.random.split(key, 5)

    # Small-but-consistent shapes: batch=1, Cin=128, spatial=16 (module uses 64).
    N, C_IN, HW = 1, 128, 16
    C_MID, C_OUT = 256, 32

    x = jax.random.normal(k_x, (N, C_IN, HW, HW), dtype=jnp.float32)

    params = {
        "w1": jax.random.normal(k_w1, (3, 3, C_IN, C_MID), jnp.float32) * 0.05,
        "b1": jax.random.normal(k_b1, (C_MID,), jnp.float32) * 0.05,
        "w2": jax.random.normal(k_w2, (3, 3, C_MID, C_OUT), jnp.float32) * 0.05,
        "b2": jax.random.normal(k_b2, (C_OUT,), jnp.float32) * 0.05,
    }

    out = jax.jit(model_forward)(x, params)
    out = jax.block_until_ready(out)

    ref = jax.block_until_ready(_ref_forward(x, params))
    assert out.shape == (N, C_OUT, HW, HW), out.shape
    err = float(jnp.max(jnp.abs(out - ref)))
    # bf16 MXU operands (f32 accumulation): loosen tolerance vs f32 reference.
    assert jnp.allclose(out, ref, atol=2e-2, rtol=2e-2), err

    print("KERNEL_OK")
</pallas_src>

<mosaic_0001>
module attributes {stable_mosaic.version = 11 : i64} {
  func.func @_fused_conv_kernel(%arg0: i32, %arg1: i32, %arg2: memref<1x20x18x128xf32, #tpu.memory_space<vmem>>, %arg3: memref<1152x256xbf16, #tpu.memory_space<vmem>>, %arg4: memref<1x256xf32, #tpu.memory_space<vmem>>, %arg5: memref<256x288xbf16, #tpu.memory_space<vmem>>, %arg6: memref<1x32xf32, #tpu.memory_space<vmem>>, %arg7: memref<1x16x512xf32, #tpu.memory_space<vmem>>, %arg8: memref<20x18x128xbf16, #tpu.memory_space<vmem>>, %arg9: memref<18x16x1152xbf16, #tpu.memory_space<vmem>>, %arg10: memref<18x32x256xbf16, #tpu.memory_space<vmem>>) attributes {dimension_semantics = [#tpu.dimension_semantics<parallel>, #tpu.dimension_semantics<parallel>], iteration_bounds = array<i64: 1, 1>, scalar_prefetch = 0 : i64, scratch_operands = 3 : i64, tpu.core_type = #tpu.core_type<tc>, window_params = [{transform_indices = @transform_0, window_bounds = array<i64: 1, 20, 18, 128>}, {pipeline_mode = #tpu.pipeline_mode<synchronous>, transform_indices = @transform_1, window_bounds = array<i64: 1152, 256>}, {pipeline_mode = #tpu.pipeline_mode<synchronous>, transform_indices = @transform_2, window_bounds = array<i64: 1, 256>}, {pipeline_mode = #tpu.pipeline_mode<synchronous>, transform_indices = @transform_3, window_bounds = array<i64: 256, 288>}, {pipeline_mode = #tpu.pipeline_mode<synchronous>, transform_indices = @transform_4, window_bounds = array<i64: 1, 32>}, {transform_indices = @transform_5, window_bounds = array<i64: 1, 16, 512>}]} {
    %c16_i32 = arith.constant 16 : i32
    %0 = arith.muli %arg1, %c16_i32 : i32
    %1 = tpu.assume_multiple %0, 8 : i32
    %c0 = arith.constant 0 : index
    %2 = arith.index_cast %1 : i32 to index
    %c0_0 = arith.constant 0 : index
    %c0_1 = arith.constant 0 : index
    %3 = vector.load %arg2[%c0, %2, %c0_0, %c0_1] : memref<1x20x18x128xf32, #tpu.memory_space<vmem>>, vector<1x20x18x128xf32>
    %4 = vector.shape_cast %3 : vector<1x20x18x128xf32> to vector<20x18x128xf32>
    %cst = arith.constant 0.000000e+00 : f32
    %5 = vector.broadcast %cst : f32 to vector<20x18x128xf32>
    %6 = arith.maximumf %4, %5 : vector<20x18x128xf32>
    %7 = arith.truncf %6 : vector<20x18x128xf32> to vector<20x18x128xbf16>
    %c0_2 = arith.constant 0 : index
    %c0_3 = arith.constant 0 : index
    %c0_4 = arith.constant 0 : index
    %8 = vector.load %arg8[%c0_2, %c0_3, %c0_4] : memref<20x18x128xbf16, #tpu.memory_space<vmem>>, vector<20x18x128xbf16>
    tpu.vector_store %arg8[%c0_2, %c0_3, %c0_4], %7 {strides = array<i32>} : memref<20x18x128xbf16, #tpu.memory_space<vmem>>, vector<20x18x128xbf16>,
    %c0_5 = arith.constant 0 : index
    %c0_6 = arith.constant 0 : index
    %c0_7 = arith.constant 0 : index
    %9 = vector.load %arg8[%c0_5, %c0_6, %c0_7] : memref<20x18x128xbf16, #tpu.memory_space<vmem>>, vector<18x16x128xbf16>
    %c0_8 = arith.constant 0 : index
    %c0_9 = arith.constant 0 : index
    %c0_10 = arith.constant 0 : index
    %10 = vector.load %arg9[%c0_8, %c0_9, %c0_10] : memref<18x16x1152xbf16, #tpu.memory_space<vmem>>, vector<18x16x128xbf16>
    tpu.vector_store %arg9[%c0_8, %c0_9, %c0_10], %9 {strides = array<i32>} : memref<18x16x1152xbf16, #tpu.memory_space<vmem>>, vector<18x16x128xbf16>,
    %c0_11 = arith.constant 0 : index
    %c1 = arith.constant 1 : index
    %c0_12 = arith.constant 0 : index
    %11 = vector.load %arg8[%c0_11, %c1, %c0_12] : memref<20x18x128xbf16, #tpu.memory_space<vmem>>, vector<18x16x128xbf16>
    %c0_13 = arith.constant 0 : index
    %c0_14 = arith.constant 0 : index
    %c128 = arith.constant 128 : index
    %12 = vector.load %arg9[%c0_13, %c0_14, %c128] : memref<18x16x1152xbf16, #tpu.memory_space<vmem>>, vector<18x16x128xbf16>
    tpu.vector_store %arg9[%c0_13, %c0_14, %c128], %11 {strides = array<i32>} : memref<18x16x1152xbf16, #tpu.memory_space<vmem>>, vector<18x16x128xbf16>,
    %c0_15 = arith.constant 0 : index
    %c2 = arith.constant 2 : index
    %c0_16 = arith.constant 0 : index
    %13 = vector.load %arg8[%c0_15, %c2, %c0_16] : memref<20x18x128xbf16, #tpu.memory_space<vmem>>, vector<18x16x128xbf16>
    %c0_17 = arith.constant 0 : index
    %c0_18 = arith.constant 0 : index
    %c256 = arith.constant 256 : index
    %14 = vector.load %arg9[%c0_17, %c0_18, %c256] : memref<18x16x1152xbf16, #tpu.memory_space<vmem>>, vector<18x16x128xbf16>
    tpu.vector_store %arg9[%c0_17, %c0_18, %c256], %13 {strides = array<i32>} : memref<18x16x1152xbf16, #tpu.memory_space<vmem>>, vector<18x16x128xbf16>,
    %c1_19 = arith.constant 1 : index
    %c0_20 = arith.constant 0 : index
    %c0_21 = arith.constant 0 : index
    %15 = vector.load %arg8[%c1_19, %c0_20, %c0_21] : memref<20x18x128xbf16, #tpu.memory_space<vmem>>, vector<18x16x128xbf16>
    %c0_22 = arith.constant 0 : index
    %c0_23 = arith.constant 0 : index
    %c384 = arith.constant 384 : index
    %16 = vector.load %arg9[%c0_22, %c0_23, %c384] : memref<18x16x1152xbf16, #tpu.memory_space<vmem>>, vector<18x16x128xbf16>
    tpu.vector_store %arg9[%c0_22, %c0_23, %c384], %15 {strides = array<i32>} : memref<18x16x1152xbf16, #tpu.memory_space<vmem>>, vector<18x16x128xbf16>,
    %c1_24 = arith.constant 1 : index
    %c1_25 = arith.constant 1 : index
    %c0_26 = arith.constant 0 : index
    %17 = vector.load %arg8[%c1_24, %c1_25, %c0_26] : memref<20x18x128xbf16, #tpu.memory_space<vmem>>, vector<18x16x128xbf16>
    %c0_27 = arith.constant 0 : index
    %c0_28 = arith.constant 0 : index
    %c512 = arith.constant 512 : index
    %18 = vector.load %arg9[%c0_27, %c0_28, %c512] : memref<18x16x1152xbf16, #tpu.memory_space<vmem>>, vector<18x16x128xbf16>
    tpu.vector_store %arg9[%c0_27, %c0_28, %c512], %17 {strides = array<i32>} : memref<18x16x1152xbf16, #tpu.memory_space<vmem>>, vector<18x16x128xbf16>,
    %c1_29 = arith.constant 1 : index
    %c2_30 = arith.constant 2 : index
    %c0_31 = arith.constant 0 : index
    %19 = vector.load %arg8[%c1_29, %c2_30, %c0_31] : memref<20x18x128xbf16, #tpu.memory_space<vmem>>, vector<18x16x128xbf16>
    %c0_32 = arith.constant 0 : index
    %c0_33 = arith.constant 0 : index
    %c640 = arith.constant 640 : index
    %20 = vector.load %arg9[%c0_32, %c0_33, %c640] : memref<18x16x1152xbf16, #tpu.memory_space<vmem>>, vector<18x16x128xbf16>
    tpu.vector_store %arg9[%c0_32, %c0_33, %c640], %19 {strides = array<i32>} : memref<18x16x1152xbf16, #tpu.memory_space<vmem>>, vector<18x16x128xbf16>,
    %c2_34 = arith.constant 2 : index
    %c0_35 = arith.constant 0 : index
    %c0_36 = arith.constant 0 : index
    %21 = vector.load %arg8[%c2_34, %c0_35, %c0_36] : memref<20x18x128xbf16, #tpu.memory_space<vmem>>, vector<18x16x128xbf16>
    %c0_37 = arith.constant 0 : index
    %c0_38 = arith.constant 0 : index
    %c768 = arith.constant 768 : index
    %22 = vector.load %arg9[%c0_37, %c0_38, %c768] : memref<18x16x1152xbf16, #tpu.memory_space<vmem>>, vector<18x16x128xbf16>
    tpu.vector_store %arg9[%c0_37, %c0_38, %c768], %21 {strides = array<i32>} : memref<18x16x1152xbf16, #tpu.memory_space<vmem>>, vector<18x16x128xbf16>,
    %c2_39 = arith.constant 2 : index
    %c1_40 = arith.constant 1 : index
    %c0_41 = arith.constant 0 : index
    %23 = vector.load %arg8[%c2_39, %c1_40, %c0_41] : memref<20x18x128xbf16, #tpu.memory_space<vmem>>, vector<18x16x128xbf16>
    %c0_42 = arith.constant 0 : index
    %c0_43 = arith.constant 0 : index
    %c896 = arith.constant 896 : index
    %24 = vector.load %arg9[%c0_42, %c0_43, %c896] : memref<18x16x1152xbf16, #tpu.memory_space<vmem>>, vector<18x16x128xbf16>
    tpu.vector_store %arg9[%c0_42, %c0_43, %c896], %23 {strides = array<i32>} : memref<18x16x1152xbf16, #tpu.memory_space<vmem>>, vector<18x16x128xbf16>,
    %c2_44 = arith.constant 2 : index
    %c2_45 = arith.constant 2 : index
    %c0_46 = arith.constant 0 : index
    %25 = vector.load %arg8[%c2_44, %c2_45, %c0_46] : memref<20x18x128xbf16, #tpu.memory_space<vmem>>, vector<18x16x128xbf16>
    %c0_47 = arith.constant 0 : index
    %c0_48 = arith.constant 0 : index
    %c1024 = arith.constant 1024 : index
    %26 = vector.load %arg9[%c0_47, %c0_48, %c1024] : memref<18x16x1152xbf16, #tpu.memory_space<vmem>>, vector<18x16x128xbf16>
    tpu.vector_store %arg9[%c0_47, %c0_48, %c1024], %25 {strides = array<i32>} : memref<18x16x1152xbf16, #tpu.memory_space<vmem>>, vector<18x16x128xbf16>,
    %c0_49 = arith.constant 0 : index
    %c0_50 = arith.constant 0 : index
    %c0_51 = arith.constant 0 : index
    %27 = vector.load %arg9[%c0_49, %c0_50, %c0_51] : memref<18x16x1152xbf16, #tpu.memory_space<vmem>>, vector<18x16x1152xbf16>
    %28 = vector.shape_cast %27 : vector<18x16x1152xbf16> to vector<288x1152xbf16>
    %c0_52 = arith.constant 0 : index
    %c0_53 = arith.constant 0 : index
    %29 = vector.load %arg3[%c0_52, %c0_53] : memref<1152x256xbf16, #tpu.memory_space<vmem>>, vector<1152x256xbf16>
    %cst_54 = arith.constant dense<0.000000e+00> : vector<288x256xf32>
    %30 = tpu.matmul %28, %29, %cst_54 {dimension_numbers = #tpu.dot_dimension_numbers<[1], [0], [0], [1], [0, 0, 1, 1], [], []>} : vector<288x1152xbf16>, vector<1152x256xbf16>, vector<288x256xf32> -> vector<288x256xf32>
    %c0_55 = arith.constant 0 : index
    %c0_56 = arith.constant 0 : index
    %31 = vector.load %arg4[%c0_55, %c0_56] : memref<1x256xf32, #tpu.memory_space<vmem>>, vector<1x256xf32>
    %32 = vector.broadcast %31 : vector<1x256xf32> to vector<288x256xf32>
    %33 = arith.addf %30, %32 : vector<288x256xf32>
    %cst_57 = arith.constant 0.000000e+00 : f32
    %34 = vector.broadcast %cst_57 : f32 to vector<288x256xf32>
    %35 = arith.maximumf %33, %34 : vector<288x256xf32>
    %36 = arith.truncf %35 : vector<288x256xf32> to vector<288x256xbf16>
    %37 = vector.shape_cast %36 : vector<288x256xbf16> to vector<18x16x256xbf16>
    %c0_58 = arith.constant 0 : index
    %c8 = arith.constant 8 : index
    %c0_59 = arith.constant 0 : index
    %38 = vector.load %arg10[%c0_58, %c8, %c0_59] : memref<18x32x256xbf16, #tpu.memory_space<vmem>>, vector<18x16x256xbf16>
    tpu.vector_store %arg10[%c0_58, %c8, %c0_59], %37 {strides = array<i32>} : memref<18x32x256xbf16, #tpu.memory_space<vmem>>, vector<18x16x256xbf16>,
    %cst_60 = arith.constant 0.000000e+00 : bf16
    %39 = vector.broadcast %cst_60 : bf16 to vector<18x8x256xbf16>
    %c0_61 = arith.constant 0 : index
    %c0_62 = arith.constant 0 : index
    %c0_63 = arith.constant 0 : index
    %40 = vector.load %arg10[%c0_61, %c0_62, %c0_63] : memref<18x32x256xbf16, #tpu.memory_space<vmem>>, vector<18x8x256xbf16>
    tpu.vector_store %arg10[%c0_61, %c0_62, %c0_63], %39 {strides = array<i32>} : memref<18x32x256xbf16, #tpu.memory_space<vmem>>, vector<18x8x256xbf16>,
    %cst_64 = arith.constant 0.000000e+00 : bf16
    %41 = vector.broadcast %cst_64 : bf16 to vector<18x8x256xbf16>
    %c0_65 = arith.constant 0 : index
    %c24 = arith.constant 24 : index
    %c0_66 = arith.constant 0 : index
    %42 = vector.load %arg10[%c0_65, %c24, %c0_66] : memref<18x32x256xbf16, #tpu.memory_space<vmem>>, vector<18x8x256xbf16>
    tpu.vector_store %arg10[%c0_65, %c24, %c0_66], %41 {strides = array<i32>} : memref<18x32x256xbf16, #tpu.memory_space<vmem>>, vector<18x8x256xbf16>,
    %c0_i32 = arith.constant 0 : i32
    %43 = arith.cmpi eq, %arg1, %c0_i32 : i32
    %44 = arith.extui %43 : i1 to i32
    %c0_i32_67 = arith.constant 0 : i32
    %45 = arith.cmpi ne, %44, %c0_i32_67 : i32
    scf.if %45 {
      %cst_83 = arith.constant 0.000000e+00 : bf16
      %84 = vector.broadcast %cst_83 : bf16 to vector<1x32x256xbf16>
      %c0_84 = arith.constant 0 : index
      %c0_85 = arith.constant 0 : index
      %c0_86 = arith.constant 0 : index
      %85 = vector.load %arg10[%c0_84, %c0_85, %c0_86] : memref<18x32x256xbf16, #tpu.memory_space<vmem>>, vector<1x32x256xbf16>
      tpu.vector_store %arg10[%c0_84, %c0_85, %c0_86], %84 {strides = array<i32>} : memref<18x32x256xbf16, #tpu.memory_space<vmem>>, vector<1x32x256xbf16>,
    } else {
    }
    %c0_i32_68 = arith.constant 0 : i32
    %46 = arith.cmpi eq, %arg1, %c0_i32_68 : i32
    %47 = arith.extui %46 : i1 to i32
    %c0_i32_69 = arith.constant 0 : i32
    %48 = arith.cmpi ne, %47, %c0_i32_69 : i32
    scf.if %48 {
      %cst_83 = arith.constant 0.000000e+00 : bf16
      %84 = vector.broadcast %cst_83 : bf16 to vector<1x32x256xbf16>
      %c17 = arith.constant 17 : index
      %c0_84 = arith.constant 0 : index
      %c0_85 = arith.constant 0 : index
      %85 = vector.load %arg10[%c17, %c0_84, %c0_85] : memref<18x32x256xbf16, #tpu.memory_space<vmem>>, vector<1x32x256xbf16>
      tpu.vector_store %arg10[%c17, %c0_84, %c0_85], %84 {strides = array<i32>} : memref<18x32x256xbf16, #tpu.memory_space<vmem>>, vector<1x32x256xbf16>,
    } else {
    }
    %c0_70 = arith.constant 0 : index
    %c0_71 = arith.constant 0 : index
    %c0_72 = arith.constant 0 : index
    %49 = vector.load %arg10[%c0_70, %c0_71, %c0_72] : memref<18x32x256xbf16, #tpu.memory_space<vmem>>, vector<18x32x256xbf16>
    %50 = vector.shape_cast %49 : vector<18x32x256xbf16> to vector<576x256xbf16>
    %c0_73 = arith.constant 0 : index
    %c0_74 = arith.constant 0 : index
    %51 = vector.load %arg5[%c0_73, %c0_74] : memref<256x288xbf16, #tpu.memory_space<vmem>>, vector<256x288xbf16>
    %cst_75 = arith.constant dense<0.000000e+00> : vector<576x288xf32>
    %52 = tpu.matmul %50, %51, %cst_75 {dimension_numbers = #tpu.dot_dimension_numbers<[1], [0], [0], [1], [0, 0, 1, 1], [], []>} : vector<576x256xbf16>, vector<256x288xbf16>, vector<576x288xf32> -> vector<576x288xf32>
    %53 = vector.shape_cast %52 : vector<576x288xf32> to vector<18x32x288xf32>
    %cst_76 = arith.constant 0.000000e+00 : f32
    %54 = vector.broadcast %cst_76 : f32 to vector<16x16x32xf32>
    %55 = vector.extract_strided_slice %53 {offsets = [0, 7, 0], sizes = [16, 16, 32], strides = [1, 1, 1]} : vector<18x32x288xf32> to vector<16x16x32xf32>
    %56 = arith.addf %54, %55 : vector<16x16x32xf32>
    %57 = vector.extract_strided_slice %53 {offsets = [0, 8, 32], sizes = [16, 16, 32], strides = [1, 1, 1]} : vector<18x32x288xf32> to vector<16x16x32xf32>
    %58 = arith.addf %56, %57 : vector<16x16x32xf32>
    %59 = vector.extract_strided_slice %53 {offsets = [0, 9, 64], sizes = [16, 16, 32], strides = [1, 1, 1]} : vector<18x32x288xf32> to vector<16x16x32xf32>
    %60 = arith.addf %58, %59 : vector<16x16x32xf32>
    %61 = vector.extract_strided_slice %53 {offsets = [1, 7, 96], sizes = [16, 16, 32], strides = [1, 1, 1]} : vector<18x32x288xf32> to vector<16x16x32xf32>
    %62 = arith.addf %60, %61 : vector<16x16x32xf32>
    %63 = vector.extract_strided_slice %53 {offsets = [1, 8, 128], sizes = [16, 16, 32], strides = [1, 1, 1]} : vector<18x32x288xf32> to vector<16x16x32xf32>
    %64 = arith.addf %62, %63 : vector<16x16x32xf32>
    %65 = vector.extract_strided_slice %53 {offsets = [1, 9, 160], sizes = [16, 16, 32], strides = [1, 1, 1]} : vector<18x32x288xf32> to vector<16x16x32xf32>
    %66 = arith.addf %64, %65 : vector<16x16x32xf32>
    %67 = vector.extract_strided_slice %53 {offsets = [2, 7, 192], sizes = [16, 16, 32], strides = [1, 1, 1]} : vector<18x32x288xf32> to vector<16x16x32xf32>
    %68 = arith.addf %66, %67 : vector<16x16x32xf32>
    %69 = vector.extract_strided_slice %53 {offsets = [2, 8, 224], sizes = [16, 16, 32], strides = [1, 1, 1]} : vector<18x32x288xf32> to vector<16x16x32xf32>
    %70 = arith.addf %68, %69 : vector<16x16x32xf32>
    %71 = vector.extract_strided_slice %53 {offsets = [2, 9, 256], sizes = [16, 16, 32], strides = [1, 1, 1]} : vector<18x32x288xf32> to vector<16x16x32xf32>
    %72 = arith.addf %70, %71 : vector<16x16x32xf32>
    %c0_77 = arith.constant 0 : index
    %c0_78 = arith.constant 0 : index
    %73 = vector.load %arg6[%c0_77, %c0_78] : memref<1x32xf32, #tpu.memory_space<vmem>>, vector<1x32xf32>
    %74 = vector.shape_cast %73 : vector<1x32xf32> to vector<1x1x32xf32>
    %75 = vector.broadcast %74 : vector<1x1x32xf32> to vector<16x16x32xf32>
    %76 = arith.addf %72, %75 : vector<16x16x32xf32>
    %77 = arith.negf %76 : vector<16x16x32xf32>
    %78 = math.exp %77 : vector<16x16x32xf32>
    %cst_79 = arith.constant 1.000000e+00 : f32
    %79 = vector.broadcast %cst_79 : f32 to vector<16x16x32xf32>
    %80 = arith.addf %79, %78 : vector<16x16x32xf32>
    %81 = arith.divf %79, %80 : vector<16x16x32xf32>
    %82 = vector.shape_cast %81 : vector<16x16x32xf32> to vector<1x16x512xf32>
    %c0_80 = arith.constant 0 : index
    %c0_81 = arith.constant 0 : index
    %c0_82 = arith.constant 0 : index
    %83 = vector.load %arg7[%c0_80, %c0_81, %c0_82] : memref<1x16x512xf32, #tpu.memory_space<vmem>>, vector<1x16x512xf32>
    tpu.vector_store %arg7[%c0_80, %c0_81, %c0_82], %82 {strides = array<i32>} : memref<1x16x512xf32, #tpu.memory_space<vmem>>, vector<1x16x512xf32>,
    return
  }
  func.func @transform_0(%arg0: i32, %arg1: i32) -> (i32, i32, i32, i32) {
    %c0_i32 = arith.constant 0 : i32
    %c0_i32_0 = arith.constant 0 : i32
    %c0_i32_1 = arith.constant 0 : i32
    %c0_i32_2 = arith.constant 0 : i32
    return %arg0, %c0_i32, %c0_i32_0, %c0_i32_1 : i32, i32, i32, i32
  }
  func.func @transform_1(%arg0: i32, %arg1: i32) -> (i32, i32) {
    %c0_i32 = arith.constant 0 : i32
    %c0_i32_0 = arith.constant 0 : i32
    %c0_i32_1 = arith.constant 0 : i32
    return %c0_i32, %c0_i32_0 : i32, i32
  }
  func.func @transform_2(%arg0: i32, %arg1: i32) -> (i32, i32) {
    %c0_i32 = arith.constant 0 : i32
    %c0_i32_0 = arith.constant 0 : i32
    %c0_i32_1 = arith.constant 0 : i32
    return %c0_i32, %c0_i32_0 : i32, i32
  }
  func.func @transform_3(%arg0: i32, %arg1: i32) -> (i32, i32) {
    %c0_i32 = arith.constant 0 : i32
    %c0_i32_0 = arith.constant 0 : i32
    %c0_i32_1 = arith.constant 0 : i32
    return %c0_i32, %c0_i32_0 : i32, i32
  }
  func.func @transform_4(%arg0: i32, %arg1: i32) -> (i32, i32) {
    %c0_i32 = arith.constant 0 : i32
    %c0_i32_0 = arith.constant 0 : i32
    %c0_i32_1 = arith.constant 0 : i32
    return %c0_i32, %c0_i32_0 : i32, i32
  }
  func.func @transform_5(%arg0: i32, %arg1: i32) -> (i32, i32, i32) {
    %c0_i32 = arith.constant 0 : i32
    %c0_i32_0 = arith.constant 0 : i32
    return %arg0, %arg1, %c0_i32 : i32, i32, i32
  }
}

</mosaic_0001>

<bundles_post_ra>
// kernel: model_forward.1
= control target key start
LH: loop header
LB: loop body
LE: loop exit
PB: predicated region body
PF: predicated region fallthrough
CT: control target
= control target key end

     0   :  { %vm824_vm0 = vsmask.f32 7424  ;;  %vm1275_vm1 = vcmask 1046528   ;;  %s11669_s11 = smov 64   ;;  %vm7052_vm2 = vcmask 1045504   ;;  %vm9019_vm3 = vcmask 1040384   ;;  %s15936_s1 = inlined_call_operand.vmem [shape: bf16[1152,256], index: 1, kind: input, shape index: {}]   ;;  %s15937_s0 = inlined_call_operand.vmem [shape: f32[1,20,18,128], index: 0, kind: input, shape index: {}]   ;;  %s15938_s3 = inlined_call_operand.vmem [shape: bf16[256,288], index: 3, kind: input, shape index: {}]   ;;  %s15939_s2 = inlined_call_operand.vmem [shape: f32[1,256], index: 2, kind: input, shape index: {}]   ;;  %s15940_s4 = inlined_call_operand.vmem [shape: f32[1,32], index: 4, kind: input, shape index: {}]   ;;  %s15941_s5 = inlined_call_operand.vmem [shape: f32[1,16,512], index: 5, kind: output, shape index: {}]  }
   0x1   :  { %v10883_v0 = vld [vmem:[%s15936_s1 + $0x4] ss:$8 sps:$4 sm:$0xff]   ;;  %v10885_v1 = vld [vmem:[%s15936_s1] ss:$8 sps:$4 sm:$0xff]   ;;  %v10886_v2 = vld [vmem:[%s15936_s1 + $0x14] ss:$8 sps:$4 sm:$0xff]  }
   0x2   :  { %4206 = vmatprep.subr.bf16.mxu0 %v10883_v0  ;;  %v10888_v3 = vld [vmem:[%s15936_s1 + $0x10] ss:$8 sps:$4 sm:$0xff]   ;;  %v10889_v4 = vld [vmem:[%s15936_s1 + $0x24] ss:$8 sps:$4 sm:$0xff]   ;;  %v10891_v5 = vld [vmem:[%s15936_s1 + $0x20] ss:$8 sps:$4 sm:$0xff]  }
   0x3   :  { %4207 = vmatpush1.bf16.msra.mxu0 %v10885_v1  ;;  %v10892_v6 = vld [vmem:[%s15936_s1 + $0x34] ss:$8 sps:$4 sm:$0xff]   ;;  %v10894_v7 = vld [vmem:[%s15936_s1 + $0x30] ss:$8 sps:$4 sm:$0xff]   ;;  %v10895_v8 = vld [vmem:[%s15936_s1 + $0x44] ss:$8 sps:$4 sm:$0xff]  }
   0x4   :  { %4208 = vmatprep.subr.bf16.mxu0 %v10886_v2  ;;  %v10897_v9 = vld [vmem:[%s15936_s1 + $0x40] ss:$8 sps:$4 sm:$0xff]   ;;  %v10898_v10 = vld [vmem:[%s15936_s1 + $0x54] ss:$8 sps:$4 sm:$0xff]   ;;  %v10900_v11 = vld [vmem:[%s15936_s1 + $0x50] ss:$8 sps:$4 sm:$0xff]  }
   0x5   :  { %v10901_v12 = vld [vmem:[%s15936_s1 + $0x64] ss:$8 sps:$4 sm:$0xff]   ;;  %v26_v15 = vld [vmem:[%s15937_s0 + $0x10] sm:$0x3]  ;;  %v10903_v18 = vld [vmem:[%s15936_s1 + $0x60] ss:$8 sps:$4 sm:$0xff]  }
   0x6   :  { %v24_v13 = vld [vmem:[%s15937_s0] sm:$0xff]  ;;  %v25_v14 = vld [vmem:[%s15937_s0 + $0x8] sm:$0xff]  ;;  %v10904_v19 = vld [vmem:[%s15936_s1 + $0x74] ss:$8 sps:$4 sm:$0xff]   ;;  %v86_v20 = vmax.f32 %v26_v15, 0.0  ;;  %vm9772_vm4 = vcmask 261120  }
   0x7   :  { %4209 = vmatpush1.bf16.msra.mxu0 %v10888_v3  ;;  %v84_v16 = vmax.f32 %v24_v13, 0.0  ;;  %v85_v17 = vmax.f32 %v25_v14, 0.0  ;;  %v27_v21 = vld [vmem:[%s15937_s0 + $0x18] sm:$0xff]  ;;  %v28_v23 = vld [vmem:[%s15937_s0 + $0x20] sm:$0xff]  ;;  %v29_v24 = vld [vmem:[%s15937_s0 + $0x28] sm:$0x3] }
   0x8   :  { %4210 = vmatprep.subr.bf16.mxu0 %v10889_v4  ;;  %v87_v25 = vmax.f32 %v27_v21, 0.0  ;;  %v10384_v26 = vpack.c.bf16 %v86_v20, %v86_v20  ;;  %v88_v27 = vmax.f32 %v28_v23, 0.0  ;;  %v89_v28 = vmax.f32 %v29_v24, 0.0  ;;  %v30_v29 = vld [vmem:[%s15937_s0 + $0x30] sm:$0xff]  ;;  %v31_v31 = vld [vmem:[%s15937_s0 + $0x38] sm:$0xff]  ;;  %v33_v40 = vld [vmem:[%s15937_s0 + $0x48] sm:$0xff] }
   0x9   :  { %v10445_v22 = vpack.c.bf16 %v85_v17, %v84_v16  ;;  %v32_v32 = vld [vmem:[%s15937_s0 + $0x40] sm:$0x3]  ;;  %v90_v33 = vmax.f32 %v30_v29, 0.0  ;;  %v10906_v34 = vld [vmem:[%s15936_s1 + $0x70] ss:$8 sps:$4 sm:$0xff]   ;;  %v91_v37 = vmax.f32 %v31_v31, 0.0 }
   0xa   :  { %v10385_v30 = vpack.c.bf16 %v87_v25, %v87_v25  ;;  %406 = vst [vmem:[#allocation2 + $0x8] sm:$0x1] %v10384_v26  ;;  %v10386_v35 = vpack.c.bf16 %v88_v27, %v88_v27  ;;  %v10387_v36 = vpack.c.bf16 %v89_v28, %v89_v28  ;;  %v92_v38 = vmax.f32 %v32_v32, 0.0  ;;  %v10907_v39 = vld [vmem:[%s15936_s1 + $0x84] ss:$8 sps:$4 sm:$0xff]   ;;  %v34_v41 = vld [vmem:[%s15937_s0 + $0x50] sm:$0xff] }
   0xb   :  { %4211 = vmatpush1.bf16.msra.mxu0 %v10891_v5  ;;  %10446 = vst [vmem:[#allocation2] sm:$0xff] %v10445_v22   ;;  %v10450_v43 = vpack.c.bf16 %v91_v37, %v90_v33  ;;  %v35_v44 = vld [vmem:[%s15937_s0 + $0x58] sm:$0x3]  ;;  %v93_v45 = vmax.f32 %v33_v40, 0.0  ;;  %v94_v46 = vmax.f32 %v34_v41, 0.0  ;;  %v36_v49 = vld [vmem:[%s15937_s0 + $0x60] sm:$0xff] }
   0xc   :  { %4212 = vmatprep.subr.bf16.mxu0 %v10892_v6  ;;  %407 = vst [vmem:[#allocation2 + $0xc] sm:$0xf] %v10385_v30  ;;  %408 = vst [vmem:[#allocation2 + $0x10] sm:$0xf] %v10386_v35  ;;  %v10390_v42 = vpack.c.bf16 %v92_v38, %v92_v38  ;;  %v10909_v47 = vld [vmem:[%s15936_s1 + $0x80] ss:$8 sps:$4 sm:$0xff]  }
   0xd   :  { %409 = vst [vmem:[#allocation2 + $0x14] sm:$0x1] %v10387_v36  ;;  %v95_v48 = vmax.f32 %v35_v44, 0.0  ;;  %10492 = vst [vmem:[#allocation2 + $0x18] sm:$0xff] %v10450_v43   ;;  %v10391_v50 = vpack.c.bf16 %v93_v45, %v93_v45  ;;  %v10392_v51 = vpack.c.bf16 %v94_v46, %v94_v46  ;;  %v37_v52 = vld [vmem:[%s15937_s0 + $0x68] sm:$0xff]  ;;  %v96_v54 = vmax.f32 %v36_v49, 0.0 }
   0xe   :  { %412 = vst [vmem:[#allocation2 + $0x20] sm:$0x1] %v10390_v42  ;;  %v38_v53 = vld [vmem:[%s15937_s0 + $0x70] sm:$0x3]  ;;  %v10910_v55 = vld [vmem:[%s15936_s1 + $0x94] ss:$8 sps:$4 sm:$0xff]  }
   0xf   :  { %4213 = vmatpush1.bf16.msra.mxu0 %v10894_v7  ;;  %v10393_v56 = vpack.c.bf16 %v95_v48, %v95_v48  ;;  %v97_v57 = vmax.f32 %v37_v52, 0.0  ;;  %v98_v58 = vmax.f32 %v38_v53, 0.0  ;;  %v39_v59 = vld [vmem:[%s15937_s0 + $0x78] sm:$0xff]  ;;  %413 = vst [vmem:[#allocation2 + $0x24] sm:$0xf] %v10391_v50  ;;  %v40_v20 = vld [vmem:[%s15937_s0 + $0x80] sm:$0xff] }
  0x10   :  { %4214 = vmatprep.subr.bf16.mxu0 %v10895_v8  ;;  %v10912_v60 = vld [vmem:[%s15936_s1 + $0x90] ss:$8 sps:$4 sm:$0xff]   ;;  %414 = vst [vmem:[#allocation2 + $0x28] sm:$0xf] %v10392_v51  ;;  %v99_v62 = vmax.f32 %v39_v59, 0.0  ;;  %v100_v22 = vmax.f32 %v40_v20, 0.0 }
  0x11   :  { %v10913_v63 = vld [vmem:[%s15936_s1 + $0xa4] ss:$8 sps:$4 sm:$0xff]   ;;  %v10932_v0 = vld [vmem:[#allocation2 + $0x8] ss:$0 sps:$4 sm:$0x11]   ;;  %v10396_v1 = vpack.c.bf16 %v98_v58, %v98_v58  ;;  %v10455_v2 = vpack.c.bf16 %v97_v57, %v96_v54  ;;  %v42_v27 = vld [vmem:[%s15937_s0 + $0x90] sm:$0xff] }
  0x12   :  { %v10931_v61 = vld [vmem:[#allocation2] sm:$0xff]   ;;  %415 = vst [vmem:[#allocation2 + $0x2c] sm:$0x1] %v10393_v56  ;;  %v10397_v5 = vpack.c.bf16 %v99_v62, %v99_v62  ;;  %v833_v6 = vshll.u32 %v10932_v0, 16  ;;  %v10918_v13 = vld [vmem:[%s15936_s1 + $0xb0] ss:$8 sps:$4 sm:$0xff]   ;;  %v10398_v26 = vpack.c.bf16 %v100_v22, %v100_v22 }
  0x13   :  { %4215 = vmatpush1.bf16.msra.mxu0 %v10897_v9  ;;  %v826_v3 = vshrl.u32 %v10931_v61, 16  ;;  %v828_v4 = vshll.u32 %v10931_v61, 16  ;;  %10493 = vst [vmem:[#allocation2 + $0x30] sm:$0xff] %v10455_v2   ;;  %418 = vst [vmem:[#allocation2 + $0x38] sm:$0x1] %v10396_v1  ;;  %v11830_v16 = vld [vmem:[#allocation2 + $0xc] sm:$0xff]  }
  0x14   :  { %4216 = vmatprep.subr.bf16.mxu0 %v10898_v10  ;;  %419 = vst [vmem:[#allocation2 + $0x3c] sm:$0xf] %v10397_v5  ;;  %v835_v8 = vrot.slane %v833_v6, 1  ;;  %v10915_v9 = vld [vmem:[%s15936_s1 + $0xa0] ss:$8 sps:$4 sm:$0xff]   ;;  %v840_v23 = vshll.u32 %v11830_v16, 16 }
  0x15   :  { %v830_v7 = vrot.slane %v828_v4, 1  ;;  %v10919_v14 = vld [vmem:[%s15936_s1 + $0xc4] ss:$8 sps:$4 sm:$0xff]   ;;  %v10921_v15 = vld [vmem:[%s15936_s1 + $0xc0] ss:$8 sps:$4 sm:$0xff]   ;;  %v43_v30 = vld [vmem:[%s15937_s0 + $0x98] sm:$0xff] }
  0x16   :  { %v10922_v17 = vld [vmem:[%s15936_s1 + $0xd4] ss:$8 sps:$4 sm:$0xff]   ;;  %v41_v21 = vld [vmem:[%s15937_s0 + $0x88] sm:$0x3]  ;;  %v10925_v25 = vld [vmem:[%s15936_s1 + $0xe4] ss:$8 sps:$4 sm:$0xff]  }
  0x17   :  { %4217 = vmatpush1.bf16.msra.mxu0 %v10900_v11  ;;  %v831_v10 = vor.u32 %v830_v7, %v826_v3  ;;  %v10916_v11 = vld [vmem:[%s15936_s1 + $0xb4] ss:$8 sps:$4 sm:$0xff]   ;;  %v101_v24 = vmax.f32 %v41_v21, 0.0  ;;  %v10927_v28 = vld [vmem:[%s15936_s1 + $0xe0] ss:$8 sps:$4 sm:$0xff]   ;;  %v102_v32 = vmax.f32 %v42_v27, 0.0 }
  0x18   :  { %4218 = vmatprep.subr.bf16.mxu0 %v10901_v12  ;;  %v44_v31 = vld [vmem:[%s15937_s0 + $0xa0] sm:$0x3]  ;;  %v10928_v33 = vld [vmem:[%s15936_s1 + $0xf4] ss:$8 sps:$4 sm:$0xff]   ;;  %420 = vst [vmem:[#allocation2 + $0x40] sm:$0xf] %v10398_v26 }
  0x19   :  { %v836_v12 = vsel %vm824_vm0, %v831_v10, %v835_v8  ;;  %v10399_v29 = vpack.c.bf16 %v101_v24, %v101_v24  ;;  %v103_v36 = vmax.f32 %v43_v30, 0.0  ;;  %v104_v37 = vmax.f32 %v44_v31, 0.0  ;;  %v45_v38 = vld [vmem:[%s15937_s0 + $0xa8] sm:$0xff]  ;;  %v11867_v40 = vld [vmem:[#allocation2 + $0x18] sm:$0xff]   ;;  %v46_v41 = vld [vmem:[%s15937_s0 + $0xb0] sm:$0xff] }
  0x1a   :  { %4238 = vmatprep.mubr.bf16.mxu0 %v836_v12  ;;  %v47_v42 = vld [vmem:[%s15937_s0 + $0xb8] sm:$0x3]  ;;  %v105_v43 = vmax.f32 %v45_v38, 0.0  ;;  %v106_v46 = vmax.f32 %v46_v41, 0.0  ;;  %v48_v48 = vld [vmem:[%s15937_s0 + $0xc0] sm:$0xff]  ;;  %v49_v49 = vld [vmem:[%s15937_s0 + $0xc8] sm:$0xff] }
  0x1b   :  { %4219 = vmatpush1.bf16.msra.mxu0 %v10903_v18  ;;  %v10924_v18 = vld [vmem:[%s15936_s1 + $0xd0] ss:$8 sps:$4 sm:$0xff]   ;;  %421 = vst [vmem:[#allocation2 + $0x44] sm:$0x1] %v10399_v29  ;;  %v10402_v44 = vpack.c.bf16 %v104_v37, %v104_v37  ;;  %v10460_v45 = vpack.c.bf16 %v103_v36, %v102_v32  ;;  %v108_v52 = vmax.f32 %v48_v48, 0.0  ;;  %v109_v53 = vmax.f32 %v49_v49, 0.0 }
  0x1c   :  { %4220 = vmatprep.subr.bf16.mxu0 %v10904_v19  ;;  %v10938_v19 = vld [vmem:[#allocation2 + $0x14] ss:$0 sps:$4 sm:$0x11]   ;;  %v50_v50 = vld [vmem:[%s15937_s0 + $0xd0] sm:$0x3]  ;;  %v10403_v51 = vpack.c.bf16 %v105_v43, %v105_v43  ;;  %v10404_v58 = vpack.c.bf16 %v106_v46, %v106_v46  ;;  %v852_v62 = vshll.u32 %v11867_v40, 16 }
  0x1d   :  { %v845_v35 = vshll.u32 %v10938_v19, 16  ;;  %v110_v54 = vmax.f32 %v50_v50, 0.0  ;;  %v10930_v56 = vld [vmem:[%s15936_s1 + $0xf0] ss:$8 sps:$4 sm:$0xff]   ;;  %v10936_v57 = vld [vmem:[%s15936_s1 + $0x104] ss:$8 sps:$4 sm:$0xff]   ;;  %v10465_v0 = vpack.c.bf16 %v109_v53, %v108_v52 }
  0x1e   :  { %10494 = vst [vmem:[#allocation2 + $0x48] sm:$0xff] %v10460_v45   ;;  %424 = vst [vmem:[#allocation2 + $0x50] sm:$0x1] %v10402_v44  ;;  %v53_v1 = vld [vmem:[%s15937_s0 + $0xe8] sm:$0x3]  ;;  %v54_v8 = vld [vmem:[%s15937_s0 + $0xf0] sm:$0xff] }
  0x1f   :  { %4221 = vmatpush1.bf16.msra.mxu0 %v10906_v34  ;;  %v838_v34 = vshrl.u32 %v11830_v16, 16  ;;  %425 = vst [vmem:[#allocation2 + $0x54] sm:$0xf] %v10403_v51  ;;  %v847_v4 = vrot.slane %v845_v35, 1  ;;  %426 = vst [vmem:[#allocation2 + $0x58] sm:$0xf] %v10404_v58 }
  0x20   :  { %4222 = vmatprep.subr.bf16.mxu0 %v10907_v39  ;;  %v842_v39 = vrot.slane %v840_v23, 1  ;;  %v10944_v5 = vld [vmem:[#allocation2 + $0x20] ss:$0 sps:$4 sm:$0x11]   ;;  %v113_v6 = vmax.f32 %v53_v1, 0.0  ;;  %10495 = vst [vmem:[#allocation2 + $0x60] sm:$0xff] %v10465_v0  }
  0x21   :  { %v10942_v12 = vld [vmem:[%s15936_s1 + $0x114] ss:$8 sps:$4 sm:$0xff]   ;;  %v854_v16 = vrot.slane %v852_v62, 1  ;;  %v857_v20 = vshll.u32 %v10944_v5, 16  ;;  %v10949_v21 = vld [vmem:[#allocation2 + $0x24] sm:$0xff]   ;;  %v10939_v32 = vld [vmem:[#allocation2 + $0xc] sm:$0xff]  }
  0x22   :  { %v843_v3 = vor.u32 %v842_v39, %v838_v34  ;;  %v10940_v24 = vld [vmem:[%s15936_s1 + $0x110] ss:$8 sps:$4 sm:$0xff]   ;;  %v864_v31 = vshll.u32 %v10949_v21, 16  ;;  %v862_v34 = vshrl.u32 %v10949_v21, 16  ;;  %v10954_v35 = vld [vmem:[%s15936_s1 + $0x134] ss:$8 sps:$4 sm:$0xff]  }
  0x23   :  { %4223 = vmatpush1.bf16.msra.mxu0 %v10909_v47  ;;  %v107_v47 = vmax.f32 %v47_v42, 0.0  ;;  %v859_v30 = vrot.slane %v857_v20, 1  ;;  %v10955_v36 = vld [vmem:[#allocation2 + $0x30] sm:$0xff]   ;;  %v10960_v45 = vld [vmem:[%s15936_s1 + $0x144] ss:$8 sps:$4 sm:$0xff]   ;;  %v10945_v46 = vld [vmem:[#allocation2 + $0x18] sm:$0xff]  }
  0x24   :  { %4224 = vmatprep.subr.bf16.mxu0 %v10910_v55  ;;  %v51_v55 = vld [vmem:[%s15937_s0 + $0xd8] sm:$0xff]  ;;  %v848_v19 = vsel %vm824_vm0, %v843_v3, %v847_v4  ;;  %v866_v38 = vrot.slane %v864_v31, 1  ;;  %v876_v42 = vshll.u32 %v10955_v36, 16  ;;  %v874_v48 = vshrl.u32 %v10955_v36, 16  ;;  %v10972_v1 = vld [vmem:[%s15936_s1 + $0x164] ss:$8 sps:$4 sm:$0xff]  }
  0x25   :  { %v10405_v59 = vpack.c.bf16 %v107_v47, %v107_v47  ;;  %v111_v61 = vmax.f32 %v51_v55, 0.0  ;;  %v10952_v41 = vld [vmem:[%s15936_s1 + $0x130] ss:$8 sps:$4 sm:$0xff]   ;;  %v10958_v47 = vld [vmem:[%s15936_s1 + $0x140] ss:$8 sps:$4 sm:$0xff]   ;;  %vm9775_vm5 = vcmask 523264  }
  0x26   :  { %v867_v43 = vor.u32 %v866_v38, %v862_v34  ;;  %v878_v50 = vrot.slane %v876_v42, 1  ;;  %v11939_v51 = vld [vmem:[#allocation2 + $0x3c] sm:$0xff]   ;;  %v57_v55 = vld [vmem:[%s15937_s0 + $0x108] sm:$0xff]  ;;  %v59_v58 = vld [vmem:[%s15937_s0 + $0x118] sm:$0x3]  ;;  %vm9778_vm6 = vcmask 785408  }
  0x27   :  { %4225 = vmatpush1.bf16.msra.mxu0 %v10912_v60  ;;  %v52_v60 = vld [vmem:[%s15937_s0 + $0xe0] sm:$0xff]  ;;  %427 = vst [vmem:[#allocation2 + $0x5c] sm:$0x1] %v10405_v59  ;;  %v10409_v7 = vpack.c.bf16 %v111_v61, %v111_v61  ;;  %v10966_v53 = vld [vmem:[%s15936_s1 + $0x154] ss:$8 sps:$4 sm:$0xff]   ;;  %v117_v59 = vmax.f32 %v57_v55, 0.0 }
  0x28   :  { %4226 = vmatprep.subr.bf16.mxu0 %v10913_v63  ;;  %v10408_v63 = vpack.c.bf16 %v110_v54, %v110_v54  ;;  %v112_v2 = vmax.f32 %v52_v60, 0.0  ;;  %v10962_v54 = vld [vmem:[#allocation2 + $0x44] ss:$0 sps:$4 sm:$0x11]   ;;  %v879_v60 = vor.u32 %v878_v50, %v874_v48  ;;  %v888_v61 = vshll.u32 %v11939_v51, 16  ;;  %v61_v4 = vld [vmem:[%s15937_s0 + $0x128] sm:$0xff] }
  0x29   :  { %431 = vst [vmem:[#allocation2 + $0x6c] sm:$0xf] %v10409_v7  ;;  %v10964_v62 = vld [vmem:[%s15936_s1 + $0x150] ss:$8 sps:$4 sm:$0xff]   ;;  %v119_v0 = vmax.f32 %v59_v58, 0.0  ;;  %v60_v3 = vld [vmem:[%s15937_s0 + $0x120] sm:$0xff] }
  0x2a   :  { %430 = vst [vmem:[#allocation2 + $0x68] sm:$0x1] %v10408_v63  ;;  %v10410_v10 = vpack.c.bf16 %v112_v2, %v112_v2  ;;  %v10415_v2 = vpack.c.bf16 %v117_v59, %v117_v59  ;;  %v10970_v5 = vld [vmem:[%s15936_s1 + $0x160] ss:$8 sps:$4 sm:$0xff]  }
  0x2b   :  { %4227 = vmatpush1.bf16.msra.mxu0 %v10915_v9  ;;  %v10934_v9 = vld [vmem:[%s15936_s1 + $0x100] ss:$8 sps:$4 sm:$0xff]   ;;  %v10417_v7 = vpack.c.bf16 %v119_v0, %v119_v0  ;;  %v10991_v0 = vld [vmem:[%s15936_s1 + $0x190] ss:$8 sps:$4 sm:$0xff]  }
  0x2c   :  { %4228 = vmatprep.subr.bf16.mxu0 %v10916_v11  ;;  %v10933_v11 = vld [vmem:[#allocation2] sm:$0xff]   ;;  %432 = vst [vmem:[#allocation2 + $0x70] sm:$0xf] %v10410_v10  ;;  %437 = vst [vmem:[#allocation2 + $0x84] sm:$0xf] %v10415_v2  ;;  %v11987_v21 = vld [vmem:[#allocation2 + $0x48] sm:$0xff]  }
  0x2d   :  { %v10951_v10 = vld [vmem:[#allocation2 + $0x24] sm:$0xff]   ;;  %439 = vst [vmem:[#allocation2 + $0x8c] sm:$0x1] %v10417_v7  ;;  %v898_v58 = vshrl.u32 %v11987_v21, 16 }
  0x2e   :  { %v65_v20 = vld [vmem:[%s15937_s0 + $0x148] sm:$0x3]  ;;  %v10999_v2 = vld [vmem:[%s15936_s1 + $0x1a4] ss:$8 sps:$4 sm:$0xff]  }
  0x2f   :  { %4229 = vmatpush1.bf16.msra.mxu0 %v10918_v13  ;;  %v10411_v13 = vpack.c.bf16 %v113_v6, %v113_v6  ;;  %v10976_v7 = vld [vmem:[#allocation2 + $0x60] sm:$0xff]  }
  0x30   :  { %4230 = vmatprep.subr.bf16.mxu0 %v10919_v14  ;;  %v114_v14 = vmax.f32 %v54_v8, 0.0  ;;  %v62_v8 = vld [vmem:[%s15937_s0 + $0x130] sm:$0x3] }
  0x31   :  { %433 = vst [vmem:[#allocation2 + $0x74] sm:$0x1] %v10411_v13  ;;  %v121_v13 = vmax.f32 %v61_v4, 0.0 }
  0x33   :  { %4231 = vmatpush1.bf16.msra.mxu0 %v10921_v15  ;;  %v850_v15 = vshrl.u32 %v11867_v40, 16  ;;  %v10956_v40 = vld [vmem:[#allocation2 + $0x38] ss:$0 sps:$4 sm:$0x11]  }
  0x34   :  { %4232 = vmatprep.subr.bf16.mxu0 %v10922_v17  ;;  %v55_v17 = vld [vmem:[%s15937_s0 + $0xf8] sm:$0xff]  ;;  %v881_v49 = vshll.u32 %v10956_v40, 16  ;;  %v69_v40 = vld [vmem:[%s15937_s0 + $0x168] sm:$0xff] }
  0x35   :  { %v115_v22 = vmax.f32 %v55_v17, 0.0  ;;  %v855_v29 = vor.u32 %v854_v16, %v850_v15  ;;  %v890_v16 = vrot.slane %v888_v61, 1  ;;  %v893_v17 = vshll.u32 %v10962_v54, 16  ;;  %v10985_v54 = vld [vmem:[%s15936_s1 + $0x180] ss:$8 sps:$4 sm:$0xff]  }
  0x36   :  { %v10974_v61 = vld [vmem:[#allocation2 + $0x5c] ss:$0 sps:$4 sm:$0x11]  }
  0x37   :  { %4233 = vmatpush1.bf16.msra.mxu0 %v10924_v18  ;;  %v56_v18 = vld [vmem:[%s15937_s0 + $0x100] sm:$0x3]  ;;  %v10470_v27 = vpack.c.bf16 %v115_v22, %v114_v14  ;;  %v860_v37 = vsel %vm824_vm0, %v855_v29, %v859_v30  ;;  %v122_v14 = vmax.f32 %v62_v8, 0.0  ;;  %v67_v29 = vld [vmem:[%s15937_s0 + $0x158] sm:$0xff]  ;;  %v10987_v30 = vld [vmem:[%s15936_s1 + $0x184] ss:$8 sps:$4 sm:$0xff]  }
  0x38   :  { %4234 = vmatprep.subr.bf16.mxu0 %v10925_v25  ;;  %v116_v23 = vmax.f32 %v56_v18, 0.0  ;;  %v10950_v25 = vld [vmem:[#allocation2 + $0x2c] ss:$0 sps:$4 sm:$0x11]   ;;  %v63_v18 = vld [vmem:[%s15937_s0 + $0x138] sm:$0xff]  ;;  %v895_v36 = vrot.slane %v893_v17, 1 }
  0x39   :  { %10496 = vst [vmem:[#allocation2 + $0x78] sm:$0xff] %v10470_v27   ;;  %v869_v39 = vshll.u32 %v10950_v25, 16  ;;  %v10420_v22 = vpack.c.bf16 %v122_v14, %v122_v14  ;;  %v125_v27 = vmax.f32 %v65_v20, 0.0  ;;  %v10997_v8 = vld [vmem:[%s15936_s1 + $0x1a0] ss:$8 sps:$4 sm:$0xff]  }
  0x3a   :  { %v10414_v26 = vpack.c.bf16 %v116_v23, %v116_v23  ;;  %v10969_v14 = vld [vmem:[#allocation2 + $0x48] sm:$0xff]  }
  0x3b   :  { %4235 = vmatpush1.bf16.msra.mxu0 %v10927_v28  ;;  %v10948_v28 = vld [vmem:[%s15936_s1 + $0x124] ss:$8 sps:$4 sm:$0xff]   ;;  %v871_v44 = vrot.slane %v869_v39, 1  ;;  %442 = vst [vmem:[#allocation2 + $0x98] sm:$0x1] %v10420_v22  ;;  %v10423_v38 = vpack.c.bf16 %v125_v27, %v125_v27 }
  0x3c   :  { %4236 = vmatprep.subr.bf16.mxu0 %v10928_v33  ;;  %436 = vst [vmem:[#allocation2 + $0x80] sm:$0x1] %v10414_v26  ;;  %v10946_v33 = vld [vmem:[%s15936_s1 + $0x120] ss:$8 sps:$4 sm:$0xff]   ;;  %v10978_v26 = vld [vmem:[%s15936_s1 + $0x170] ss:$8 sps:$4 sm:$0xff]  }
  0x3d   :  { %v872_v52 = vsel %vm824_vm0, %v867_v43, %v871_v44  ;;  %v900_v43 = vshll.u32 %v11987_v21, 16  ;;  %445 = vst [vmem:[#allocation2 + $0xa4] sm:$0x1] %v10423_v38  ;;  %v11011_v17 = vld [vmem:[%s15936_s1 + $0x1c4] ss:$8 sps:$4 sm:$0xff]   ;;  %v922_v21 = vshrl.u32 %v10976_v7, 16 }
  0x3e   :  { %v11009_v20 = vld [vmem:[%s15936_s1 + $0x1c0] ss:$8 sps:$4 sm:$0xff]   ;;  %v11017_v22 = vld [vmem:[%s15936_s1 + $0x1d4] ss:$8 sps:$4 sm:$0xff]  }
  0x3f   :  { %4237 = vmatpush1.bf16.msra.mxu0 %v10930_v56  ;;  %v883_v56 = vrot.slane %v881_v49, 1  ;;  %v902_v59 = vrot.slane %v900_v43, 1 }
  0x40   :  { %4419 = vmatprep.subr.bf16.mxu0 %v10936_v57  ;;  %v58_v57 = vld [vmem:[%s15937_s0 + $0x110] sm:$0xff] }
  0x41   :  { %v118_v63 = vmax.f32 %v58_v57, 0.0  ;;  %v884_v15 = vsel %vm824_vm0, %v879_v60, %v883_v56  ;;  %v10993_v60 = vld [vmem:[%s15936_s1 + $0x194] ss:$8 sps:$4 sm:$0xff]  }
  0x42   :  { %4239 = vmatmul.mubr.bf16.vlgmr.msra.gmra.mrb[0].mxu0 %v10933_v11  ;;  %v886_v11 = vshrl.u32 %v11939_v51, 16  ;;  %v10973_v51 = vld [vmem:[#allocation2 + $0x54] sm:$0xff]  }
  0x43   :  { %4420 = vmatpush1.bf16.msra.mxu0 %v10934_v9  ;;  %4248 = vmatprep.mubr.bf16.mxu0 %v848_v19  ;;  %v10416_v6 = vpack.c.bf16 %v118_v63, %v118_v63  ;;  %v120_v9 = vmax.f32 %v60_v3, 0.0  ;;  %v64_v19 = vld [vmem:[%s15937_s0 + $0x140] sm:$0xff]  ;;  %v910_v4 = vshrl.u32 %v10973_v51, 16 }
  0x44   :  { %4421 = vmatprep.subr.bf16.mxu0 %v10942_v12  ;;  %v10980_v12 = vld [vmem:[%s15936_s1 + $0x174] ss:$8 sps:$4 sm:$0xff]   ;;  %v124_v25 = vmax.f32 %v64_v19, 0.0  ;;  %v891_v42 = vor.u32 %v890_v16, %v886_v11  ;;  %v10977_v11 = vld [vmem:[#allocation2 + $0x68] ss:$0 sps:$4 sm:$0x11]  }
  0x45   :  { %438 = vst [vmem:[#allocation2 + $0x88] sm:$0xf] %v10416_v6  ;;  %v10475_v23 = vpack.c.bf16 %v121_v13, %v120_v9  ;;  %v10963_v3 = vld [vmem:[#allocation2 + $0x3c] sm:$0xff]   ;;  %v917_v6 = vshll.u32 %v10974_v61, 16  ;;  %v11003_v13 = vld [vmem:[%s15936_s1 + $0x1b0] ss:$8 sps:$4 sm:$0xff]  }
  0x46   :  { %v896_v57 = vsel %vm824_vm0, %v891_v42, %v895_v36  ;;  %v10982_v19 = vld [vmem:[#allocation2 + $0x6c] sm:$0xff]  }
  0x47   :  { %4422 = vmatpush1.bf16.msra.mxu0 %v10940_v24  ;;  %v123_v24 = vmax.f32 %v63_v18, 0.0  ;;  %10497 = vst [vmem:[#allocation2 + $0x90] sm:$0xff] %v10475_v23   ;;  %v919_v16 = vrot.slane %v917_v6, 1  ;;  %v72_v18 = vld [vmem:[%s15937_s0 + $0x180] sm:$0xff]  ;;  %v73_v23 = vld [vmem:[%s15937_s0 + $0x188] sm:$0xff]  ;;  %v936_v38 = vshll.u32 %v10982_v19, 16 }
  0x48   :  { %4423 = vmatprep.subr.bf16.mxu0 %v10948_v28  ;;  %v66_v28 = vld [vmem:[%s15937_s0 + $0x150] sm:$0xff]  ;;  %v133_v27 = vmax.f32 %v73_v23, 0.0  ;;  %v11038_v61 = vld [vmem:[%s15936_s1 + $0x204] ss:$8 sps:$4 sm:$0xff]  }
  0x49   :  { %v10421_v31 = vpack.c.bf16 %v123_v24, %v123_v24  ;;  %v126_v34 = vmax.f32 %v66_v28, 0.0  ;;  %v75_v28 = vld [vmem:[%s15937_s0 + $0x198] sm:$0xff]  ;;  %v10995_v6 = vld [vmem:[#allocation2 + $0x8c] ss:$0 sps:$4 sm:$0x11]  }
  0x4a   :  { %4249 = vmatmul.mubr.bf16.gmra.mrb[4].mxu0 %v10939_v32  ;;  %v10422_v32 = vpack.c.bf16 %v124_v25, %v124_v25  ;;  %v74_v25 = vld [vmem:[%s15937_s0 + $0x190] sm:$0x3] }
  0x4b   :  { %4258 = vmatprep.mubr.bf16.mxu0 %v860_v37  ;;  %4424 = vmatpush1.bf16.msra.mxu0 %v10946_v33  ;;  %v68_v33 = vld [vmem:[%s15937_s0 + $0x160] sm:$0x3]  ;;  %v10968_v37 = vld [vmem:[#allocation2 + $0x50] ss:$0 sps:$4 sm:$0x11]  }
  0x4c   :  { %4425 = vmatprep.subr.bf16.mxu0 %v10954_v35  ;;  %v127_v35 = vmax.f32 %v67_v29, 0.0  ;;  %v128_v39 = vmax.f32 %v68_v33, 0.0  ;;  %443 = vst [vmem:[#allocation2 + $0x9c] sm:$0xf] %v10421_v31  ;;  %444 = vst [vmem:[#allocation2 + $0xa0] sm:$0xf] %v10422_v32 }
  0x4d   :  { %v134_v31 = vmax.f32 %v74_v25, 0.0  ;;  %v76_v32 = vld [vmem:[%s15937_s0 + $0x1a0] sm:$0xff]  ;;  %v77_v33 = vld [vmem:[%s15937_s0 + $0x1a8] sm:$0x3] }
  0x4e   :  { %v10480_v44 = vpack.c.bf16 %v127_v35, %v126_v34  ;;  %v10426_v48 = vpack.c.bf16 %v128_v39, %v128_v39  ;;  %v135_v34 = vmax.f32 %v75_v28, 0.0  ;;  %v10983_v35 = vld [vmem:[#allocation2 + $0x74] ss:$0 sps:$4 sm:$0x11]   ;;  %v11015_v39 = vld [vmem:[%s15936_s1 + $0x1d0] ss:$8 sps:$4 sm:$0xff]  }
  0x4f   :  { %4426 = vmatpush1.bf16.msra.mxu0 %v10952_v41  ;;  %v10957_v41 = vld [vmem:[#allocation2 + $0x30] sm:$0xff]   ;;  %v10996_v28 = vld [vmem:[#allocation2 + $0x84] sm:$0xff]  }
  0x50   :  { %4427 = vmatprep.subr.bf16.mxu0 %v10960_v45  ;;  %v70_v45 = vld [vmem:[%s15937_s0 + $0x170] sm:$0xff]  ;;  %10498 = vst [vmem:[#allocation2 + $0xa8] sm:$0xff] %v10480_v44   ;;  %448 = vst [vmem:[#allocation2 + $0xb0] sm:$0x1] %v10426_v48  ;;  %v10433_v42 = vpack.c.bf16 %v135_v34, %v135_v34 }
  0x51   :  { %v130_v49 = vmax.f32 %v70_v45, 0.0  ;;  %v10975_v48 = vld [vmem:[#allocation2 + $0x54] sm:$0xff]  }
  0x52   :  { %4259 = vmatmul.mubr.bf16.gmra.mrb[8].mxu0 %v10945_v46  ;;  %v71_v46 = vld [vmem:[%s15937_s0 + $0x178] sm:$0x3]  ;;  %455 = vst [vmem:[#allocation2 + $0xcc] sm:$0xf] %v10433_v42 }
  0x53   :  { %4268 = vmatprep.mubr.bf16.mxu0 %v872_v52  ;;  %4428 = vmatpush1.bf16.msra.mxu0 %v10958_v47  ;;  %v129_v47 = vmax.f32 %v69_v40, 0.0  ;;  %v131_v50 = vmax.f32 %v71_v46, 0.0  ;;  %v10428_v55 = vpack.c.bf16 %v130_v49, %v130_v49  ;;  %v10432_v40 = vpack.c.bf16 %v134_v31, %v134_v31  ;;  %v11023_v46 = vld [vmem:[%s15936_s1 + $0x1e4] ss:$8 sps:$4 sm:$0xff]   ;;  %v11006_v23 = vld [vmem:[#allocation2 + $0x9c] sm:$0xff]  }
  0x54   :  { %4429 = vmatprep.subr.bf16.mxu0 %v10966_v53  ;;  %v905_v53 = vshll.u32 %v10968_v37, 16  ;;  %v136_v37 = vmax.f32 %v76_v32, 0.0  ;;  %v934_v49 = vshrl.u32 %v10982_v19, 16 }
  0x55   :  { %v10427_v52 = vpack.c.bf16 %v129_v47, %v129_v47  ;;  %v10429_v56 = vpack.c.bf16 %v131_v50, %v131_v50  ;;  %450 = vst [vmem:[#allocation2 + $0xb8] sm:$0xf] %v10428_v55  ;;  %454 = vst [vmem:[#allocation2 + $0xc8] sm:$0x1] %v10432_v40  ;;  %v941_v50 = vshll.u32 %v10983_v35, 16 }
  0x56   :  { %v907_v63 = vrot.slane %v905_v53, 1  ;;  %v10434_v43 = vpack.c.bf16 %v136_v37, %v136_v37  ;;  %v938_v53 = vrot.slane %v936_v38, 1  ;;  %v11031_v55 = vld [vmem:[%s15936_s1 + $0x1f4] ss:$8 sps:$4 sm:$0xff]  }
  0x57   :  { %4430 = vmatpush1.bf16.msra.mxu0 %v10964_v62  ;;  %449 = vst [vmem:[#allocation2 + $0xb4] sm:$0xf] %v10427_v52  ;;  %451 = vst [vmem:[#allocation2 + $0xbc] sm:$0x1] %v10429_v56  ;;  %v912_v62 = vshll.u32 %v10973_v51, 16  ;;  %v10988_v51 = vld [vmem:[#allocation2 + $0x78] sm:$0xff]  }
  0x58   :  { %4431 = vmatprep.subr.bf16.mxu0 %v10972_v1  ;;  %v903_v1 = vor.u32 %v902_v59, %v898_v58  ;;  %456 = vst [vmem:[#allocation2 + $0xd0] sm:$0xf] %v10434_v43  ;;  %v11021_v52 = vld [vmem:[%s15936_s1 + $0x1e0] ss:$8 sps:$4 sm:$0xff]   ;;  %v948_v58 = vshll.u32 %v10988_v51, 16  ;;  %v11002_v38 = vld [vmem:[#allocation2 + $0x90] sm:$0xff]  }
  0x59   :  { %v10989_v56 = vld [vmem:[#allocation2 + $0x80] ss:$0 sps:$4 sm:$0x11]   ;;  %v11029_v59 = vld [vmem:[%s15936_s1 + $0x1f0] ss:$8 sps:$4 sm:$0xff]  }
  0x5a   :  { %4269 = vmatmul.mubr.bf16.gmra.mrb[12].mxu0 %v10951_v10  ;;  %v908_v9 = vsel %vm824_vm0, %v903_v1, %v907_v63  ;;  %v11005_v10 = vld [vmem:[%s15936_s1 + $0x1b4] ss:$8 sps:$4 sm:$0xff]   ;;  %v950_v1 = vrot.slane %v948_v58, 1  ;;  %v11013_v34 = vld [vmem:[#allocation2 + $0xb0] ss:$0 sps:$4 sm:$0x11]  }
  0x5b   :  { %4278 = vmatprep.mubr.bf16.mxu0 %v884_v15  ;;  %4432 = vmatpush1.bf16.msra.mxu0 %v10970_v5  ;;  %v914_v5 = vrot.slane %v912_v62, 1  ;;  %v10981_v62 = vld [vmem:[#allocation2 + $0x60] sm:$0xff]   ;;  %v1001_v42 = vshll.u32 %v11013_v34, 16 }
  0x5c   :  { %4433 = vmatprep.subr.bf16.mxu0 %v10980_v12  ;;  %v924_v12 = vshll.u32 %v10976_v7, 16  ;;  %v11045_v34 = vld [vmem:[#allocation2 + $0x24] sm:$0xff]  }
  0x5d   :  { %v915_v15 = vor.u32 %v914_v5, %v910_v4 }
  0x5e   :  { %v926_v24 = vrot.slane %v924_v12, 1  ;;  %v965_v12 = vshll.u32 %v10995_v6, 16  ;;  %v11018_v43 = vld [vmem:[#allocation2 + $0xb4] sm:$0xff]  }
  0x5f   :  { %4434 = vmatpush1.bf16.msra.mxu0 %v10978_v26  ;;  %v132_v26 = vmax.f32 %v72_v18, 0.0  ;;  %v920_v29 = vsel %vm824_vm0, %v915_v15, %v919_v16  ;;  %v11001_v16 = vld [vmem:[#allocation2 + $0x98] ss:$0 sps:$4 sm:$0x11]  }
  0x60   :  { %4435 = vmatprep.subr.bf16.mxu0 %v10987_v30  ;;  %v929_v30 = vshll.u32 %v10977_v11, 16  ;;  %v927_v44 = vor.u32 %v926_v24, %v922_v21  ;;  %v967_v15 = vrot.slane %v965_v12, 1  ;;  %v10990_v18 = vld [vmem:[#allocation2 + $0x78] sm:$0xff]  }
  0x61   :  { %v10485_v36 = vpack.c.bf16 %v133_v27, %v132_v26  ;;  %v11007_v26 = vld [vmem:[#allocation2 + $0xa4] ss:$0 sps:$4 sm:$0x11]   ;;  %v984_v27 = vshll.u32 %v11006_v23, 16 }
  0x62   :  { %4279 = vmatmul.mubr.bf16.gmra.mrb[16].mxu0 %v10957_v41  ;;  %v137_v41 = vmax.f32 %v77_v33, 0.0  ;;  %v931_v45 = vrot.slane %v929_v30, 1  ;;  %v989_v32 = vshll.u32 %v11007_v26, 16  ;;  %v11012_v33 = vld [vmem:[#allocation2 + $0xa8] sm:$0xff]  }
  0x63   :  { %4288 = vmatprep.mubr.bf16.mxu0 %v896_v57  ;;  %4436 = vmatpush1.bf16.msra.mxu0 %v10985_v54  ;;  %10499 = vst [vmem:[#allocation2 + $0xc0] sm:$0xff] %v10485_v36   ;;  %v943_v57 = vrot.slane %v941_v50, 1  ;;  %v986_v31 = vrot.slane %v984_v27, 1  ;;  %v996_v37 = vshll.u32 %v11012_v33, 16  ;;  %v994_v40 = vshrl.u32 %v11012_v33, 16 }
  0x64   :  { %4437 = vmatprep.subr.bf16.mxu0 %v10993_v60  ;;  %v10435_v47 = vpack.c.bf16 %v137_v41, %v137_v41  ;;  %v932_v54 = vsel %vm824_vm0, %v927_v44, %v931_v45  ;;  %v939_v60 = vor.u32 %v938_v53, %v934_v49  ;;  %v991_v36 = vrot.slane %v989_v32, 1  ;;  %v11019_v44 = vld [vmem:[#allocation2 + $0xbc] ss:$0 sps:$4 sm:$0x11]   ;;  %v11042_v32 = vld [vmem:[%s15936_s1 + $0x210] ss:$8 sps:$4 sm:$0xff]  }
  0x65   :  { %v998_v41 = vrot.slane %v996_v37, 1  ;;  %v1006_v49 = vshrl.u32 %v11018_v43, 16  ;;  %v1013_v50 = vshll.u32 %v11019_v44, 16  ;;  %v11044_v27 = vld [vmem:[%s15936_s1 + $0x214] ss:$8 sps:$4 sm:$0xff]  }
  0x66   :  { %457 = vst [vmem:[#allocation2 + $0xd4] sm:$0x1] %v10435_v47  ;;  %v944_v63 = vsel %vm824_vm0, %v939_v60, %v943_v57  ;;  %v1008_v47 = vshll.u32 %v11018_v43, 16  ;;  %v11014_v57 = vld [vmem:[#allocation2 + $0xa8] sm:$0xff]   ;;  %v11051_v44 = vld [vmem:[#allocation2 + $0x30] sm:$0xff]  }
  0x67   :  { %4438 = vmatpush1.bf16.msra.mxu0 %v10991_v0  ;;  %v946_v0 = vshrl.u32 %v10988_v51, 16  ;;  %v999_v45 = vor.u32 %v998_v41, %v994_v40  ;;  %v11027_v60 = vld [vmem:[#allocation2 + $0xcc] sm:$0xff]   ;;  %v11048_v37 = vld [vmem:[%s15936_s1 + $0x220] ss:$8 sps:$4 sm:$0xff]  }
  0x68   :  { %4439 = vmatprep.subr.bf16.mxu0 %v10999_v2  ;;  %v953_v2 = vshll.u32 %v10989_v56, 16  ;;  %v1010_v53 = vrot.slane %v1008_v47, 1  ;;  %v11050_v33 = vld [vmem:[%s15936_s1 + $0x224] ss:$8 sps:$4 sm:$0xff]   ;;  %v11060_v47 = vld [vmem:[%s15936_s1 + $0x240] ss:$8 sps:$4 sm:$0xff]  }
  0x69   :  { %v951_v4 = vor.u32 %v950_v1, %v946_v0  ;;  %v1032_v1 = vshll.u32 %v11027_v60, 16  ;;  %v11062_v43 = vld [vmem:[%s15936_s1 + $0x244] ss:$8 sps:$4 sm:$0xff]  }
  0x6a   :  { %4289 = vmatmul.mubr.bf16.gmra.mrb[20].mxu0 %v10963_v3  ;;  %v10994_v3 = vld [vmem:[#allocation2 + $0x84] sm:$0xff]   ;;  %v955_v5 = vrot.slane %v953_v2, 1  ;;  %v1011_v58 = vor.u32 %v1010_v53, %v1006_v49 }
  0x6b   :  { %4298 = vmatprep.mubr.bf16.mxu0 %v908_v9  ;;  %4440 = vmatpush1.bf16.msra.mxu0 %v10997_v8  ;;  %v960_v7 = vshll.u32 %v10994_v3, 16  ;;  %v10984_v8 = vld [vmem:[#allocation2 + $0x6c] sm:$0xff]   ;;  %v11024_v51 = vld [vmem:[#allocation2 + $0xc0] sm:$0xff]   ;;  %v1034_v6 = vrot.slane %v1032_v1, 1 }
  0x6c   :  { %4441 = vmatprep.subr.bf16.mxu0 %v11005_v10  ;;  %v956_v9 = vsel %vm824_vm0, %v951_v4, %v955_v5  ;;  %v958_v10 = vshrl.u32 %v10994_v3, 16  ;;  %v1020_v56 = vshll.u32 %v11024_v51, 16  ;;  %v11020_v4 = vld [vmem:[#allocation2 + $0xb4] sm:$0xff]   ;;  %v1030_v5 = vshrl.u32 %v11027_v60, 16  ;;  %v11074_v53 = vld [vmem:[%s15936_s1 + $0x264] ss:$8 sps:$4 sm:$0xff]  }
  0x6d   :  { %v962_v11 = vrot.slane %v960_v7, 1  ;;  %v11028_v0 = vld [vmem:[#allocation2 + $0xd4] ss:$0 sps:$4 sm:$0x11]   ;;  %v11064_v1 = vld [vmem:[#allocation2 + $0x3c] sm:$0xfe]  }
  0x6e   :  { %v1037_v7 = vshll.u32 %v11028_v0, 16  ;;  %v11063_v0 = vld [vmem:[#allocation2 + $0x48] sm:$0xff]  }
  0x6f   :  { %4442 = vmatpush1.bf16.msra.mxu0 %v11003_v13  ;;  %v11000_v13 = vld [vmem:[#allocation2 + $0x90] sm:$0xff]  }
  0x70   :  { %4443 = vmatprep.subr.bf16.mxu0 %v11011_v17  ;;  %v972_v17 = vshll.u32 %v11000_v13, 16 }
  0x72   :  { %4299 = vmatmul.mubr.bf16.gmra.mrb[24].mxu0 %v10969_v14  ;;  %v963_v14 = vor.u32 %v962_v11, %v958_v10  ;;  %v974_v21 = vrot.slane %v972_v17, 1  ;;  %v1039_v10 = vrot.slane %v1037_v7, 1  ;;  %v11026_v11 = vld [vmem:[#allocation2 + $0xc0] sm:$0xff]  }
  0x73   :  { %4308 = vmatprep.mubr.bf16.mxu0 %v920_v29  ;;  %4444 = vmatpush1.bf16.msra.mxu0 %v11009_v20  ;;  %v970_v20 = vshrl.u32 %v11000_v13, 16  ;;  %v982_v29 = vshrl.u32 %v11006_v23, 16  ;;  %v11032_v13 = vld [vmem:[#allocation2 + $0xcc] sm:$0xff]   ;;  %v11039_v23 = vld [vmem:[#allocation2 + $0x18] sm:$0xff]  }
  0x74   :  { %4445 = vmatprep.subr.bf16.mxu0 %v11017_v22  ;;  %v968_v19 = vsel %vm824_vm0, %v963_v14, %v967_v15  ;;  %v977_v22 = vshll.u32 %v11001_v16, 16  ;;  %v11033_v14 = vld [vmem:[#allocation2 + $0xc] sm:$0xff]   ;;  %v11034_v15 = vld [vmem:[#allocation2] sm:$0xfe]  }
  0x75   :  { %v975_v24 = vor.u32 %v974_v21, %v970_v20  ;;  %v987_v35 = vor.u32 %v986_v31, %v982_v29  ;;  %v11035_v16 = vld [vmem:[#allocation2 + $0x8] ss:$0 sps:$4 sm:$0x11]   ;;  %v1276_v17 = vrot.slane %v11034_v15, 1  ;;  %v79_v20 = vld [vmem:[%s15937_s0 + $0x1b8] sm:$0xff] }
  0x76   :  { %v979_v25 = vrot.slane %v977_v22, 1  ;;  %v11036_v22 = vld [vmem:[%s15936_s1 + $0x200] ss:$8 sps:$4 sm:$0xff]   ;;  %v139_v26 = vmax.f32 %v79_v20, 0.0 }
  0x77   :  { %4446 = vmatpush1.bf16.msra.mxu0 %v11015_v39  ;;  %v992_v39 = vsel %vm824_vm0, %v987_v35, %v991_v36  ;;  %v11046_v35 = vld [vmem:[#allocation2 + $0x18] sm:$0xfe]   ;;  %v11047_v36 = vld [vmem:[#allocation2 + $0x20] ss:$0 sps:$4 sm:$0x11]  }
  0x78   :  { %4447 = vmatprep.subr.bf16.mxu0 %v11023_v46  ;;  %v980_v30 = vsel %vm824_vm0, %v975_v24, %v979_v25  ;;  %v1003_v46 = vrot.slane %v1001_v42, 1  ;;  %v11040_v24 = vld [vmem:[#allocation2 + $0xc] sm:$0xfe]   ;;  %v11041_v25 = vld [vmem:[#allocation2 + $0x14] ss:$0 sps:$4 sm:$0x11]  }
  0x79   :  { %v1280_v31 = vrot.slane %v11041_v25, 1  ;;  %v1282_v40 = vrot.slane %v11046_v35, 1  ;;  %v1283_v41 = vrot.slane %v11047_v36, 1  ;;  %v11054_v42 = vld [vmem:[%s15936_s1 + $0x230] ss:$8 sps:$4 sm:$0xff]   ;;  %v11075_v20 = vld [vmem:[#allocation2 + $0x60] sm:$0xff]  }
  0x7a   :  { %4309 = vmatmul.mubr.bf16.gmra.mrb[28].mxu0 %v10975_v48  ;;  %v11008_v48 = vld [vmem:[#allocation2 + $0x9c] sm:$0xff]  }
  0x7b   :  { %4318 = vmatprep.mubr.bf16.mxu0 %v932_v54  ;;  %4448 = vmatpush1.bf16.msra.mxu0 %v11021_v52  ;;  %v1004_v52 = vsel %vm824_vm0, %v999_v45, %v1003_v46  ;;  %v1015_v54 = vrot.slane %v1013_v50, 1  ;;  %v11052_v45 = vld [vmem:[#allocation2 + $0x24] sm:$0xfe]   ;;  %v11053_v46 = vld [vmem:[#allocation2 + $0x2c] ss:$0 sps:$4 sm:$0x11]   ;;  %v1284_v49 = vsel %vm1275_vm1, %v1282_v40, %v1283_v41 }
  0x7c   :  { %4449 = vmatprep.subr.bf16.mxu0 %v11031_v55  ;;  %v11025_v55 = vld [vmem:[#allocation2 + $0xc8] ss:$0 sps:$4 sm:$0x11]   ;;  %v1285_v50 = vrot.slane %v11052_v45, 1  ;;  %v11084_v40 = vld [vmem:[#allocation2 + $0x78] sm:$0xff]  }
  0x7d   :  { %v11085_v41 = vld [vmem:[#allocation2 + $0x6c] sm:$0xfe]  }
  0x7f   :  { %4450 = vmatpush1.bf16.msra.mxu0 %v11029_v59  ;;  %v1018_v59 = vshrl.u32 %v11024_v51, 16  ;;  %v1286_v51 = vrot.slane %v11053_v46, 1  ;;  %v11090_v46 = vld [vmem:[#allocation2 + $0x84] sm:$0xff]  }
  0x80   :  { %4632 = vmatprep.subr.bf16.mxu0 %v11038_v61  ;;  %v1025_v61 = vshll.u32 %v11025_v55, 16  ;;  %v11058_v55 = vld [vmem:[#allocation2 + $0x30] sm:$0xfe]  }
  0x81   :  { %v1288_v60 = vrot.slane %v11058_v55, 1 }
  0x82   :  { %4319 = vmatmul.mubr.bf16.gmra.mrb[32].mxu0 %v10981_v62  ;;  %v1016_v62 = vsel %vm824_vm0, %v1011_v58, %v1015_v54  ;;  %v1027_v3 = vrot.slane %v1025_v61, 1  ;;  %v11057_v54 = vld [vmem:[#allocation2 + $0x3c] sm:$0xff]  }
  0x83   :  { %4328 = vmatprep.mubr.bf16.mxu0 %v944_v63  ;;  %v1022_v63 = vrot.slane %v1020_v56, 1  ;;  %v11059_v56 = vld [vmem:[#allocation2 + $0x38] ss:$0 sps:$4 sm:$0x11]   ;;  %v11081_v58 = vld [vmem:[%s15936_s1 + $0x274] ss:$8 sps:$4 sm:$0xff]  }
  0x84   :  { %v1289_v61 = vrot.slane %v11059_v56, 1 }
  0x85   :  { %v1023_v2 = vor.u32 %v1022_v63, %v1018_v59  ;;  %v1287_v59 = vsel %vm1275_vm1, %v1285_v50, %v1286_v51  ;;  %v11089_v63 = vld [vmem:[%s15936_s1 + $0x284] ss:$8 sps:$4 sm:$0xff]  }
  0x8a   :  { %4329 = vmatmul.mubr.bf16.gmra.mrb[36].mxu0 %v10984_v8  ;;  %v1028_v8 = vsel %vm824_vm0, %v1023_v2, %v1027_v3  ;;  %v11065_v2 = vld [vmem:[#allocation2 + $0x44] ss:$0 sps:$4 sm:$0x11]   ;;  %v11087_v3 = vld [vmem:[%s15936_s1 + $0x280] ss:$8 sps:$4 sm:$0xff]  }
  0x8b   :  { %4338 = vmatprep.mubr.bf16.mxu0 %v956_v9  ;;  %v1035_v9 = vor.u32 %v1034_v6, %v1030_v5  ;;  %v1290_v5 = vsel %vm1275_vm1, %v1288_v60, %v1289_v61  ;;  %v1291_v6 = vrot.slane %v11064_v1, 1  ;;  %v1292_v7 = vrot.slane %v11065_v2, 1  ;;  %v11103_v61 = vld [vmem:[#allocation2 + $0x90] sm:$0xfe]   ;;  %v11108_v1 = vld [vmem:[#allocation2 + $0xa8] sm:$0xff]  }
  0x8d   :  { %v1040_v12 = vsel %vm824_vm0, %v1035_v9, %v1039_v10  ;;  %v11101_v9 = vld [vmem:[%s15936_s1 + $0x2a4] ss:$8 sps:$4 sm:$0xff]   ;;  %v11069_v10 = vld [vmem:[#allocation2 + $0x54] sm:$0xff]   ;;  %v1293_v15 = vsel %vm1275_vm1, %v1291_v6, %v1292_v7  ;;  %v11116_v6 = vld [vmem:[#allocation2 + $0xb0] ss:$0 sps:$4 sm:$0x11]  }
  0x8e   :  { %v11114_v7 = vld [vmem:[#allocation2 + $0xb4] sm:$0xff]  }
  0x92   :  { %4339 = vmatmul.mubr.bf16.gmra.mrb[40].mxu0 %v10990_v18  ;;  %v1277_v18 = vrot.slane %v11035_v16, 1 }
  0x93   :  { %4348 = vmatprep.mubr.bf16.mxu0 %v968_v19  ;;  %v78_v19 = vld [vmem:[%s15937_s0 + $0x1b0] sm:$0xff] }
  0x94   :  { %v138_v21 = vmax.f32 %v78_v19, 0.0  ;;  %v11113_v19 = vld [vmem:[%s15936_s1 + $0x2c4] ss:$8 sps:$4 sm:$0xff]  }
  0x96   :  { %v10490_v29 = vpack.c.bf16 %v139_v26, %v138_v21  ;;  %v11076_v21 = vld [vmem:[#allocation2 + $0x54] sm:$0xfe]  }
  0x97   :  { %v1297_v26 = vrot.slane %v11076_v21, 1  ;;  %v11127_v21 = vld [vmem:[#allocation2 + $0xc0] sm:$0xfe]  }
  0x98   :  { %10500 = vst [vmem:[#allocation2 + $0xd8] sm:$0xff] %v10490_v29   ;;  %v11125_v29 = vld [vmem:[%s15936_s1 + $0x2e4] ss:$8 sps:$4 sm:$0xff]  }
  0x9a   :  { %4349 = vmatmul.mubr.bf16.gmra.mrb[44].mxu0 %v10996_v28  ;;  %v1278_v28 = vsel %vm1275_vm1, %v1276_v17, %v1277_v18  ;;  %v11105_v18 = vld [vmem:[%s15936_s1 + $0x2b0] ss:$8 sps:$4 sm:$0xff]  }
  0x9b   :  { %4358 = vmatprep.mubr.bf16.mxu0 %v980_v30  ;;  %v1279_v30 = vrot.slane %v11040_v24, 1  ;;  %v11119_v24 = vld [vmem:[%s15936_s1 + $0x2d4] ss:$8 sps:$4 sm:$0xff]  }
  0xa2   :  { %4359 = vmatmul.mubr.bf16.gmra.mrb[48].mxu0 %v11002_v38  ;;  %v1281_v38 = vsel %vm1275_vm1, %v1279_v30, %v1280_v31  ;;  %v11078_v30 = vld [vmem:[#allocation2 + $0x6c] sm:$0xff]   ;;  %v11082_v31 = vld [vmem:[#allocation2 + $0x60] sm:$0xfe]  }
  0xa3   :  { %4368 = vmatprep.mubr.bf16.mxu0 %v992_v39  ;;  %v11056_v39 = vld [vmem:[%s15936_s1 + $0x234] ss:$8 sps:$4 sm:$0xff]   ;;  %v1300_v36 = vrot.slane %v11082_v31, 1 }
  0xaa   :  { %4369 = vmatmul.mubr.bf16.gmra.mrb[52].mxu0 %v11008_v48  ;;  %v11068_v48 = vld [vmem:[%s15936_s1 + $0x254] ss:$8 sps:$4 sm:$0xff]  }
  0xab   :  { %4378 = vmatprep.mubr.bf16.mxu0 %v1004_v52  ;;  %v11066_v52 = vld [vmem:[%s15936_s1 + $0x250] ss:$8 sps:$4 sm:$0xff]  }
  0xb2   :  { %4379 = vmatmul.mubr.bf16.gmra.mrb[56].mxu0 %v11014_v57  ;;  %v11072_v57 = vld [vmem:[%s15936_s1 + $0x260] ss:$8 sps:$4 sm:$0xff]  }
  0xb3   :  { %4388 = vmatprep.mubr.bf16.mxu0 %v1016_v62  ;;  %v11079_v62 = vld [vmem:[%s15936_s1 + $0x270] ss:$8 sps:$4 sm:$0xff]  }
  0xba   :  { %4389 = vmatmul.mubr.bf16.gmra.mrb[60].mxu0 %v11020_v4  ;;  %v11095_v4 = vld [vmem:[%s15936_s1 + $0x294] ss:$8 sps:$4 sm:$0xff]  }
  0xbb   :  { %4398 = vmatprep.mubr.bf16.mxu0 %v1028_v8  ;;  %v11093_v8 = vld [vmem:[%s15936_s1 + $0x290] ss:$8 sps:$4 sm:$0xff]  }
  0xc2   :  { %4399 = vmatmul.mubr.bf16.gmra.mrb[64].mxu0 %v11026_v11  ;;  %v11070_v11 = vld [vmem:[#allocation2 + $0x48] sm:$0xfe]  }
  0xc3   :  { %4408 = vmatprep.mubr.bf16.mxu0 %v1040_v12  ;;  %v11071_v12 = vld [vmem:[#allocation2 + $0x50] ss:$0 sps:$4 sm:$0x11]   ;;  %v1294_v16 = vrot.slane %v11070_v11, 1  ;;  %v1319_v11 = vrot.slane %v11116_v6, 1 }
  0xc4   :  { %v1295_v17 = vrot.slane %v11071_v12, 1  ;;  %v11122_v12 = vld [vmem:[#allocation2 + $0xbc] ss:$0 sps:$4 sm:$0x11]  }
  0xc6   :  { %v1296_v25 = vsel %vm1275_vm1, %v1294_v16, %v1295_v17  ;;  %v1322_v17 = vrot.slane %v11122_v12, 1  ;;  %v11153_v12 = vld [vmem:[%s15936_s1 + $0x320] ss:$8 sps:$4 sm:$0xff]  }
  0xca   :  { %4409 = vmatmul.mubr.bf16.gmra.mrb[68].mxu0 %v11032_v13  ;;  %v11099_v13 = vld [vmem:[%s15936_s1 + $0x2a0] ss:$8 sps:$4 sm:$0xff]  }
  0xcb   :  { %4451 = vmatprep.mubr.bf16.mxu0 %v11033_v14  ;;  %v11107_v14 = vld [vmem:[%s15936_s1 + $0x2b4] ss:$8 sps:$4 sm:$0xff]  }
  0xd2   :  { %4452 = vmatmul.mubr.bf16.vlgmr.msra.gmra.mrb[0].mxu0 %v1278_v28  ;;  %v11117_v28 = vld [vmem:[%s15936_s1 + $0x2d0] ss:$8 sps:$4 sm:$0xff]  }
  0xd3   :  { %4633 = vmatpush1.bf16.msra.mxu0 %v11036_v22  ;;  %4461 = vmatprep.mubr.bf16.mxu0 %v11039_v23  ;;  %v11077_v22 = vld [vmem:[#allocation2 + $0x5c] ss:$0 sps:$4 sm:$0x11]   ;;  %v11111_v23 = vld [vmem:[%s15936_s1 + $0x2c0] ss:$8 sps:$4 sm:$0xff]  }
  0xd4   :  { %4634 = vmatprep.subr.bf16.mxu0 %v11044_v27  ;;  %v1298_v27 = vrot.slane %v11077_v22, 1  ;;  %v1324_v22 = vrot.slane %v11127_v21, 1 }
  0xd6   :  { %v1299_v35 = vsel %vm1275_vm1, %v1297_v26, %v1298_v27  ;;  %v11134_v26 = vld [vmem:[#allocation2 + $0xd4] ss:$0 sps:$4 sm:$0x11]  }
  0xd7   :  { %4635 = vmatpush1.bf16.msra.mxu0 %v11042_v32  ;;  %v11083_v32 = vld [vmem:[#allocation2 + $0x68] ss:$0 sps:$4 sm:$0x11]   ;;  %v11136_v27 = vld [vmem:[#allocation2 + $0x14] ss:$0 sps:$4 sm:$0x11]  }
  0xd8   :  { %4636 = vmatprep.subr.bf16.mxu0 %v11050_v33  ;;  %v11123_v33 = vld [vmem:[%s15936_s1 + $0x2e0] ss:$8 sps:$4 sm:$0xff]  }
  0xda   :  { %4462 = vmatmul.mubr.bf16.gmra.mrb[4].mxu0 %v1281_v38  ;;  %v11130_v38 = vld [vmem:[%s15936_s1 + $0x2f0] ss:$8 sps:$4 sm:$0xff]  }
  0xdb   :  { %4471 = vmatprep.mubr.bf16.mxu0 %v11045_v34  ;;  %4637 = vmatpush1.bf16.msra.mxu0 %v11048_v37  ;;  %v11132_v34 = vld [vmem:[%s15936_s1 + $0x2f4] ss:$8 sps:$4 sm:$0xff]   ;;  %v1301_v37 = vrot.slane %v11083_v32, 1  ;;  %v1328_v32 = vrot.slane %v11134_v26, 1 }
  0xdc   :  { %4638 = vmatprep.subr.bf16.mxu0 %v11056_v39  ;;  %v11141_v39 = vld [vmem:[%s15936_s1 + $0x304] ss:$8 sps:$4 sm:$0xff]  }
  0xdf   :  { %4639 = vmatpush1.bf16.msra.mxu0 %v11054_v42  ;;  %v11086_v42 = vld [vmem:[#allocation2 + $0x74] ss:$0 sps:$4 sm:$0x11]  }
  0xe0   :  { %4640 = vmatprep.subr.bf16.mxu0 %v11062_v43  ;;  %v1302_v43 = vsel %vm1275_vm1, %v1300_v36, %v1301_v37  ;;  %v1304_v45 = vrot.slane %v11086_v42, 1  ;;  %v2178_v36 = vrot.slane %v11136_v27, 1  ;;  %v80_v42 = vld [vmem:[%s15937_s0 + $0x1c0] sm:$0x3] }
  0xe2   :  { %4472 = vmatmul.mubr.bf16.gmra.mrb[8].mxu0 %v1284_v49  ;;  %v11091_v49 = vld [vmem:[#allocation2 + $0x78] sm:$0xfe]  }
  0xe3   :  { %4481 = vmatprep.mubr.bf16.mxu0 %v11051_v44  ;;  %4641 = vmatpush1.bf16.msra.mxu0 %v11060_v47  ;;  %v1303_v44 = vrot.slane %v11085_v41, 1  ;;  %v11092_v47 = vld [vmem:[#allocation2 + $0x80] ss:$0 sps:$4 sm:$0x11]   ;;  %v1306_v50 = vrot.slane %v11091_v49, 1  ;;  %v11144_v41 = vld [vmem:[#allocation2 + $0x18] sm:$0xff]  }
  0xe4   :  { %4642 = vmatprep.subr.bf16.mxu0 %v11068_v48  ;;  %v1307_v51 = vrot.slane %v11092_v47, 1 }
  0xe5   :  { %v1305_v48 = vsel %vm1275_vm1, %v1303_v44, %v1304_v45  ;;  %v11142_v44 = vld [vmem:[#allocation2 + $0x18] sm:$0xfe]   ;;  %v11143_v45 = vld [vmem:[#allocation2 + $0x20] ss:$0 sps:$4 sm:$0x11]  }
  0xe6   :  { %v1308_v55 = vsel %vm1275_vm1, %v1306_v50, %v1307_v51  ;;  %v11145_v50 = vld [vmem:[#allocation2 + $0x20] ss:$0 sps:$4 sm:$0x11]   ;;  %v1742_v51 = vshll.u32 %v11144_v41, 16 }
  0xe7   :  { %4643 = vmatpush1.bf16.msra.mxu0 %v11066_v52  ;;  %v11096_v52 = vld [vmem:[#allocation2 + $0x90] sm:$0xff]  }
  0xe8   :  { %4644 = vmatprep.subr.bf16.mxu0 %v11074_v53  ;;  %v11098_v53 = vld [vmem:[#allocation2 + $0x8c] ss:$0 sps:$4 sm:$0x11]  }
  0xea   :  { %4482 = vmatmul.mubr.bf16.gmra.mrb[12].mxu0 %v1287_v59  ;;  %v11104_v59 = vld [vmem:[#allocation2 + $0x98] ss:$0 sps:$4 sm:$0x11]  }
  0xeb   :  { %4491 = vmatprep.mubr.bf16.mxu0 %v11057_v54  ;;  %4645 = vmatpush1.bf16.msra.mxu0 %v11072_v57  ;;  %v11097_v54 = vld [vmem:[#allocation2 + $0x84] sm:$0xfe]   ;;  %v1310_v57 = vrot.slane %v11098_v53, 1  ;;  %v2181_v53 = vrot.slane %v11143_v45, 1 }
  0xec   :  { %4646 = vmatprep.subr.bf16.mxu0 %v11081_v58  ;;  %v1309_v56 = vrot.slane %v11097_v54, 1  ;;  %v11102_v58 = vld [vmem:[#allocation2 + $0x9c] sm:$0xff]   ;;  %v11183_v45 = vld [vmem:[%s15936_s1 + $0x364] ss:$8 sps:$4 sm:$0xff]  }
  0xed   :  { %v11139_v54 = vld [vmem:[%s15936_s1 + $0x300] ss:$8 sps:$4 sm:$0xff]  }
  0xee   :  { %v1311_v60 = vsel %vm1275_vm1, %v1309_v56, %v1310_v57  ;;  %v1740_v56 = vshrl.u32 %v11144_v41, 16  ;;  %v1744_v57 = vrot.slane %v1742_v51, 1  ;;  %v11172_v51 = vld [vmem:[#allocation2 + $0x48] sm:$0xff]  }
  0xef   :  { %4647 = vmatpush1.bf16.msra.mxu0 %v11079_v62  ;;  %v1312_v62 = vrot.slane %v11103_v61, 1 }
  0xf0   :  { %4648 = vmatprep.subr.bf16.mxu0 %v11089_v63  ;;  %v1313_v63 = vrot.slane %v11104_v59, 1  ;;  %v11148_v59 = vld [vmem:[%s15936_s1 + $0x314] ss:$8 sps:$4 sm:$0xff]  }
  0xf2   :  { %4492 = vmatmul.mubr.bf16.gmra.mrb[16].mxu0 %v1290_v5  ;;  %v1314_v2 = vsel %vm1275_vm1, %v1312_v62, %v1313_v63  ;;  %v11149_v62 = vld [vmem:[#allocation2 + $0x24] sm:$0xfe]   ;;  %v11150_v63 = vld [vmem:[#allocation2 + $0x2c] ss:$0 sps:$4 sm:$0x11]  }
  0xf3   :  { %4501 = vmatprep.mubr.bf16.mxu0 %v11063_v0  ;;  %4649 = vmatpush1.bf16.msra.mxu0 %v11087_v3  ;;  %v11110_v0 = vld [vmem:[#allocation2 + $0xa4] ss:$0 sps:$4 sm:$0x11]   ;;  %v11109_v3 = vld [vmem:[#allocation2 + $0x9c] sm:$0xfe]   ;;  %v2184_v6 = vrot.slane %v11150_v63, 1 }
  0xf4   :  { %4650 = vmatprep.subr.bf16.mxu0 %v11095_v4  ;;  %v1315_v4 = vrot.slane %v11109_v3, 1  ;;  %v1316_v5 = vrot.slane %v11110_v0, 1  ;;  %v11152_v0 = vld [vmem:[#allocation2 + $0x2c] ss:$0 sps:$4 sm:$0x11]  }
  0xf5   :  { %v11146_v3 = vld [vmem:[%s15936_s1 + $0x310] ss:$8 sps:$4 sm:$0xff]   ;;  %v11201_v63 = vld [vmem:[%s15936_s1 + $0x384] ss:$8 sps:$4 sm:$0xff]  }
  0xf7   :  { %4651 = vmatpush1.bf16.msra.mxu0 %v11093_v8  ;;  %v1317_v8 = vsel %vm1275_vm1, %v1315_v4, %v1316_v5  ;;  %v2183_v5 = vrot.slane %v11149_v62, 1 }
  0xf8   :  { %4652 = vmatprep.subr.bf16.mxu0 %v11101_v9  ;;  %v11115_v9 = vld [vmem:[#allocation2 + $0xa8] sm:$0xfe]  }
  0xfa   :  { %4502 = vmatmul.mubr.bf16.gmra.mrb[20].mxu0 %v1293_v15  ;;  %v11121_v15 = vld [vmem:[#allocation2 + $0xb4] sm:$0xfe]  }
  0xfb   :  { %4511 = vmatprep.mubr.bf16.mxu0 %v11069_v10  ;;  %4653 = vmatpush1.bf16.msra.mxu0 %v11099_v13  ;;  %v1318_v10 = vrot.slane %v11115_v9, 1  ;;  %v11120_v13 = vld [vmem:[#allocation2 + $0xc0] sm:$0xff]   ;;  %v1321_v16 = vrot.slane %v11121_v15, 1  ;;  %v1759_v9 = vshll.u32 %v11152_v0, 16  ;;  %v2185_v15 = vsel %vm1275_vm1, %v2183_v5, %v2184_v6  ;;  %v11179_v5 = vld [vmem:[#allocation2 + $0x54] sm:$0xff]  }
  0xfc   :  { %4654 = vmatprep.subr.bf16.mxu0 %v11107_v14  ;;  %v1788_v0 = vshrl.u32 %v11172_v51, 16  ;;  %v11199_v6 = vld [vmem:[%s15936_s1 + $0x380] ss:$8 sps:$4 sm:$0xff]  }
  0xfd   :  { %v1320_v14 = vsel %vm1275_vm1, %v1318_v10, %v1319_v11 }
  0xff   :  { %4655 = vmatpush1.bf16.msra.mxu0 %v11105_v18  ;;  %v11128_v18 = vld [vmem:[#allocation2 + $0xc8] ss:$0 sps:$4 sm:$0x11]  }
 0x100   :  { %4656 = vmatprep.subr.bf16.mxu0 %v11113_v19  ;;  %v11126_v19 = vld [vmem:[#allocation2 + $0xcc] sm:$0xff]  }
 0x102   :  { %4512 = vmatmul.mubr.bf16.gmra.mrb[24].mxu0 %v1296_v25  ;;  %v11133_v25 = vld [vmem:[#allocation2 + $0xcc] sm:$0xfe]  }
 0x103   :  { %4521 = vmatprep.mubr.bf16.mxu0 %v11075_v20  ;;  %4657 = vmatpush1.bf16.msra.mxu0 %v11111_v23  ;;  %v1323_v20 = vsel %vm1275_vm1, %v1321_v16, %v1322_v17  ;;  %v1325_v23 = vrot.slane %v11128_v18, 1  ;;  %v1327_v31 = vrot.slane %v11133_v25, 1  ;;  %v11157_v16 = vld [vmem:[#allocation2 + $0x38] ss:$0 sps:$4 sm:$0x11]  }
 0x104   :  { %4658 = vmatprep.subr.bf16.mxu0 %v11119_v24  ;;  %v11129_v24 = vld [vmem:[#allocation2 + $0xd8] sm:$0xff]   ;;  %v11169_v25 = vld [vmem:[%s15936_s1 + $0x344] ss:$8 sps:$4 sm:$0xff]  }
 0x105   :  { %v1329_v37 = vsel %vm1275_vm1, %v1327_v31, %v1328_v32  ;;  %v11162_v17 = vld [vmem:[%s15936_s1 + $0x334] ss:$8 sps:$4 sm:$0xff]   ;;  %v11159_v18 = vld [vmem:[#allocation2 + $0x38] ss:$0 sps:$4 sm:$0x11]  }
 0x106   :  { %v1771_v27 = vshll.u32 %v11159_v18, 16  ;;  %v11165_v31 = vld [vmem:[#allocation2 + $0x3c] sm:$0xff]  }
 0x107   :  { %4659 = vmatpush1.bf16.msra.mxu0 %v11117_v28  ;;  %v11137_v28 = vld [vmem:[#allocation2 + $0xc] sm:$0xff]   ;;  %v11167_v32 = vld [vmem:[%s15936_s1 + $0x340] ss:$8 sps:$4 sm:$0xff]   ;;  %v1778_v41 = vshll.u32 %v11165_v31, 16 }
 0x108   :  { %4660 = vmatprep.subr.bf16.mxu0 %v11125_v29  ;;  %v1326_v29 = vsel %vm1275_vm1, %v1324_v22, %v1325_v23  ;;  %v11160_v22 = vld [vmem:[%s15936_s1 + $0x330] ss:$8 sps:$4 sm:$0xff]  }
 0x10a   :  { %4522 = vmatmul.mubr.bf16.gmra.mrb[28].mxu0 %v1299_v35 }
 0x10b   :  { %4531 = vmatprep.mubr.bf16.mxu0 %v11078_v30  ;;  %4661 = vmatpush1.bf16.msra.mxu0 %v11123_v33  ;;  %v11135_v30 = vld [vmem:[#allocation2 + $0xc] sm:$0xfe]   ;;  %v11138_v33 = vld [vmem:[#allocation2 + $0x14] ss:$0 sps:$4 sm:$0x11]  }
 0x10c   :  { %4662 = vmatprep.subr.bf16.mxu0 %v11132_v34  ;;  %v1730_v34 = vshll.u32 %v11137_v28, 16  ;;  %v2177_v35 = vrot.slane %v11135_v30, 1  ;;  %v11163_v30 = vld [vmem:[#allocation2 + $0x3c] sm:$0xfe]  }
 0x10f   :  { %4663 = vmatpush1.bf16.msra.mxu0 %v11130_v38  ;;  %v1728_v38 = vshrl.u32 %v11137_v28, 16 }
 0x110   :  { %4845 = vmatprep.subr.bf16.mxu0 %v11141_v39  ;;  %v1732_v39 = vrot.slane %v1730_v34, 1  ;;  %v11164_v34 = vld [vmem:[#allocation2 + $0x44] ss:$0 sps:$4 sm:$0x11]  }
 0x112   :  { %4532 = vmatmul.mubr.bf16.gmra.mrb[32].mxu0 %v1302_v43  ;;  %v2179_v43 = vsel %vm1275_vm1, %v2177_v35, %v2178_v36  ;;  %v11176_v35 = vld [vmem:[%s15936_s1 + $0x354] ss:$8 sps:$4 sm:$0xff]   ;;  %v11166_v36 = vld [vmem:[#allocation2 + $0x44] ss:$0 sps:$4 sm:$0x11]  }
 0x113   :  { %4541 = vmatprep.mubr.bf16.mxu0 %v11084_v40  ;;  %v1735_v40 = vshll.u32 %v11138_v33, 16 }
 0x115   :  { %v1737_v49 = vrot.slane %v1735_v40, 1  ;;  %v1773_v40 = vrot.slane %v1771_v27, 1 }
 0x11a   :  { %4542 = vmatmul.mubr.bf16.gmra.mrb[36].mxu0 %v1305_v48  ;;  %v1733_v48 = vor.u32 %v1732_v39, %v1728_v38  ;;  %v12262_v38 = vld [vmem:[%s15936_s1 + $0x404] ss:$8 sps:$4 sm:$0xff]  }
 0x11b   :  { %4551 = vmatprep.mubr.bf16.mxu0 %v11090_v46  ;;  %v140_v46 = vmax.f32 %v80_v42, 0.0  ;;  %v11174_v42 = vld [vmem:[%s15936_s1 + $0x350] ss:$8 sps:$4 sm:$0xff]   ;;  %10501 = vmatprep.subr.bf16.mxu1 %v12262_v38 }
 0x11d   :  { %v10438_v47 = vpack.c.bf16 %v140_v46, %v140_v46  ;;  %v1776_v46 = vshrl.u32 %v11165_v31, 16 }
 0x11f   :  { %460 = vst [vmem:[#allocation2 + $0xe0] sm:$0x1] %v10438_v47  ;;  %v1783_v47 = vshll.u32 %v11166_v36, 16 }
 0x122   :  { %4552 = vmatmul.mubr.bf16.gmra.mrb[40].mxu0 %v1308_v55  ;;  %v1738_v55 = vsel %vm824_vm0, %v1733_v48, %v1737_v49  ;;  %v1780_v49 = vrot.slane %v1778_v41, 1 }
 0x123   :  { %4561 = vmatprep.mubr.bf16.mxu0 %v11096_v52  ;;  %v2180_v52 = vrot.slane %v11142_v44, 1  ;;  %v2190_v44 = vrot.slane %v11164_v34, 1  ;;  %v11220_v34 = vld [vmem:[%s15936_s1 + $0x3b0] ss:$8 sps:$4 sm:$0xff]  }
 0x125   :  { %v2182_v61 = vsel %vm1275_vm1, %v2180_v52, %v2181_v53  ;;  %v11181_v52 = vld [vmem:[%s15936_s1 + $0x360] ss:$8 sps:$4 sm:$0xff]  }
 0x12a   :  { %4562 = vmatmul.mubr.bf16.gmra.mrb[44].mxu0 %v1311_v60  ;;  %v11151_v60 = vld [vmem:[#allocation2 + $0x24] sm:$0xff]  }
 0x12b   :  { %4571 = vmatprep.mubr.bf16.mxu0 %v11102_v58  ;;  %v1747_v58 = vshll.u32 %v11145_v50, 16  ;;  %v1754_v4 = vshll.u32 %v11151_v60, 16  ;;  %v11170_v50 = vld [vmem:[#allocation2 + $0x48] sm:$0xfe]  }
 0x12d   :  { %v1756_v11 = vrot.slane %v1754_v4, 1  ;;  %v11177_v4 = vld [vmem:[#allocation2 + $0x54] sm:$0xfe]  }
 0x132   :  { %4572 = vmatmul.mubr.bf16.gmra.mrb[48].mxu0 %v1314_v2  ;;  %v1749_v2 = vrot.slane %v1747_v58, 1  ;;  %v1785_v58 = vrot.slane %v1783_v47, 1 }
 0x133   :  { %4581 = vmatprep.mubr.bf16.mxu0 %v11108_v1  ;;  %v1745_v1 = vor.u32 %v1744_v57, %v1740_v56  ;;  %v11173_v56 = vld [vmem:[#allocation2 + $0x50] ss:$0 sps:$4 sm:$0x11]   ;;  %v1781_v57 = vor.u32 %v1780_v49, %v1776_v46  ;;  %v11227_v46 = vld [vmem:[%s15936_s1 + $0x3c0] ss:$8 sps:$4 sm:$0xff]  }
 0x134   :  { %v11236_v49 = vld [vmem:[%s15936_s1 + $0x3d4] ss:$8 sps:$4 sm:$0xff]  }
 0x135   :  { %v1750_v10 = vsel %vm824_vm0, %v1745_v1, %v1749_v2  ;;  %v1795_v1 = vshll.u32 %v11173_v56, 16  ;;  %v1786_v2 = vsel %vm824_vm0, %v1781_v57, %v1785_v58  ;;  %v11234_v57 = vld [vmem:[%s15936_s1 + $0x3d0] ss:$8 sps:$4 sm:$0xff]  }
 0x13a   :  { %4582 = vmatmul.mubr.bf16.gmra.mrb[52].mxu0 %v1317_v8  ;;  %v1752_v8 = vshrl.u32 %v11151_v60, 16  ;;  %v11190_v60 = vld [vmem:[%s15936_s1 + $0x370] ss:$8 sps:$4 sm:$0xff]  }
 0x13b   :  { %4591 = vmatprep.mubr.bf16.mxu0 %v11114_v7  ;;  %v11155_v7 = vld [vmem:[%s15936_s1 + $0x324] ss:$8 sps:$4 sm:$0xff]  }
 0x142   :  { %4592 = vmatmul.mubr.bf16.gmra.mrb[56].mxu0 %v1320_v14  ;;  %v11158_v14 = vld [vmem:[#allocation2 + $0x30] sm:$0xff]  }
 0x143   :  { %4601 = vmatprep.mubr.bf16.mxu0 %v11120_v13  ;;  %v11156_v13 = vld [vmem:[#allocation2 + $0x30] sm:$0xfe]   ;;  %v1766_v21 = vshll.u32 %v11158_v14, 16  ;;  %v1764_v26 = vshrl.u32 %v11158_v14, 16  ;;  %v1797_v14 = vrot.slane %v1795_v1, 1 }
 0x144   :  { %v2186_v23 = vrot.slane %v11156_v13, 1 }
 0x14a   :  { %4602 = vmatmul.mubr.bf16.gmra.mrb[60].mxu0 %v1323_v20  ;;  %v1761_v20 = vrot.slane %v1759_v9, 1  ;;  %v11208_v9 = vld [vmem:[%s15936_s1 + $0x394] ss:$8 sps:$4 sm:$0xff]  }
 0x14b   :  { %4611 = vmatprep.mubr.bf16.mxu0 %v11126_v19  ;;  %v1757_v19 = vor.u32 %v1756_v11, %v1752_v8  ;;  %v11178_v8 = vld [vmem:[#allocation2 + $0x5c] ss:$0 sps:$4 sm:$0x11]   ;;  %v12297_v11 = vld [vmem:[%s15936_s1 + $0x410] ss:$8 sps:$4 sm:$0xff]  }
 0x14c   :  { %v2196_v18 = vrot.slane %v11178_v8, 1 }
 0x14d   :  { %v1762_v28 = vsel %vm824_vm0, %v1757_v19, %v1761_v20  ;;  %v11215_v19 = vld [vmem:[%s15936_s1 + $0x3a4] ss:$8 sps:$4 sm:$0xff]   ;;  %v1800_v20 = vshrl.u32 %v11179_v5, 16 }
 0x152   :  { %4612 = vmatmul.mubr.bf16.gmra.mrb[64].mxu0 %v1326_v29  ;;  %v1768_v29 = vrot.slane %v1766_v21, 1 }
 0x153   :  { %4621 = vmatprep.mubr.bf16.mxu0 %v11129_v24  ;;  %v2187_v24 = vrot.slane %v11157_v16, 1  ;;  %v11206_v16 = vld [vmem:[%s15936_s1 + $0x390] ss:$8 sps:$4 sm:$0xff]  }
 0x154   :  { %v1769_v39 = vor.u32 %v1768_v29, %v1764_v26  ;;  %v11213_v26 = vld [vmem:[%s15936_s1 + $0x3a0] ss:$8 sps:$4 sm:$0xff]   ;;  %v11222_v29 = vld [vmem:[%s15936_s1 + $0x3b4] ss:$8 sps:$4 sm:$0xff]  }
 0x155   :  { %v2188_v33 = vsel %vm1275_vm1, %v2186_v23, %v2187_v24  ;;  %v11184_v24 = vld [vmem:[#allocation2 + $0x60] sm:$0xfe]  }
 0x156   :  { %v1774_v48 = vsel %vm824_vm0, %v1769_v39, %v1773_v40  ;;  %v11229_v39 = vld [vmem:[%s15936_s1 + $0x3c4] ss:$8 sps:$4 sm:$0xff]  }
 0x15a   :  { %4622 = vmatmul.mubr.bf16.gmra.mrb[68].mxu0 %v1329_v37  ;;  %v12257_v37 = vld [vmem:[%s15936_s1 + $0x400] ss:$8 sps:$4 sm:$0xff]  }
 0x15b   :  { %4664 = vmatprep.mubr.bf16.mxu0 %v2179_v43  ;;  %v2189_v43 = vrot.slane %v11163_v30, 1  ;;  %10509 = vmatpush1.bf16.msra.mxu1 %v12257_v37  ;;  %v11187_v30 = vld [vmem:[#allocation2 + $0x68] ss:$0 sps:$4 sm:$0x11]  }
 0x15c   :  { %v1819_v41 = vshll.u32 %v11187_v30, 16  ;;  %v12405_v30 = vld [vmem:[%s15936_s1 + $0x464] ss:$8 sps:$4 sm:$0xff]  }
 0x15d   :  { %v2191_v53 = vsel %vm1275_vm1, %v2189_v43, %v2190_v44  ;;  %v11188_v44 = vld [vmem:[#allocation2 + $0x6c] sm:$0xfe]  }
 0x15e   :  { %v2201_v58 = vrot.slane %v11188_v44, 1 }
 0x162   :  { %4665 = vmatmul.mubr.bf16.vlgmr.msra.gmra.mrb[0].mxu0 %v1738_v55  ;;  %v11192_v55 = vld [vmem:[%s15936_s1 + $0x374] ss:$8 sps:$4 sm:$0xff]  }
 0x163   :  { %4846 = vmatpush1.bf16.msra.mxu0 %v11139_v54  ;;  %4674 = vmatprep.mubr.bf16.mxu0 %v2182_v61  ;;  %v11171_v54 = vld [vmem:[#allocation2 + $0x50] ss:$0 sps:$4 sm:$0x11]   ;;  %v2192_v61 = vrot.slane %v11170_v50, 1 }
 0x164   :  { %4847 = vmatprep.subr.bf16.mxu0 %v11148_v59  ;;  %v1790_v59 = vshll.u32 %v11172_v51, 16  ;;  %v2193_v62 = vrot.slane %v11171_v54, 1  ;;  %v11194_v50 = vld [vmem:[#allocation2 + $0x74] ss:$0 sps:$4 sm:$0x11]  }
 0x165   :  { %v12337_v51 = vld [vmem:[%s15936_s1 + $0x424] ss:$8 sps:$4 sm:$0xff]  }
 0x167   :  { %4848 = vmatpush1.bf16.msra.mxu0 %v11146_v3  ;;  %v1792_v3 = vrot.slane %v1790_v59, 1 }
 0x168   :  { %4849 = vmatprep.subr.bf16.mxu0 %v11155_v7  ;;  %v2194_v7 = vsel %vm1275_vm1, %v2192_v61, %v2193_v62  ;;  %v1831_v61 = vshll.u32 %v11194_v50, 16  ;;  %v12360_v62 = vld [vmem:[%s15936_s1 + $0x430] ss:$8 sps:$4 sm:$0xff]  }
 0x169   :  { %v1793_v13 = vor.u32 %v1792_v3, %v1788_v0  ;;  %v11197_v3 = vld [vmem:[#allocation2 + $0x78] sm:$0xff]  }
 0x16a   :  { %4675 = vmatmul.mubr.bf16.gmra.mrb[4].mxu0 %v1750_v10  ;;  %v11180_v10 = vld [vmem:[#allocation2 + $0x5c] ss:$0 sps:$4 sm:$0x11]   ;;  %v1833_v8 = vrot.slane %v1831_v61, 1 }
 0x16b   :  { %4684 = vmatprep.mubr.bf16.mxu0 %v2185_v15  ;;  %4850 = vmatpush1.bf16.msra.mxu0 %v11153_v12  ;;  %v12302_v12 = vld [vmem:[%s15936_s1 + $0x414] ss:$8 sps:$4 sm:$0xff]   ;;  %v1802_v15 = vshll.u32 %v11179_v5, 16  ;;  %v1807_v21 = vshll.u32 %v11180_v10, 16  ;;  %v12380_v10 = vld [vmem:[%s15936_s1 + $0x440] ss:$8 sps:$4 sm:$0xff]  }
 0x16c   :  { %4851 = vmatprep.subr.bf16.mxu0 %v11162_v17  ;;  %v2195_v17 = vrot.slane %v11177_v4, 1  ;;  %10502 = vmatprep.subr.bf16.mxu1 %v12302_v12  ;;  %v11241_v4 = vld [vmem:[%s15936_s1 + $0x3e0] ss:$8 sps:$4 sm:$0xff]  }
 0x16d   :  { %10510 = vmatpush1.bf16.msra.mxu1 %v12297_v11  ;;  %v1804_v23 = vrot.slane %v1802_v15, 1  ;;  %v11198_v15 = vld [vmem:[#allocation2 + $0x80] ss:$0 sps:$4 sm:$0x11]  }
 0x16e   :  { %v2197_v27 = vsel %vm1275_vm1, %v2195_v17, %v2196_v18  ;;  %10503 = vmatprep.subr.bf16.mxu1 %v12337_v51  ;;  %v11250_v17 = vld [vmem:[%s15936_s1 + $0x3f0] ss:$8 sps:$4 sm:$0xff]  }
 0x16f   :  { %4852 = vmatpush1.bf16.msra.mxu0 %v11160_v22  ;;  %v1798_v22 = vsel %vm824_vm0, %v1793_v13, %v1797_v14  ;;  %v1805_v31 = vor.u32 %v1804_v23, %v1800_v20  ;;  %v12385_v13 = vld [vmem:[%s15936_s1 + $0x454] ss:$8 sps:$4 sm:$0xff]   ;;  %v12395_v20 = vld [vmem:[%s15936_s1 + $0x450] ss:$8 sps:$4 sm:$0xff]  }
 0x170   :  { %4853 = vmatprep.subr.bf16.mxu0 %v11169_v25  ;;  %v11186_v25 = vld [vmem:[#allocation2 + $0x60] sm:$0xff]  }
 0x171   :  { %v1812_v40 = vshrl.u32 %v11186_v25, 16 }
 0x172   :  { %4685 = vmatmul.mubr.bf16.gmra.mrb[8].mxu0 %v1762_v28  ;;  %v11185_v28 = vld [vmem:[#allocation2 + $0x68] ss:$0 sps:$4 sm:$0x11]  }
 0x173   :  { %4694 = vmatprep.mubr.bf16.mxu0 %v2188_v33  ;;  %4854 = vmatpush1.bf16.msra.mxu0 %v11167_v32  ;;  %v1809_v32 = vrot.slane %v1807_v21, 1  ;;  %v1814_v33 = vshll.u32 %v11186_v25, 16  ;;  %v2199_v36 = vrot.slane %v11185_v28, 1  ;;  %v11204_v25 = vld [vmem:[#allocation2 + $0x84] sm:$0xff]  }
 0x174   :  { %4855 = vmatprep.subr.bf16.mxu0 %v11176_v35  ;;  %v2198_v35 = vrot.slane %v11184_v24, 1  ;;  %v1843_v24 = vshll.u32 %v11198_v15, 16  ;;  %v11203_v28 = vld [vmem:[#allocation2 + $0x8c] ss:$0 sps:$4 sm:$0x11]  }
 0x175   :  { %v1816_v43 = vrot.slane %v1814_v33, 1 }
 0x176   :  { %v2200_v47 = vsel %vm1275_vm1, %v2198_v35, %v2199_v36  ;;  %v1845_v33 = vrot.slane %v1843_v24, 1  ;;  %v2208_v36 = vrot.slane %v11203_v28, 1 }
 0x177   :  { %4856 = vmatpush1.bf16.msra.mxu0 %v11174_v42  ;;  %v1810_v42 = vsel %vm824_vm0, %v1805_v31, %v1809_v32  ;;  %v1817_v54 = vor.u32 %v1816_v43, %v1812_v40  ;;  %v12410_v31 = vld [vmem:[%s15936_s1 + $0x460] ss:$8 sps:$4 sm:$0xff]   ;;  %v12415_v32 = vld [vmem:[%s15936_s1 + $0x474] ss:$8 sps:$4 sm:$0xff]   ;;  %v1848_v40 = vshrl.u32 %v11204_v25, 16 }
 0x178   :  { %4857 = vmatprep.subr.bf16.mxu0 %v11183_v45  ;;  %v11193_v45 = vld [vmem:[#allocation2 + $0x6c] sm:$0xff]  }
 0x179   :  { %v1826_v56 = vshll.u32 %v11193_v45, 16 }
 0x17a   :  { %4695 = vmatmul.mubr.bf16.gmra.mrb[12].mxu0 %v1774_v48  ;;  %v11189_v48 = vld [vmem:[#allocation2 + $0x74] ss:$0 sps:$4 sm:$0x11]  }
 0x17b   :  { %4704 = vmatprep.mubr.bf16.mxu0 %v2191_v53  ;;  %4858 = vmatpush1.bf16.msra.mxu0 %v11181_v52  ;;  %v12342_v52 = vld [vmem:[%s15936_s1 + $0x420] ss:$8 sps:$4 sm:$0xff]   ;;  %v12347_v53 = vld [vmem:[%s15936_s1 + $0x434] ss:$8 sps:$4 sm:$0xff]   ;;  %v2202_v59 = vrot.slane %v11189_v48, 1  ;;  %v1828_v1 = vrot.slane %v1826_v56, 1 }
 0x17c   :  { %4859 = vmatprep.subr.bf16.mxu0 %v11192_v55  ;;  %v1821_v55 = vrot.slane %v1819_v41, 1  ;;  %10511 = vmatpush1.bf16.msra.mxu1 %v12342_v52  ;;  %v12433_v48 = vld [vmem:[#allocation2 + $0x90] sm:$0xfe]  }
 0x17d   :  { %10504 = vmatprep.subr.bf16.mxu1 %v12347_v53  ;;  %v2203_v5 = vsel %vm1275_vm1, %v2201_v58, %v2202_v59  ;;  %v15944_v59 = vmov 0   ;;  %v2210_v61 = vrot.slane %v12433_v48, 1 }
 0x17e   :  { %v1822_v0 = vsel %vm824_vm0, %v1817_v54, %v1821_v55  ;;  %v12440_v55 = vld [vmem:[#allocation2 + $0x98] ss:$0 sps:$4 sm:$0x11]   ;;  %5160 = vmatprep.mubr.bf16.mxu1 %v15944_v59  ;;  %5561 = vst [vmem:[#allocation4 + $0x20] sm:$0xf] %v15944_v59 }
 0x17f   :  { %4860 = vmatpush1.bf16.msra.mxu0 %v11190_v60  ;;  %v11243_v60 = vld [vmem:[%s15936_s1 + $0x3e4] ss:$8 sps:$4 sm:$0xff]   ;;  %5562 = vst [vmem:[#allocation4 + $0x28] sm:$0xf] %v15944_v59  ;;  %5563 = vst [vmem:[#allocation4 + $0x40] sm:$0xf] %v15944_v59 }
 0x180   :  { %4861 = vmatprep.subr.bf16.mxu0 %v11201_v63  ;;  %v1824_v63 = vshrl.u32 %v11193_v45, 16  ;;  %10512 = vmatpush1.bf16.msra.mxu1 %v12360_v62  ;;  %v12428_v45 = vld [vmem:[#allocation2 + $0x6c] sm:$0xfe]   ;;  %5564 = vst [vmem:[#allocation4 + $0x48] sm:$0xf] %v15944_v59 }
 0x181   :  { %v3099_v50 = vrot.slane %v12428_v45, 1  ;;  %5565 = vst [vmem:[#allocation4 + $0x60] sm:$0xf] %v15944_v59  ;;  %5566 = vst [vmem:[#allocation4 + $0x68] sm:$0xf] %v15944_v59 }
 0x182   :  { %4705 = vmatmul.mubr.bf16.gmra.mrb[16].mxu0 %v1786_v2  ;;  %v11195_v2 = vld [vmem:[#allocation2 + $0x78] sm:$0xfe]   ;;  %v1829_v14 = vor.u32 %v1828_v1, %v1824_v63  ;;  %5567 = vst [vmem:[#allocation4 + $0x80] sm:$0xf] %v15944_v59  ;;  %5568 = vst [vmem:[#allocation4 + $0x88] sm:$0xf] %v15944_v59 }
 0x183   :  { %4714 = vmatprep.mubr.bf16.mxu0 %v2194_v7  ;;  %4862 = vmatpush1.bf16.msra.mxu0 %v11199_v6  ;;  %v11196_v6 = vld [vmem:[#allocation2 + $0x80] ss:$0 sps:$4 sm:$0x11]   ;;  %v11252_v7 = vld [vmem:[%s15936_s1 + $0x3f4] ss:$8 sps:$4 sm:$0xff]   ;;  %v2204_v18 = vrot.slane %v11195_v2, 1 }
 0x184   :  { %4863 = vmatprep.subr.bf16.mxu0 %v11208_v9  ;;  %v12375_v9 = vld [vmem:[%s15936_s1 + $0x444] ss:$8 sps:$4 sm:$0xff]   ;;  %v1834_v21 = vsel %vm824_vm0, %v1829_v14, %v1833_v8  ;;  %5569 = vst [vmem:[#allocation4 + $0xa0] sm:$0xf] %v15944_v59  ;;  %5570 = vst [vmem:[#allocation4 + $0xa8] sm:$0xf] %v15944_v59 }
 0x185   :  { %10505 = vmatprep.subr.bf16.mxu1 %v12375_v9  ;;  %5571 = vst [vmem:[#allocation4 + $0xc0] sm:$0xf] %v15944_v59  ;;  %5572 = vst [vmem:[#allocation4 + $0xc8] sm:$0xf] %v15944_v59  ;;  %v1867_v2 = vshll.u32 %v12440_v55, 16 }
 0x186   :  { %10513 = vmatpush1.bf16.msra.mxu1 %v12380_v10  ;;  %5573 = vst [vmem:[#allocation4 + $0xe0] sm:$0xf] %v15944_v59  ;;  %5574 = vst [vmem:[#allocation4 + $0xe8] sm:$0xf] %v15944_v59  ;;  %v11216_v8 = vld [vmem:[#allocation2 + $0x9c] sm:$0xfe]  }
 0x187   :  { %4864 = vmatpush1.bf16.msra.mxu0 %v11206_v16  ;;  %v1838_v16 = vshll.u32 %v11197_v3, 16  ;;  %10506 = vmatprep.subr.bf16.mxu1 %v12385_v13  ;;  %5575 = vst [vmem:[#allocation4 + $0x100] sm:$0xf] %v15944_v59  ;;  %5576 = vst [vmem:[#allocation4 + $0x108] sm:$0xf] %v15944_v59 }
 0x188   :  { %4865 = vmatprep.subr.bf16.mxu0 %v11215_v19  ;;  %v2205_v19 = vrot.slane %v11196_v6, 1  ;;  %5577 = vst [vmem:[#allocation4 + $0x120] sm:$0xf] %v15944_v59  ;;  %5578 = vst [vmem:[#allocation4 + $0x128] sm:$0xf] %v15944_v59 }
 0x189   :  { %v1840_v23 = vrot.slane %v1838_v16, 1  ;;  %5579 = vst [vmem:[#allocation4 + $0x140] sm:$0xf] %v15944_v59  ;;  %5580 = vst [vmem:[#allocation4 + $0x148] sm:$0xf] %v15944_v59 }
 0x18a   :  { %4715 = vmatmul.mubr.bf16.gmra.mrb[20].mxu0 %v1798_v22  ;;  %v1836_v22 = vshrl.u32 %v11197_v3, 16  ;;  %10514 = vmatpush1.bf16.msra.mxu1 %v12395_v20  ;;  %5581 = vst [vmem:[#allocation4 + $0x160] sm:$0xf] %v15944_v59  ;;  %5582 = vst [vmem:[#allocation4 + $0x168] sm:$0xf] %v15944_v59 }
 0x18b   :  { %4724 = vmatprep.mubr.bf16.mxu0 %v2197_v27  ;;  %4866 = vmatpush1.bf16.msra.mxu0 %v11213_v26  ;;  %v2206_v26 = vsel %vm1275_vm1, %v2204_v18, %v2205_v19  ;;  %v11202_v27 = vld [vmem:[#allocation2 + $0x84] sm:$0xfe]   ;;  %5583 = vst [vmem:[#allocation4 + $0x180] sm:$0xf] %v15944_v59  ;;  %5584 = vst [vmem:[#allocation4 + $0x188] sm:$0xf] %v15944_v59 }
 0x18c   :  { %4867 = vmatprep.subr.bf16.mxu0 %v11222_v29  ;;  %v11205_v29 = vld [vmem:[#allocation2 + $0x8c] ss:$0 sps:$4 sm:$0x11]   ;;  %v2207_v35 = vrot.slane %v11202_v27, 1  ;;  %10507 = vmatprep.subr.bf16.mxu1 %v12405_v30  ;;  %5585 = vst [vmem:[#allocation4 + $0x1a0] sm:$0xf] %v15944_v59 }
 0x18d   :  { %v1855_v41 = vshll.u32 %v11205_v29, 16  ;;  %5586 = vst [vmem:[#allocation4 + $0x1a8] sm:$0xf] %v15944_v59  ;;  %5587 = vst [vmem:[#allocation4 + $0x1c0] sm:$0xf] %v15944_v59  ;;  %v1869_v19 = vrot.slane %v1867_v2, 1 }
 0x18e   :  { %10515 = vmatpush1.bf16.msra.mxu1 %v12410_v31  ;;  %5588 = vst [vmem:[#allocation4 + $0x1c8] sm:$0xf] %v15944_v59  ;;  %5589 = vst [vmem:[#allocation4 + $0x1e0] sm:$0xf] %v15944_v59  ;;  %v11225_v27 = vld [vmem:[#allocation2 + $0xa8] sm:$0xff]  }
 0x18f   :  { %4868 = vmatpush1.bf16.msra.mxu0 %v11220_v34  ;;  %v1850_v34 = vshll.u32 %v11204_v25, 16  ;;  %10508 = vmatprep.subr.bf16.mxu1 %v12415_v32  ;;  %v12445_v58 = vrot.slane %v1855_v41, 1  ;;  %5590 = vst [vmem:[#allocation4 + $0x1e8] sm:$0xf] %v15944_v59  ;;  %5591 = vst [vmem:[#allocation4 + $0x200] sm:$0xf] %v15944_v59 }
 0x190   :  { %4869 = vmatprep.subr.bf16.mxu0 %v11229_v39  ;;  %v12422_v39 = vld [vmem:[%s15936_s1 + $0x470] ss:$8 sps:$4 sm:$0xff]   ;;  %5592 = vst [vmem:[#allocation4 + $0x208] sm:$0xf] %v15944_v59  ;;  %5593 = vst [vmem:[#allocation4 + $0x220] sm:$0xf] %v15944_v59 }
 0x191   :  { %v1852_v44 = vrot.slane %v1850_v34, 1  ;;  %5597 = vst [vmem:[#allocation4 + $0x30] sm:$0xf0] %v15944_v59  ;;  %5598 = vst [vmem:[#allocation4 + $0x38] sm:$0xf0] %v15944_v59 }
 0x192   :  { %4725 = vmatmul.mubr.bf16.gmra.mrb[24].mxu0 %v1810_v42  ;;  %v12424_v42 = vld [vmem:[#allocation2 + $0x90] sm:$0xff]   ;;  %10516 = vmatpush1.bf16.msra.mxu1 %v12422_v39  ;;  %5599 = vst [vmem:[#allocation4 + $0x50] sm:$0xf0] %v15944_v59  ;;  %5600 = vst [vmem:[#allocation4 + $0x58] sm:$0xf0] %v15944_v59 }
 0x193   :  { %4734 = vmatprep.mubr.bf16.mxu0 %v2200_v47  ;;  %4870 = vmatpush1.bf16.msra.mxu0 %v11227_v46  ;;  %v12430_v46 = vld [vmem:[#allocation2 + $0x74] ss:$0 sps:$4 sm:$0x11]   ;;  %v2209_v47 = vsel %vm1275_vm1, %v2207_v35, %v2208_v36  ;;  %v1862_v56 = vshll.u32 %v12424_v42, 16  ;;  %5601 = vst [vmem:[#allocation4 + $0x70] sm:$0xf0] %v15944_v59 }
 0x194   :  { %4871 = vmatprep.subr.bf16.mxu0 %v11236_v49  ;;  %v12435_v49 = vld [vmem:[#allocation2 + $0x98] ss:$0 sps:$4 sm:$0x11]   ;;  %v3100_v54 = vrot.slane %v12430_v46, 1  ;;  %5602 = vst [vmem:[#allocation4 + $0x78] sm:$0xf0] %v15944_v59 }
 0x195   :  { %5603 = vst [vmem:[#allocation4 + $0x90] sm:$0xf0] %v15944_v59  ;;  %5604 = vst [vmem:[#allocation4 + $0x98] sm:$0xf0] %v15944_v59  ;;  %v2211_v63 = vrot.slane %v12435_v49, 1  ;;  %v1864_v1 = vrot.slane %v1862_v56, 1 }
 0x196   :  { %5605 = vst [vmem:[#allocation4 + $0xb0] sm:$0xf0] %v15944_v59  ;;  %5606 = vst [vmem:[#allocation4 + $0xb8] sm:$0xf0] %v15944_v59  ;;  %v11223_v35 = vld [vmem:[#allocation2 + $0xa8] sm:$0xfe]  }
 0x197   :  { %4872 = vmatpush1.bf16.msra.mxu0 %v11234_v57  ;;  %v12443_v57 = vor.u32 %v1852_v44, %v1848_v40  ;;  %5607 = vst [vmem:[#allocation4 + $0xd0] sm:$0xf0] %v15944_v59  ;;  %5608 = vst [vmem:[#allocation4 + $0xd8] sm:$0xf0] %v15944_v59  ;;  %v1884_v49 = vshrl.u32 %v11225_v27, 16  ;;  %v11232_v56 = vld [vmem:[#allocation2 + $0xb4] sm:$0xff]  }
 0x198   :  { %4873 = vmatprep.subr.bf16.mxu0 %v11243_v60  ;;  %5609 = vst [vmem:[#allocation4 + $0xf0] sm:$0xf0] %v15944_v59  ;;  %5610 = vst [vmem:[#allocation4 + $0xf8] sm:$0xf0] %v15944_v59  ;;  %v3101_v60 = vsel %vm1275_vm1, %v3099_v50, %v3100_v54 }
 0x199   :  { %5611 = vst [vmem:[#allocation4 + $0x110] sm:$0xf0] %v15944_v59  ;;  %5612 = vst [vmem:[#allocation4 + $0x118] sm:$0xf0] %v15944_v59  ;;  %5161 = vmatmul.mubr.bf16.vlgmr.msra.gmra.mrb[0].mxu1 %v3101_v60  ;;  %v1858_v3 = vsel %vm824_vm0, %v12443_v57, %v12445_v58  ;;  %v11318_v57 = vld [vmem:[#allocation2 + $0x90] sm:$0xfe]  }
 0x19a   :  { %4735 = vmatmul.mubr.bf16.gmra.mrb[28].mxu0 %v1822_v0  ;;  %5613 = vst [vmem:[#allocation4 + $0x130] sm:$0xf0] %v15944_v59  ;;  %5614 = vst [vmem:[#allocation4 + $0x138] sm:$0xf0] %v15944_v59  ;;  %5170 = vmatprep.mubr.bf16.mxu1 %v15944_v59  ;;  %v1860_v0 = vshrl.u32 %v12424_v42, 16 }
 0x19b   :  { %4744 = vmatprep.mubr.bf16.mxu0 %v2203_v5  ;;  %4874 = vmatpush1.bf16.msra.mxu0 %v11241_v4  ;;  %5615 = vst [vmem:[#allocation4 + $0x150] sm:$0xf0] %v15944_v59  ;;  %5616 = vst [vmem:[#allocation4 + $0x158] sm:$0xf0] %v15944_v59  ;;  %v11218_v4 = vld [vmem:[#allocation2 + $0x9c] sm:$0xff]  }
 0x19c   :  { %4875 = vmatprep.subr.bf16.mxu0 %v11252_v7  ;;  %5617 = vst [vmem:[#allocation4 + $0x170] sm:$0xf0] %v15944_v59  ;;  %5618 = vst [vmem:[#allocation4 + $0x178] sm:$0xf0] %v15944_v59  ;;  %v11308_v5 = vld [vmem:[#allocation2 + $0x78] sm:$0xfe]   ;;  %v2212_v7 = vsel %vm1275_vm1, %v2210_v61, %v2211_v63  ;;  %v1865_v18 = vor.u32 %v1864_v1, %v1860_v0 }
 0x19d   :  { %5619 = vst [vmem:[#allocation4 + $0x190] sm:$0xf0] %v15944_v59  ;;  %5620 = vst [vmem:[#allocation4 + $0x198] sm:$0xf0] %v15944_v59  ;;  %v3102_v15 = vrot.slane %v11308_v5, 1  ;;  %v1872_v25 = vshrl.u32 %v11218_v4, 16 }
 0x19e   :  { %5621 = vst [vmem:[#allocation4 + $0x1b0] sm:$0xf0] %v15944_v59  ;;  %5622 = vst [vmem:[#allocation4 + $0x1b8] sm:$0xf0] %v15944_v59  ;;  %v1870_v28 = vsel %vm824_vm0, %v1865_v18, %v1869_v19  ;;  %v11230_v61 = vld [vmem:[#allocation2 + $0xb4] sm:$0xfe]  }
 0x19f   :  { %4876 = vmatpush1.bf16.msra.mxu0 %v11250_v17  ;;  %5623 = vst [vmem:[#allocation4 + $0x1d0] sm:$0xf0] %v15944_v59  ;;  %5624 = vst [vmem:[#allocation4 + $0x1d8] sm:$0xf0] %v15944_v59  ;;  %v3108_v0 = vrot.slane %v11318_v57, 1  ;;  %v1898_v5 = vshll.u32 %v11232_v56, 16 }
 0x1a0   :  { %5058 = vmatprep.subr.bf16.mxu0 %v12262_v38  ;;  %v1841_v38 = vor.u32 %v1840_v23, %v1836_v22  ;;  %5625 = vst [vmem:[#allocation4 + $0x1f0] sm:$0xf0] %v15944_v59  ;;  %5626 = vst [vmem:[#allocation4 + $0x1f8] sm:$0xf0] %v15944_v59  ;;  %v2213_v23 = vrot.slane %v11216_v8, 1 }
 0x1a1   :  { %5627 = vst [vmem:[#allocation4 + $0x210] sm:$0xf0] %v15944_v59  ;;  %5628 = vst [vmem:[#allocation4 + $0x218] sm:$0xf0] %v15944_v59  ;;  %v1900_v18 = vrot.slane %v1898_v5, 1 }
 0x1a2   :  { %4745 = vmatmul.mubr.bf16.gmra.mrb[32].mxu0 %v1834_v21  ;;  %v1846_v43 = vsel %vm824_vm0, %v1841_v38, %v1845_v33  ;;  %v11309_v6 = vld [vmem:[#allocation2 + $0x80] ss:$0 sps:$4 sm:$0x11]   ;;  %v11217_v14 = vld [vmem:[#allocation2 + $0xa4] ss:$0 sps:$4 sm:$0x11]  }
 0x1a3   :  { %4754 = vmatprep.mubr.bf16.mxu0 %v2206_v26  ;;  %v3103_v16 = vrot.slane %v11309_v6, 1  ;;  %v11219_v17 = vld [vmem:[#allocation2 + $0xa4] ss:$0 sps:$4 sm:$0x11]   ;;  %v1874_v21 = vshll.u32 %v11218_v4, 16  ;;  %v2214_v24 = vrot.slane %v11217_v14, 1 }
 0x1a4   :  { %v1879_v26 = vshll.u32 %v11219_v17, 16  ;;  %v11313_v38 = vld [vmem:[#allocation2 + $0x84] sm:$0xfe]   ;;  %v11314_v33 = vld [vmem:[#allocation2 + $0x8c] ss:$0 sps:$4 sm:$0x11]  }
 0x1a5   :  { %v3104_v22 = vsel %vm1275_vm1, %v3102_v15, %v3103_v16  ;;  %v1876_v29 = vrot.slane %v1874_v21, 1  ;;  %v2215_v34 = vsel %vm1275_vm1, %v2213_v23, %v2214_v24  ;;  %v11224_v36 = vld [vmem:[#allocation2 + $0xb0] ss:$0 sps:$4 sm:$0x11]   ;;  %v3105_v40 = vrot.slane %v11313_v38, 1  ;;  %v11239_v16 = vld [vmem:[#allocation2 + $0xc0] sm:$0xff]  }
 0x1a6   :  { %5171 = vmatmul.mubr.bf16.gmra.mrb[4].mxu1 %v3104_v22  ;;  %v3106_v41 = vrot.slane %v11314_v33, 1  ;;  %v11226_v42 = vld [vmem:[#allocation2 + $0xb0] ss:$0 sps:$4 sm:$0x11]   ;;  %v1881_v45 = vrot.slane %v1879_v26, 1  ;;  %v2217_v48 = vrot.slane %v11224_v36, 1 }
 0x1a7   :  { %5180 = vmatprep.mubr.bf16.mxu1 %v15944_v59  ;;  %v1877_v44 = vor.u32 %v1876_v29, %v1872_v25  ;;  %v1891_v54 = vshll.u32 %v11226_v42, 16  ;;  %v11319_v58 = vld [vmem:[#allocation2 + $0x98] ss:$0 sps:$4 sm:$0x11]   ;;  %v1896_v14 = vshrl.u32 %v11232_v56, 16  ;;  %v1908_v36 = vshrl.u32 %v11239_v16, 16 }
 0x1a8   :  { %v3107_v46 = vsel %vm1275_vm1, %v3105_v40, %v3106_v41  ;;  %v11231_v63 = vld [vmem:[#allocation2 + $0xbc] ss:$0 sps:$4 sm:$0x11]   ;;  %v3109_v1 = vrot.slane %v11319_v58, 1  ;;  %v11323_v19 = vld [vmem:[#allocation2 + $0x9c] sm:$0xfe]  }
 0x1a9   :  { %v1882_v55 = vsel %vm824_vm0, %v1877_v44, %v1881_v45  ;;  %v11233_v2 = vld [vmem:[#allocation2 + $0xbc] ss:$0 sps:$4 sm:$0x11]   ;;  %v1893_v4 = vrot.slane %v1891_v54, 1  ;;  %v2220_v8 = vrot.slane %v11231_v63, 1  ;;  %v3111_v25 = vrot.slane %v11323_v19, 1 }
 0x1aa   :  { %4755 = vmatmul.mubr.bf16.gmra.mrb[36].mxu0 %v1846_v43  ;;  %v1886_v43 = vshll.u32 %v11225_v27, 16  ;;  %v3110_v6 = vsel %vm1275_vm1, %v3108_v0, %v3109_v1  ;;  %v1903_v15 = vshll.u32 %v11233_v2, 16  ;;  %v11324_v21 = vld [vmem:[#allocation2 + $0xa4] ss:$0 sps:$4 sm:$0x11]   ;;  %v1901_v29 = vor.u32 %v1900_v18, %v1896_v14  ;;  %v11253_v1 = vld [vmem:[#allocation2 + $0xd8] sm:$0xff]  }
 0x1ab   :  { %4764 = vmatprep.mubr.bf16.mxu0 %v2209_v47  ;;  %v2216_v47 = vrot.slane %v11223_v35, 1  ;;  %v11237_v23 = vld [vmem:[#allocation2 + $0xc0] sm:$0xfe]   ;;  %v11238_v24 = vld [vmem:[#allocation2 + $0xc8] ss:$0 sps:$4 sm:$0x11]  }
 0x1ac   :  { %v1888_v50 = vrot.slane %v1886_v43, 1  ;;  %v3112_v26 = vrot.slane %v11324_v21, 1  ;;  %v11240_v27 = vld [vmem:[#allocation2 + $0xc8] ss:$0 sps:$4 sm:$0x11]   ;;  %v1905_v38 = vrot.slane %v1903_v15, 1 }
 0x1ad   :  { %v2218_v60 = vsel %vm1275_vm1, %v2216_v47, %v2217_v48  ;;  %v2223_v35 = vrot.slane %v11238_v24, 1  ;;  %v1915_v41 = vshll.u32 %v11240_v27, 16  ;;  %v11246_v43 = vld [vmem:[#allocation2 + $0xcc] sm:$0xff]   ;;  %v11245_v48 = vld [vmem:[#allocation2 + $0xd4] ss:$0 sps:$4 sm:$0x11]  }
 0x1ae   :  { %5181 = vmatmul.mubr.bf16.gmra.mrb[8].mxu1 %v3107_v46  ;;  %v3113_v33 = vsel %vm1275_vm1, %v3111_v25, %v3112_v26  ;;  %v1906_v42 = vsel %vm824_vm0, %v1901_v29, %v1905_v38  ;;  %v11328_v44 = vld [vmem:[#allocation2 + $0xa8] sm:$0xfe]   ;;  %v11329_v45 = vld [vmem:[#allocation2 + $0xb0] ss:$0 sps:$4 sm:$0x11]   ;;  %v1922_v57 = vshll.u32 %v11246_v43, 16 }
 0x1af   :  { %5190 = vmatprep.mubr.bf16.mxu1 %v15944_v59  ;;  %v11244_v47 = vld [vmem:[#allocation2 + $0xcc] sm:$0xfe]   ;;  %v11247_v54 = vld [vmem:[#allocation2 + $0xd4] ss:$0 sps:$4 sm:$0x11]   ;;  %v1917_v56 = vrot.slane %v1915_v41, 1 }
 0x1b0   :  { %v1920_v63 = vshrl.u32 %v11246_v43, 16  ;;  %v1927_v0 = vshll.u32 %v11247_v54, 16  ;;  %v11334_v5 = vld [vmem:[#allocation2 + $0xbc] ss:$0 sps:$4 sm:$0x11]   ;;  %v1934_v18 = vshll.u32 %v11253_v1, 16 }
 0x1b1   :  { %v11255_v14 = vld [vmem:[#allocation2 + $0x18] sm:$0xff]   ;;  %v1932_v27 = vshrl.u32 %v11253_v1, 16 }
 0x1b2   :  { %4765 = vmatmul.mubr.bf16.gmra.mrb[40].mxu0 %v1858_v3  ;;  %v1889_v3 = vor.u32 %v1888_v50, %v1884_v49  ;;  %v3114_v49 = vrot.slane %v11328_v44, 1  ;;  %v3115_v50 = vrot.slane %v11329_v45, 1  ;;  %v1929_v21 = vrot.slane %v1927_v0, 1  ;;  %v11344_v0 = vld [vmem:[#allocation2 + $0xd4] ss:$0 sps:$4 sm:$0x11]  }
 0x1b3   :  { %4774 = vmatprep.mubr.bf16.mxu0 %v2212_v7  ;;  %v2219_v7 = vrot.slane %v11230_v61, 1  ;;  %v2226_v61 = vrot.slane %v11245_v48, 1  ;;  %v2631_v26 = vshll.u32 %v11255_v14, 16 }
 0x1b4   :  { %v1894_v17 = vsel %vm824_vm0, %v1889_v3, %v1893_v4  ;;  %v3116_v58 = vsel %vm1275_vm1, %v3114_v49, %v3115_v50  ;;  %v1924_v3 = vrot.slane %v1922_v57, 1  ;;  %v11333_v4 = vld [vmem:[#allocation2 + $0xb4] sm:$0xfe]   ;;  %v11262_v50 = vld [vmem:[#allocation2 + $0x2c] ss:$0 sps:$4 sm:$0x11]  }
 0x1b5   :  { %v2221_v22 = vsel %vm1275_vm1, %v2219_v7, %v2220_v8  ;;  %v11248_v7 = vld [vmem:[#allocation2 + $0xd8] sm:$0xfe]   ;;  %v11249_v8 = vld [vmem:[#allocation2 + $0xe0] ss:$0 sps:$4 sm:$0x11]   ;;  %v3117_v15 = vrot.slane %v11333_v4, 1 }
 0x1b6   :  { %5191 = vmatmul.mubr.bf16.gmra.mrb[12].mxu1 %v3110_v6  ;;  %v1925_v19 = vor.u32 %v1924_v3, %v1920_v63  ;;  %v2228_v24 = vrot.slane %v11248_v7, 1  ;;  %v2229_v25 = vrot.slane %v11249_v8, 1  ;;  %v2633_v41 = vrot.slane %v2631_v26, 1  ;;  %v11343_v63 = vld [vmem:[#allocation2 + $0xcc] sm:$0xfe]  }
 0x1b7   :  { %5200 = vmatprep.mubr.bf16.mxu1 %v15944_v59  ;;  %v2648_v7 = vshll.u32 %v11262_v50, 16  ;;  %v11264_v8 = vld [vmem:[#allocation2 + $0x30] sm:$0xff]   ;;  %v11348_v26 = vld [vmem:[#allocation2 + $0xd8] sm:$0xfe]  }
 0x1b8   :  { %v1930_v38 = vsel %vm824_vm0, %v1925_v19, %v1929_v21 }
 0x1b9   :  { %v2650_v21 = vrot.slane %v2648_v7, 1  ;;  %v11290_v7 = vld [vmem:[#allocation2 + $0x60] sm:$0xff]  }
 0x1ba   :  { %4775 = vmatmul.mubr.bf16.gmra.mrb[44].mxu0 %v1870_v28  ;;  %v1910_v28 = vshll.u32 %v11239_v16, 16  ;;  %v3118_v16 = vrot.slane %v11334_v5, 1 }
 0x1bb   :  { %4784 = vmatprep.mubr.bf16.mxu0 %v2215_v34  ;;  %v2222_v34 = vrot.slane %v11237_v23, 1 }
 0x1bc   :  { %v1912_v40 = vrot.slane %v1910_v28, 1  ;;  %v3119_v23 = vsel %vm1275_vm1, %v3117_v15, %v3118_v16  ;;  %v1936_v28 = vrot.slane %v1934_v18, 1  ;;  %v3124_v15 = vrot.slane %v11344_v0, 1 }
 0x1bd   :  { %v2224_v46 = vsel %vm1275_vm1, %v2222_v34, %v2223_v35  ;;  %v11338_v34 = vld [vmem:[#allocation2 + $0xc0] sm:$0xfe]   ;;  %v11339_v35 = vld [vmem:[#allocation2 + $0xc8] ss:$0 sps:$4 sm:$0x11]  }
 0x1be   :  { %5201 = vmatmul.mubr.bf16.gmra.mrb[16].mxu1 %v3113_v33  ;;  %v3120_v43 = vrot.slane %v11338_v34, 1  ;;  %v3121_v44 = vrot.slane %v11339_v35, 1  ;;  %v1937_v45 = vor.u32 %v1936_v28, %v1932_v27  ;;  %v11349_v27 = vld [vmem:[#allocation2 + $0xe0] ss:$0 sps:$4 sm:$0x11]  }
 0x1bf   :  { %5210 = vmatprep.mubr.bf16.mxu1 %v15944_v59  ;;  %v3127_v34 = vrot.slane %v11349_v27, 1 }
 0x1c0   :  { %v3122_v48 = vsel %vm1275_vm1, %v3120_v43, %v3121_v44  ;;  %v11263_v43 = vld [vmem:[#allocation2 + $0x24] sm:$0xff]  }
 0x1c2   :  { %4785 = vmatmul.mubr.bf16.gmra.mrb[48].mxu0 %v1882_v55  ;;  %v1913_v55 = vor.u32 %v1912_v40, %v1908_v36  ;;  %v2230_v36 = vsel %vm1275_vm1, %v2228_v24, %v2229_v25  ;;  %v2629_v40 = vshrl.u32 %v11255_v14, 16  ;;  %v3123_v14 = vrot.slane %v11343_v63, 1 }
 0x1c3   :  { %4794 = vmatprep.mubr.bf16.mxu0 %v2218_v60  ;;  %v2225_v60 = vrot.slane %v11244_v47, 1  ;;  %v2653_v24 = vshrl.u32 %v11264_v8, 16 }
 0x1c4   :  { %v1918_v2 = vsel %vm824_vm0, %v1913_v55, %v1917_v56  ;;  %v2634_v49 = vor.u32 %v2633_v41, %v2629_v40  ;;  %v81_v55 = vld [vmem:[%s15937_s0 + $0x1c8] sm:$0xff]  ;;  %v82_v56 = vld [vmem:[%s15937_s0 + $0x1d0] sm:$0xff]  ;;  %v3125_v18 = vsel %vm1275_vm1, %v3123_v14, %v3124_v15  ;;  %v11271_v41 = vld [vmem:[#allocation2 + $0x44] ss:$0 sps:$4 sm:$0x11]   ;;  %v2703_v14 = vshll.u32 %v11290_v7, 16 }
 0x1c5   :  { %v2227_v6 = vsel %vm1275_vm1, %v2225_v60, %v2226_v61  ;;  %v141_v57 = vmax.f32 %v81_v55, 0.0  ;;  %v83_v60 = vld [vmem:[%s15937_s0 + $0x1d8] sm:$0x3]  ;;  %v2701_v15 = vshrl.u32 %v11290_v7, 16 }
 0x1c6   :  { %5211 = vmatmul.mubr.bf16.gmra.mrb[20].mxu1 %v3116_v58  ;;  %v142_v58 = vmax.f32 %v82_v56, 0.0  ;;  %v143_v1 = vmax.f32 %v83_v60, 0.0  ;;  %v11274_v56 = vld [vmem:[#allocation2 + $0x50] ss:$0 sps:$4 sm:$0x11]  }
 0x1c7   :  { %5220 = vmatprep.mubr.bf16.mxu1 %v15944_v59  ;;  %v2684_v63 = vshll.u32 %v11274_v56, 16 }
 0x1c8   :  { %v10440_v3 = vpack.c.bf16 %v142_v58, %v142_v58  ;;  %v10441_v16 = vpack.c.bf16 %v143_v1, %v143_v1  ;;  %v11266_v58 = vld [vmem:[#allocation2 + $0x30] sm:$0xff]   ;;  %v11282_v1 = vld [vmem:[#allocation2 + $0x5c] ss:$0 sps:$4 sm:$0x11]  }
 0x1ca   :  { %4795 = vmatmul.mubr.bf16.gmra.mrb[52].mxu0 %v1894_v17  ;;  %v11254_v17 = vld [vmem:[#allocation2 + $0xe0] ss:$0 sps:$4 sm:$0x11]   ;;  %462 = vst [vmem:[#allocation2 + $0xe8] sm:$0xf] %v10440_v3 }
 0x1cb   :  { %4804 = vmatprep.mubr.bf16.mxu0 %v2221_v22  ;;  %v11256_v22 = vld [vmem:[#allocation2 + $0x20] ss:$0 sps:$4 sm:$0x11]   ;;  %v1939_v29 = vshll.u32 %v11254_v17, 16  ;;  %463 = vst [vmem:[#allocation2 + $0xec] sm:$0x1] %v10441_v16 }
 0x1cc   :  { %v2636_v33 = vshll.u32 %v11256_v22, 16  ;;  %v11265_v17 = vld [vmem:[#allocation2 + $0x38] ss:$0 sps:$4 sm:$0x11]   ;;  %v2655_v22 = vshll.u32 %v11264_v8, 16  ;;  %v11272_v3 = vld [vmem:[#allocation2 + $0x3c] sm:$0xff]  }
 0x1cd   :  { %v2660_v25 = vshll.u32 %v11265_v17, 16  ;;  %v11291_v8 = vld [vmem:[#allocation2 + $0x68] ss:$0 sps:$4 sm:$0x11]   ;;  %v2705_v16 = vrot.slane %v2703_v14, 1 }
 0x1ce   :  { %5221 = vmatmul.mubr.bf16.gmra.mrb[24].mxu1 %v3119_v23  ;;  %v2638_v47 = vrot.slane %v2636_v33, 1  ;;  %v11257_v23 = vld [vmem:[#allocation2 + $0x18] sm:$0xff]   ;;  %v3126_v33 = vrot.slane %v11348_v26, 1  ;;  %v2708_v17 = vshll.u32 %v11291_v8, 16 }
 0x1cf   :  { %5230 = vmatprep.mubr.bf16.mxu1 %v15944_v59  ;;  %v2662_v35 = vrot.slane %v2660_v25, 1  ;;  %v11305_v26 = vld [vmem:[#allocation2 + $0x78] sm:$0xff]  }
 0x1d0   :  { %v2639_v4 = vsel %vm824_vm0, %v2634_v49, %v2638_v47  ;;  %v11273_v49 = vld [vmem:[#allocation2 + $0x48] sm:$0xff]  }
 0x1d1   :  { %v2677_v60 = vshrl.u32 %v11273_v49, 16 }
 0x1d2   :  { %4805 = vmatmul.mubr.bf16.gmra.mrb[56].mxu0 %v1906_v42  ;;  %v11261_v42 = vld [vmem:[#allocation2 + $0x24] sm:$0xff]  }
 0x1d3   :  { %4814 = vmatprep.mubr.bf16.mxu0 %v2224_v46  ;;  %v1941_v46 = vrot.slane %v1939_v29, 1  ;;  %v2643_v54 = vshll.u32 %v11261_v42, 16  ;;  %v2641_v5 = vshrl.u32 %v11261_v42, 16  ;;  %v2657_v29 = vrot.slane %v2655_v22, 1  ;;  %v11284_v22 = vld [vmem:[#allocation2 + $0x54] sm:$0xff]  }
 0x1d5   :  { %v1942_v61 = vsel %vm824_vm0, %v1937_v45, %v1941_v46  ;;  %v2658_v40 = vor.u32 %v2657_v29, %v2653_v24  ;;  %v11354_v45 = vld [vmem:[#allocation2 + $0xec] ss:$0 sps:$4 sm:$0x11]   ;;  %v2727_v29 = vshll.u32 %v11305_v26, 16 }
 0x1d6   :  { %5231 = vmatmul.mubr.bf16.gmra.mrb[28].mxu1 %v3122_v48  ;;  %v2672_v48 = vshll.u32 %v11271_v41, 16 }
 0x1d7   :  { %5240 = vmatprep.mubr.bf16.mxu1 %v15944_v59  ;;  %v2663_v46 = vsel %vm824_vm0, %v2658_v40, %v2662_v35  ;;  %v11371_v35 = vld [vmem:[%s15938_s3 + $0x4] ss:$12 sps:$4 sm:$0xff]   ;;  %v2725_v40 = vshrl.u32 %v11305_v26, 16  ;;  %v2729_v41 = vrot.slane %v2727_v29, 1  ;;  %v11330_v29 = vld [vmem:[#allocation2 + $0xb4] sm:$0xff]  }
 0x1d8   :  { %6036 = vmatprep.subr.bf16.mxu1 %v11371_v35 }
 0x1da   :  { %4815 = vmatmul.mubr.bf16.gmra.mrb[60].mxu0 %v1918_v2  ;;  %v10439_v2 = vpack.c.bf16 %v141_v57, %v141_v57  ;;  %v2679_v57 = vshll.u32 %v11273_v49, 16  ;;  %v11374_v49 = vld [vmem:[%s15938_s3 + $0x1c] ss:$12 sps:$4 sm:$0xff]  }
 0x1db   :  { %4824 = vmatprep.mubr.bf16.mxu0 %v2227_v6  ;;  %v2645_v6 = vrot.slane %v2643_v54, 1 }
 0x1dc   :  { %461 = vst [vmem:[#allocation2 + $0xe4] sm:$0xf] %v10439_v2 }
 0x1dd   :  { %v2646_v19 = vor.u32 %v2645_v6, %v2641_v5  ;;  %v2696_v6 = vshll.u32 %v11282_v1, 16  ;;  %v11380_v1 = vld [vmem:[%s15938_s3 + $0x4c] ss:$12 sps:$4 sm:$0xff]  }
 0x1de   :  { %5241 = vmatmul.mubr.bf16.gmra.mrb[32].mxu1 %v3125_v18  ;;  %v11299_v18 = vld [vmem:[#allocation2 + $0x6c] sm:$0xff]  }
 0x1df   :  { %5250 = vmatprep.mubr.bf16.mxu1 %v15944_v59  ;;  %v2651_v28 = vsel %vm824_vm0, %v2646_v19, %v2650_v21  ;;  %v2710_v19 = vrot.slane %v2708_v17, 1  ;;  %v2715_v21 = vshll.u32 %v11299_v18, 16  ;;  %v2713_v24 = vshrl.u32 %v11299_v18, 16  ;;  %v11389_v17 = vld [vmem:[%s15938_s3 + $0x94] ss:$12 sps:$4 sm:$0xff]  }
 0x1e2   :  { %4825 = vmatmul.mubr.bf16.gmra.mrb[64].mxu0 %v1930_v38  ;;  %v11270_v38 = vld [vmem:[#allocation2 + $0x3c] sm:$0xff]  }
 0x1e3   :  { %4834 = vmatprep.mubr.bf16.mxu0 %v2230_v36  ;;  %v3128_v36 = vsel %vm1275_vm1, %v3126_v33, %v3127_v34  ;;  %v2667_v42 = vshll.u32 %v11270_v38, 16  ;;  %v11353_v44 = vld [vmem:[#allocation2 + $0xe4] sm:$0xfe]  }
 0x1e4   :  { %v3129_v50 = vrot.slane %v11353_v44, 1  ;;  %v11310_v33 = vld [vmem:[#allocation2 + $0x84] sm:$0xff]   ;;  %v11311_v44 = vld [vmem:[#allocation2 + $0x8c] ss:$0 sps:$4 sm:$0x11]  }
 0x1e5   :  { %v2669_v47 = vrot.slane %v2667_v42, 1  ;;  %v11369_v42 = vld [vmem:[%s15938_s3] ss:$12 sps:$4 sm:$0xff]  }
 0x1e6   :  { %5251 = vmatmul.mubr.bf16.gmra.mrb[36].mxu1 %v3128_v36 }
 0x1e7   :  { %5260 = vmatprep.mubr.bf16.mxu1 %v15944_v59  ;;  %6037 = vmatpush1.bf16.msra.mxu1 %v11369_v42  ;;  %v11322_v42 = vld [vmem:[#allocation2 + $0x9c] sm:$0xff]  }
 0x1e8   :  { %6038 = vmatprep.subr.bf16.mxu1 %v11374_v49 }
 0x1ea   :  { %4835 = vmatmul.mubr.bf16.gmra.mrb[68].mxu0 %v1942_v61  ;;  %v2681_v61 = vrot.slane %v2679_v57, 1 }
 0x1eb   :  { %4877 = vmatprep.mubr.bf16.mxu0 %v2639_v4 }
 0x1ec   :  { %v2682_v0 = vor.u32 %v2681_v61, %v2677_v60 }
 0x1f2   :  { %4878 = vmatmul.mubr.bf16.vlgmr.msra.gmra.mrb[0].mxu0 %v11257_v23 }
 0x1f3   :  { %5059 = vmatpush1.bf16.msra.mxu0 %v12257_v37  ;;  %4887 = vmatprep.mubr.bf16.mxu0 %v2651_v28  ;;  %v2665_v37 = vshrl.u32 %v11270_v38, 16  ;;  %v11293_v38 = vld [vmem:[#allocation2 + $0x60] sm:$0xff]  }
 0x1f4   :  { %5060 = vmatprep.subr.bf16.mxu0 %v12302_v12  ;;  %v3130_v12 = vrot.slane %v11354_v45, 1  ;;  %v11315_v45 = vld [vmem:[#allocation2 + $0x90] sm:$0xff]  }
 0x1f5   :  { %v2670_v55 = vor.u32 %v2669_v47, %v2665_v37  ;;  %v2730_v37 = vor.u32 %v2729_v41, %v2725_v40  ;;  %v2739_v47 = vshll.u32 %v11310_v33, 16  ;;  %v2749_v61 = vshrl.u32 %v11315_v45, 16  ;;  %v11396_v41 = vld [vmem:[%s15938_s3 + $0xd8] ss:$12 sps:$4 sm:$0xff]  }
 0x1f6   :  { %v3131_v54 = vsel %vm1275_vm1, %v3129_v50, %v3130_v12  ;;  %v2737_v50 = vshrl.u32 %v11310_v33, 16  ;;  %v2744_v12 = vshll.u32 %v11311_v44, 16  ;;  %v11331_v33 = vld [vmem:[#allocation2 + $0xbc] ss:$0 sps:$4 sm:$0x11]   ;;  %v2787_v40 = vshll.u32 %v11330_v29, 16 }
 0x1f7   :  { %5061 = vmatpush1.bf16.msra.mxu0 %v12297_v11  ;;  %v2674_v11 = vrot.slane %v2672_v48, 1  ;;  %5261 = vmatmul.mubr.bf16.gmra.mrb[40].mxu1 %v3131_v54  ;;  %v11372_v48 = vld [vmem:[%s15938_s3 + $0x18] ss:$12 sps:$4 sm:$0xff]   ;;  %v2741_v57 = vrot.slane %v2739_v47, 1  ;;  %v11401_v44 = vld [vmem:[%s15938_s3 + $0xf4] ss:$12 sps:$4 sm:$0xff]  }
 0x1f8   :  { %5062 = vmatprep.subr.bf16.mxu0 %v12337_v51  ;;  %6068 = vmatprep.mubr.bf16.mxu1 %v15944_v59  ;;  %v11316_v54 = vld [vmem:[#allocation2 + $0x98] ss:$0 sps:$4 sm:$0x11]   ;;  %v2746_v60 = vrot.slane %v2744_v12, 1  ;;  %v11335_v47 = vld [vmem:[#allocation2 + $0xc0] sm:$0xff]  }
 0x1f9   :  { %v2675_v51 = vsel %vm824_vm0, %v2670_v55, %v2674_v11  ;;  %v11320_v55 = vld [vmem:[#allocation2 + $0x9c] sm:$0xff]   ;;  %6039 = vmatpush1.bf16.msra.mxu1 %v11372_v48 }
 0x1fa   :  { %4888 = vmatmul.mubr.bf16.gmra.mrb[4].mxu0 %v11263_v43  ;;  %v11377_v11 = vld [vmem:[%s15938_s3 + $0x34] ss:$12 sps:$4 sm:$0xff]   ;;  %v2761_v14 = vshrl.u32 %v11320_v55, 16  ;;  %v11399_v48 = vld [vmem:[%s15938_s3 + $0xf0] ss:$12 sps:$4 sm:$0xff]  }
 0x1fb   :  { %4897 = vmatprep.mubr.bf16.mxu0 %v2663_v46  ;;  %5063 = vmatpush1.bf16.msra.mxu0 %v12342_v52  ;;  %v11281_v52 = vld [vmem:[#allocation2 + $0x54] sm:$0xff]   ;;  %v11302_v46 = vld [vmem:[#allocation2 + $0x6c] sm:$0xff]  }
 0x1fc   :  { %5064 = vmatprep.subr.bf16.mxu0 %v12347_v53  ;;  %v2686_v53 = vrot.slane %v2684_v63, 1  ;;  %v2691_v2 = vshll.u32 %v11281_v52, 16  ;;  %v2689_v4 = vshrl.u32 %v11281_v52, 16  ;;  %6040 = vmatprep.subr.bf16.mxu1 %v11377_v11  ;;  %v11307_v63 = vld [vmem:[#allocation2 + $0x78] sm:$0xff]   ;;  %v2742_v52 = vor.u32 %v2741_v57, %v2737_v50  ;;  %v11402_v11 = vld [vmem:[%s15938_s3 + $0x108] ss:$12 sps:$4 sm:$0xff]  }
 0x1fd   :  { %v11404_v50 = vld [vmem:[%s15938_s3 + $0x10c] ss:$12 sps:$4 sm:$0xff]   ;;  %v11407_v57 = vld [vmem:[%s15938_s3 + $0x124] ss:$12 sps:$4 sm:$0xff]  }
 0x1fe   :  { %v2693_v5 = vrot.slane %v2691_v2, 1  ;;  %v2756_v2 = vshll.u32 %v11316_v54, 16  ;;  %v11336_v54 = vld [vmem:[#allocation2 + $0xc8] ss:$0 sps:$4 sm:$0x11]  }
 0x1ff   :  { %5065 = vmatpush1.bf16.msra.mxu0 %v12360_v62  ;;  %v2687_v62 = vsel %vm824_vm0, %v2682_v0, %v2686_v53  ;;  %v11378_v53 = vld [vmem:[%s15938_s3 + $0x48] ss:$12 sps:$4 sm:$0xff]  }
 0x200   :  { %5066 = vmatprep.subr.bf16.mxu0 %v12375_v9  ;;  %v2694_v9 = vor.u32 %v2693_v5, %v2689_v4  ;;  %v2747_v4 = vsel %vm824_vm0, %v2742_v52, %v2746_v60  ;;  %v11321_v5 = vld [vmem:[#allocation2 + $0xa4] ss:$0 sps:$4 sm:$0x11]   ;;  %v2758_v7 = vrot.slane %v2756_v2, 1  ;;  %v11405_v52 = vld [vmem:[%s15938_s3 + $0x120] ss:$12 sps:$4 sm:$0xff]  }
 0x202   :  { %4898 = vmatmul.mubr.bf16.gmra.mrb[8].mxu0 %v11266_v58  ;;  %v2751_v58 = vshll.u32 %v11315_v45, 16 }
 0x203   :  { %4907 = vmatprep.mubr.bf16.mxu0 %v2675_v51  ;;  %5067 = vmatpush1.bf16.msra.mxu0 %v12380_v10  ;;  %v2698_v10 = vrot.slane %v2696_v6, 1  ;;  %v11375_v51 = vld [vmem:[%s15938_s3 + $0x30] ss:$12 sps:$4 sm:$0xff]   ;;  %v11381_v6 = vld [vmem:[%s15938_s3 + $0x60] ss:$12 sps:$4 sm:$0xff]  }
 0x204   :  { %5068 = vmatprep.subr.bf16.mxu0 %v12385_v13  ;;  %v11275_v13 = vld [vmem:[#allocation2 + $0x48] sm:$0xff]   ;;  %6041 = vmatpush1.bf16.msra.mxu1 %v11375_v51  ;;  %v2753_v0 = vrot.slane %v2751_v58, 1  ;;  %v2797_v51 = vshrl.u32 %v11335_v47, 16 }
 0x205   :  { %6042 = vmatprep.subr.bf16.mxu1 %v11380_v1 }
 0x206   :  { %v2754_v8 = vor.u32 %v2753_v0, %v2749_v61  ;;  %v2804_v61 = vshll.u32 %v11336_v54, 16  ;;  %v11341_v0 = vld [vmem:[#allocation2 + $0xd4] ss:$0 sps:$4 sm:$0x11]  }
 0x207   :  { %5069 = vmatpush1.bf16.msra.mxu0 %v12395_v20  ;;  %v2699_v20 = vsel %vm824_vm0, %v2694_v9, %v2698_v10  ;;  %v11386_v9 = vld [vmem:[%s15938_s3 + $0x7c] ss:$12 sps:$4 sm:$0xff]  }
 0x208   :  { %5070 = vmatprep.subr.bf16.mxu0 %v12405_v30  ;;  %v2706_v30 = vor.u32 %v2705_v16, %v2701_v15  ;;  %6043 = vmatpush1.bf16.msra.mxu1 %v11378_v53  ;;  %v11312_v10 = vld [vmem:[#allocation2 + $0x84] sm:$0xff]   ;;  %v2768_v15 = vshll.u32 %v11321_v5, 16  ;;  %v2759_v18 = vsel %vm824_vm0, %v2754_v8, %v2758_v7  ;;  %v2806_v2 = vrot.slane %v2804_v61, 1  ;;  %v11345_v8 = vld [vmem:[#allocation2 + $0xd8] sm:$0xff]  }
 0x209   :  { %v11325_v16 = vld [vmem:[#allocation2 + $0xa8] sm:$0xff]   ;;  %v2816_v5 = vshll.u32 %v11341_v0, 16  ;;  %v11361_v0 = vld [vmem:[#allocation2 + $0x3c] sm:$0xfe]  }
 0x20a   :  { %4908 = vmatmul.mubr.bf16.gmra.mrb[12].mxu0 %v11272_v3  ;;  %v2711_v23 = vsel %vm824_vm0, %v2706_v30, %v2710_v19  ;;  %v2763_v3 = vshll.u32 %v11320_v55, 16  ;;  %v11387_v30 = vld [vmem:[%s15938_s3 + $0x90] ss:$12 sps:$4 sm:$0xff]   ;;  %v2770_v19 = vrot.slane %v2768_v15, 1  ;;  %v2799_v55 = vshll.u32 %v11335_v47, 16 }
 0x20b   :  { %4917 = vmatprep.mubr.bf16.mxu0 %v2687_v62  ;;  %5071 = vmatpush1.bf16.msra.mxu0 %v12410_v31  ;;  %v11300_v31 = vld [vmem:[#allocation2 + $0x74] ss:$0 sps:$4 sm:$0x11]   ;;  %v11383_v62 = vld [vmem:[%s15938_s3 + $0x64] ss:$12 sps:$4 sm:$0xff]  }
 0x20c   :  { %5072 = vmatprep.subr.bf16.mxu0 %v12415_v32  ;;  %v2717_v32 = vrot.slane %v2715_v21, 1  ;;  %v2720_v25 = vshll.u32 %v11300_v31, 16  ;;  %6044 = vmatprep.subr.bf16.mxu1 %v11383_v62  ;;  %v11392_v31 = vld [vmem:[%s15938_s3 + $0xac] ss:$12 sps:$4 sm:$0xff]   ;;  %v2801_v60 = vrot.slane %v2799_v55, 1 }
 0x20d   :  { %6045 = vmatpush1.bf16.msra.mxu1 %v11381_v6  ;;  %v11410_v53 = vld [vmem:[%s15938_s3 + $0x13c] ss:$12 sps:$4 sm:$0xff]   ;;  %v11408_v62 = vld [vmem:[%s15938_s3 + $0x138] ss:$12 sps:$4 sm:$0xff]   ;;  %v11413_v6 = vld [vmem:[%s15938_s3 + $0x154] ss:$12 sps:$4 sm:$0xff]  }
 0x20e   :  { %v2718_v27 = vor.u32 %v2717_v32, %v2713_v24  ;;  %v2722_v28 = vrot.slane %v2720_v25, 1  ;;  %6046 = vmatprep.subr.bf16.mxu1 %v11386_v9  ;;  %v11390_v24 = vld [vmem:[%s15938_s3 + $0xa8] ss:$12 sps:$4 sm:$0xff]   ;;  %v11395_v25 = vld [vmem:[%s15938_s3 + $0xc4] ss:$12 sps:$4 sm:$0xff]   ;;  %v2802_v1 = vor.u32 %v2801_v60, %v2797_v51 }
 0x20f   :  { %5073 = vmatpush1.bf16.msra.mxu0 %v12422_v39  ;;  %v11306_v39 = vld [vmem:[#allocation2 + $0x80] ss:$0 sps:$4 sm:$0x11]   ;;  %v11317_v32 = vld [vmem:[#allocation2 + $0x90] sm:$0xff]  }
 0x210   :  { %v2732_v34 = vshll.u32 %v11306_v39, 16  ;;  %v2723_v36 = vsel %vm824_vm0, %v2718_v27, %v2722_v28  ;;  %v2773_v39 = vshrl.u32 %v11325_v16, 16  ;;  %v2807_v7 = vsel %vm824_vm0, %v2802_v1, %v2806_v2 }
 0x212   :  { %4918 = vmatmul.mubr.bf16.gmra.mrb[16].mxu0 %v11275_v13  ;;  %v2734_v43 = vrot.slane %v2732_v34, 1  ;;  %v2765_v13 = vrot.slane %v2763_v3, 1  ;;  %v11398_v34 = vld [vmem:[%s15938_s3 + $0xdc] ss:$12 sps:$4 sm:$0xff]  }
 0x213   :  { %4927 = vmatprep.mubr.bf16.mxu0 %v2699_v20  ;;  %v11384_v20 = vld [vmem:[%s15938_s3 + $0x78] ss:$12 sps:$4 sm:$0xff]  }
 0x214   :  { %v2735_v56 = vsel %vm824_vm0, %v2730_v37, %v2734_v43  ;;  %6047 = vmatpush1.bf16.msra.mxu1 %v11384_v20  ;;  %v2766_v21 = vor.u32 %v2765_v13, %v2761_v14  ;;  %v2792_v43 = vshll.u32 %v11331_v33, 16  ;;  %v2789_v37 = vrot.slane %v2787_v40, 1  ;;  %v11411_v14 = vld [vmem:[%s15938_s3 + $0x150] ss:$12 sps:$4 sm:$0xff]   ;;  %v11416_v20 = vld [vmem:[%s15938_s3 + $0x16c] ss:$12 sps:$4 sm:$0xff]  }
 0x215   :  { %6048 = vmatprep.subr.bf16.mxu1 %v11389_v17  ;;  %v2818_v13 = vrot.slane %v2816_v5, 1  ;;  %v2823_v17 = vshll.u32 %v11345_v8, 16  ;;  %v11352_v40 = vld [vmem:[#allocation2 + $0xe4] sm:$0xff]  }
 0x216   :  { %v2771_v26 = vsel %vm824_vm0, %v2766_v21, %v2770_v19  ;;  %v2794_v49 = vrot.slane %v2792_v43, 1 }
 0x217   :  { %v2825_v21 = vrot.slane %v2823_v17, 1  ;;  %v11365_v17 = vld [vmem:[#allocation2 + $0x54] sm:$0xfe]  }
 0x218   :  { %6049 = vmatpush1.bf16.msra.mxu1 %v11387_v30  ;;  %v11337_v30 = vld [vmem:[#allocation2 + $0xc0] sm:$0xff]  }
 0x219   :  { %6050 = vmatprep.subr.bf16.mxu1 %v11392_v31  ;;  %v2821_v31 = vshrl.u32 %v11345_v8, 16 }
 0x21a   :  { %4928 = vmatmul.mubr.bf16.gmra.mrb[20].mxu0 %v11284_v22  ;;  %v11326_v22 = vld [vmem:[#allocation2 + $0xb0] ss:$0 sps:$4 sm:$0x11]  }
 0x21b   :  { %4937 = vmatprep.mubr.bf16.mxu0 %v2711_v23  ;;  %v2775_v23 = vshll.u32 %v11325_v16, 16  ;;  %v2780_v28 = vshll.u32 %v11326_v22, 16  ;;  %v11346_v16 = vld [vmem:[#allocation2 + $0xe0] ss:$0 sps:$4 sm:$0x11]  }
 0x21c   :  { %6051 = vmatpush1.bf16.msra.mxu1 %v11390_v24  ;;  %v2828_v22 = vshll.u32 %v11346_v16, 16  ;;  %v2826_v24 = vor.u32 %v2825_v21, %v2821_v31 }
 0x21d   :  { %v2777_v27 = vrot.slane %v2775_v23, 1  ;;  %6052 = vmatprep.subr.bf16.mxu1 %v11395_v25  ;;  %v11350_v23 = vld [vmem:[#allocation2 + $0xe4] sm:$0xff]   ;;  %v11351_v25 = vld [vmem:[#allocation2 + $0xec] ss:$0 sps:$4 sm:$0x11]  }
 0x21f   :  { %v2778_v35 = vor.u32 %v2777_v27, %v2773_v39  ;;  %v11342_v39 = vld [vmem:[#allocation2 + $0xcc] sm:$0xff]  }
 0x222   :  { %4938 = vmatmul.mubr.bf16.gmra.mrb[24].mxu0 %v11293_v38  ;;  %v11393_v38 = vld [vmem:[%s15938_s3 + $0xc0] ss:$12 sps:$4 sm:$0xff]  }
 0x223   :  { %4947 = vmatprep.mubr.bf16.mxu0 %v2723_v36  ;;  %6053 = vmatpush1.bf16.msra.mxu1 %v11393_v38  ;;  %v2782_v36 = vrot.slane %v2780_v28, 1  ;;  %v2833_v28 = vshrl.u32 %v11350_v23, 16  ;;  %v2840_v38 = vshll.u32 %v11351_v25, 16  ;;  %v11368_v25 = vld [vmem:[#allocation2 + $0x68] ss:$0 sps:$4 sm:$0x11]  }
 0x224   :  { %6054 = vmatprep.subr.bf16.mxu1 %v11398_v34 }
 0x225   :  { %v2783_v45 = vsel %vm824_vm0, %v2778_v35, %v2782_v36  ;;  %v2842_v34 = vrot.slane %v2840_v38, 1  ;;  %v11347_v35 = vld [vmem:[#allocation2 + $0xd8] sm:$0xff]   ;;  %v3097_v38 = vrot.slane %v11368_v25, 1 }
 0x227   :  { %6055 = vmatpush1.bf16.msra.mxu1 %v11396_v41  ;;  %v11355_v41 = vld [vmem:[#allocation2 + $0x18] sm:$0xfe]  }
 0x228   :  { %6056 = vmatprep.subr.bf16.mxu1 %v11401_v44  ;;  %v3078_v43 = vrot.slane %v11355_v41, 1 }
 0x22a   :  { %4948 = vmatmul.mubr.bf16.gmra.mrb[28].mxu0 %v11302_v46  ;;  %v2785_v46 = vshrl.u32 %v11330_v29, 16 }
 0x22b   :  { %4957 = vmatprep.mubr.bf16.mxu0 %v2735_v56  ;;  %6057 = vmatpush1.bf16.msra.mxu1 %v11399_v48  ;;  %v11327_v56 = vld [vmem:[#allocation2 + $0xa8] sm:$0xff]  }
 0x22c   :  { %v2790_v12 = vor.u32 %v2789_v37, %v2785_v46  ;;  %6058 = vmatprep.subr.bf16.mxu1 %v11404_v50  ;;  %v11357_v46 = vld [vmem:[#allocation2 + $0x24] sm:$0xfe]   ;;  %v11358_v37 = vld [vmem:[#allocation2 + $0x2c] ss:$0 sps:$4 sm:$0x11]  }
 0x22d   :  { %v3082_v54 = vrot.slane %v11358_v37, 1 }
 0x22e   :  { %v2795_v58 = vsel %vm824_vm0, %v2790_v12, %v2794_v49  ;;  %v3081_v12 = vrot.slane %v11357_v46, 1 }
 0x22f   :  { %6059 = vmatpush1.bf16.msra.mxu1 %v11402_v11  ;;  %v11359_v11 = vld [vmem:[#allocation2 + $0x30] sm:$0xfe]  }
 0x230   :  { %6060 = vmatprep.subr.bf16.mxu1 %v11407_v57  ;;  %v3083_v55 = vsel %vm1275_vm1, %v3081_v12, %v3082_v54  ;;  %v3084_v61 = vrot.slane %v11359_v11, 1 }
 0x232   :  { %4958 = vmatmul.mubr.bf16.gmra.mrb[32].mxu0 %v11307_v63  ;;  %v11340_v63 = vld [vmem:[#allocation2 + $0xcc] sm:$0xff]  }
 0x233   :  { %4967 = vmatprep.mubr.bf16.mxu0 %v2747_v4  ;;  %6061 = vmatpush1.bf16.msra.mxu1 %v11405_v52  ;;  %v2811_v3 = vshll.u32 %v11340_v63, 16  ;;  %v11332_v4 = vld [vmem:[#allocation2 + $0xb4] sm:$0xff]   ;;  %v2809_v9 = vshrl.u32 %v11340_v63, 16 }
 0x234   :  { %6062 = vmatprep.subr.bf16.mxu1 %v11410_v53  ;;  %v11362_v53 = vld [vmem:[#allocation2 + $0x44] ss:$0 sps:$4 sm:$0x11]  }
 0x235   :  { %v3088_v5 = vrot.slane %v11362_v53, 1  ;;  %v3476_v53 = vlaneseq }
 0x237   :  { %6063 = vmatpush1.bf16.msra.mxu1 %v11408_v62 }
 0x238   :  { %6064 = vmatprep.subr.bf16.mxu1 %v11413_v6 }
 0x23a   :  { %4968 = vmatmul.mubr.bf16.gmra.mrb[36].mxu0 %v11312_v10  ;;  %v2813_v10 = vrot.slane %v2811_v3, 1 }
 0x23b   :  { %4977 = vmatprep.mubr.bf16.mxu0 %v2759_v18  ;;  %6065 = vmatpush1.bf16.msra.mxu1 %v11411_v14  ;;  %v11414_v18 = vld [vmem:[%s15938_s3 + $0x168] ss:$12 sps:$4 sm:$0xff]  }
 0x23c   :  { %v2814_v15 = vor.u32 %v2813_v10, %v2809_v9  ;;  %6066 = vmatprep.subr.bf16.mxu1 %v11416_v20  ;;  %v11364_v9 = vld [vmem:[#allocation2 + $0x50] ss:$0 sps:$4 sm:$0x11]  }
 0x23e   :  { %v2819_v19 = vsel %vm824_vm0, %v2814_v15, %v2818_v13  ;;  %v3091_v15 = vrot.slane %v11364_v9, 1 }
 0x23f   :  { %6067 = vmatpush1.bf16.msra.mxu1 %v11414_v18  ;;  %v11366_v18 = vld [vmem:[#allocation2 + $0x5c] ss:$0 sps:$4 sm:$0x11]  }
 0x240   :  { %6418 = vmatprep.subr.bf16.mxu1 %v15944_v59 }
 0x242   :  { %4978 = vmatmul.mubr.bf16.gmra.mrb[40].mxu0 %v11317_v32  ;;  %6069 = vmatmul.mubr.bf16.vlgmr.msra.gmra.mrb[44].mxu1 %v15944_v59  ;;  %v2830_v32 = vrot.slane %v2828_v22, 1  ;;  %v3093_v22 = vrot.slane %v11365_v17, 1 }
 0x243   :  { %4987 = vmatprep.mubr.bf16.mxu0 %v2771_v26  ;;  %6076 = vmatprep.mubr.bf16.mxu1 %v15944_v59  ;;  %v2835_v26 = vshll.u32 %v11350_v23, 16  ;;  %v3094_v23 = vrot.slane %v11366_v18, 1 }
 0x244   :  { %v2831_v27 = vsel %vm824_vm0, %v2826_v24, %v2830_v32  ;;  %v11367_v32 = vld [vmem:[#allocation2 + $0x60] sm:$0xfe]  }
 0x245   :  { %v2837_v29 = vrot.slane %v2835_v26, 1  ;;  %v3095_v24 = vsel %vm1275_vm1, %v3093_v22, %v3094_v23 }
 0x247   :  { %v2838_v33 = vor.u32 %v2837_v29, %v2833_v28  ;;  %v3096_v29 = vrot.slane %v11367_v32, 1 }
 0x249   :  { %v2843_v36 = vsel %vm824_vm0, %v2838_v33, %v2842_v34  ;;  %v3098_v33 = vsel %vm1275_vm1, %v3096_v29, %v3097_v38 }
 0x24a   :  { %4988 = vmatmul.mubr.bf16.gmra.mrb[44].mxu0 %v11322_v42  ;;  %6077 = vmatmul.mubr.bf16.gmra.mrb[48].mxu1 %v15944_v59  ;;  %v11356_v42 = vld [vmem:[#allocation2 + $0x20] ss:$0 sps:$4 sm:$0x11]  }
 0x24b   :  { %4997 = vmatprep.mubr.bf16.mxu0 %v2783_v45  ;;  %v3079_v44 = vrot.slane %v11356_v42, 1 }
 0x24d   :  { %v3080_v45 = vsel %vm1275_vm1, %v3078_v43, %v3079_v44 }
 0x252   :  { %4998 = vmatmul.mubr.bf16.gmra.mrb[48].mxu0 %v11327_v56  ;;  %v11360_v56 = vld [vmem:[#allocation2 + $0x38] ss:$0 sps:$4 sm:$0x11]  }
 0x253   :  { %5007 = vmatprep.mubr.bf16.mxu0 %v2795_v58  ;;  %v3085_v63 = vrot.slane %v11360_v56, 1 }
 0x255   :  { %v3086_v52 = vsel %vm1275_vm1, %v3084_v61, %v3085_v63 }
 0x25a   :  { %5008 = vmatmul.mubr.bf16.gmra.mrb[52].mxu0 %v11332_v4  ;;  %v3087_v4 = vrot.slane %v11361_v0, 1 }
 0x25b   :  { %5017 = vmatprep.mubr.bf16.mxu0 %v2807_v7  ;;  %v11363_v7 = vld [vmem:[#allocation2 + $0x48] sm:$0xfe]  }
 0x25c   :  { %v3089_v6 = vsel %vm1275_vm1, %v3087_v4, %v3088_v5  ;;  %v3090_v20 = vrot.slane %v11363_v7, 1  ;;  %v12802_v4 = vshrl.u32 %v3476_v53, 7 }
 0x25e   :  { %v3092_v16 = vsel %vm1275_vm1, %v3090_v20, %v3091_v15  ;;  %16141 = vst [vmem:[#allocation5_spill] sm:$0xff] %v12802_v4  ;;  %v3478_v5 = vsub.s32 0, %v12802_v4  ;;  %v3482_v7 = vsub.s32 1, %v12802_v4 }
 0x262   :  { %5018 = vmatmul.mubr.bf16.gmra.mrb[56].mxu0 %v11337_v30 }
 0x263   :  { %5027 = vmatprep.mubr.bf16.mxu0 %v2819_v19 }
 0x26a   :  { %5028 = vmatmul.mubr.bf16.gmra.mrb[60].mxu0 %v11342_v39 }
 0x26b   :  { %5037 = vmatprep.mubr.bf16.mxu0 %v2831_v27 }
 0x26c   :  { %v12706_v47 = vpop.f32.mrb[0].mxu1 }
 0x26d   :  { %v12708_v48 = vpop.f32.mrb[1].mxu1 }
 0x26e   :  { %v12710_v49 = vpop.f32.mrb[2].mxu1 }
 0x26f   :  { %v12712_v50 = vpop.f32.mrb[3].mxu1 }
 0x272   :  { %5038 = vmatmul.mubr.bf16.gmra.mrb[64].mxu0 %v11347_v35 }
 0x273   :  { %5047 = vmatprep.mubr.bf16.mxu0 %v2843_v36 }
 0x279   :  { %v12716_v57 = vpop.f32.mrb[4].mxu1 }
 0x27a   :  { %5048 = vmatmul.mubr.bf16.gmra.mrb[68].mxu0 %v11352_v40  ;;  %v12718_v58 = vpop.f32.mrb[5].mxu1 }
 0x27b   :  { %5090 = vmatprep.mubr.bf16.mxu0 %v15944_v59  ;;  %v12720_v51 = vpop.f32.mrb[6].mxu1 }
 0x27c   :  { %v12722_v60 = vpop.f32.mrb[7].mxu1 }
 0x281   :  { %v12726_v1 = vpop.f32.mrb[8].mxu1 }
 0x282   :  { %5091 = vmatmul.mubr.bf16.vlgmr.msra.gmra.mrb[0].mxu0 %v3080_v45  ;;  %v12728_v2 = vpop.f32.mrb[9].mxu1 }
 0x283   :  { %5100 = vmatprep.mubr.bf16.mxu0 %v15944_v59  ;;  %v12730_v3 = vpop.f32.mrb[10].mxu1 }
 0x284   :  { %v12732_v62 = vpop.f32.mrb[11].mxu1 }
 0x289   :  { %v12736_v10 = vpop.f32.mrb[12].mxu1 }
 0x28a   :  { %5101 = vmatmul.mubr.bf16.gmra.mrb[4].mxu0 %v3083_v55  ;;  %v12738_v8 = vpop.f32.mrb[13].mxu1 }
 0x28b   :  { %5110 = vmatprep.mubr.bf16.mxu0 %v15944_v59  ;;  %v12740_v14 = vpop.f32.mrb[14].mxu1 }
 0x28c   :  { %v12742_v13 = vpop.f32.mrb[15].mxu1 }
 0x291   :  { %v12746_v30 = vpop.f32.mrb[16].mxu1 }
 0x292   :  { %5111 = vmatmul.mubr.bf16.gmra.mrb[8].mxu0 %v3086_v52  ;;  %v12748_v19 = vpop.f32.mrb[17].mxu1 }
 0x293   :  { %5120 = vmatprep.mubr.bf16.mxu0 %v15944_v59  ;;  %v12750_v31 = vpop.f32.mrb[18].mxu1 }
 0x294   :  { %v12752_v21 = vpop.f32.mrb[19].mxu1 }
 0x299   :  { %v12756_v26 = vpop.f32.mrb[20].mxu1 }
 0x29a   :  { %5121 = vmatmul.mubr.bf16.gmra.mrb[12].mxu0 %v3089_v6  ;;  %v12758_v39 = vpop.f32.mrb[21].mxu1  ;;  %v3474_v6 = vld [vmem:[%s15939_s2] sm:$0x3]  ;;  %s11668_s2 = smov 96  }
 0x29b   :  { %5130 = vmatprep.mubr.bf16.mxu0 %v15944_v59  ;;  %v12760_v27 = vpop.f32.mrb[22].mxu1  ;;  %v12809_v9 = vrot.slane %v3474_v6, %v3478_v5  ;;  %v12811_v20 = vrot.slane %v3474_v6, %v3482_v7 }
 0x29c   :  { %v12762_v28 = vpop.f32.mrb[23].mxu1 }
 0x2a1   :  { %v12766_v34 = vpop.f32.mrb[24].mxu1 }
 0x2a2   :  { %5131 = vmatmul.mubr.bf16.gmra.mrb[16].mxu0 %v3092_v16  ;;  %v12768_v35 = vpop.f32.mrb[25].mxu1 }
 0x2a3   :  { %5140 = vmatprep.mubr.bf16.mxu0 %v15944_v59  ;;  %v12770_v36 = vpop.f32.mrb[26].mxu1 }
 0x2a4   :  { %v12772_v40 = vpop.f32.mrb[27].mxu1 }
 0x2a9   :  { %v12774_v41 = vpop.f32.mrb[28].mxu1 }
 0x2aa   :  { %5141 = vmatmul.mubr.bf16.gmra.mrb[20].mxu0 %v3095_v24  ;;  %v12776_v42 = vpop.f32.mrb[29].mxu1 }
 0x2ab   :  { %5150 = vmatprep.mubr.bf16.mxu0 %v15944_v59  ;;  %v12778_v43 = vpop.f32.mrb[30].mxu1 }
 0x2ac   :  { %v12780_v44 = vpop.f32.mrb[31].mxu1 }
 0x2b1   :  { %v12782_v45 = vpop.f32.mrb[32].mxu1 }
 0x2b2   :  { %5151 = vmatmul.mubr.bf16.gmra.mrb[24].mxu0 %v3098_v33  ;;  %v12784_v46 = vpop.f32.mrb[33].mxu1 }
 0x2b3   :  { %v12786_v37 = vpop.f32.mrb[34].mxu1 }
 0x2b4   :  { %v12788_v12 = vpop.f32.mrb[35].mxu1 }
 0x2b9   :  { %v12790_v54 = vpop.f32.mrb[36].mxu1 }
 0x2ba   :  { %v12792_v55 = vpop.f32.mrb[37].mxu1 }
 0x2bb   :  { %v12794_v11 = vpop.f32.mrb[38].mxu1 }
 0x2bc   :  { %v12796_v56 = vpop.f32.mrb[39].mxu1 }
 0x2ca   :  { %v12798_v61 = vpop.f32.mrb[40].mxu1 }
 0x2cb   :  { %v5264_v63 = vpop.f32.mrb[41].mxu1 }
 0x2cc   :  { %v12800_v52 = vpop.f32.mrb[42].mxu1 }
 0x2cd   :  { %v5268_v0 = vpop.f32.mrb[43].mxu1 }
 0x2fd   :  { %v4949_v15 = vpop.f32.mrb[28].mxu0 }
 0x2fe   :  { %v10545_v16 = vadd.f32 %v4949_v15, %v12809_v9  ;;  %v4951_v17 = vpop.f32.mrb[29].mxu0 }
 0x2ff   :  { %v10547_v18 = vadd.f32 %v4951_v17, %v12811_v20  ;;  %v4953_v22 = vpop.f32.mrb[30].mxu0 }
 0x300   :  { %v10549_v23 = vadd.f32 %v4953_v22, %v12809_v9  ;;  %v10546_v24 = vadd.f32 %v10545_v16, %v12706_v47  ;;  %v4955_v32 = vpop.f32.mrb[31].mxu0 }
 0x301   :  { %v10551_v25 = vadd.f32 %v4955_v32, %v12811_v20  ;;  %v10548_v29 = vadd.f32 %v10547_v18, %v12708_v48 }
 0x302   :  { %v10550_v38 = vadd.f32 %v10549_v23, %v12710_v49  ;;  %v5299_v63 = vmax.f32 %v10546_v24, 0.0 }
 0x303   :  { %v10552_v33 = vadd.f32 %v10551_v25, %v12712_v50  ;;  %v5300_v53 = vmax.f32 %v10548_v29, 0.0 }
 0x304   :  { %v5301_v0 = vmax.f32 %v10550_v38, 0.0 }
 0x305   :  { %v5302_v5 = vmax.f32 %v10552_v33, 0.0  ;;  %v4959_v6 = vpop.f32.mrb[32].mxu0 }
 0x306   :  { %v5357_v7 = vpack.c.bf16 %v5301_v0, %v5299_v63  ;;  %v10553_v15 = vadd.f32 %v4959_v6, %v12809_v9  ;;  %v4961_v17 = vpop.f32.mrb[33].mxu0 }
 0x307   :  { %v5358_v22 = vpack.c.bf16 %v5302_v5, %v5300_v53  ;;  %v10555_v47 = vadd.f32 %v4961_v17, %v12811_v20  ;;  %v4963_v16 = vpop.f32.mrb[34].mxu0 }
 0x308   :  { %v5429_v32 = vrot.slane %v5357_v7, 4  ;;  %v10557_v48 = vadd.f32 %v4963_v16, %v12809_v9  ;;  %v10554_v49 = vadd.f32 %v10553_v15, %v12716_v57  ;;  %v4965_v18 = vpop.f32.mrb[35].mxu0 }
 0x309   :  { %v5430_v50 = vrot.slane %v5358_v22, 4  ;;  %v10559_v23 = vadd.f32 %v4965_v18, %v12811_v20  ;;  %v10556_v24 = vadd.f32 %v10555_v47, %v12718_v58 }
 0x30a   :  { %5515 = vst [vmem:[#allocation4 + $0xf0] ss:$-12 sps:$4 sm:$0xff] %v5429_v32   ;;  %v10558_v25 = vadd.f32 %v10557_v48, %v12720_v51  ;;  %v5303_v38 = vmax.f32 %v10554_v49, 0.0 }
 0x30b   :  { %5516 = vst [vmem:[#allocation4 + $0xf8] ss:$-12 sps:$4 sm:$0xff] %v5430_v50   ;;  %v10560_v29 = vadd.f32 %v10559_v23, %v12722_v60  ;;  %v5304_v63 = vmax.f32 %v10556_v24, 0.0 }
 0x30c   :  { %v5305_v33 = vmax.f32 %v10558_v25, 0.0 }
 0x30d   :  { %v5306_v0 = vmax.f32 %v10560_v29, 0.0  ;;  %v4969_v53 = vpop.f32.mrb[36].mxu0 }
 0x30e   :  { %v5359_v5 = vpack.c.bf16 %v5305_v33, %v5303_v38  ;;  %v10561_v57 = vadd.f32 %v4969_v53, %v12809_v9  ;;  %v4971_v6 = vpop.f32.mrb[37].mxu0 }
 0x30f   :  { %v5360_v7 = vpack.c.bf16 %v5306_v0, %v5304_v63  ;;  %v10563_v15 = vadd.f32 %v4971_v6, %v12811_v20  ;;  %v4973_v17 = vpop.f32.mrb[38].mxu0 }
 0x310   :  { %v5431_v58 = vrot.slane %v5359_v5, 4  ;;  %v10565_v22 = vadd.f32 %v4973_v17, %v12809_v9  ;;  %v10562_v51 = vadd.f32 %v10561_v57, %v12726_v1  ;;  %v4975_v47 = vpop.f32.mrb[39].mxu0 }
 0x311   :  { %v5432_v60 = vrot.slane %v5360_v7, 4  ;;  %v10567_v16 = vadd.f32 %v4975_v47, %v12811_v20  ;;  %v10564_v32 = vadd.f32 %v10563_v15, %v12728_v2 }
 0x312   :  { %5519 = vst [vmem:[#allocation4 + $0x110] ss:$-12 sps:$4 sm:$0xff] %v5431_v58   ;;  %v10566_v48 = vadd.f32 %v10565_v22, %v12730_v3  ;;  %v5307_v18 = vmax.f32 %v10562_v51, 0.0 }
 0x313   :  { %5520 = vst [vmem:[#allocation4 + $0x118] ss:$-12 sps:$4 sm:$0xff] %v5432_v60   ;;  %v10568_v49 = vadd.f32 %v10567_v16, %v12732_v62  ;;  %v5308_v23 = vmax.f32 %v10564_v32, 0.0 }
 0x314   :  { %v5309_v50 = vmax.f32 %v10566_v48, 0.0 }
 0x315   :  { %v5310_v24 = vmax.f32 %v10568_v49, 0.0  ;;  %v4979_v25 = vpop.f32.mrb[40].mxu0 }
 0x316   :  { %v5361_v29 = vpack.c.bf16 %v5309_v50, %v5307_v18  ;;  %v10569_v1 = vadd.f32 %v4979_v25, %v12809_v9  ;;  %v4981_v38 = vpop.f32.mrb[41].mxu0 }
 0x317   :  { %v5362_v33 = vpack.c.bf16 %v5310_v24, %v5308_v23  ;;  %v10571_v63 = vadd.f32 %v4981_v38, %v12811_v20  ;;  %v4983_v0 = vpop.f32.mrb[42].mxu0 }
 0x318   :  { %v5433_v2 = vrot.slane %v5361_v29, 4  ;;  %v10573_v53 = vadd.f32 %v4983_v0, %v12809_v9  ;;  %v10570_v3 = vadd.f32 %v10569_v1, %v12736_v10  ;;  %v4985_v5 = vpop.f32.mrb[43].mxu0 }
 0x319   :  { %v5434_v62 = vrot.slane %v5362_v33, 4  ;;  %v10575_v57 = vadd.f32 %v4985_v5, %v12811_v20  ;;  %v10572_v6 = vadd.f32 %v10571_v63, %v12738_v8 }
 0x31a   :  { %5523 = vst [vmem:[#allocation4 + $0x130] ss:$-12 sps:$4 sm:$0xff] %v5433_v2   ;;  %v10574_v7 = vadd.f32 %v10573_v53, %v12740_v14  ;;  %v5311_v17 = vmax.f32 %v10570_v3, 0.0 }
 0x31b   :  { %5524 = vst [vmem:[#allocation4 + $0x138] ss:$-12 sps:$4 sm:$0xff] %v5434_v62   ;;  %v10576_v15 = vadd.f32 %v10575_v57, %v12742_v13  ;;  %v5312_v22 = vmax.f32 %v10572_v6, 0.0 }
 0x31c   :  { %v5313_v58 = vmax.f32 %v10574_v7, 0.0 }
 0x31d   :  { %v5314_v51 = vmax.f32 %v10576_v15, 0.0  ;;  %v4989_v47 = vpop.f32.mrb[44].mxu0 }
 0x31e   :  { %v5363_v60 = vpack.c.bf16 %v5313_v58, %v5311_v17  ;;  %v10577_v10 = vadd.f32 %v4989_v47, %v12809_v9  ;;  %v4991_v16 = vpop.f32.mrb[45].mxu0 }
 0x31f   :  { %v5364_v32 = vpack.c.bf16 %v5314_v51, %v5312_v22  ;;  %v10579_v48 = vadd.f32 %v4991_v16, %v12811_v20  ;;  %v4993_v49 = vpop.f32.mrb[46].mxu0 }
 0x320   :  { %v5435_v8 = vrot.slane %v5363_v60, 4  ;;  %v10581_v18 = vadd.f32 %v4993_v49, %v12809_v9  ;;  %v10578_v14 = vadd.f32 %v10577_v10, %v12746_v30  ;;  %v4995_v50 = vpop.f32.mrb[47].mxu0 }
 0x321   :  { %v5436_v13 = vrot.slane %v5364_v32, 4  ;;  %v10583_v23 = vadd.f32 %v4995_v50, %v12811_v20  ;;  %v10580_v24 = vadd.f32 %v10579_v48, %v12748_v19 }
 0x322   :  { %5527 = vst [vmem:[#allocation4 + $0x150] ss:$-12 sps:$4 sm:$0xff] %v5435_v8   ;;  %v10582_v25 = vadd.f32 %v10581_v18, %v12750_v31  ;;  %v5315_v1 = vmax.f32 %v10578_v14, 0.0 }
 0x323   :  { %5528 = vst [vmem:[#allocation4 + $0x158] ss:$-12 sps:$4 sm:$0xff] %v5436_v13   ;;  %v10584_v29 = vadd.f32 %v10583_v23, %v12752_v21  ;;  %v5316_v33 = vmax.f32 %v10580_v24, 0.0 }
 0x324   :  { %v5317_v38 = vmax.f32 %v10582_v25, 0.0 }
 0x325   :  { %v5318_v63 = vmax.f32 %v10584_v29, 0.0  ;;  %v4999_v0 = vpop.f32.mrb[48].mxu0 }
 0x326   :  { %v5365_v2 = vpack.c.bf16 %v5317_v38, %v5315_v1  ;;  %v10585_v30 = vadd.f32 %v4999_v0, %v12809_v9  ;;  %v5001_v53 = vpop.f32.mrb[49].mxu0 }
 0x327   :  { %v5366_v3 = vpack.c.bf16 %v5318_v63, %v5316_v33  ;;  %v10587_v5 = vadd.f32 %v5001_v53, %v12811_v20  ;;  %v5003_v62 = vpop.f32.mrb[50].mxu0  ;;  %v12869_v63 = vpop.f32.mrb[44].mxu1 }
 0x328   :  { %v5437_v19 = vrot.slane %v5365_v2, 4  ;;  %v10589_v57 = vadd.f32 %v5003_v62, %v12809_v9  ;;  %v10586_v31 = vadd.f32 %v10585_v30, %v12756_v26  ;;  %v5005_v6 = vpop.f32.mrb[51].mxu0  ;;  %v6072_v30 = vpop.f32.mrb[45].mxu1 }
 0x329   :  { %v5438_v21 = vrot.slane %v5366_v3, 4  ;;  %v10591_v7 = vadd.f32 %v5005_v6, %v12811_v20  ;;  %v10588_v15 = vadd.f32 %v10587_v5, %v12758_v39 }
 0x32a   :  { %5531 = vst [vmem:[#allocation4 + $0x170] ss:$-12 sps:$4 sm:$0xff] %v5437_v19   ;;  %v10590_v17 = vadd.f32 %v10589_v57, %v12760_v27  ;;  %v5319_v22 = vmax.f32 %v10586_v31, 0.0 }
 0x32b   :  { %5532 = vst [vmem:[#allocation4 + $0x178] ss:$-12 sps:$4 sm:$0xff] %v5438_v21   ;;  %v10592_v58 = vadd.f32 %v10591_v7, %v12762_v28  ;;  %v5320_v47 = vmax.f32 %v10588_v15, 0.0 }
 0x32c   :  { %v5321_v51 = vmax.f32 %v10590_v17, 0.0 }
 0x32d   :  { %v5322_v60 = vmax.f32 %v10592_v58, 0.0  ;;  %v5009_v10 = vpop.f32.mrb[52].mxu0 }
 0x32e   :  { %v5367_v16 = vpack.c.bf16 %v5321_v51, %v5319_v22  ;;  %v10593_v26 = vadd.f32 %v5009_v10, %v12809_v9  ;;  %v5011_v32 = vpop.f32.mrb[53].mxu0 }
 0x32f   :  { %v5368_v48 = vpack.c.bf16 %v5322_v60, %v5320_v47  ;;  %v10595_v49 = vadd.f32 %v5011_v32, %v12811_v20  ;;  %v5013_v8 = vpop.f32.mrb[54].mxu0 }
 0x330   :  { %v5439_v39 = vrot.slane %v5367_v16, 4  ;;  %v10597_v18 = vadd.f32 %v5013_v8, %v12809_v9  ;;  %v10594_v27 = vadd.f32 %v10593_v26, %v12766_v34  ;;  %v5015_v14 = vpop.f32.mrb[55].mxu0 }
 0x331   :  { %v5440_v28 = vrot.slane %v5368_v48, 4  ;;  %v10599_v50 = vadd.f32 %v5015_v14, %v12811_v20  ;;  %v10596_v13 = vadd.f32 %v10595_v49, %v12768_v35 }
 0x332   :  { %5535 = vst [vmem:[#allocation4 + $0x190] ss:$-12 sps:$4 sm:$0xff] %v5439_v39   ;;  %v10598_v23 = vadd.f32 %v10597_v18, %v12770_v36  ;;  %v5323_v25 = vmax.f32 %v10594_v27, 0.0  ;;  %v12873_v36 = vpop.f32.mrb[46].mxu1 }
 0x333   :  { %5536 = vst [vmem:[#allocation4 + $0x198] ss:$-12 sps:$4 sm:$0xff] %v5440_v28   ;;  %v10600_v24 = vadd.f32 %v10599_v50, %v12772_v40  ;;  %v5324_v1 = vmax.f32 %v10596_v13, 0.0  ;;  %v6075_v57 = vpop.f32.mrb[47].mxu1  ;;  %v6796_v31 = vrot.slane %v12873_v36, 1 }
 0x334   :  { %v5325_v29 = vmax.f32 %v10598_v23, 0.0  ;;  %v12884_v10 = vpop.f32.mrb[48].mxu1 }
 0x335   :  { %v5326_v38 = vmax.f32 %v10600_v24, 0.0  ;;  %v5019_v33 = vpop.f32.mrb[56].mxu0  ;;  %6844 = vrot.lane.b32.xlu0 %v6796_v31, %s11668_s2  ;;  %v6797_v32 = vrot.slane %v12884_v10, 1  ;;  %v7054_v24 = vrot.slane %v12884_v10, 2 }
 0x336   :  { %v5369_v34 = vpack.c.bf16 %v5325_v29, %v5323_v25  ;;  %v10601_v0 = vadd.f32 %v5019_v33, %v12809_v9  ;;  %v5021_v2 = vpop.f32.mrb[57].mxu0 }
 0x337   :  { %v5370_v53 = vpack.c.bf16 %v5326_v38, %v5324_v1  ;;  %v10603_v35 = vadd.f32 %v5021_v2, %v12811_v20  ;;  %v5023_v3 = vpop.f32.mrb[58].mxu0  ;;  %6848 = vrot.lane.b32.xlu1 %v6797_v32, %s11668_s2  ;;  %v6798_v14 = vsel %vm1275_vm1, %v6796_v31, %v6797_v32 }
 0x338   :  { %v5441_v5 = vrot.slane %v5369_v34, 4  ;;  %v10605_v40 = vadd.f32 %v5023_v3, %v12809_v9  ;;  %v10602_v62 = vadd.f32 %v10601_v0, %v12774_v41  ;;  %v5025_v19 = vpop.f32.mrb[59].mxu0  ;;  %v7053_v41 = vrot.slane %v12873_v36, 2 }
 0x339   :  { %v5442_v6 = vrot.slane %v5370_v53, 4  ;;  %v10607_v21 = vadd.f32 %v5025_v19, %v12811_v20  ;;  %v10604_v7 = vadd.f32 %v10603_v35, %v12776_v42 }
 0x33a   :  { %5539 = vst [vmem:[#allocation4 + $0x1b0] ss:$-12 sps:$4 sm:$0xff] %v5441_v5   ;;  %v10606_v15 = vadd.f32 %v10605_v40, %v12778_v43  ;;  %v5327_v58 = vmax.f32 %v10602_v62, 0.0  ;;  %7133 = vrot.lane.b32.xlu0 %v7053_v41, %s11669_s11  ;;  %v6080_v43 = vpop.f32.mrb[49].mxu1  ;;  %v7055_v1 = vsel %vm7052_vm2, %v7053_v41, %v7054_v24 }
 0x33b   :  { %5540 = vst [vmem:[#allocation4 + $0x1b8] ss:$-12 sps:$4 sm:$0xff] %v5442_v6   ;;  %v10608_v17 = vadd.f32 %v10607_v21, %v12780_v44  ;;  %v5328_v51 = vmax.f32 %v10604_v7, 0.0  ;;  %7135 = vrot.lane.b32.xlu1 %v7055_v1, %s11669_s11  ;;  %v6081_v40 = vpop.f32.mrb[50].mxu1 }
 0x33c   :  { %v5329_v22 = vmax.f32 %v10606_v15, 0.0  ;;  %v7056_v31 = vrot.slane %v6081_v40, 2  ;;  %v6083_v6 = vpop.f32.mrb[51].mxu1 }
 0x33d   :  { %v5330_v47 = vmax.f32 %v10608_v17, 0.0  ;;  %v5029_v60 = vpop.f32.mrb[60].mxu0  ;;  %v11418_v6 = vld [vmem:[%s15938_s3 + $0x20] ss:$12 sps:$4 sm:$0xff]  }
 0x33e   :  { %v5371_v16 = vpack.c.bf16 %v5329_v22, %v5327_v58  ;;  %v10609_v42 = vadd.f32 %v5029_v60, %v12809_v9  ;;  %v5031_v26 = vpop.f32.mrb[61].mxu0  ;;  %6846 = vrot.lane.b32.xlu0 %v6798_v14, %s11668_s2  ;;  %v7057_v15 = vsel %vm7052_vm2, %v7054_v24, %v7056_v31 }
 0x33f   :  { %v5372_v44 = vpack.c.bf16 %v5330_v47, %v5328_v51  ;;  %v10611_v48 = vadd.f32 %v5031_v26, %v12811_v20  ;;  %v5033_v49 = vpop.f32.mrb[62].mxu0 }
 0x340   :  { %v5443_v8 = vrot.slane %v5371_v16, 4  ;;  %v10613_v39 = vadd.f32 %v5033_v49, %v12809_v9  ;;  %v10610_v18 = vadd.f32 %v10609_v42, %v12782_v45  ;;  %v5035_v27 = vpop.f32.mrb[63].mxu0 }
 0x341   :  { %v5444_v28 = vrot.slane %v5372_v44, 4  ;;  %v10615_v50 = vadd.f32 %v5035_v27, %v12811_v20  ;;  %v10612_v13 = vadd.f32 %v10611_v48, %v12784_v46 }
 0x342   :  { %5543 = vst [vmem:[#allocation4 + $0x1d0] ss:$-12 sps:$4 sm:$0xff] %v5443_v8   ;;  %v10614_v23 = vadd.f32 %v10613_v39, %v12786_v37  ;;  %v5331_v25 = vmax.f32 %v10610_v18, 0.0  ;;  %7137 = vrot.lane.b32.xlu0 %v7057_v15, %s11669_s11 }
 0x343   :  { %5544 = vst [vmem:[#allocation4 + $0x1d8] ss:$-12 sps:$4 sm:$0xff] %v5444_v28   ;;  %v10616_v45 = vadd.f32 %v10615_v50, %v12788_v12  ;;  %v5332_v38 = vmax.f32 %v10612_v13, 0.0 }
 0x344   :  { %v5333_v29 = vmax.f32 %v10614_v23, 0.0 }
 0x345   :  { %v5334_v33 = vmax.f32 %v10616_v45, 0.0  ;;  %v5039_v34 = vpop.f32.mrb[64].mxu0 }
 0x346   :  { %v5373_v46 = vpack.c.bf16 %v5333_v29, %v5331_v25  ;;  %v10617_v0 = vadd.f32 %v5039_v34, %v12809_v9  ;;  %v5041_v37 = vpop.f32.mrb[65].mxu0 }
 0x347   :  { %v5374_v2 = vpack.c.bf16 %v5334_v33, %v5332_v38  ;;  %v10619_v30 = vadd.f32 %v5041_v37, %v12811_v20  ;;  %v5043_v53 = vpop.f32.mrb[66].mxu0 }
 0x348   :  { %v5445_v35 = vrot.slane %v5373_v46, 4  ;;  %v10621_v12 = vadd.f32 %v5043_v53, %v12809_v9  ;;  %v10618_v3 = vadd.f32 %v10617_v0, %v12790_v54  ;;  %v5045_v5 = vpop.f32.mrb[67].mxu0 }
 0x349   :  { %v5446_v62 = vrot.slane %v5374_v2, 4  ;;  %v10623_v19 = vadd.f32 %v5045_v5, %v12811_v20  ;;  %v10620_v57 = vadd.f32 %v10619_v30, %v12792_v55 }
 0x34a   :  { %5547 = vst [vmem:[#allocation4 + $0x1f0] ss:$-12 sps:$4 sm:$0xff] %v5445_v35   ;;  %v10622_v21 = vadd.f32 %v10621_v12, %v12794_v11  ;;  %v5335_v17 = vmax.f32 %v10618_v3, 0.0 }
 0x34b   :  { %5548 = vst [vmem:[#allocation4 + $0x1f8] ss:$-12 sps:$4 sm:$0xff] %v5446_v62   ;;  %v10624_v7 = vadd.f32 %v10623_v19, %v12796_v56  ;;  %v5336_v54 = vmax.f32 %v10620_v57, 0.0 }
 0x34c   :  { %v5337_v41 = vmax.f32 %v10622_v21, 0.0 }
 0x34d   :  { %v5338_v58 = vmax.f32 %v10624_v7, 0.0  ;;  %v5049_v22 = vpop.f32.mrb[68].mxu0 }
 0x34e   :  { %v5375_v51 = vpack.c.bf16 %v5337_v41, %v5335_v17  ;;  %v10625_v55 = vadd.f32 %v5049_v22, %v12809_v9  ;;  %v5051_v47 = vpop.f32.mrb[69].mxu0 }
 0x34f   :  { %v5376_v60 = vpack.c.bf16 %v5338_v58, %v5336_v54  ;;  %v5053_v16 = vpop.f32.mrb[70].mxu0 }
 0x350   :  { %v5447_v42 = vrot.slane %v5375_v51, 4  ;;  %v10629_v11 = vadd.f32 %v5053_v16, %v12809_v9  ;;  %v10626_v56 = vadd.f32 %v10625_v55, %v12798_v61  ;;  %v5055_v26 = vpop.f32.mrb[71].mxu0  ;;  %v11417_v61 = vld [vmem:[%s15938_s3 + $0x8] ss:$12 sps:$4 sm:$0xff]  }
 0x351   :  { %v5448_v43 = vrot.slane %v5376_v60, 4  ;;  %6419 = vmatpush1.bf16.msra.mxu1 %v11417_v61 }
 0x352   :  { %5551 = vst [vmem:[#allocation4 + $0x210] ss:$-12 sps:$4 sm:$0xff] %v5447_v42   ;;  %v10630_v32 = vadd.f32 %v10629_v11, %v12800_v52  ;;  %v5339_v44 = vmax.f32 %v10626_v56, 0.0  ;;  %6420 = vmatprep.subr.bf16.mxu1 %v15944_v59 }
 0x353   :  { %5552 = vst [vmem:[#allocation4 + $0x218] ss:$-12 sps:$4 sm:$0xff] %v5448_v43  }
 0x354   :  { %v5341_v48 = vmax.f32 %v10630_v32, 0.0 }
 0x355   :  { %v5092_v49 = vpop.f32.mrb[0].mxu0  ;;  %6421 = vmatpush1.bf16.msra.mxu1 %v11418_v6 }
 0x356   :  { %v5377_v8 = vpack.c.bf16 %v5341_v48, %v5339_v44  ;;  %v5094_v39 = vpop.f32.mrb[1].mxu0  ;;  %6422 = vmatprep.subr.bf16.mxu1 %v15944_v59 }
 0x357   :  { %v5096_v18 = vpop.f32.mrb[2].mxu0 }
 0x358   :  { %v5449_v27 = vrot.slane %v5377_v8, 4  ;;  %v5098_v14 = vpop.f32.mrb[3].mxu0 }
 0x35a   :  { %5555 = vst [vmem:[#allocation4 + $0x230] ss:$-12 sps:$4 sm:$0xff] %v5449_v27  }
 0x35b   :  { %5640 = vst [vmem:[#allocation4 + $0x220] sm:$0xff] %v15944_v59 }
 0x35d   :  { %v5102_v28 = vpop.f32.mrb[4].mxu0 }
 0x35e   :  { %v10521_v52 = vadd.f32 %v5102_v28, %v12809_v9  ;;  %v5104_v50 = vpop.f32.mrb[5].mxu0 }
 0x35f   :  { %v10522_v13 = vadd.f32 %v5104_v50, %v12811_v20  ;;  %v5106_v23 = vpop.f32.mrb[6].mxu0 }
 0x360   :  { %v10523_v24 = vadd.f32 %v5106_v23, %v12809_v9  ;;  %v5108_v45 = vpop.f32.mrb[7].mxu0  ;;  %v5275_v29 = vmax.f32 %v10521_v52, 0.0 }
 0x361   :  { %v10524_v25 = vadd.f32 %v5108_v45, %v12811_v20  ;;  %v5276_v38 = vmax.f32 %v10522_v13, 0.0 }
 0x362   :  { %v5277_v1 = vmax.f32 %v10523_v24, 0.0 }
 0x363   :  { %v5278_v33 = vmax.f32 %v10524_v25, 0.0 }
 0x364   :  { %v5345_v34 = vpack.c.bf16 %v5277_v1, %v5275_v29  ;;  %v11419_v1 = vld [vmem:[%s15938_s3 + $0x38] ss:$12 sps:$4 sm:$0xff]  }
 0x365   :  { %v5346_v46 = vpack.c.bf16 %v5278_v33, %v5276_v38  ;;  %v5112_v0 = vpop.f32.mrb[8].mxu0  ;;  %6423 = vmatpush1.bf16.msra.mxu1 %v11419_v1 }
 0x366   :  { %v5417_v37 = vrot.slane %v5345_v34, 4  ;;  %v10525_v2 = vadd.f32 %v5112_v0, %v12809_v9  ;;  %v5114_v30 = vpop.f32.mrb[9].mxu0  ;;  %6424 = vmatprep.subr.bf16.mxu1 %v15944_v59 }
 0x367   :  { %v5418_v53 = vrot.slane %v5346_v46, 4  ;;  %v10526_v35 = vadd.f32 %v5114_v30, %v12811_v20  ;;  %v5116_v12 = vpop.f32.mrb[10].mxu0 }
 0x368   :  { %5491 = vst [vmem:[#allocation4 + $0x30] ss:$-12 sps:$4 sm:$0xff] %v5417_v37   ;;  %v10527_v3 = vadd.f32 %v5116_v12, %v12809_v9  ;;  %v5118_v5 = vpop.f32.mrb[11].mxu0  ;;  %v5279_v62 = vmax.f32 %v10525_v2, 0.0 }
 0x369   :  { %5492 = vst [vmem:[#allocation4 + $0x38] ss:$-12 sps:$4 sm:$0xff] %v5418_v53   ;;  %v10528_v40 = vadd.f32 %v5118_v5, %v12811_v20  ;;  %v5280_v57 = vmax.f32 %v10526_v35, 0.0 }
 0x36a   :  { %v5281_v19 = vmax.f32 %v10527_v3, 0.0 }
 0x36b   :  { %v5282_v31 = vmax.f32 %v10528_v40, 0.0 }
 0x36c   :  { %v5347_v21 = vpack.c.bf16 %v5281_v19, %v5279_v62 }
 0x36d   :  { %v5348_v7 = vpack.c.bf16 %v5282_v31, %v5280_v57  ;;  %v5122_v15 = vpop.f32.mrb[12].mxu0 }
 0x36e   :  { %v5419_v17 = vrot.slane %v5347_v21, 4  ;;  %v10529_v41 = vadd.f32 %v5122_v15, %v12809_v9  ;;  %v5124_v54 = vpop.f32.mrb[13].mxu0 }
 0x36f   :  { %v5420_v58 = vrot.slane %v5348_v7, 4  ;;  %v10530_v22 = vadd.f32 %v5124_v54, %v12811_v20  ;;  %v5126_v51 = vpop.f32.mrb[14].mxu0  ;;  %v12940_v42 = vld [vmem:[#allocation4 + $0x20] sm:$0xff]  ;;  %v12950_v13 = vld [vmem:[#allocation4 + $0x30] sm:$0xff] }
 0x370   :  { %5495 = vst [vmem:[#allocation4 + $0x50] ss:$-12 sps:$4 sm:$0xff] %v5419_v17   ;;  %v10531_v55 = vadd.f32 %v5126_v51, %v12809_v9  ;;  %v5128_v47 = vpop.f32.mrb[15].mxu0  ;;  %v12936_v60 = vld [vmem:[#allocation4 + $0x28] sm:$0xff]  ;;  %v5283_v11 = vmax.f32 %v10529_v41, 0.0  ;;  %v12943_v26 = vld [vmem:[#allocation4 + $0x38] sm:$0xff] }
 0x371   :  { %5496 = vst [vmem:[#allocation4 + $0x58] ss:$-12 sps:$4 sm:$0xff] %v5420_v58   ;;  %v10532_v16 = vadd.f32 %v5128_v47, %v12811_v20  ;;  %6084 = vmatprep.mubr.bf16.mxu1 %v12936_v60  ;;  %v5284_v43 = vmax.f32 %v10530_v22, 0.0 }
 0x372   :  { %v5285_v56 = vmax.f32 %v10531_v55, 0.0  ;;  %6085 = vmatmul.mubr.bf16.gmra.mrb[52].mxu1 %v12940_v42 }
 0x373   :  { %v5286_v32 = vmax.f32 %v10532_v16, 0.0  ;;  %6093 = vmatprep.mubr.bf16.mxu1 %v12943_v26 }
 0x374   :  { %v5349_v44 = vpack.c.bf16 %v5285_v56, %v5283_v11 }
 0x375   :  { %v5350_v48 = vpack.c.bf16 %v5286_v32, %v5284_v43  ;;  %v5132_v49 = vpop.f32.mrb[16].mxu0 }
 0x376   :  { %v5421_v8 = vrot.slane %v5349_v44, 4  ;;  %v10533_v39 = vadd.f32 %v5132_v49, %v12809_v9  ;;  %v5134_v18 = vpop.f32.mrb[17].mxu0 }
 0x377   :  { %v5422_v27 = vrot.slane %v5350_v48, 4  ;;  %v10534_v14 = vadd.f32 %v5134_v18, %v12811_v20  ;;  %v5136_v61 = vpop.f32.mrb[18].mxu0  ;;  %v12964_v5 = vld [vmem:[#allocation4 + $0x40] sm:$0xff]  ;;  %v12974_v16 = vld [vmem:[#allocation4 + $0x50] sm:$0xff] }
 0x378   :  { %5499 = vst [vmem:[#allocation4 + $0x70] ss:$-12 sps:$4 sm:$0xff] %v5421_v8   ;;  %v10535_v28 = vadd.f32 %v5136_v61, %v12809_v9  ;;  %v5138_v52 = vpop.f32.mrb[19].mxu0  ;;  %v5287_v23 = vmax.f32 %v10533_v39, 0.0  ;;  %v12953_v45 = vld [vmem:[#allocation4 + $0x48] sm:$0xff]  ;;  %v12967_v19 = vld [vmem:[#allocation4 + $0x58] sm:$0xff] }
 0x379   :  { %5500 = vst [vmem:[#allocation4 + $0x78] ss:$-12 sps:$4 sm:$0xff] %v5422_v27   ;;  %v10536_v50 = vadd.f32 %v5138_v52, %v12811_v20  ;;  %v5288_v25 = vmax.f32 %v10534_v14, 0.0  ;;  %v11420_v18 = vld [vmem:[%s15938_s3 + $0x50] ss:$12 sps:$4 sm:$0xff]  }
 0x37a   :  { %v5289_v24 = vmax.f32 %v10535_v28, 0.0  ;;  %6094 = vmatmul.mubr.bf16.gmra.mrb[56].mxu1 %v12950_v13  ;;  %v11421_v52 = vld [vmem:[%s15938_s3 + $0x68] ss:$12 sps:$4 sm:$0xff]  }
 0x37b   :  { %v5290_v29 = vmax.f32 %v10536_v50, 0.0  ;;  %6103 = vmatprep.mubr.bf16.mxu1 %v12953_v45  ;;  %6425 = vmatpush1.bf16.msra.mxu1 %v11420_v18  ;;  %v5695_v18 = vld [vmem:[#allocation4 + $0x198] sm:$0xff] }
 0x37c   :  { %v5351_v38 = vpack.c.bf16 %v5289_v24, %v5287_v23  ;;  %6426 = vmatprep.subr.bf16.mxu1 %v15944_v59 }
 0x37d   :  { %v5352_v33 = vpack.c.bf16 %v5290_v29, %v5288_v25  ;;  %v5142_v34 = vpop.f32.mrb[20].mxu0  ;;  %v11422_v29 = vld [vmem:[%s15938_s3 + $0x80] ss:$12 sps:$4 sm:$0xff]  }
 0x37e   :  { %v5423_v46 = vrot.slane %v5351_v38, 4  ;;  %v10537_v0 = vadd.f32 %v5142_v34, %v12809_v9  ;;  %v5144_v37 = vpop.f32.mrb[21].mxu0 }
 0x37f   :  { %v5424_v2 = vrot.slane %v5352_v33, 4  ;;  %v10538_v30 = vadd.f32 %v5144_v37, %v12811_v20  ;;  %v5146_v53 = vpop.f32.mrb[22].mxu0  ;;  %v12980_v39 = vld [vmem:[#allocation4 + $0x60] sm:$0xff]  ;;  %v12990_v27 = vld [vmem:[#allocation4 + $0x70] sm:$0xff]  ;;  %6427 = vmatpush1.bf16.msra.mxu1 %v11421_v52  ;;  %v13040_v37 = vld [vmem:[#allocation4 + $0xe8] sm:$0xff] }
 0x380   :  { %5503 = vst [vmem:[#allocation4 + $0x90] ss:$-12 sps:$4 sm:$0xff] %v5423_v46   ;;  %v10539_v35 = vadd.f32 %v5146_v53, %v12809_v9  ;;  %v5148_v12 = vpop.f32.mrb[23].mxu0  ;;  %v5291_v40 = vmax.f32 %v10537_v0, 0.0  ;;  %v12977_v43 = vld [vmem:[#allocation4 + $0x68] sm:$0xff]  ;;  %6428 = vmatprep.subr.bf16.mxu1 %v15944_v59  ;;  %16145 = vst [vmem:[#allocation9_spill] sm:$0xff] %v13040_v37 }
 0x381   :  { %5504 = vst [vmem:[#allocation4 + $0x98] ss:$-12 sps:$4 sm:$0xff] %v5424_v2   ;;  %v10540_v3 = vadd.f32 %v5148_v12, %v12811_v20  ;;  %v5292_v57 = vmax.f32 %v10538_v30, 0.0  ;;  %v11423_v46 = vld [vmem:[%s15938_s3 + $0x98] ss:$12 sps:$4 sm:$0xff]   ;;  %v5672_v2 = vld [vmem:[#allocation4 + $0xe0] sm:$0xff] }
 0x382   :  { %v5293_v62 = vmax.f32 %v10539_v35, 0.0  ;;  %6104 = vmatmul.mubr.bf16.gmra.mrb[60].mxu1 %v12964_v5  ;;  %v5675_v30 = vld [vmem:[#allocation4 + $0xf8] sm:$0xff]  ;;  %v5674_v53 = vld [vmem:[#allocation4 + $0xf0] sm:$0xff]  ;;  %v5677_v35 = vld [vmem:[#allocation4 + $0x108] sm:$0xff] }
 0x383   :  { %v5294_v31 = vmax.f32 %v10540_v3, 0.0  ;;  %6113 = vmatprep.mubr.bf16.mxu1 %v12967_v19  ;;  %6429 = vmatpush1.bf16.msra.mxu1 %v11422_v29  ;;  %v11424_v12 = vld [vmem:[%s15938_s3 + $0xb0] ss:$12 sps:$4 sm:$0xff]   ;;  %v5694_v52 = vld [vmem:[#allocation4 + $0x190] sm:$0xff] }
 0x384   :  { %v5353_v6 = vpack.c.bf16 %v5293_v62, %v5291_v40  ;;  %6430 = vmatprep.subr.bf16.mxu1 %v15944_v59  ;;  %v5676_v3 = vld [vmem:[#allocation4 + $0x100] sm:$0xff]  ;;  %v5679_v62 = vld [vmem:[#allocation4 + $0x118] sm:$0xff]  ;;  %v5697_v29 = vld [vmem:[#allocation4 + $0x1a8] sm:$0xff] }
 0x385   :  { %v5354_v21 = vpack.c.bf16 %v5294_v31, %v5292_v57  ;;  %v5152_v7 = vpop.f32.mrb[24].mxu0  ;;  %v11425_v40 = vld [vmem:[%s15938_s3 + $0xc8] ss:$12 sps:$4 sm:$0xff]   ;;  %v11426_v57 = vld [vmem:[%s15938_s3 + $0xe0] ss:$12 sps:$4 sm:$0xff]  }
 0x386   :  { %v5425_v15 = vrot.slane %v5353_v6, 4  ;;  %v10541_v17 = vadd.f32 %v5152_v7, %v12809_v9  ;;  %v5154_v41 = vpop.f32.mrb[25].mxu0  ;;  %v5678_v31 = vld [vmem:[#allocation4 + $0x110] sm:$0xff]  ;;  %v11428_v7 = vld [vmem:[%s15938_s3 + $0x110] ss:$12 sps:$4 sm:$0xff]  }
 0x387   :  { %v5426_v54 = vrot.slane %v5354_v21, 4  ;;  %v10542_v58 = vadd.f32 %v5154_v41, %v12811_v20  ;;  %v5156_v22 = vpop.f32.mrb[26].mxu0  ;;  %v12996_v61 = vld [vmem:[#allocation4 + $0x80] sm:$0xff]  ;;  %v13006_v50 = vld [vmem:[#allocation4 + $0x90] sm:$0xff]  ;;  %6431 = vmatpush1.bf16.msra.mxu1 %v11423_v46  ;;  %v5681_v21 = vld [vmem:[#allocation4 + $0x128] sm:$0xff] }
 0x388   :  { %5507 = vst [vmem:[#allocation4 + $0xb0] ss:$-12 sps:$4 sm:$0xff] %v5425_v15   ;;  %v10543_v51 = vadd.f32 %v5156_v22, %v12809_v9  ;;  %v5158_v55 = vpop.f32.mrb[27].mxu0  ;;  %v5295_v11 = vmax.f32 %v10541_v17, 0.0  ;;  %v12993_v14 = vld [vmem:[#allocation4 + $0x88] sm:$0xff]  ;;  %v12999_v28 = vld [vmem:[#allocation4 + $0x98] sm:$0xff]  ;;  %6432 = vmatprep.subr.bf16.mxu1 %v15944_v59 }
 0x389   :  { %5508 = vst [vmem:[#allocation4 + $0xb8] ss:$-12 sps:$4 sm:$0xff] %v5426_v54   ;;  %v10544_v47 = vadd.f32 %v5158_v55, %v12811_v20  ;;  %v5296_v32 = vmax.f32 %v10542_v58, 0.0  ;;  %v12983_v20 = vld [vmem:[#allocation4 + $0x78] sm:$0xff]  ;;  %v11427_v6 = vld [vmem:[%s15938_s3 + $0xf8] ss:$12 sps:$4 sm:$0xff]  }
 0x38a   :  { %v5297_v56 = vmax.f32 %v10543_v51, 0.0  ;;  %6114 = vmatmul.mubr.bf16.gmra.mrb[64].mxu1 %v12974_v16  ;;  %v5680_v15 = vld [vmem:[#allocation4 + $0x120] sm:$0xff]  ;;  %v5683_v41 = vld [vmem:[#allocation4 + $0x138] sm:$0xff]  ;;  %v5682_v58 = vld [vmem:[#allocation4 + $0x130] sm:$0xff] }
 0x38b   :  { %v5298_v44 = vmax.f32 %v10544_v47, 0.0  ;;  %6123 = vmatprep.mubr.bf16.mxu1 %v12977_v43  ;;  %6433 = vmatpush1.bf16.msra.mxu1 %v11424_v12  ;;  %v11429_v17 = vld [vmem:[%s15938_s3 + $0x128] ss:$12 sps:$4 sm:$0xff]   ;;  %v11430_v54 = vld [vmem:[%s15938_s3 + $0x140] ss:$12 sps:$4 sm:$0xff]   ;;  %v5685_v51 = vld [vmem:[#allocation4 + $0x148] sm:$0xff] }
 0x38c   :  { %v5355_v48 = vpack.c.bf16 %v5297_v56, %v5295_v11  ;;  %6434 = vmatprep.subr.bf16.mxu1 %v15944_v59  ;;  %v11431_v22 = vld [vmem:[%s15938_s3 + $0x158] ss:$12 sps:$4 sm:$0xff]   ;;  %v11432_v55 = vld [vmem:[%s15938_s3 + $0x170] ss:$12 sps:$4 sm:$0xff]   ;;  %v5687_v11 = vld [vmem:[#allocation4 + $0x158] sm:$0xff]  ;;  %s11670_s3 = smov 32  }
 0x38d   :  { %v5356_v49 = vpack.c.bf16 %v5298_v44, %v5296_v32  ;;  %v5684_v47 = vld [vmem:[#allocation4 + $0x140] sm:$0xff]  ;;  %v5686_v56 = vld [vmem:[#allocation4 + $0x150] sm:$0xff]  ;;  %v5689_v32 = vld [vmem:[#allocation4 + $0x168] sm:$0xff] }
 0x38e   :  { %v5427_v8 = vrot.slane %v5355_v48, 4  ;;  %v5688_v44 = vld [vmem:[#allocation4 + $0x160] sm:$0xff]  ;;  %v5691_v48 = vld [vmem:[#allocation4 + $0x178] sm:$0xff] }
 0x38f   :  { %v5428_v9 = vrot.slane %v5356_v49, 4  ;;  %v13012_v24 = vld [vmem:[#allocation4 + $0xa0] sm:$0xff]  ;;  %v13022_v1 = vld [vmem:[#allocation4 + $0xb0] sm:$0xff]  ;;  %6435 = vmatpush1.bf16.msra.mxu1 %v11425_v40  ;;  %v5703_v12 = vld [vmem:[#allocation4 + $0x1d8] sm:$0xff] }
 0x390   :  { %5511 = vst [vmem:[#allocation4 + $0xd0] ss:$-12 sps:$4 sm:$0xff] %v5427_v8   ;;  %v13009_v23 = vld [vmem:[#allocation4 + $0xa8] sm:$0xff]  ;;  %v13015_v25 = vld [vmem:[#allocation4 + $0xb8] sm:$0xff]  ;;  %6436 = vmatprep.subr.bf16.mxu1 %v15944_v59  ;;  %v5690_v49 = vld [vmem:[#allocation4 + $0x170] sm:$0xff] }
 0x391   :  { %5512 = vst [vmem:[#allocation4 + $0xd8] ss:$-12 sps:$4 sm:$0xff] %v5428_v9   ;;  %v5693_v8 = vld [vmem:[#allocation4 + $0x188] sm:$0xff]  ;;  %v5692_v9 = vld [vmem:[#allocation4 + $0x180] sm:$0xff] }
 0x392   :  { %6124 = vmatmul.mubr.bf16.gmra.mrb[68].mxu1 %v12980_v39  ;;  %v5696_v46 = vld [vmem:[#allocation4 + $0x1a0] sm:$0xff] }
 0x393   :  { %6133 = vmatprep.mubr.bf16.mxu1 %v12983_v20  ;;  %6437 = vmatpush1.bf16.msra.mxu1 %v11426_v57 }
 0x394   :  { %6438 = vmatprep.subr.bf16.mxu1 %v15944_v59 }
 0x397   :  { %v13028_v33 = vld [vmem:[#allocation4 + $0xc0] sm:$0xff]  ;;  %v13037_v0 = vld [vmem:[#allocation4 + $0xd0] sm:$0xff]  ;;  %6439 = vmatpush1.bf16.msra.mxu1 %v11427_v6 }
 0x398   :  { %v13025_v38 = vld [vmem:[#allocation4 + $0xc8] sm:$0xff]  ;;  %16142 = vst [vmem:[#allocation6_spill] sm:$0xff] %v13028_v33  ;;  %v13031_v34 = vld [vmem:[#allocation4 + $0xd8] sm:$0xff]  ;;  %16144 = vst [vmem:[#allocation8_spill] sm:$0xff] %v13037_v0  ;;  %6440 = vmatprep.subr.bf16.mxu1 %v15944_v59 }
 0x399   :  { %16143 = vst [vmem:[#allocation7_spill] sm:$0xff] %v13031_v34 }
 0x39a   :  { %6134 = vmatmul.mubr.bf16.gmra.mrb[72].mxu1 %v12990_v27 }
 0x39b   :  { %6143 = vmatprep.mubr.bf16.mxu1 %v12993_v14  ;;  %6441 = vmatpush1.bf16.msra.mxu1 %v11428_v7 }
 0x39c   :  { %6442 = vmatprep.subr.bf16.mxu1 %v15944_v59 }
 0x39f   :  { %6443 = vmatpush1.bf16.msra.mxu1 %v11429_v17 }
 0x3a0   :  { %6444 = vmatprep.subr.bf16.mxu1 %v15944_v59 }
 0x3a2   :  { %6144 = vmatmul.mubr.bf16.gmra.mrb[76].mxu1 %v12996_v61 }
 0x3a3   :  { %6153 = vmatprep.mubr.bf16.mxu1 %v12999_v28  ;;  %6445 = vmatpush1.bf16.msra.mxu1 %v11430_v54 }
 0x3a4   :  { %6446 = vmatprep.subr.bf16.mxu1 %v15944_v59 }
 0x3a7   :  { %6447 = vmatpush1.bf16.msra.mxu1 %v11431_v22 }
 0x3a8   :  { %6448 = vmatprep.subr.bf16.mxu1 %v15944_v59 }
 0x3aa   :  { %6154 = vmatmul.mubr.bf16.gmra.mrb[80].mxu1 %v13006_v50 }
 0x3ab   :  { %6163 = vmatprep.mubr.bf16.mxu1 %v13009_v23  ;;  %6449 = vmatpush1.bf16.msra.mxu1 %v11432_v55 }
 0x3b2   :  { %6164 = vmatmul.mubr.bf16.gmra.mrb[84].mxu1 %v13012_v24 }
 0x3b3   :  { %6173 = vmatprep.mubr.bf16.mxu1 %v13015_v25 }
 0x3ba   :  { %6174 = vmatmul.mubr.bf16.gmra.mrb[88].mxu1 %v13022_v1 }
 0x3bb   :  { %6183 = vmatprep.mubr.bf16.mxu1 %v13025_v38 }
 0x3c2   :  { %6184 = vmatmul.mubr.bf16.gmra.mrb[92].mxu1 %v13028_v33 }
 0x3c3   :  { %6193 = vmatprep.mubr.bf16.mxu1 %v13031_v34 }
 0x3ca   :  { %6194 = vmatmul.mubr.bf16.gmra.mrb[96].mxu1 %v13037_v0 }
 0x3cb   :  { %6203 = vmatprep.mubr.bf16.mxu1 %v13040_v37 }
 0x3d2   :  { %6204 = vmatmul.mubr.bf16.gmra.mrb[100].mxu1 %v5672_v2  ;;  %v5699_v2 = vld [vmem:[#allocation4 + $0x1b8] sm:$0xff] }
 0x3d3   :  { %6213 = vmatprep.mubr.bf16.mxu1 %v5675_v30  ;;  %v5698_v30 = vld [vmem:[#allocation4 + $0x1b0] sm:$0xff] }
 0x3da   :  { %6214 = vmatmul.mubr.bf16.gmra.mrb[104].mxu1 %v5674_v53  ;;  %v5701_v53 = vld [vmem:[#allocation4 + $0x1c8] sm:$0xff] }
 0x3db   :  { %6223 = vmatprep.mubr.bf16.mxu1 %v5677_v35  ;;  %v5700_v35 = vld [vmem:[#allocation4 + $0x1c0] sm:$0xff] }
 0x3e2   :  { %6224 = vmatmul.mubr.bf16.gmra.mrb[108].mxu1 %v5676_v3 }
 0x3e3   :  { %6233 = vmatprep.mubr.bf16.mxu1 %v5679_v62 }
 0x3ea   :  { %6234 = vmatmul.mubr.bf16.gmra.mrb[112].mxu1 %v5678_v31  ;;  %v5702_v31 = vld [vmem:[#allocation4 + $0x1d0] sm:$0xff] }
 0x3eb   :  { %6243 = vmatprep.mubr.bf16.mxu1 %v5681_v21  ;;  %v5705_v21 = vld [vmem:[#allocation4 + $0x1e8] sm:$0xff] }
 0x3f2   :  { %6244 = vmatmul.mubr.bf16.gmra.mrb[116].mxu1 %v5680_v15 }
 0x3f3   :  { %6253 = vmatprep.mubr.bf16.mxu1 %v5683_v41 }
 0x3fa   :  { %6254 = vmatmul.mubr.bf16.gmra.mrb[120].mxu1 %v5682_v58 }
 0x3fb   :  { %6263 = vmatprep.mubr.bf16.mxu1 %v5685_v51 }
 0x402   :  { %6264 = vmatmul.mubr.bf16.gmra.mrb[124].mxu1 %v5684_v47 }
 0x403   :  { %6273 = vmatprep.mubr.bf16.mxu1 %v5687_v11 }
 0x40a   :  { %6274 = vmatmul.mubr.bf16.gmra.mrb[128].mxu1 %v5686_v56 }
 0x40b   :  { %6283 = vmatprep.mubr.bf16.mxu1 %v5689_v32 }
 0x412   :  { %6284 = vmatmul.mubr.bf16.gmra.mrb[132].mxu1 %v5688_v44 }
 0x413   :  { %6293 = vmatprep.mubr.bf16.mxu1 %v5691_v48 }
 0x41a   :  { %6294 = vmatmul.mubr.bf16.gmra.mrb[136].mxu1 %v5690_v49  ;;  %v5704_v49 = vld [vmem:[#allocation4 + $0x1e0] sm:$0xff] }
 0x41b   :  { %6303 = vmatprep.mubr.bf16.mxu1 %v5693_v8 }
 0x422   :  { %6304 = vmatmul.mubr.bf16.gmra.mrb[140].mxu1 %v5692_v9 }
 0x423   :  { %6313 = vmatprep.mubr.bf16.mxu1 %v5695_v18  ;;  %v5707_v18 = vld [vmem:[#allocation4 + $0x1f8] sm:$0xff] }
 0x42a   :  { %6314 = vmatmul.mubr.bf16.gmra.mrb[144].mxu1 %v5694_v52 }
 0x42b   :  { %6323 = vmatprep.mubr.bf16.mxu1 %v5697_v29 }
 0x432   :  { %6324 = vmatmul.mubr.bf16.gmra.mrb[148].mxu1 %v5696_v46 }
 0x433   :  { %6333 = vmatprep.mubr.bf16.mxu1 %v5699_v2 }
 0x43a   :  { %6334 = vmatmul.mubr.bf16.gmra.mrb[152].mxu1 %v5698_v30 }
 0x43b   :  { %6343 = vmatprep.mubr.bf16.mxu1 %v5701_v53 }
 0x442   :  { %6344 = vmatmul.mubr.bf16.gmra.mrb[156].mxu1 %v5700_v35  ;;  %v5706_v35 = vld [vmem:[#allocation4 + $0x1f0] sm:$0xff] }
 0x443   :  { %6353 = vmatprep.mubr.bf16.mxu1 %v5703_v12  ;;  %v5709_v12 = vld [vmem:[#allocation4 + $0x208] sm:$0xff] }
 0x445   :  { %v13079_v3 = vpop.f32.mrb[52].mxu1 }
 0x446   :  { %16146 = vst [vmem:[#allocation10_spill] sm:$0xff] %v13079_v3  ;;  %v6088_v40 = vpop.f32.mrb[53].mxu1  ;;  %7343 = vrot.lane.b32.xlu0 %v13079_v3, %s11670_s3 }
 0x447   :  { %v13083_v62 = vpop.f32.mrb[54].mxu1 }
 0x448   :  { %16147 = vst [vmem:[#allocation11_spill] sm:$0xff] %v13083_v62  ;;  %7345 = vrot.lane.b32.xlu1 %v13083_v62, %s11670_s3  ;;  %v13087_v57 = vpop.f32.mrb[55].mxu1  ;;  %v6799_v7 = vrot.slane %v13083_v62, 1  ;;  %v7058_v41 = vrot.slane %v13083_v62, 2 }
 0x449   :  { %v7727_v6 = vrot.slane %v13087_v57, 2  ;;  %v15943_v47 = vrot.slane %v13087_v57, 1 }
 0x44a   :  { %6354 = vmatmul.mubr.bf16.gmra.mrb[160].mxu1 %v5702_v31 }
 0x44b   :  { %6363 = vmatprep.mubr.bf16.mxu1 %v5705_v21  ;;  %7807 = vrot.lane.b32.xlu0 %v7727_v6, %s11668_s2 }
 0x44c   :  { %6850 = vrot.lane.b32.xlu1 %v6799_v7, %s11668_s2 }
 0x44d   :  { %v13093_v15 = vpop.f32.mrb[56].mxu1 }
 0x44e   :  { %16148 = vst [vmem:[#allocation12_spill] sm:$0xff] %v13093_v15  ;;  %v13095_v17 = vpop.f32.mrb[57].mxu1  ;;  %v6800_v54 = vrot.slane %v13093_v15, 1  ;;  %v7059_v58 = vrot.slane %v13093_v15, 2 }
 0x44f   :  { %v15942_v22 = vrot.slane %v13095_v17, 1  ;;  %v7728_v51 = vrot.slane %v13095_v17, 2  ;;  %v6099_v55 = vpop.f32.mrb[58].mxu1  ;;  %7347 = vrot.lane.b32.xlu0 %v13093_v15, %s11670_s3 }
 0x450   :  { %v7061_v11 = vrot.slane %v6099_v55, 2  ;;  %7139 = vrot.lane.b32.xlu1 %v7058_v41, %s11669_s11  ;;  %v6101_v56 = vpop.f32.mrb[59].mxu1  ;;  %v6801_v32 = vsel %vm1275_vm1, %v6799_v7, %v6800_v54  ;;  %v7060_v44 = vsel %vm7052_vm2, %v7058_v41, %v7059_v58 }
 0x451   :  { %v7730_v48 = vrot.slane %v6101_v56, 2  ;;  %v7729_v8 = vsel %vm7052_vm2, %v7727_v6, %v7728_v51  ;;  %v13114_v9 = vsel %vm1275_vm1, %v15943_v47, %v15942_v22 }
 0x452   :  { %6364 = vmatmul.mubr.bf16.gmra.mrb[164].mxu1 %v5704_v49  ;;  %v7062_v52 = vsel %vm7052_vm2, %v7059_v58, %v7061_v11 }
 0x453   :  { %6373 = vmatprep.mubr.bf16.mxu1 %v5707_v18  ;;  %6852 = vrot.lane.b32.xlu0 %v6801_v32, %s11668_s2  ;;  %v7731_v29 = vsel %vm7052_vm2, %v7728_v51, %v7730_v48  ;;  %v5708_v48 = vld [vmem:[#allocation4 + $0x200] sm:$0xff] }
 0x454   :  { %6854 = vrot.lane.b32.xlu1 %v6800_v54, %s11668_s2 }
 0x455   :  { %v13120_v46 = vpop.f32.mrb[60].mxu1 }
 0x456   :  { %16149 = vst [vmem:[#allocation13_spill] sm:$0xff] %v13120_v46  ;;  %v6107_v2 = vpop.f32.mrb[61].mxu1 }
 0x457   :  { %v13122_v30 = vpop.f32.mrb[62].mxu1  ;;  %7141 = vrot.lane.b32.xlu0 %v7060_v44, %s11669_s11 }
 0x458   :  { %16150 = vst [vmem:[#allocation14_spill] sm:$0xff] %v13122_v30  ;;  %7809 = vrot.lane.b32.xlu1 %v7729_v8, %s11668_s2  ;;  %v6111_v53 = vpop.f32.mrb[63].mxu1  ;;  %v6802_v6 = vrot.slane %v13122_v30, 1  ;;  %v7063_v21 = vrot.slane %v13122_v30, 2  ;;  %v5711_v8 = vld [vmem:[#allocation4 + $0x218] sm:$0xff] }
 0x459   :  { %v7732_v58 = vrot.slane %v6111_v53, 2 }
 0x45a   :  { %6374 = vmatmul.mubr.bf16.gmra.mrb[168].mxu1 %v5706_v35 }
 0x45b   :  { %6383 = vmatprep.mubr.bf16.mxu1 %v5709_v12  ;;  %7811 = vrot.lane.b32.xlu0 %v7731_v29, %s11668_s2 }
 0x45c   :  { %7143 = vrot.lane.b32.xlu1 %v7062_v52, %s11669_s11 }
 0x45d   :  { %v13128_v40 = vpop.f32.mrb[64].mxu1 }
 0x45e   :  { %16151 = vst [vmem:[#allocation15_spill] sm:$0xff] %v13128_v40  ;;  %v6117_v31 = vpop.f32.mrb[65].mxu1  ;;  %v6803_v7 = vrot.slane %v13128_v40, 1  ;;  %v7064_v41 = vrot.slane %v13128_v40, 2 }
 0x45f   :  { %v6119_v54 = vpop.f32.mrb[66].mxu1  ;;  %8017 = vrot.lane.b32.xlu0 %v6107_v2, %s11669_s11  ;;  %v7733_v51 = vrot.slane %v6117_v31, 2 }
 0x460   :  { %v7066_v55 = vrot.slane %v6119_v54, 2  ;;  %7349 = vrot.lane.b32.xlu1 %v13120_v46, %s11670_s3  ;;  %v6121_v11 = vpop.f32.mrb[67].mxu1  ;;  %v6804_v56 = vsel %vm1275_vm1, %v6802_v6, %v6803_v7  ;;  %v7065_v32 = vsel %vm7052_vm2, %v7063_v21, %v7064_v41 }
 0x461   :  { %v7735_v44 = vrot.slane %v6121_v11, 2  ;;  %v13140_v49 = vsel %vm7052_vm2, %v7732_v58, %v7733_v51 }
 0x462   :  { %6384 = vmatmul.mubr.bf16.gmra.mrb[172].mxu1 %v5708_v48  ;;  %v13143_v18 = vsel %vm7052_vm2, %v7064_v41, %v7066_v55  ;;  %v5710_v41 = vld [vmem:[#allocation4 + $0x210] sm:$0xff] }
 0x463   :  { %6393 = vmatprep.mubr.bf16.mxu1 %v5711_v8  ;;  %7351 = vrot.lane.b32.xlu0 %v13122_v30, %s11670_s3  ;;  %v7736_v52 = vsel %vm7052_vm2, %v7733_v51, %v7735_v44  ;;  %v13163_v51 = vrot.slane %v6111_v53, 1 }
 0x464   :  { %8019 = vrot.lane.b32.xlu1 %v6111_v53, %s11669_s11 }
 0x465   :  { %v13149_v29 = vpop.f32.mrb[68].mxu1  ;;  %16155 = vst [vmem:[#allocation19_spill] sm:$0xff] %v13163_v51 }
 0x466   :  { %16152 = vst [vmem:[#allocation16_spill] sm:$0xff] %v13149_v29  ;;  %v6127_v2 = vpop.f32.mrb[69].mxu1 }
 0x467   :  { %v13151_v35 = vpop.f32.mrb[70].mxu1  ;;  %6856 = vrot.lane.b32.xlu0 %v6802_v6, %s11668_s2 }
 0x468   :  { %16153 = vst [vmem:[#allocation17_spill] sm:$0xff] %v13151_v35  ;;  %7813 = vrot.lane.b32.xlu1 %v7732_v58, %s11668_s2  ;;  %v13155_v12 = vpop.f32.mrb[71].mxu1  ;;  %v6805_v6 = vrot.slane %v13151_v35, 1  ;;  %v15949_v58 = vrot.slane %v13151_v35, 2 }
 0x469   :  { %v15950_v48 = vrot.slane %v13155_v12, 2 }
 0x46a   :  { %6394 = vmatmul.mubr.bf16.gmra.mrb[176].mxu1 %v5710_v41 }
 0x46b   :  { %7145 = vrot.lane.b32.xlu0 %v7063_v21, %s11669_s11  ;;  %6402 = vmatprep.mubr.bf16.mxu1 %v15944_v59 }
 0x46c   :  { %7353 = vrot.lane.b32.xlu1 %v13128_v40, %s11670_s3 }
 0x46d   :  { %v13161_v54 = vpop.f32.mrb[72].mxu1 }
 0x46e   :  { %16154 = vst [vmem:[#allocation18_spill] sm:$0xff] %v13161_v54  ;;  %v13165_v55 = vpop.f32.mrb[73].mxu1  ;;  %v15948_v11 = vrot.slane %v13161_v54, 1  ;;  %v7069_v44 = vrot.slane %v13161_v54, 2 }
 0x46f   :  { %v6139_v21 = vpop.f32.mrb[74].mxu1  ;;  %8212 = vrot.lane.b32.xlu0 %v13163_v51, %s11670_s3  ;;  %v7738_v8 = vrot.slane %v13165_v55, 2 }
 0x470   :  { %v7071_v53 = vrot.slane %v6139_v21, 2  ;;  %6858 = vrot.lane.b32.xlu1 %v6804_v56, %s11668_s2  ;;  %v6141_v41 = vpop.f32.mrb[75].mxu1  ;;  %v13179_v22 = vsel %vm1275_vm1, %v6805_v6, %v15948_v11  ;;  %v13184_v47 = vsel %vm7052_vm2, %v15949_v58, %v7069_v44  ;;  %v16156_v21 = vmov 0  }
 0x471   :  { %v7740_v59 = vrot.slane %v6141_v41, 2  ;;  %v13189_v4 = vsel %vm7052_vm2, %v15950_v48, %v7738_v8  ;;  %v13196_v11 = vrot.slane %v6117_v31, 1 }
 0x472   :  { %6403 = vmatmul.mubr.bf16.gmra.mrb[180].mxu1 %v16156_v21  ;;  %v13193_v56 = vsel %vm7052_vm2, %v7069_v44, %v7071_v53 }
 0x473   :  { %8021 = vrot.lane.b32.xlu0 %v6117_v31, %s11669_s11  ;;  %16157 = vst [vmem:[#allocation20_spill] sm:$0xff] %v13196_v11  ;;  %6410 = vmatprep.mubr.bf16.mxu1 %v16156_v21  ;;  %v13200_v58 = vsel %vm7052_vm2, %v7738_v8, %v7740_v59  ;;  %v13212_v44 = vsel %vm1275_vm1, %v13163_v51, %v13196_v11 }
 0x474   :  { %7147 = vrot.lane.b32.xlu1 %v7065_v32, %s11669_s11  ;;  %16160 = vst [vmem:[#allocation23_spill] sm:$0xff] %v13212_v44 }
 0x475   :  { %v13203_v41 = vpop.f32.mrb[76].mxu1 }
 0x476   :  { %16158 = vst [vmem:[#allocation21_spill] sm:$0xff] %v13203_v41  ;;  %v13205_v48 = vpop.f32.mrb[77].mxu1 }
 0x477   :  { %v13207_v40 = vpop.f32.mrb[78].mxu1  ;;  %6860 = vrot.lane.b32.xlu0 %v6803_v7, %s11668_s2 }
 0x478   :  { %16159 = vst [vmem:[#allocation22_spill] sm:$0xff] %v13207_v40  ;;  %8214 = vrot.lane.b32.xlu1 %v13212_v44, %s11670_s3  ;;  %v13217_v59 = vpop.f32.mrb[79].mxu1  ;;  %v15961_v53 = vrot.slane %v13207_v40, 1  ;;  %v15960_v30 = vrot.slane %v13207_v40, 2 }
 0x479   :  { %v16163_v3 = vrot.slane %v13217_v59, 2 }
 0x47a   :  { %6411 = vmatmul.mubr.bf16.gmra.mrb[184].mxu1 %v16156_v21 }
 0x47b   :  { %8216 = vrot.lane.b32.xlu0 %v13196_v11, %s11670_s3  ;;  %6450 = vmatprep.mubr.bf16.mxu1 %v16156_v21 }
 0x47c   :  { %7817 = vrot.lane.b32.xlu1 %v7736_v52, %s11668_s2 }
 0x47d   :  { %v13224_v31 = vpop.f32.mrb[80].mxu1 }
 0x47e   :  { %16161 = vst [vmem:[#allocation24_spill] sm:$0xff] %v13224_v31  ;;  %v7074_v7 = vrot.slane %v13224_v31, 2  ;;  %v13228_v8 = vpop.f32.mrb[81].mxu1  ;;  %v16162_v51 = vrot.slane %v13224_v31, 1 }
 0x47f   :  { %v7743_v11 = vrot.slane %v13228_v8, 2  ;;  %v6159_v44 = vpop.f32.mrb[82].mxu1  ;;  %7815 = vrot.lane.b32.xlu0 %v13140_v49, %s11668_s2 }
 0x480   :  { %v7076_v52 = vrot.slane %v6159_v44, 2  ;;  %8023 = vrot.lane.b32.xlu1 %v6127_v2, %s11669_s11  ;;  %v6161_v32 = vpop.f32.mrb[83].mxu1  ;;  %v13242_v15 = vsel %vm1275_vm1, %v15961_v53, %v16162_v51  ;;  %v13247_v46 = vsel %vm7052_vm2, %v15960_v30, %v7074_v7 }
 0x481   :  { %v7745_v62 = vrot.slane %v6161_v32, 2  ;;  %v13252_v49 = vsel %vm7052_vm2, %v16163_v3, %v7743_v11 }
 0x482   :  { %6451 = vmatmul.mubr.bf16.vlgmr.msra.gmra.mrb[188].mxu1 %v16156_v21  ;;  %v13256_v2 = vsel %vm7052_vm2, %v7074_v7, %v7076_v52  ;;  %v13287_v7 = vrot.slane %v13155_v12, 1 }
 0x483   :  { %7149 = vrot.lane.b32.xlu0 %v13143_v18, %s11669_s11  ;;  %6456 = vmatprep.mubr.bf16.mxu1 %v16156_v21  ;;  %v13262_v51 = vsel %vm7052_vm2, %v7743_v11, %v7745_v62  ;;  %v16166_v62 = vrot.slane %v13151_v35, 2 }
 0x484   :  { %7357 = vrot.lane.b32.xlu1 %v13151_v35, %s11670_s3  ;;  %16168 = vst [vmem:[#allocation28_spill] sm:$0xff] %v13287_v7 }
 0x485   :  { %v13266_v44 = vpop.f32.mrb[84].mxu1 }
 0x486   :  { %16164 = vst [vmem:[#allocation25_spill] sm:$0xff] %v13266_v44  ;;  %v13268_v3 = vpop.f32.mrb[85].mxu1 }
 0x487   :  { %v13270_v32 = vpop.f32.mrb[86].mxu1  ;;  %7355 = vrot.lane.b32.xlu0 %v13149_v29, %s11670_s3  ;;  %v16169_v29 = vrot.slane %v13155_v12, 2 }
 0x488   :  { %16165 = vst [vmem:[#allocation26_spill] sm:$0xff] %v13270_v32  ;;  %6862 = vrot.lane.b32.xlu1 %v6805_v6, %s11668_s2  ;;  %v13275_v18 = vpop.f32.mrb[87].mxu1  ;;  %v16170_v53 = vrot.slane %v13270_v32, 2 }
 0x48a   :  { %6457 = vmatmul.mubr.bf16.gmra.mrb[192].mxu1 %v16156_v21  ;;  %v15969_v21 = vrot.slane %v13270_v32, 1 }
 0x48b   :  { %6462 = vmatprep.mubr.bf16.mxu1 %v12936_v60  ;;  %8025 = vrot.lane.b32.xlu0 %v13155_v12, %s11669_s11 }
 0x48c   :  { %7151 = vrot.lane.b32.xlu1 %v16166_v62, %s11669_s11 }
 0x48d   :  { %v13284_v11 = vpop.f32.mrb[88].mxu1 }
 0x48e   :  { %16167 = vst [vmem:[#allocation27_spill] sm:$0xff] %v13284_v11  ;;  %v7079_v6 = vrot.slane %v13284_v11, 2  ;;  %v13290_v52 = vpop.f32.mrb[89].mxu1  ;;  %v15968_v30 = vrot.slane %v13284_v11, 1 }
 0x48f   :  { %v7748_v35 = vrot.slane %v13290_v52, 2  ;;  %v6179_v62 = vpop.f32.mrb[90].mxu1  ;;  %7819 = vrot.lane.b32.xlu0 %v16169_v29, %s11668_s2  ;;  %v16171_v29 = vrot.slane %v13275_v18, 2 }
 0x490   :  { %v7081_v37 = vrot.slane %v6179_v62, 2  ;;  %8218 = vrot.lane.b32.xlu1 %v13287_v7, %s11670_s3  ;;  %v6181_v0 = vpop.f32.mrb[91].mxu1  ;;  %v13307_v60 = vsel %vm1275_vm1, %v15969_v21, %v15968_v30  ;;  %v13312_v34 = vsel %vm7052_vm2, %v16170_v53, %v7079_v6 }
 0x491   :  { %v7750_v33 = vrot.slane %v6181_v0, 2  ;;  %v13317_v12 = vsel %vm7052_vm2, %v16171_v29, %v7748_v35 }
 0x492   :  { %6463 = vmatmul.mubr.bf16.gmra.mrb[196].mxu1 %v12940_v42  ;;  %v13321_v62 = vsel %vm7052_vm2, %v7079_v6, %v7081_v37  ;;  %v16174_v42 = vrot.slane %v13161_v54, 1 }
 0x493   :  { %6468 = vmatprep.mubr.bf16.mxu1 %v12943_v26  ;;  %7359 = vrot.lane.b32.xlu0 %v13161_v54, %s11670_s3  ;;  %v13327_v30 = vsel %vm7052_vm2, %v7748_v35, %v7750_v33  ;;  %v13345_v33 = vrot.slane %v13165_v55, 1 }
 0x494   :  { %8027 = vrot.lane.b32.xlu1 %v13165_v55, %s11669_s11 }
 0x495   :  { %v13331_v0 = vpop.f32.mrb[92].mxu1  ;;  %16175 = vst [vmem:[#allocation31_spill] sm:$0xff] %v13345_v33 }
 0x496   :  { %16172 = vst [vmem:[#allocation29_spill] sm:$0xff] %v13331_v0  ;;  %v13333_v53 = vpop.f32.mrb[93].mxu1 }
 0x497   :  { %v13335_v29 = vpop.f32.mrb[94].mxu1  ;;  %6864 = vrot.lane.b32.xlu0 %v13179_v22, %s11668_s2  ;;  %v13358_v22 = vsel %vm1275_vm1, %v13287_v7, %v13345_v33 }
 0x498   :  { %16173 = vst [vmem:[#allocation30_spill] sm:$0xff] %v13335_v29  ;;  %6866 = vrot.lane.b32.xlu1 %v16174_v42, %s11668_s2  ;;  %v13342_v26 = vpop.f32.mrb[95].mxu1  ;;  %16177 = vst [vmem:[#allocation33_spill] sm:$0xff] %v13358_v22  ;;  %v16179_v6 = vrot.slane %v13335_v29, 2 }
 0x49a   :  { %6469 = vmatmul.mubr.bf16.gmra.mrb[200].mxu1 %v12950_v13 }
 0x49b   :  { %6474 = vmatprep.mubr.bf16.mxu1 %v12953_v45  ;;  %7153 = vrot.lane.b32.xlu0 %v13184_v47, %s11669_s11  ;;  %v15977_v47 = vrot.slane %v13335_v29, 1 }
 0x49c   :  { %8222 = vrot.lane.b32.xlu1 %v13345_v33, %s11670_s3 }
 0x49d   :  { %v13353_v37 = vpop.f32.mrb[96].mxu1 }
 0x49e   :  { %16176 = vst [vmem:[#allocation32_spill] sm:$0xff] %v13353_v37  ;;  %v15976_v55 = vrot.slane %v13353_v37, 1  ;;  %v7084_v13 = vrot.slane %v13353_v37, 2  ;;  %v13363_v45 = vpop.f32.mrb[97].mxu1 }
 0x49f   :  { %16178 = vst [vmem:[#allocation34_spill] sm:$0xff] %v13363_v45  ;;  %v7753_v42 = vrot.slane %v13363_v45, 2  ;;  %v6199_v21 = vpop.f32.mrb[98].mxu1  ;;  %8220 = vrot.lane.b32.xlu0 %v13358_v22, %s11670_s3  ;;  %v16181_v22 = vrot.slane %v13342_v26, 2 }
 0x4a0   :  { %v7086_v54 = vrot.slane %v6199_v21, 2  ;;  %7821 = vrot.lane.b32.xlu1 %v13189_v4, %s11668_s2  ;;  %v6201_v35 = vpop.f32.mrb[99].mxu1  ;;  %v13377_v33 = vsel %vm1275_vm1, %v15977_v47, %v15976_v55  ;;  %v13382_v7 = vsel %vm7052_vm2, %v16179_v6, %v7084_v13 }
 0x4a1   :  { %16180 = vst [vmem:[#allocation35_spill] sm:$0xff] %v13382_v7  ;;  %v7755_v45 = vrot.slane %v6201_v35, 2  ;;  %v13387_v21 = vsel %vm7052_vm2, %v16181_v22, %v7753_v42  ;;  %v6845_v35 = vpop.permute.xlu0 %6844 }
 0x4a2   :  { %16182 = vst [vmem:[#allocation36_spill] sm:$0xff] %v13387_v21  ;;  %6475 = vmatmul.mubr.bf16.gmra.mrb[204].mxu1 %v12964_v5  ;;  %v13391_v4 = vsel %vm7052_vm2, %v7084_v13, %v7086_v54 }
 0x4a3   :  { %16183 = vst [vmem:[#allocation37_spill] sm:$0xff] %v13391_v4  ;;  %6481 = vmatprep.mubr.bf16.mxu1 %v12967_v19  ;;  %7823 = vrot.lane.b32.xlu0 %v13200_v58, %s11668_s2  ;;  %v13397_v55 = vsel %vm7052_vm2, %v7753_v42, %v7755_v45 }
 0x4a4   :  { %16184 = vst [vmem:[#allocation38_spill] sm:$0xff] %v13397_v55  ;;  %7155 = vrot.lane.b32.xlu1 %v13193_v56, %s11669_s11  ;;  %v16191_v56 = vrot.slane %v13217_v59, 2 }
 0x4a5   :  { %v13401_v6 = vpop.f32.mrb[100].mxu1  ;;  %v7134_v54 = vpop.permute.xlu0 %7133 }
 0x4a6   :  { %16185 = vst [vmem:[#allocation39_spill] sm:$0xff] %v13401_v6  ;;  %v13403_v22 = vpop.f32.mrb[101].mxu1  ;;  %v16190_v6 = vrot.slane %v13207_v40, 1 }
 0x4a7   :  { %16186 = vst [vmem:[#allocation40_spill] sm:$0xff] %v13403_v22  ;;  %v13405_v5 = vpop.f32.mrb[102].mxu1  ;;  %8029 = vrot.lane.b32.xlu0 %v13205_v48, %s11669_s11 }
 0x4a8   :  { %16187 = vst [vmem:[#allocation41_spill] sm:$0xff] %v13405_v5  ;;  %7361 = vrot.lane.b32.xlu1 %v13203_v41, %s11670_s3  ;;  %v13411_v19 = vpop.f32.mrb[103].mxu1  ;;  %v6849_v41 = vpop.permute.xlu1 %6848  ;;  %v16193_v21 = vrot.slane %v13405_v5, 1 }
 0x4a9   :  { %v6847_v13 = vpop.permute.xlu0 %6846 }
 0x4aa   :  { %6482 = vmatmul.mubr.bf16.gmra.mrb[208].mxu1 %v12974_v16 }
 0x4ab   :  { %6489 = vmatprep.mubr.bf16.mxu1 %v12977_v43  ;;  %7363 = vrot.lane.b32.xlu0 %v13207_v40, %s11670_s3 }
 0x4ac   :  { %8031 = vrot.lane.b32.xlu1 %v13217_v59, %s11669_s11 }
 0x4ad   :  { %v13419_v58 = vpop.f32.mrb[104].mxu1 }
 0x4ae   :  { %16188 = vst [vmem:[#allocation42_spill] sm:$0xff] %v13419_v58  ;;  %v7089_v45 = vrot.slane %v13419_v58, 2  ;;  %v13425_v16 = vpop.f32.mrb[105].mxu1  ;;  %v16192_v22 = vrot.slane %v13419_v58, 1  ;;  %v6988_v58 = vadd.f32 %v6845_v35, %v12869_v63  ;;  %v7136_v63 = vpop.permute.xlu1 %7135 }
 0x4af   :  { %16189 = vst [vmem:[#allocation43_spill] sm:$0xff] %v13425_v16  ;;  %v7758_v42 = vrot.slane %v13425_v16, 2  ;;  %v6219_v47 = vpop.f32.mrb[106].mxu1  ;;  %6868 = vrot.lane.b32.xlu0 %v16190_v6, %s11668_s2  ;;  %v16194_v16 = vrot.slane %v13405_v5, 2 }
 0x4b0   :  { %v7091_v4 = vrot.slane %v6219_v47, 2  ;;  %7825 = vrot.lane.b32.xlu1 %v16191_v56, %s11668_s2  ;;  %v6221_v48 = vpop.f32.mrb[107].mxu1  ;;  %v13440_v43 = vsel %vm1275_vm1, %v16193_v21, %v16192_v22  ;;  %v16195_v47 = vrot.slane %v13411_v19, 2  ;;  %v16196_v21 = vrot.slane %v13207_v40, 2 }
 0x4b1   :  { %v13445_v55 = vsel %vm7052_vm2, %v16194_v16, %v7089_v45  ;;  %v7760_v6 = vrot.slane %v6221_v48, 2  ;;  %v7138_v48 = vpop.permute.xlu0 %7137  ;;  %v7277_v35 = vadd.f32 %v7134_v54, %v6988_v58  ;;  %v16201_v58 = vrot.slane %v13087_v57, 1 }
 0x4b2   :  { %v13450_v7 = vsel %vm7052_vm2, %v16195_v47, %v7758_v42  ;;  %6490 = vmatmul.mubr.bf16.gmra.mrb[212].mxu1 %v12980_v39  ;;  %v13454_v56 = vsel %vm7052_vm2, %v7089_v45, %v7091_v4  ;;  %v13467_v39 = vrot.slane %v13217_v59, 1  ;;  %v6989_v4 = vadd.f32 %v6847_v13, %v12873_v36 }
 0x4b3   :  { %6496 = vmatprep.mubr.bf16.mxu1 %v12983_v20  ;;  %7157 = vrot.lane.b32.xlu0 %v16196_v21, %s11669_s11  ;;  %v13462_v22 = vsel %vm7052_vm2, %v7758_v42, %v7760_v6  ;;  %v13484_v13 = vrot.slane %v13228_v8, 1  ;;  %v6990_v21 = vadd.f32 %v6849_v41, %v12884_v10 }
 0x4b4   :  { %7365 = vrot.lane.b32.xlu1 %v13224_v31, %s11670_s3  ;;  %16197 = vst [vmem:[#allocation44_spill] sm:$0xff] %v13467_v39  ;;  %v7278_v6 = vadd.f32 %v7136_v63, %v6989_v4 }
 0x4b5   :  { %v13470_v45 = vpop.f32.mrb[108].mxu1  ;;  %16200 = vst [vmem:[#allocation47_spill] sm:$0xff] %v13484_v13 }
 0x4b6   :  { %16198 = vst [vmem:[#allocation45_spill] sm:$0xff] %v13470_v45  ;;  %v13472_v20 = vpop.f32.mrb[109].mxu1 }
 0x4b7   :  { %v13474_v16 = vpop.f32.mrb[110].mxu1  ;;  %8224 = vrot.lane.b32.xlu0 %v13467_v39, %s11670_s3 }
 0x4b8   :  { %16199 = vst [vmem:[#allocation46_spill] sm:$0xff] %v13474_v16  ;;  %6870 = vrot.lane.b32.xlu1 %v13242_v15, %s11668_s2  ;;  %v13480_v42 = vpop.f32.mrb[111].mxu1  ;;  %v7344_v59 = vpop.permute.xlu0 %7343 }
 0x4b9   :  { %v7487_v47 = vadd.f32 %v7344_v59, %v7277_v35 }
 0x4ba   :  { %6497 = vmatmul.mubr.bf16.gmra.mrb[216].mxu1 %v12990_v27  ;;  %v7346_v36 = vpop.permute.xlu1 %7345 }
 0x4bb   :  { %v7488_v54 = vadd.f32 %v7346_v36, %v7278_v6  ;;  %6504 = vmatprep.mubr.bf16.mxu1 %v12993_v14  ;;  %8033 = vrot.lane.b32.xlu0 %v13228_v8, %s11669_s11  ;;  %v13491_v15 = vadd.f32 %v16201_v58, %v7487_v47  ;;  %v15989_v14 = vrot.slane %v13474_v16, 1  ;;  %v15988_v8 = vrot.slane %v13474_v16, 2 }
 0x4bc   :  { %7159 = vrot.lane.b32.xlu1 %v13247_v46, %s11669_s11  ;;  %v16204_v47 = vrot.slane %v13224_v31, 1  ;;  %v7279_v36 = vadd.f32 %v7138_v48, %v6990_v21  ;;  %v16205_v48 = vrot.slane %v13480_v42, 2 }
 0x4bd   :  { %v13496_v27 = vpop.f32.mrb[112].mxu1  ;;  %v13498_v4 = vpop.permute.xlu0 %7807  ;;  %v13501_v63 = vadd.f32 %v13114_v9, %v7488_v54  ;;  %v13516_v9 = vsel %vm1275_vm1, %v13467_v39, %v13484_v13 }
 0x4be   :  { %16202 = vst [vmem:[#allocation48_spill] sm:$0xff] %v13496_v27  ;;  %v15987_v57 = vrot.slane %v13496_v27, 1  ;;  %v7094_v35 = vrot.slane %v13496_v27, 2  ;;  %v13507_v59 = vpop.permute.xlu1 %6850  ;;  %v13509_v10 = vpop.f32.mrb[113].mxu1  ;;  %16203 = vst [vmem:[#allocation49_spill] sm:$0xff] %v13516_v9 }
 0x4bf   :  { %v7763_v41 = vrot.slane %v13509_v10, 2  ;;  %v6239_v6 = vpop.f32.mrb[114].mxu1  ;;  %6872 = vrot.lane.b32.xlu0 %v16204_v47, %s11668_s2 }
 0x4c0   :  { %v7096_v54 = vrot.slane %v6239_v6, 2  ;;  %8226 = vrot.lane.b32.xlu1 %v13516_v9, %s11670_s3  ;;  %v6241_v58 = vpop.f32.mrb[115].mxu1  ;;  %v13528_v46 = vsel %vm1275_vm1, %v15989_v14, %v15987_v57  ;;  %v13533_v40 = vsel %vm7052_vm2, %v15988_v8, %v7094_v35 }
 0x4c1   :  { %v7765_v31 = vrot.slane %v6241_v58, 2  ;;  %v7348_v47 = vpop.permute.xlu0 %7347  ;;  %v13538_v21 = vsel %vm7052_vm2, %v16205_v48, %v7763_v41  ;;  %v16206_v48 = vrot.slane %v13095_v17, 1 }
 0x4c2   :  { %6505 = vmatmul.mubr.bf16.gmra.mrb[220].mxu1 %v12996_v61  ;;  %v13541_v6 = vpop.permute.xlu1 %7139  ;;  %v7489_v9 = vadd.f32 %v7348_v47, %v7279_v36  ;;  %v13544_v57 = vsel %vm7052_vm2, %v7094_v35, %v7096_v54 }
 0x4c3   :  { %6511 = vmatprep.mubr.bf16.mxu1 %v12999_v28  ;;  %8228 = vrot.lane.b32.xlu0 %v13484_v13, %s11670_s3  ;;  %v13550_v58 = vsel %vm7052_vm2, %v7763_v41, %v7765_v31 }
 0x4c4   :  { %7829 = vrot.lane.b32.xlu1 %v13262_v51, %s11668_s2  ;;  %v13556_v61 = vadd.f32 %v16206_v48, %v7489_v9  ;;  %v16216_v9 = vrot.slane %v13270_v32, 1 }
 0x4c5   :  { %v13558_v8 = vpop.f32.mrb[116].mxu1  ;;  %v13560_v36 = vpop.permute.xlu0 %6852 }
 0x4c6   :  { %16207 = vst [vmem:[#allocation50_spill] sm:$0xff] %v13556_v61  ;;  %16208 = vst [vmem:[#allocation51_spill] sm:$0xff] %v13558_v8  ;;  %v13562_v35 = vpop.permute.xlu1 %6854  ;;  %v13564_v28 = vpop.f32.mrb[117].mxu1 }
 0x4c7   :  { %16209 = vst [vmem:[#allocation52_spill] sm:$0xff] %v13560_v36  ;;  %16210 = vst [vmem:[#allocation53_spill] sm:$0xff] %v13562_v35  ;;  %v13566_v54 = vpop.f32.mrb[118].mxu1  ;;  %7827 = vrot.lane.b32.xlu0 %v13252_v49, %s11668_s2 }
 0x4c8   :  { %16211 = vst [vmem:[#allocation54_spill] sm:$0xff] %v13566_v54  ;;  %8035 = vrot.lane.b32.xlu1 %v13268_v3, %s11669_s11  ;;  %v13572_v31 = vpop.f32.mrb[119].mxu1 }
 0x4c9   :  { %v13574_v17 = vpop.permute.xlu0 %7141 }
 0x4ca   :  { %16212 = vst [vmem:[#allocation55_spill] sm:$0xff] %v13574_v17  ;;  %6512 = vmatmul.mubr.bf16.gmra.mrb[224].mxu1 %v13006_v50  ;;  %v13577_v51 = vpop.permute.xlu1 %7809 }
 0x4cb   :  { %6519 = vmatprep.mubr.bf16.mxu1 %v13009_v23  ;;  %7161 = vrot.lane.b32.xlu0 %v13256_v2, %s11669_s11  ;;  %v16218_v2 = vrot.slane %v13566_v54, 2 }
 0x4cc   :  { %7369 = vrot.lane.b32.xlu1 %v13270_v32, %s11670_s3 }
 0x4cd   :  { %v13584_v49 = vpop.f32.mrb[120].mxu1  ;;  %v13586_v41 = vpop.permute.xlu0 %7811 }
 0x4ce   :  { %16213 = vst [vmem:[#allocation56_spill] sm:$0xff] %v13584_v49  ;;  %16214 = vst [vmem:[#allocation57_spill] sm:$0xff] %v13586_v41  ;;  %v15993_v50 = vrot.slane %v13584_v49, 1  ;;  %v7099_v47 = vrot.slane %v13584_v49, 2  ;;  %v13592_v48 = vpop.permute.xlu1 %7143  ;;  %v13594_v23 = vpop.f32.mrb[121].mxu1 }
 0x4cf   :  { %16215 = vst [vmem:[#allocation58_spill] sm:$0xff] %v13592_v48  ;;  %v7768_v14 = vrot.slane %v13594_v23, 2  ;;  %v6259_v13 = vpop.f32.mrb[122].mxu1  ;;  %7367 = vrot.lane.b32.xlu0 %v13266_v44, %s11670_s3  ;;  %v16217_v48 = vrot.slane %v13566_v54, 1 }
 0x4d0   :  { %v7101_v39 = vrot.slane %v6259_v13, 2  ;;  %6874 = vrot.lane.b32.xlu1 %v16216_v9, %s11668_s2  ;;  %v6261_v3 = vpop.f32.mrb[123].mxu1  ;;  %v13613_v35 = vsel %vm7052_vm2, %v16218_v2, %v7099_v47  ;;  %v16219_v13 = vrot.slane %v13572_v31, 2  ;;  %v16222_v2 = vrot.slane %v13270_v32, 2 }
 0x4d1   :  { %v13608_v17 = vsel %vm1275_vm1, %v16217_v48, %v15993_v50  ;;  %v7770_v36 = vrot.slane %v6261_v3, 2  ;;  %v13615_v44 = vpop.permute.xlu0 %8017  ;;  %v13642_v50 = vrot.slane %v13275_v18, 1 }
 0x4d2   :  { %v13620_v9 = vsel %vm7052_vm2, %v16219_v13, %v7768_v14  ;;  %6520 = vmatmul.mubr.bf16.gmra.mrb[228].mxu1 %v13012_v24  ;;  %v13623_v41 = vpop.permute.xlu1 %7349  ;;  %v13626_v48 = vsel %vm7052_vm2, %v7099_v47, %v7101_v39 }
 0x4d3   :  { %16220 = vst [vmem:[#allocation59_spill] sm:$0xff] %v13623_v41  ;;  %16221 = vst [vmem:[#allocation60_spill] sm:$0xff] %v13626_v48  ;;  %6526 = vmatprep.mubr.bf16.mxu1 %v13015_v25  ;;  %8037 = vrot.lane.b32.xlu0 %v13275_v18, %s11669_s11  ;;  %v13632_v3 = vsel %vm7052_vm2, %v7768_v14, %v7770_v36  ;;  %v16229_v14 = vrot.slane %v13275_v18, 2 }
 0x4d4   :  { %7163 = vrot.lane.b32.xlu1 %v16222_v2, %s11669_s11  ;;  %16225 = vst [vmem:[#allocation63_spill] sm:$0xff] %v13642_v50 }
 0x4d5   :  { %v13637_v13 = vpop.f32.mrb[124].mxu1  ;;  %v13639_v24 = vpop.permute.xlu0 %7351 }
 0x4d6   :  { %16223 = vst [vmem:[#allocation61_spill] sm:$0xff] %v13637_v13  ;;  %16224 = vst [vmem:[#allocation62_spill] sm:$0xff] %v13639_v24  ;;  %v13644_v39 = vpop.permute.xlu1 %8019  ;;  %v13646_v25 = vpop.f32.mrb[125].mxu1 }
 0x4d7   :  { %16226 = vst [vmem:[#allocation64_spill] sm:$0xff] %v13644_v39  ;;  %16227 = vst [vmem:[#allocation65_spill] sm:$0xff] %v13646_v25  ;;  %v13648_v47 = vpop.f32.mrb[126].mxu1  ;;  %7831 = vrot.lane.b32.xlu0 %v16229_v14, %s11668_s2 }
 0x4d8   :  { %16228 = vst [vmem:[#allocation66_spill] sm:$0xff] %v13648_v47  ;;  %8230 = vrot.lane.b32.xlu1 %v13642_v50, %s11670_s3  ;;  %v13655_v36 = vpop.f32.mrb[127].mxu1  ;;  %v16239_v25 = vrot.slane %v13648_v47, 2 }
 0x4d9   :  { %v13657_v2 = vpop.permute.xlu0 %6856 }
 0x4da   :  { %16230 = vst [vmem:[#allocation67_spill] sm:$0xff] %v13657_v2  ;;  %6527 = vmatmul.mubr.bf16.gmra.mrb[232].mxu1 %v13022_v1  ;;  %v13660_v32 = vpop.permute.xlu1 %7813  ;;  %v16236_v2 = vrot.slane %v13284_v11, 1 }
 0x4db   :  { %16231 = vst [vmem:[#allocation68_spill] sm:$0xff] %v13660_v32  ;;  %6534 = vmatprep.mubr.bf16.mxu1 %v13025_v38  ;;  %7371 = vrot.lane.b32.xlu0 %v13284_v11, %s11670_s3  ;;  %v13706_v11 = vrot.slane %v13290_v52, 1 }
 0x4dc   :  { %8039 = vrot.lane.b32.xlu1 %v13290_v52, %s11669_s11 }
 0x4dd   :  { %v13667_v18 = vpop.f32.mrb[128].mxu1  ;;  %v13669_v14 = vpop.permute.xlu0 %7145  ;;  %16243 = vst [vmem:[#allocation76_spill] sm:$0xff] %v13706_v11 }
 0x4de   :  { %16232 = vst [vmem:[#allocation69_spill] sm:$0xff] %v13667_v18  ;;  %16233 = vst [vmem:[#allocation70_spill] sm:$0xff] %v13669_v14  ;;  %v16001_v1 = vrot.slane %v13667_v18, 1  ;;  %v7104_v32 = vrot.slane %v13667_v18, 2  ;;  %v13675_v13 = vpop.permute.xlu1 %7353  ;;  %v13677_v38 = vpop.f32.mrb[129].mxu1  ;;  %v16244_v18 = vld [vmem:[#allocation6_spill] sm:$0xff] }
 0x4df   :  { %16234 = vst [vmem:[#allocation71_spill] sm:$0xff] %v13675_v13  ;;  %16235 = vst [vmem:[#allocation72_spill] sm:$0xff] %v13677_v38  ;;  %v7773_v41 = vrot.slane %v13677_v38, 2  ;;  %v6279_v39 = vpop.f32.mrb[130].mxu1  ;;  %6876 = vrot.lane.b32.xlu0 %v13307_v60, %s11668_s2  ;;  %v16237_v13 = vrot.slane %v13648_v47, 1 }
 0x4e0   :  { %v7106_v14 = vrot.slane %v6279_v39, 2  ;;  %6878 = vrot.lane.b32.xlu1 %v16236_v2, %s11668_s2  ;;  %v6281_v24 = vpop.f32.mrb[131].mxu1  ;;  %v13696_v38 = vsel %vm7052_vm2, %v16239_v25, %v7104_v32  ;;  %v16241_v39 = vrot.slane %v13655_v36, 2  ;;  %v16247_v25 = vld [vmem:[#allocation7_spill] sm:$0xff] }
 0x4e1   :  { %v13691_v61 = vsel %vm1275_vm1, %v16237_v13, %v16001_v1  ;;  %16240 = vst [vmem:[#allocation74_spill] sm:$0xff] %v13696_v38  ;;  %v7775_v48 = vrot.slane %v6281_v24, 2  ;;  %v13698_v60 = vpop.permute.xlu0 %8212 }
 0x4e2   :  { %16238 = vst [vmem:[#allocation73_spill] sm:$0xff] %v13691_v61  ;;  %v13703_v2 = vsel %vm7052_vm2, %v16241_v39, %v7773_v41  ;;  %6535 = vmatmul.mubr.bf16.gmra.mrb[236].mxu1 %v16244_v18  ;;  %v13709_v13 = vpop.permute.xlu1 %6858  ;;  %v13712_v1 = vsel %vm7052_vm2, %v7104_v32, %v7106_v14  ;;  %v13733_v32 = vsel %vm1275_vm1, %v13642_v50, %v13706_v11  ;;  %v16256_v14 = vld [vmem:[#allocation8_spill] sm:$0xff] }
 0x4e3   :  { %16242 = vst [vmem:[#allocation75_spill] sm:$0xff] %v13703_v2  ;;  %16245 = vst [vmem:[#allocation6_spill] sm:$0xff] %v13709_v13  ;;  %6541 = vmatprep.mubr.bf16.mxu1 %v16247_v25  ;;  %7165 = vrot.lane.b32.xlu0 %v13312_v34, %s11669_s11  ;;  %v13718_v24 = vsel %vm7052_vm2, %v7773_v41, %v7775_v48 }
 0x4e4   :  { %16246 = vst [vmem:[#allocation77_spill] sm:$0xff] %v13712_v1  ;;  %16248 = vst [vmem:[#allocation7_spill] sm:$0xff] %v13718_v24  ;;  %8234 = vrot.lane.b32.xlu1 %v13706_v11, %s11670_s3 }
 0x4e5   :  { %v13722_v52 = vpop.f32.mrb[132].mxu1  ;;  %v13724_v39 = vpop.permute.xlu0 %8021  ;;  %16252 = vst [vmem:[#allocation81_spill] sm:$0xff] %v13733_v32 }
 0x4e6   :  { %16249 = vst [vmem:[#allocation78_spill] sm:$0xff] %v13722_v52  ;;  %v13726_v18 = vpop.permute.xlu1 %7147  ;;  %v13728_v2 = vpop.f32.mrb[133].mxu1  ;;  %v16257_v52 = vld [vmem:[#allocation9_spill] sm:$0xff] }
 0x4e7   :  { %16250 = vst [vmem:[#allocation79_spill] sm:$0xff] %v13726_v18  ;;  %16251 = vst [vmem:[#allocation80_spill] sm:$0xff] %v13728_v2  ;;  %v13735_v34 = vpop.f32.mrb[134].mxu1  ;;  %8232 = vrot.lane.b32.xlu0 %v13733_v32, %s11670_s3 }
 0x4e8   :  { %16253 = vst [vmem:[#allocation82_spill] sm:$0xff] %v13735_v34  ;;  %7833 = vrot.lane.b32.xlu1 %v13317_v12, %s11668_s2  ;;  %v13741_v41 = vpop.f32.mrb[135].mxu1  ;;  %v16012_v12 = vrot.slane %v13735_v34, 1 }
 0x4e9   :  { %16254 = vst [vmem:[#allocation83_spill] sm:$0xff] %v13741_v41  ;;  %v13743_v48 = vpop.permute.xlu0 %6860 }
 0x4ea   :  { %16255 = vst [vmem:[#allocation84_spill] sm:$0xff] %v13743_v48  ;;  %6542 = vmatmul.mubr.bf16.gmra.mrb[240].mxu1 %v16256_v14  ;;  %v13746_v25 = vpop.permute.xlu1 %8214 }
 0x4eb   :  { %6549 = vmatprep.mubr.bf16.mxu1 %v16257_v52  ;;  %7835 = vrot.lane.b32.xlu0 %v13327_v30, %s11668_s2  ;;  %v16261_v30 = vrot.slane %v13735_v34, 2 }
 0x4ec   :  { %7167 = vrot.lane.b32.xlu1 %v13321_v62, %s11669_s11 }
 0x4ed   :  { %v13753_v11 = vpop.f32.mrb[136].mxu1  ;;  %v13755_v32 = vpop.permute.xlu0 %8216 }
 0x4ee   :  { %16258 = vst [vmem:[#allocation8_spill] sm:$0xff] %v13753_v11  ;;  %v16011_v14 = vrot.slane %v13753_v11, 1  ;;  %v7109_v1 = vrot.slane %v13753_v11, 2  ;;  %v13761_v2 = vpop.permute.xlu1 %7817  ;;  %v13763_v52 = vpop.f32.mrb[137].mxu1 }
 0x4ef   :  { %16259 = vst [vmem:[#allocation9_spill] sm:$0xff] %v13763_v52  ;;  %v7778_v62 = vrot.slane %v13763_v52, 2  ;;  %v6299_v24 = vpop.f32.mrb[138].mxu1  ;;  %8041 = vrot.lane.b32.xlu0 %v13333_v53, %s11669_s11  ;;  %v16263_v53 = vrot.slane %v13741_v41, 2 }
 0x4f0   :  { %v7111_v38 = vrot.slane %v6299_v24, 2  ;;  %7373 = vrot.lane.b32.xlu1 %v13331_v0, %s11670_s3  ;;  %v6301_v50 = vpop.f32.mrb[139].mxu1  ;;  %v13776_v18 = vsel %vm1275_vm1, %v16012_v12, %v16011_v14  ;;  %v13781_v52 = vsel %vm7052_vm2, %v16261_v30, %v7109_v1  ;;  %v11625_v0 = vld [vmem:[#allocation4 + $0xe0] sm:$0xff]  ;;  %v11626_v12 = vld [vmem:[#allocation4 + $0xf8] sm:$0xff] }
 0x4f1   :  { %16260 = vst [vmem:[#allocation85_spill] sm:$0xff] %v13776_v18  ;;  %16262 = vst [vmem:[#allocation86_spill] sm:$0xff] %v13781_v52  ;;  %v7780_v48 = vrot.slane %v6301_v50, 2  ;;  %v13783_v61 = vpop.permute.xlu0 %7815  ;;  %v13788_v24 = vsel %vm7052_vm2, %v16263_v53, %v7778_v62 }
 0x4f2   :  { %16264 = vst [vmem:[#allocation87_spill] sm:$0xff] %v13788_v24  ;;  %6550 = vmatmul.mubr.bf16.gmra.mrb[244].mxu1 %v11625_v0  ;;  %v13790_v11 = vpop.permute.xlu1 %8023  ;;  %v13793_v14 = vsel %vm7052_vm2, %v7109_v1, %v7111_v38  ;;  %v16272_v38 = vrot.slane %v13335_v29, 1 }
 0x4f3   :  { %16265 = vst [vmem:[#allocation88_spill] sm:$0xff] %v13793_v14  ;;  %6556 = vmatprep.mubr.bf16.mxu1 %v11626_v12  ;;  %7375 = vrot.lane.b32.xlu0 %v13335_v29, %s11670_s3  ;;  %v13798_v50 = vsel %vm7052_vm2, %v7778_v62, %v7780_v48  ;;  %v16273_v48 = vrot.slane %v13342_v26, 2 }
 0x4f4   :  { %16266 = vst [vmem:[#allocation89_spill] sm:$0xff] %v13798_v50  ;;  %8043 = vrot.lane.b32.xlu1 %v13342_v26, %s11669_s11  ;;  %v11628_v50 = vld [vmem:[#allocation4 + $0x108] sm:$0xff] }
 0x4f5   :  { %v13802_v30 = vpop.f32.mrb[140].mxu1  ;;  %v13804_v53 = vpop.permute.xlu0 %7149 }
 0x4f6   :  { %16267 = vst [vmem:[#allocation90_spill] sm:$0xff] %v13802_v30  ;;  %16268 = vst [vmem:[#allocation91_spill] sm:$0xff] %v13804_v53  ;;  %v13806_v0 = vpop.permute.xlu1 %7357  ;;  %v13808_v24 = vpop.f32.mrb[141].mxu1  ;;  %v11627_v30 = vld [vmem:[#allocation4 + $0xf0] sm:$0xff] }
 0x4f7   :  { %16269 = vst [vmem:[#allocation92_spill] sm:$0xff] %v13806_v0  ;;  %16270 = vst [vmem:[#allocation93_spill] sm:$0xff] %v13808_v24  ;;  %v13810_v1 = vpop.f32.mrb[142].mxu1  ;;  %6880 = vrot.lane.b32.xlu0 %v16272_v38, %s11668_s2  ;;  %v16277_v24 = vrot.slane %v13335_v29, 2  ;;  %v13830_v38 = vrot.slane %v13342_v26, 1 }
 0x4f8   :  { %16271 = vst [vmem:[#allocation94_spill] sm:$0xff] %v13810_v1  ;;  %7837 = vrot.lane.b32.xlu1 %v16273_v48, %s11668_s2  ;;  %v13818_v12 = vpop.f32.mrb[143].mxu1  ;;  %v16283_v34 = vrot.slane %v13810_v1, 2 }
 0x4f9   :  { %16274 = vst [vmem:[#allocation95_spill] sm:$0xff] %v13818_v12  ;;  %v13820_v62 = vpop.permute.xlu0 %7355  ;;  %16278 = vst [vmem:[#allocation98_spill] sm:$0xff] %v13830_v38 }
 0x4fa   :  { %16275 = vst [vmem:[#allocation96_spill] sm:$0xff] %v13820_v62  ;;  %6557 = vmatmul.mubr.bf16.gmra.mrb[248].mxu1 %v11627_v30  ;;  %v13822_v14 = vpop.permute.xlu1 %6862  ;;  %v16024_v30 = vrot.slane %v13810_v1, 1  ;;  %v11629_v62 = vld [vmem:[#allocation4 + $0x100] sm:$0xff]  ;;  %v16308_v1 = vld [vmem:[#allocation40_spill] sm:$0xff] }
 0x4fb   :  { %16276 = vst [vmem:[#allocation97_spill] sm:$0xff] %v13822_v14  ;;  %6564 = vmatprep.mubr.bf16.mxu1 %v11628_v50  ;;  %7169 = vrot.lane.b32.xlu0 %v16277_v24, %s11669_s11 }
 0x4fc   :  { %7377 = vrot.lane.b32.xlu1 %v13353_v37, %s11670_s3 }
 0x4fd   :  { %v13832_v48 = vpop.f32.mrb[144].mxu1  ;;  %v13834_v52 = vpop.permute.xlu0 %8025 }
 0x4fe   :  { %16279 = vst [vmem:[#allocation99_spill] sm:$0xff] %v13832_v48  ;;  %v16023_v50 = vrot.slane %v13832_v48, 1  ;;  %v7114_v41 = vrot.slane %v13832_v48, 2  ;;  %v13840_v29 = vpop.permute.xlu1 %7151  ;;  %v13842_v24 = vpop.f32.mrb[145].mxu1 }
 0x4ff   :  { %16280 = vst [vmem:[#allocation100_spill] sm:$0xff] %v13840_v29  ;;  %16281 = vst [vmem:[#allocation101_spill] sm:$0xff] %v13842_v24  ;;  %v7783_v26 = vrot.slane %v13842_v24, 2  ;;  %v6319_v14 = vpop.f32.mrb[146].mxu1  ;;  %8236 = vrot.lane.b32.xlu0 %v13830_v38, %s11670_s3 }
 0x500   :  { %v7116_v0 = vrot.slane %v6319_v14, 2  ;;  %6882 = vrot.lane.b32.xlu1 %v13377_v33, %s11668_s2  ;;  %v6321_v18 = vpop.f32.mrb[147].mxu1  ;;  %v13855_v29 = vsel %vm1275_vm1, %v16024_v30, %v16023_v50  ;;  %v13860_v24 = vsel %vm7052_vm2, %v16283_v34, %v7114_v41  ;;  %v16286_v14 = vrot.slane %v13818_v12, 2  ;;  %v16289_v30 = vld [vmem:[#allocation34_spill] sm:$0xff]  ;;  %v11630_v34 = vld [vmem:[#allocation4 + $0x118] sm:$0xff] }
 0x501   :  { %16282 = vst [vmem:[#allocation102_spill] sm:$0xff] %v13855_v29  ;;  %16284 = vst [vmem:[#allocation103_spill] sm:$0xff] %v13860_v24  ;;  %v7785_v53 = vrot.slane %v6321_v18, 2  ;;  %v13862_v13 = vpop.permute.xlu0 %7819  ;;  %v13875_v29 = vrot.slane %v16289_v30, 1 }
 0x502   :  { %16285 = vst [vmem:[#allocation104_spill] sm:$0xff] %v13862_v13  ;;  %v13867_v33 = vsel %vm7052_vm2, %v16286_v14, %v7783_v26  ;;  %6565 = vmatmul.mubr.bf16.gmra.mrb[252].mxu1 %v11629_v62  ;;  %v13869_v48 = vpop.permute.xlu1 %8218  ;;  %v13872_v50 = vsel %vm7052_vm2, %v7114_v41, %v7116_v0  ;;  %v16292_v14 = vld [vmem:[#allocation35_spill] sm:$0xff] }
 0x503   :  { %16287 = vst [vmem:[#allocation105_spill] sm:$0xff] %v13867_v33  ;;  %16288 = vst [vmem:[#allocation106_spill] sm:$0xff] %v13872_v50  ;;  %6571 = vmatprep.mubr.bf16.mxu1 %v11630_v34  ;;  %8045 = vrot.lane.b32.xlu0 %v16289_v30, %s11669_s11  ;;  %v13880_v18 = vsel %vm7052_vm2, %v7783_v26, %v7785_v53  ;;  %v13897_v30 = vsel %vm1275_vm1, %v13830_v38, %v13875_v29  ;;  %v16298_v53 = vrot.slane %v13353_v37, 1 }
 0x504   :  { %16290 = vst [vmem:[#allocation34_spill] sm:$0xff] %v13875_v29  ;;  %16291 = vst [vmem:[#allocation107_spill] sm:$0xff] %v13880_v18  ;;  %7171 = vrot.lane.b32.xlu1 %v16292_v14, %s11669_s11  ;;  %v11631_v14 = vld [vmem:[#allocation4 + $0x110] sm:$0xff]  ;;  %v16302_v18 = vld [vmem:[#allocation38_spill] sm:$0xff] }
 0x505   :  { %v13884_v62 = vpop.f32.mrb[148].mxu1  ;;  %v13886_v33 = vpop.permute.xlu0 %7359  ;;  %16297 = vst [vmem:[#allocation111_spill] sm:$0xff] %v13897_v30 }
 0x506   :  { %16293 = vst [vmem:[#allocation35_spill] sm:$0xff] %v13884_v62  ;;  %16294 = vst [vmem:[#allocation108_spill] sm:$0xff] %v13886_v33  ;;  %v13888_v41 = vpop.permute.xlu1 %8027  ;;  %v13890_v0 = vpop.f32.mrb[149].mxu1 }
 0x507   :  { %16295 = vst [vmem:[#allocation109_spill] sm:$0xff] %v13890_v0  ;;  %v13892_v50 = vpop.f32.mrb[150].mxu1  ;;  %6884 = vrot.lane.b32.xlu0 %v16298_v53, %s11668_s2  ;;  %v11632_v0 = vld [vmem:[#allocation4 + $0x128] sm:$0xff] }
 0x508   :  { %16296 = vst [vmem:[#allocation110_spill] sm:$0xff] %v13892_v50  ;;  %8238 = vrot.lane.b32.xlu1 %v13897_v30, %s11670_s3  ;;  %v13904_v26 = vpop.f32.mrb[151].mxu1 }
 0x509   :  { %16299 = vst [vmem:[#allocation112_spill] sm:$0xff] %v13904_v26  ;;  %v13906_v34 = vpop.permute.xlu0 %6864 }
 0x50a   :  { %16300 = vst [vmem:[#allocation113_spill] sm:$0xff] %v13906_v34  ;;  %6572 = vmatmul.mubr.bf16.gmra.mrb[0].mxu1 %v11631_v14  ;;  %v13908_v62 = vpop.permute.xlu1 %6866  ;;  %v16309_v34 = vrot.slane %v13892_v50, 1 }
 0x50b   :  { %16301 = vst [vmem:[#allocation114_spill] sm:$0xff] %v13908_v62  ;;  %6579 = vmatprep.mubr.bf16.mxu1 %v11632_v0  ;;  %8240 = vrot.lane.b32.xlu0 %v13875_v29, %s11670_s3  ;;  %v16307_v62 = vld [vmem:[#allocation36_spill] sm:$0xff]  ;;  %v16311_v29 = vrot.slane %v13892_v50, 2 }
 0x50c   :  { %7841 = vrot.lane.b32.xlu1 %v16302_v18, %s11668_s2 }
 0x50d   :  { %v13914_v53 = vpop.f32.mrb[152].mxu1  ;;  %v13916_v24 = vpop.permute.xlu0 %7153 }
 0x50e   :  { %16303 = vst [vmem:[#allocation38_spill] sm:$0xff] %v13914_v53  ;;  %16304 = vst [vmem:[#allocation115_spill] sm:$0xff] %v13916_v24  ;;  %v16038_v14 = vrot.slane %v13914_v53, 1  ;;  %v7119_v12 = vrot.slane %v13914_v53, 2  ;;  %v13922_v30 = vpop.permute.xlu1 %8222  ;;  %v13924_v0 = vpop.f32.mrb[153].mxu1 }
 0x50f   :  { %16305 = vst [vmem:[#allocation116_spill] sm:$0xff] %v13922_v30  ;;  %16306 = vst [vmem:[#allocation117_spill] sm:$0xff] %v13924_v0  ;;  %v7788_v18 = vrot.slane %v13924_v0, 2  ;;  %v6339_v38 = vpop.f32.mrb[154].mxu1  ;;  %7839 = vrot.lane.b32.xlu0 %v16307_v62, %s11668_s2  ;;  %v11633_v62 = vld [vmem:[#allocation4 + $0x120] sm:$0xff] }
 0x510   :  { %v7121_v24 = vrot.slane %v6339_v38, 2  ;;  %8047 = vrot.lane.b32.xlu1 %v16308_v1, %s11669_s11  ;;  %v6341_v37 = vpop.f32.mrb[155].mxu1  ;;  %v13937_v33 = vsel %vm1275_vm1, %v16309_v34, %v16038_v14  ;;  %v13942_v0 = vsel %vm7052_vm2, %v16311_v29, %v7119_v12  ;;  %v16313_v38 = vrot.slane %v13904_v26, 2  ;;  %v11634_v14 = vld [vmem:[#allocation4 + $0x138] sm:$0xff]  ;;  %v16317_v29 = vld [vmem:[#allocation37_spill] sm:$0xff] }
 0x511   :  { %16310 = vst [vmem:[#allocation36_spill] sm:$0xff] %v13937_v33  ;;  %16312 = vst [vmem:[#allocation40_spill] sm:$0xff] %v13942_v0  ;;  %v7790_v13 = vrot.slane %v6341_v37, 2  ;;  %v13944_v30 = vpop.permute.xlu0 %8220 }
 0x512   :  { %v13949_v1 = vsel %vm7052_vm2, %v16313_v38, %v7788_v18  ;;  %6580 = vmatmul.mubr.bf16.gmra.mrb[4].mxu1 %v11633_v62  ;;  %v13951_v53 = vpop.permute.xlu1 %7821  ;;  %v13954_v34 = vsel %vm7052_vm2, %v7119_v12, %v7121_v24  ;;  %v16324_v24 = vld [vmem:[#allocation39_spill] sm:$0xff] }
 0x513   :  { %16314 = vst [vmem:[#allocation118_spill] sm:$0xff] %v13949_v1  ;;  %16315 = vst [vmem:[#allocation119_spill] sm:$0xff] %v13951_v53  ;;  %6586 = vmatprep.mubr.bf16.mxu1 %v11634_v14  ;;  %7173 = vrot.lane.b32.xlu0 %v16317_v29, %s11669_s11  ;;  %v13959_v37 = vsel %vm7052_vm2, %v7788_v18, %v7790_v13  ;;  %v16325_v13 = vrot.slane %v13405_v5, 1  ;;  %v11635_v29 = vld [vmem:[#allocation4 + $0x130] sm:$0xff] }
 0x514   :  { %16316 = vst [vmem:[#allocation120_spill] sm:$0xff] %v13954_v34  ;;  %16318 = vst [vmem:[#allocation37_spill] sm:$0xff] %v13959_v37  ;;  %7381 = vrot.lane.b32.xlu1 %v13405_v5, %s11670_s3  ;;  %v11636_v34 = vld [vmem:[#allocation4 + $0x148] sm:$0xff]  ;;  %v13990_v37 = vrot.slane %v13411_v19, 1 }
 0x515   :  { %v13963_v38 = vpop.f32.mrb[156].mxu1  ;;  %v13965_v1 = vpop.permute.xlu0 %7823 }
 0x516   :  { %16319 = vst [vmem:[#allocation121_spill] sm:$0xff] %v13963_v38  ;;  %16320 = vst [vmem:[#allocation122_spill] sm:$0xff] %v13965_v1  ;;  %v13967_v62 = vpop.permute.xlu1 %7155  ;;  %v13969_v0 = vpop.f32.mrb[157].mxu1 }
 0x517   :  { %16321 = vst [vmem:[#allocation123_spill] sm:$0xff] %v13967_v62  ;;  %16322 = vst [vmem:[#allocation124_spill] sm:$0xff] %v13969_v0  ;;  %v13971_v12 = vpop.f32.mrb[158].mxu1  ;;  %7379 = vrot.lane.b32.xlu0 %v16324_v24, %s11670_s3  ;;  %v16329_v0 = vrot.slane %v13405_v5, 2 }
 0x518   :  { %16323 = vst [vmem:[#allocation125_spill] sm:$0xff] %v13971_v12  ;;  %6886 = vrot.lane.b32.xlu1 %v16325_v13, %s11668_s2  ;;  %v13978_v14 = vpop.f32.mrb[159].mxu1  ;;  %16330 = vst [vmem:[#allocation129_spill] sm:$0xff] %v13990_v37 }
 0x519   :  { %16326 = vst [vmem:[#allocation126_spill] sm:$0xff] %v13978_v14  ;;  %v13980_v18 = vpop.permute.xlu0 %8029 }
 0x51a   :  { %16327 = vst [vmem:[#allocation127_spill] sm:$0xff] %v13980_v18  ;;  %6587 = vmatmul.mubr.bf16.gmra.mrb[8].mxu1 %v11635_v29  ;;  %v13982_v38 = vpop.permute.xlu1 %7361  ;;  %v11637_v18 = vld [vmem:[#allocation4 + $0x140] sm:$0xff] }
 0x51b   :  { %16328 = vst [vmem:[#allocation128_spill] sm:$0xff] %v13982_v38  ;;  %6594 = vmatprep.mubr.bf16.mxu1 %v11636_v34  ;;  %8049 = vrot.lane.b32.xlu0 %v13411_v19, %s11669_s11 }
 0x51c   :  { %7175 = vrot.lane.b32.xlu1 %v16329_v0, %s11669_s11  ;;  %v16338_v0 = vrot.slane %v13971_v12, 2 }
 0x51d   :  { %v13992_v13 = vpop.f32.mrb[160].mxu1  ;;  %v13994_v33 = vpop.permute.xlu0 %7363 }
 0x51e   :  { %16331 = vst [vmem:[#allocation130_spill] sm:$0xff] %v13992_v13  ;;  %16332 = vst [vmem:[#allocation131_spill] sm:$0xff] %v13994_v33  ;;  %v16049_v34 = vrot.slane %v13992_v13, 1  ;;  %v7124_v50 = vrot.slane %v13992_v13, 2  ;;  %v14000_v24 = vpop.permute.xlu1 %8031  ;;  %v14002_v62 = vpop.f32.mrb[161].mxu1  ;;  %v16335_v33 = vrot.slane %v13411_v19, 2 }
 0x51f   :  { %16333 = vst [vmem:[#allocation132_spill] sm:$0xff] %v14000_v24  ;;  %16334 = vst [vmem:[#allocation133_spill] sm:$0xff] %v14002_v62  ;;  %v7793_v5 = vrot.slane %v14002_v62, 2  ;;  %v6359_v38 = vpop.f32.mrb[162].mxu1  ;;  %v16336_v24 = vrot.slane %v13971_v12, 1 }
 0x520   :  { %7843 = vrot.lane.b32.xlu0 %v16335_v33, %s11668_s2  ;;  %v7126_v29 = vrot.slane %v6359_v38, 2  ;;  %8242 = vrot.lane.b32.xlu1 %v13990_v37, %s11670_s3  ;;  %v6361_v26 = vpop.f32.mrb[163].mxu1  ;;  %v14021_v62 = vsel %vm7052_vm2, %v16338_v0, %v7124_v50  ;;  %v16341_v33 = vrot.slane %v13978_v14, 2  ;;  %v16344_v0 = vld [vmem:[#allocation42_spill] sm:$0xff] }
 0x521   :  { %v14016_v1 = vsel %vm1275_vm1, %v16336_v24, %v16049_v34  ;;  %16339 = vst [vmem:[#allocation135_spill] sm:$0xff] %v14021_v62  ;;  %v7795_v53 = vrot.slane %v6361_v26, 2  ;;  %v14023_v19 = vpop.permute.xlu0 %6868  ;;  %v11638_v34 = vld [vmem:[#allocation4 + $0x158] sm:$0xff]  ;;  %v16346_v62 = vld [vmem:[#allocation43_spill] sm:$0xff] }
 0x522   :  { %16337 = vst [vmem:[#allocation134_spill] sm:$0xff] %v14016_v1  ;;  %16340 = vst [vmem:[#allocation136_spill] sm:$0xff] %v14023_v19  ;;  %v14028_v38 = vsel %vm7052_vm2, %v16341_v33, %v7793_v5  ;;  %6595 = vmatmul.mubr.bf16.gmra.mrb[12].mxu1 %v11637_v18  ;;  %v14030_v13 = vpop.permute.xlu1 %7825  ;;  %v14033_v24 = vsel %vm7052_vm2, %v7124_v50, %v7126_v29  ;;  %v14060_v29 = vrot.slane %v16346_v62, 1 }
 0x523   :  { %16342 = vst [vmem:[#allocation137_spill] sm:$0xff] %v14028_v38  ;;  %16343 = vst [vmem:[#allocation138_spill] sm:$0xff] %v14033_v24  ;;  %6601 = vmatprep.mubr.bf16.mxu1 %v11638_v34  ;;  %v14038_v26 = vsel %vm7052_vm2, %v7793_v5, %v7795_v53  ;;  %v16351_v5 = vrot.slane %v16344_v0, 1 }
 0x524   :  { %7383 = vrot.lane.b32.xlu0 %v16344_v0, %s11670_s3  ;;  %16345 = vst [vmem:[#allocation139_spill] sm:$0xff] %v14038_v26  ;;  %8051 = vrot.lane.b32.xlu1 %v16346_v62, %s11669_s11  ;;  %16353 = vst [vmem:[#allocation144_spill] sm:$0xff] %v14060_v29  ;;  %v14077_v62 = vsel %vm1275_vm1, %v13990_v37, %v14060_v29 }
 0x525   :  { %v14042_v33 = vpop.f32.mrb[164].mxu1  ;;  %v14044_v38 = vpop.permute.xlu0 %7157  ;;  %16356 = vst [vmem:[#allocation147_spill] sm:$0xff] %v14077_v62 }
 0x526   :  { %16347 = vst [vmem:[#allocation43_spill] sm:$0xff] %v14042_v33  ;;  %16348 = vst [vmem:[#allocation140_spill] sm:$0xff] %v14044_v38  ;;  %v14046_v18 = vpop.permute.xlu1 %7365  ;;  %v14048_v1 = vpop.f32.mrb[165].mxu1  ;;  %v11639_v33 = vld [vmem:[#allocation4 + $0x150] sm:$0xff] }
 0x527   :  { %16349 = vst [vmem:[#allocation141_spill] sm:$0xff] %v14048_v1  ;;  %v14050_v50 = vpop.f32.mrb[166].mxu1  ;;  %v11640_v1 = vld [vmem:[#allocation4 + $0x168] sm:$0xff] }
 0x528   :  { %16350 = vst [vmem:[#allocation142_spill] sm:$0xff] %v14050_v50  ;;  %6888 = vrot.lane.b32.xlu0 %v13440_v43, %s11668_s2  ;;  %6890 = vrot.lane.b32.xlu1 %v16351_v5, %s11668_s2  ;;  %v14057_v53 = vpop.f32.mrb[167].mxu1  ;;  %v16360_v0 = vrot.slane %v14050_v50, 2 }
 0x529   :  { %16352 = vst [vmem:[#allocation143_spill] sm:$0xff] %v14057_v53  ;;  %v14062_v34 = vpop.permute.xlu0 %8224 }
 0x52a   :  { %6602 = vmatmul.mubr.bf16.gmra.mrb[16].mxu1 %v11639_v33  ;;  %v14064_v24 = vpop.permute.xlu1 %6870  ;;  %v16064_v33 = vrot.slane %v14050_v50, 1  ;;  %v11645_v50 = vld [vmem:[#allocation4 + $0x180] sm:$0xff] }
 0x52b   :  { %16354 = vst [vmem:[#allocation145_spill] sm:$0xff] %v14064_v24  ;;  %6609 = vmatprep.mubr.bf16.mxu1 %v11640_v1 }
 0x52c   :  { %7177 = vrot.lane.b32.xlu0 %v13445_v55, %s11669_s11  ;;  %8246 = vrot.lane.b32.xlu1 %v14060_v29, %s11670_s3 }
 0x52d   :  { %v14070_v43 = vpop.f32.mrb[168].mxu1  ;;  %v14072_v5 = vpop.permute.xlu0 %8033 }
 0x52e   :  { %16355 = vst [vmem:[#allocation146_spill] sm:$0xff] %v14070_v43  ;;  %v16063_v1 = vrot.slane %v14070_v43, 1  ;;  %v7129_v55 = vrot.slane %v14070_v43, 2  ;;  %v14083_v12 = vpop.permute.xlu1 %7159  ;;  %v14085_v14 = vpop.f32.mrb[169].mxu1 }
 0x52f   :  { %16357 = vst [vmem:[#allocation148_spill] sm:$0xff] %v14083_v12  ;;  %16358 = vst [vmem:[#allocation149_spill] sm:$0xff] %v14085_v14  ;;  %v7798_v24 = vrot.slane %v14085_v14, 2  ;;  %v6379_v38 = vpop.f32.mrb[170].mxu1 }
 0x530   :  { %8244 = vrot.lane.b32.xlu0 %v14077_v62, %s11670_s3  ;;  %v7131_v29 = vrot.slane %v6379_v38, 2  ;;  %7845 = vrot.lane.b32.xlu1 %v13450_v7, %s11668_s2  ;;  %v6381_v26 = vpop.f32.mrb[171].mxu1  ;;  %v14098_v37 = vsel %vm1275_vm1, %v16064_v33, %v16063_v1  ;;  %v14103_v14 = vsel %vm7052_vm2, %v16360_v0, %v7129_v55  ;;  %v16362_v38 = vrot.slane %v14057_v53, 2  ;;  %v11641_v62 = vld [vmem:[#allocation4 + $0x160] sm:$0xff]  ;;  %v11642_v33 = vld [vmem:[#allocation4 + $0x178] sm:$0xff] }
 0x531   :  { %16359 = vst [vmem:[#allocation150_spill] sm:$0xff] %v14098_v37  ;;  %16361 = vst [vmem:[#allocation151_spill] sm:$0xff] %v14103_v14  ;;  %v7800_v12 = vrot.slane %v6381_v26, 2  ;;  %v14105_v19 = vpop.permute.xlu0 %6872 }
 0x532   :  { %v14110_v7 = vsel %vm7052_vm2, %v16362_v38, %v7798_v24  ;;  %6610 = vmatmul.mubr.bf16.gmra.mrb[20].mxu1 %v11641_v62  ;;  %v14112_v43 = vpop.permute.xlu1 %8226  ;;  %v14115_v1 = vsel %vm7052_vm2, %v7129_v55, %v7131_v29 }
 0x533   :  { %16363 = vst [vmem:[#allocation152_spill] sm:$0xff] %v14110_v7  ;;  %16364 = vst [vmem:[#allocation153_spill] sm:$0xff] %v14115_v1  ;;  %6616 = vmatprep.mubr.bf16.mxu1 %v11642_v33  ;;  %v14120_v0 = vsel %vm7052_vm2, %v7798_v24, %v7800_v12  ;;  %v11644_v33 = vld [vmem:[#allocation4 + $0x188] sm:$0xff] }
 0x534   :  { %7847 = vrot.lane.b32.xlu0 %v13462_v22, %s11668_s2  ;;  %16365 = vst [vmem:[#allocation154_spill] sm:$0xff] %v14120_v0  ;;  %7179 = vrot.lane.b32.xlu1 %v13454_v56, %s11669_s11  ;;  %v11643_v56 = vld [vmem:[#allocation4 + $0x170] sm:$0xff]  ;;  %v16373_v0 = vrot.slane %v13480_v42, 2 }
 0x535   :  { %v14124_v26 = vpop.f32.mrb[172].mxu1  ;;  %v14126_v38 = vpop.permute.xlu0 %8228 }
 0x536   :  { %16366 = vst [vmem:[#allocation155_spill] sm:$0xff] %v14124_v26  ;;  %v14128_v62 = vpop.permute.xlu1 %7829  ;;  %v14130_v7 = vpop.f32.mrb[173].mxu1 }
 0x537   :  { %16367 = vst [vmem:[#allocation156_spill] sm:$0xff] %v14130_v7  ;;  %v14132_v29 = vpop.f32.mrb[174].mxu1 }
 0x538   :  { %16368 = vst [vmem:[#allocation157_spill] sm:$0xff] %v14132_v29  ;;  %8053 = vrot.lane.b32.xlu0 %v13472_v20, %s11669_s11  ;;  %7385 = vrot.lane.b32.xlu1 %v13470_v45, %s11670_s3  ;;  %v14138_v22 = vpop.f32.mrb[175].mxu1 }
 0x539   :  { %16369 = vst [vmem:[#allocation158_spill] sm:$0xff] %v14138_v22  ;;  %v14140_v12 = vpop.permute.xlu0 %7827 }
 0x53a   :  { %6617 = vmatmul.mubr.bf16.gmra.mrb[24].mxu1 %v11643_v56  ;;  %v14142_v24 = vpop.permute.xlu1 %8035  ;;  %v16071_v56 = vrot.slane %v14138_v22, 2 }
 0x53b   :  { %6624 = vmatprep.mubr.bf16.mxu1 %v11644_v33  ;;  %v16372_v33 = vrot.slane %v13474_v16, 1 }
 0x53c   :  { %7387 = vrot.lane.b32.xlu0 %v13474_v16, %s11670_s3  ;;  %8055 = vrot.lane.b32.xlu1 %v13480_v42, %s11669_s11 }
 0x53d   :  { %v14148_v20 = vpop.f32.mrb[176].mxu1  ;;  %v14150_v55 = vpop.permute.xlu0 %7161 }
 0x53e   :  { %16370 = vst [vmem:[#allocation159_spill] sm:$0xff] %v14148_v20  ;;  %v14152_v29 = vpop.permute.xlu1 %7369  ;;  %v14154_v26 = vpop.f32.mrb[177].mxu1 }
 0x53f   :  { %16371 = vst [vmem:[#allocation160_spill] sm:$0xff] %v14154_v26  ;;  %v7803_v7 = vrot.slane %v14154_v26, 2  ;;  %v6399_v1 = vpop.f32.mrb[178].mxu1  ;;  %v11646_v26 = vld [vmem:[#allocation4 + $0x198] sm:$0xff] }
 0x540   :  { %6892 = vrot.lane.b32.xlu0 %v16372_v33, %s11668_s2  ;;  %7849 = vrot.lane.b32.xlu1 %v16373_v0, %s11668_s2  ;;  %v6400_v20 = vpop.f32.mrb[179].mxu1  ;;  %v16376_v33 = vrot.slane %v13474_v16, 2 }
 0x541   :  { %v7805_v14 = vrot.slane %v6400_v20, 2  ;;  %v14164_v37 = vpop.permute.xlu0 %7367  ;;  %v14169_v53 = vsel %vm7052_vm2, %v16071_v56, %v7803_v7  ;;  %v14182_v20 = vrot.slane %v13480_v42, 1  ;;  %v11647_v42 = vld [vmem:[#allocation4 + $0x190] sm:$0xff] }
 0x542   :  { %16374 = vst [vmem:[#allocation161_spill] sm:$0xff] %v14169_v53  ;;  %6625 = vmatmul.mubr.bf16.gmra.mrb[28].mxu1 %v11645_v50  ;;  %v14171_v1 = vpop.permute.xlu1 %6874 }
 0x543   :  { %16375 = vst [vmem:[#allocation162_spill] sm:$0xff] %v14171_v1  ;;  %6631 = vmatprep.mubr.bf16.mxu1 %v11646_v26  ;;  %v14177_v0 = vsel %vm7052_vm2, %v7803_v7, %v7805_v14  ;;  %16378 = vst [vmem:[#allocation164_spill] sm:$0xff] %v14182_v20  ;;  %v11649_v1 = vld [vmem:[#allocation4 + $0x1a0] sm:$0xff] }
 0x544   :  { %7181 = vrot.lane.b32.xlu0 %v16376_v33, %s11669_s11  ;;  %16377 = vst [vmem:[#allocation163_spill] sm:$0xff] %v14177_v0  ;;  %7389 = vrot.lane.b32.xlu1 %v13496_v27, %s11670_s3  ;;  %v11648_v0 = vld [vmem:[#allocation4 + $0x1a8] sm:$0xff] }
 0x545   :  { %v14184_v56 = vpop.permute.xlu0 %8037  ;;  %v6404_v50 = vpop.f32.mrb[180].mxu1 }
 0x546   :  { %v14186_v53 = vpop.permute.xlu1 %7163  ;;  %v14188_v22 = vpop.f32.mrb[181].mxu1  ;;  %v14201_v50 = vrot.slane %v13509_v10, 1 }
 0x547   :  { %16379 = vst [vmem:[#allocation165_spill] sm:$0xff] %v14186_v53  ;;  %16380 = vst [vmem:[#allocation166_spill] sm:$0xff] %v14188_v22  ;;  %v6407_v26 = vpop.f32.mrb[182].mxu1 }
 0x548   :  { %8248 = vrot.lane.b32.xlu0 %v14182_v20, %s11670_s3  ;;  %6894 = vrot.lane.b32.xlu1 %v13528_v46, %s11668_s2  ;;  %v14194_v14 = vpop.f32.mrb[183].mxu1  ;;  %16382 = vst [vmem:[#allocation168_spill] sm:$0xff] %v14201_v50  ;;  %v14217_v45 = vsel %vm1275_vm1, %v14182_v20, %v14201_v50 }
 0x549   :  { %16381 = vst [vmem:[#allocation167_spill] sm:$0xff] %v14194_v14  ;;  %v14196_v7 = vpop.permute.xlu0 %7831  ;;  %16384 = vst [vmem:[#allocation170_spill] sm:$0xff] %v14217_v45  ;;  %v16386_v53 = vrot.slane %v14194_v14, 1 }
 0x54a   :  { %6632 = vmatmul.mubr.bf16.gmra.mrb[32].mxu1 %v11647_v42  ;;  %v14198_v33 = vpop.permute.xlu1 %8230 }
 0x54b   :  { %6639 = vmatprep.mubr.bf16.mxu1 %v11648_v0 }
 0x54c   :  { %8057 = vrot.lane.b32.xlu0 %v13509_v10, %s11669_s11  ;;  %7183 = vrot.lane.b32.xlu1 %v13533_v40, %s11669_s11  ;;  %v16385_v10 = vrot.slane %v13496_v27, 1 }
 0x54d   :  { %v14207_v46 = vpop.permute.xlu0 %7371  ;;  %v6412_v22 = vpop.f32.mrb[184].mxu1 }
 0x54e   :  { %v14210_v16 = vpop.permute.xlu1 %8039  ;;  %v14212_v42 = vpop.f32.mrb[185].mxu1 }
 0x54f   :  { %16383 = vst [vmem:[#allocation169_spill] sm:$0xff] %v14212_v42  ;;  %v16082_v40 = vrot.slane %v14212_v42, 1  ;;  %v6415_v0 = vpop.f32.mrb[186].mxu1 }
 0x550   :  { %6896 = vrot.lane.b32.xlu0 %v16385_v10, %s11668_s2  ;;  %8250 = vrot.lane.b32.xlu1 %v14217_v45, %s11670_s3  ;;  %v6416_v22 = vpop.f32.mrb[187].mxu1  ;;  %v11650_v10 = vld [vmem:[#allocation4 + $0x1b8] sm:$0xff] }
 0x551   :  { %v14225_v26 = vpop.permute.xlu0 %6876  ;;  %v14232_v20 = vsel %vm1275_vm1, %v16386_v53, %v16082_v40  ;;  %v11651_v40 = vld [vmem:[#allocation4 + $0x1b0] sm:$0xff]  ;;  %v11654_v45 = vld [vmem:[#allocation4 + $0x1d8] sm:$0xff] }
 0x552   :  { %16387 = vst [vmem:[#allocation171_spill] sm:$0xff] %v14232_v20  ;;  %6640 = vmatmul.mubr.bf16.gmra.mrb[36].mxu1 %v11649_v1  ;;  %v14234_v27 = vpop.permute.xlu1 %6878 }
 0x553   :  { %6646 = vmatprep.mubr.bf16.mxu1 %v11650_v10 }
 0x554   :  { %8252 = vrot.lane.b32.xlu0 %v14201_v50, %s11670_s3  ;;  %7853 = vrot.lane.b32.xlu1 %v13550_v58, %s11668_s2  ;;  %v11652_v58 = vld [vmem:[#allocation4 + $0x1c8] sm:$0xff] }
 0x555   :  { %v14240_v0 = vpop.permute.xlu0 %7165  ;;  %v6452_v22 = vpop.f32.mrb[188].mxu1 }
 0x556   :  { %v14242_v42 = vpop.permute.xlu1 %8234  ;;  %v6453_v14 = vpop.f32.mrb[189].mxu1 }
 0x557   :  { %v6454_v53 = vpop.f32.mrb[190].mxu1 }
 0x558   :  { %7851 = vrot.lane.b32.xlu0 %v13538_v21, %s11668_s2  ;;  %8059 = vrot.lane.b32.xlu1 %v13564_v28, %s11669_s11  ;;  %v6455_v1 = vpop.f32.mrb[191].mxu1  ;;  %v16389_v53 = vrot.slane %v13566_v54, 1 }
 0x559   :  { %v14248_v10 = vpop.permute.xlu0 %8232 }
 0x55a   :  { %6647 = vmatmul.mubr.bf16.gmra.mrb[40].mxu1 %v11651_v40  ;;  %v14250_v20 = vpop.permute.xlu1 %7833 }
 0x55b   :  { %6654 = vmatprep.mubr.bf16.mxu1 %v11652_v58 }
 0x55c   :  { %7185 = vrot.lane.b32.xlu0 %v13544_v57, %s11669_s11  ;;  %7393 = vrot.lane.b32.xlu1 %v13566_v54, %s11670_s3  ;;  %v11653_v57 = vld [vmem:[#allocation4 + $0x1c0] sm:$0xff] }
 0x55d   :  { %v14256_v21 = vpop.permute.xlu0 %7835  ;;  %v6458_v14 = vpop.f32.mrb[192].mxu1 }
 0x55e   :  { %v14258_v22 = vpop.permute.xlu1 %7167  ;;  %v6459_v28 = vpop.f32.mrb[193].mxu1  ;;  %v16390_v14 = vrot.slane %v13566_v54, 2 }
 0x55f   :  { %16388 = vst [vmem:[#allocation172_spill] sm:$0xff] %v14258_v22  ;;  %v6460_v40 = vpop.f32.mrb[194].mxu1 }
 0x560   :  { %7391 = vrot.lane.b32.xlu0 %v13558_v8, %s11670_s3  ;;  %6898 = vrot.lane.b32.xlu1 %v16389_v53, %s11668_s2  ;;  %v6461_v1 = vpop.f32.mrb[195].mxu1  ;;  %v14277_v53 = vrot.slane %v13572_v31, 1 }
 0x561   :  { %v14265_v58 = vpop.permute.xlu0 %8041 }
 0x562   :  { %6655 = vmatmul.mubr.bf16.gmra.mrb[44].mxu1 %v11653_v57  ;;  %v14267_v50 = vpop.permute.xlu1 %7373  ;;  %16392 = vst [vmem:[#allocation174_spill] sm:$0xff] %v14277_v53 }
 0x563   :  { %6661 = vmatprep.mubr.bf16.mxu1 %v11654_v45  ;;  %v16393_v45 = vrot.slane %v13572_v31, 2 }
 0x564   :  { %8061 = vrot.lane.b32.xlu0 %v13572_v31, %s11669_s11  ;;  %7187 = vrot.lane.b32.xlu1 %v16390_v14, %s11669_s11  ;;  %v11655_v14 = vld [vmem:[#allocation4 + $0x1d0] sm:$0xff] }
 0x565   :  { %v6464_v28 = vpop.f32.mrb[196].mxu1  ;;  %v14274_v40 = vpop.permute.xlu0 %7375 }
 0x566   :  { %16391 = vst [vmem:[#allocation173_spill] sm:$0xff] %v14274_v40  ;;  %v14279_v1 = vpop.permute.xlu1 %8043  ;;  %v6465_v57 = vpop.f32.mrb[197].mxu1  ;;  %v11656_v40 = vld [vmem:[#allocation4 + $0x1e8] sm:$0xff] }
 0x567   :  { %v6466_v8 = vpop.f32.mrb[198].mxu1 }
 0x568   :  { %7855 = vrot.lane.b32.xlu0 %v16393_v45, %s11668_s2  ;;  %8254 = vrot.lane.b32.xlu1 %v14277_v53, %s11670_s3  ;;  %v6467_v22 = vpop.f32.mrb[199].mxu1 }
 0x569   :  { %v14286_v54 = vpop.permute.xlu0 %6880 }
 0x56a   :  { %16394 = vst [vmem:[#allocation175_spill] sm:$0xff] %v14286_v54  ;;  %6662 = vmatmul.mubr.bf16.gmra.mrb[48].mxu1 %v11655_v14  ;;  %v14288_v28 = vpop.permute.xlu1 %7837  ;;  %v16398_v14 = vrot.slane %v13584_v49, 1 }
 0x56b   :  { %16395 = vst [vmem:[#allocation176_spill] sm:$0xff] %v14288_v28  ;;  %6669 = vmatprep.mubr.bf16.mxu1 %v11656_v40  ;;  %v14306_v28 = vrot.slane %v13594_v23, 1 }
 0x56c   :  { %7395 = vrot.lane.b32.xlu0 %v13584_v49, %s11670_s3  ;;  %8063 = vrot.lane.b32.xlu1 %v13594_v23, %s11669_s11 }
 0x56d   :  { %v6470_v8 = vpop.f32.mrb[200].mxu1  ;;  %v14294_v31 = vpop.permute.xlu0 %7169  ;;  %16399 = vst [vmem:[#allocation179_spill] sm:$0xff] %v14306_v28 }
 0x56e   :  { %16396 = vst [vmem:[#allocation177_spill] sm:$0xff] %v14294_v31  ;;  %v14296_v57 = vpop.permute.xlu1 %7377  ;;  %v6471_v22 = vpop.f32.mrb[201].mxu1  ;;  %v11657_v8 = vld [vmem:[#allocation4 + $0x1e0] sm:$0xff] }
 0x56f   :  { %16397 = vst [vmem:[#allocation178_spill] sm:$0xff] %v14296_v57  ;;  %v6472_v45 = vpop.f32.mrb[202].mxu1  ;;  %v11658_v57 = vld [vmem:[#allocation4 + $0x1f8] sm:$0xff] }
 0x570   :  { %6900 = vrot.lane.b32.xlu0 %v13608_v17, %s11668_s2  ;;  %6902 = vrot.lane.b32.xlu1 %v16398_v14, %s11668_s2  ;;  %v6473_v40 = vpop.f32.mrb[203].mxu1  ;;  %v7951_v17 = vadd.f32 %v13498_v4, %v13491_v15 }
 0x571   :  { %v14303_v54 = vpop.permute.xlu0 %8236 }
 0x572   :  { %6670 = vmatmul.mubr.bf16.gmra.mrb[52].mxu1 %v11657_v8  ;;  %v14308_v31 = vpop.permute.xlu1 %6882  ;;  %v8161_v23 = vadd.f32 %v13615_v44, %v7951_v17  ;;  %v14334_v44 = vld [vmem:[%s15940_s4] ss:$0 sm:$0xff] }
 0x573   :  { %16400 = vst [vmem:[#allocation180_spill] sm:$0xff] %v14308_v31  ;;  %6676 = vmatprep.mubr.bf16.mxu1 %v11658_v57  ;;  %v14324_v57 = vsel %vm1275_vm1, %v14277_v53, %v14306_v28 }
 0x574   :  { %7189 = vrot.lane.b32.xlu0 %v13613_v35, %s11669_s11  ;;  %8258 = vrot.lane.b32.xlu1 %v14306_v28, %s11670_s3  ;;  %16402 = vst [vmem:[#allocation182_spill] sm:$0xff] %v14324_v57  ;;  %v8356_v15 = vadd.f32 %v13698_v60, %v8161_v23  ;;  %v11659_v28 = vld [vmem:[#allocation4 + $0x1f0] sm:$0xff]  ;;  %v7952_v60 = vadd.f32 %v13577_v51, %v13501_v63 }
 0x575   :  { %v6476_v22 = vpop.f32.mrb[204].mxu1  ;;  %v14316_v45 = vpop.permute.xlu0 %8045  ;;  %v16411_v63 = vld [vmem:[#allocation59_spill] sm:$0xff] }
 0x576   :  { %v14319_v14 = vpop.permute.xlu1 %7171  ;;  %v6477_v40 = vpop.f32.mrb[205].mxu1  ;;  %v16404_v22 = vld [vmem:[#allocation10_spill] sm:$0xff] }
 0x577   :  { %16401 = vst [vmem:[#allocation181_spill] sm:$0xff] %v14319_v14  ;;  %v6478_v35 = vpop.f32.mrb[206].mxu1  ;;  %v6991_v40 = vadd.f32 %v13507_v59, %v16404_v22  ;;  %v16407_v59 = vld [vmem:[#allocation50_spill] sm:$0xff]  ;;  %v16409_v22 = vld [vmem:[#allocation64_spill] sm:$0xff] }
 0x578   :  { %8256 = vrot.lane.b32.xlu0 %v14324_v57, %s11670_s3  ;;  %v8452_v4 = vrot.slane %v6478_v35, 2  ;;  %7857 = vrot.lane.b32.xlu1 %v13620_v9, %s11668_s2  ;;  %v6480_v8 = vpop.f32.mrb[207].mxu1  ;;  %v11660_v9 = vld [vmem:[#allocation4 + $0x208] sm:$0xff]  ;;  %v8162_v53 = vadd.f32 %v16409_v22, %v7952_v60 }
 0x579   :  { %v14336_v17 = vpop.permute.xlu0 %6884  ;;  %v7280_v23 = vadd.f32 %v13541_v6, %v6991_v40  ;;  %v16406_v8 = vld [vmem:[#allocation60_spill] sm:$0xff] }
 0x57a   :  { %16403 = vst [vmem:[#allocation183_spill] sm:$0xff] %v14336_v17  ;;  %v8580_v49 = vadd.f32 %v8452_v4, %v8356_v15  ;;  %6677 = vmatmul.mubr.bf16.gmra.mrb[56].mxu1 %v11659_v28  ;;  %v14340_v57 = vpop.permute.xlu1 %8238  ;;  %v16408_v15 = vld [vmem:[#allocation57_spill] sm:$0xff]  ;;  %v8357_v40 = vadd.f32 %v13746_v25, %v8162_v53  ;;  %v16417_v25 = vld [vmem:[#allocation12_spill] sm:$0xff] }
 0x57b   :  { %16405 = vst [vmem:[#allocation10_spill] sm:$0xff] %v14340_v57  ;;  %6684 = vmatprep.mubr.bf16.mxu1 %v11660_v9  ;;  %v7953_v28 = vadd.f32 %v16408_v15, %v16407_v59  ;;  %v7490_v51 = vadd.f32 %v16411_v63, %v7280_v23  ;;  %v16413_v57 = vld [vmem:[#allocation65_spill] sm:$0xff] }
 0x57c   :  { %7859 = vrot.lane.b32.xlu0 %v13632_v3, %s11668_s2  ;;  %v8635_v35 = vadd.f32 %v14334_v44, %v8580_v49  ;;  %7191 = vrot.lane.b32.xlu1 %v16406_v8, %s11669_s11  ;;  %v16414_v15 = vld [vmem:[#allocation61_spill] sm:$0xff] }
 0x57d   :  { %v6483_v17 = vpop.f32.mrb[208].mxu1  ;;  %v14353_v14 = vpop.permute.xlu0 %8240  ;;  %v8163_v49 = vadd.f32 %v13724_v39, %v7953_v28  ;;  %v16418_v53 = vld [vmem:[#allocation53_spill] sm:$0xff] }
 0x57e   :  { %16410 = vst [vmem:[#allocation60_spill] sm:$0xff] %v14353_v14  ;;  %v10334_v9 = vmul.f32 -1.442695, %v8635_v35  ;;  %v8453_v31 = vrot.slane %v6483_v17, 2  ;;  %v14356_v3 = vpop.permute.xlu1 %7841  ;;  %v6485_v6 = vpop.f32.mrb[209].mxu1  ;;  %v16415_v35 = vld [vmem:[#allocation11_spill] sm:$0xff] }
 0x57f   :  { %16412 = vst [vmem:[#allocation50_spill] sm:$0xff] %v14356_v3  ;;  %v6486_v8 = vpop.f32.mrb[210].mxu1  ;;  %v16416_v17 = vld [vmem:[#allocation52_spill] sm:$0xff]  ;;  %v8358_v63 = vadd.f32 %v13755_v32, %v8163_v49  ;;  %v6993_v6 = vadd.f32 %v16418_v53, %v16417_v25 }
 0x580   :  { %8065 = vrot.lane.b32.xlu0 %v16413_v57, %s11669_s11  ;;  %v8454_v60 = vsel %vm7052_vm2, %v8452_v4, %v8453_v31  ;;  %v8455_v59 = vrot.slane %v6486_v8, 2  ;;  %7397 = vrot.lane.b32.xlu1 %v16414_v15, %s11670_s3  ;;  %v6488_v23 = vpop.f32.mrb[211].mxu1  ;;  %v6992_v22 = vadd.f32 %v16416_v17, %v16415_v35  ;;  %11433 = vpow2.f32 %v10334_v9  ;;  %v16419_v57 = vld [vmem:[#allocation19_spill] sm:$0xff]  ;;  %v11661_v8 = vld [vmem:[#allocation4 + $0x200] sm:$0xff]  ;;  %v11662_v9 = vld [vmem:[#allocation4 + $0x218] sm:$0xff] }
 0x581   :  { %v8581_v39 = vadd.f32 %v8454_v60, %v8357_v40  ;;  %v14368_v28 = vpop.permute.xlu0 %7839  ;;  %v7666_v3 = vadd.f32 %v16419_v57, %v7490_v51  ;;  %v16420_v23 = vld [vmem:[#allocation55_spill] sm:$0xff]  ;;  %v16421_v49 = vld [vmem:[#allocation68_spill] sm:$0xff]  ;;  %v16423_v60 = vld [vmem:[#allocation62_spill] sm:$0xff] }
 0x582   :  { %v8456_v4 = vsel %vm7052_vm2, %v8453_v31, %v8455_v59  ;;  %6685 = vmatmul.mubr.bf16.gmra.mrb[60].mxu1 %v11661_v8  ;;  %v14374_v15 = vpop.permute.xlu1 %8047  ;;  %v7281_v14 = vadd.f32 %v16420_v23, %v6992_v22  ;;  %v16422_v31 = vld [vmem:[#allocation58_spill] sm:$0xff] }
 0x583   :  { %v8636_v35 = vadd.f32 %v14334_v44, %v8581_v39  ;;  %v8582_v32 = vadd.f32 %v8456_v4, %v8358_v63  ;;  %6691 = vmatprep.mubr.bf16.mxu1 %v11662_v9  ;;  %v7954_v40 = vadd.f32 %v16421_v49, %v7666_v3  ;;  %v7282_v51 = vadd.f32 %v16422_v31, %v6993_v6  ;;  %v16424_v4 = vld [vmem:[#allocation71_spill] sm:$0xff]  ;;  %v16428_v31 = vld [vmem:[#allocation13_spill] sm:$0xff] }
 0x584   :  { %7399 = vrot.lane.b32.xlu0 %v13648_v47, %s11670_s3  ;;  %8067 = vrot.lane.b32.xlu1 %v13655_v36, %s11669_s11  ;;  %v7491_v59 = vadd.f32 %v16423_v60, %v7281_v14  ;;  %v16425_v6 = vrot.slane %v13648_v47, 1  ;;  %v16427_v9 = vld [vmem:[#allocation23_spill] sm:$0xff] }
 0x585   :  { %v10335_v17 = vmul.f32 -1.442695, %v8636_v35  ;;  %v8637_v22 = vadd.f32 %v14334_v44, %v8582_v32  ;;  %v6491_v25 = vpop.f32.mrb[212].mxu1  ;;  %v14386_v39 = vpop.permute.xlu0 %7173  ;;  %v8164_v63 = vadd.f32 %v13790_v11, %v7954_v40  ;;  %v7492_v3 = vadd.f32 %v16424_v4, %v7282_v51  ;;  %v16429_v51 = vld [vmem:[#allocation67_spill] sm:$0xff] }
 0x586   :  { %v14389_v53 = vpop.permute.xlu1 %7381  ;;  %v6492_v57 = vpop.f32.mrb[213].mxu1  ;;  %v16426_v32 = vrot.slane %v13655_v36, 2  ;;  %v7667_v49 = vadd.f32 %v16427_v9, %v7491_v59  ;;  %v6994_v60 = vadd.f32 %v16429_v51, %v16428_v31  ;;  %v14411_v59 = vld [vmem:[#allocation4 + $0x220] sm:$0xff]  ;;  %v16437_v31 = vld [vmem:[#allocation96_spill] sm:$0xff] }
 0x587   :  { %11435 = vpow2.f32 %v10335_v17  ;;  %v10336_v8 = vmul.f32 -1.442695, %v8637_v22  ;;  %v6493_v23 = vpop.f32.mrb[214].mxu1  ;;  %v8359_v14 = vadd.f32 %v13869_v48, %v8164_v63  ;;  %v11663_v22 = vld [vmem:[#allocation4 + $0x210] sm:$0xff]  ;;  %v16431_v63 = vld [vmem:[#allocation20_spill] sm:$0xff] }
 0x588   :  { %6904 = vrot.lane.b32.xlu0 %v16425_v6, %s11668_s2  ;;  %v8457_v35 = vrot.slane %v6493_v23, 2  ;;  %7861 = vrot.lane.b32.xlu1 %v16426_v32, %s11668_s2  ;;  %v6495_v11 = vpop.f32.mrb[215].mxu1  ;;  %v7668_v57 = vadd.f32 %v16431_v63, %v7492_v3  ;;  %v7955_v4 = vadd.f32 %v13783_v61, %v7667_v49  ;;  %v16432_v23 = vrot.slane %v13648_v47, 2  ;;  %v16434_v32 = vld [vmem:[#allocation69_spill] sm:$0xff] }
 0x589   :  { %11437 = vpow2.f32 %v10336_v8  ;;  %v14400_v40 = vpop.permute.xlu0 %7379  ;;  %v16433_v8 = vld [vmem:[#allocation70_spill] sm:$0xff]  ;;  %v14419_v11 = vrot.slane %v13655_v36, 1 }
 0x58a   :  { %v8583_v17 = vadd.f32 %v8457_v35, %v8359_v14  ;;  %6692 = vmatmul.mubr.bf16.gmra.mrb[64].mxu1 %v11663_v22  ;;  %v14404_v25 = vpop.permute.xlu1 %6886  ;;  %v11434_v48 = vpop.eup %11433  ;;  %v7283_v6 = vadd.f32 %v16433_v8, %v6994_v60  ;;  %v7956_v61 = vadd.f32 %v13761_v2, %v7668_v57  ;;  %v8165_v3 = vadd.f32 %v13834_v52, %v7955_v4  ;;  %v16439_v2 = vld [vmem:[#allocation14_spill] sm:$0xff] }
 0x58b   :  { %16430 = vst [vmem:[#allocation57_spill] sm:$0xff] %v14404_v25  ;;  %6699 = vmatprep.mubr.bf16.mxu1 %v14411_v59  ;;  %16435 = vst [vmem:[#allocation64_spill] sm:$0xff] %v14419_v11  ;;  %v8827_v22 = vadd.f32 1.0, %v11434_v48  ;;  %v16440_v52 = vld [vmem:[#allocation6_spill] sm:$0xff]  ;;  %v16441_v48 = vld [vmem:[#allocation73_spill] sm:$0xff] }
 0x58c   :  { %7193 = vrot.lane.b32.xlu0 %v16432_v23, %s11669_s11  ;;  %v8638_v14 = vadd.f32 %v14334_v44, %v8583_v17  ;;  %7401 = vrot.lane.b32.xlu1 %v16434_v32, %s11670_s3  ;;  %v7493_v51 = vadd.f32 %v16437_v31, %v7283_v6  ;;  %v8166_v8 = vadd.f32 %v13888_v41, %v7956_v61  ;;  %v16442_v31 = vld [vmem:[#allocation15_spill] sm:$0xff]  ;;  %v16444_v61 = vld [vmem:[#allocation116_spill] sm:$0xff] }
 0x58d   :  { %v6498_v9 = vpop.f32.mrb[216].mxu1  ;;  %v14423_v49 = vpop.permute.xlu0 %8049  ;;  %v8360_v36 = vadd.f32 %v13944_v30, %v8165_v3  ;;  %v6995_v57 = vadd.f32 %v16440_v52, %v16439_v2  ;;  %v16446_v25 = vld [vmem:[#allocation28_spill] sm:$0xff] }
 0x58e   :  { %16436 = vst [vmem:[#allocation59_spill] sm:$0xff] %v14423_v49  ;;  %v10337_v63 = vmul.f32 -1.442695, %v8638_v14  ;;  %v8458_v60 = vrot.slane %v6498_v9, 2  ;;  %v14426_v23 = vpop.permute.xlu1 %7175  ;;  %v6500_v17 = vpop.f32.mrb[217].mxu1  ;;  %v8361_v30 = vadd.f32 %v16444_v61, %v8166_v8  ;;  %v7669_v49 = vadd.f32 %v16446_v25, %v7493_v51  ;;  %v16450_v25 = vld [vmem:[#allocation91_spill] sm:$0xff] }
 0x58f   :  { %16438 = vst [vmem:[#allocation65_spill] sm:$0xff] %v14426_v23  ;;  %v6501_v47 = vpop.f32.mrb[218].mxu1  ;;  %v16443_v17 = vld [vmem:[#allocation84_spill] sm:$0xff] }
 0x590   :  { %8260 = vrot.lane.b32.xlu0 %v14419_v11, %s11670_s3  ;;  %v8459_v4 = vsel %vm7052_vm2, %v8457_v35, %v8458_v60  ;;  %v8460_v6 = vrot.slane %v6501_v47, 2  ;;  %6906 = vrot.lane.b32.xlu1 %v16441_v48, %s11668_s2  ;;  %v6503_v14 = vpop.f32.mrb[219].mxu1  ;;  %v6996_v41 = vadd.f32 %v16443_v17, %v16442_v31  ;;  %11439 = vpow2.f32 %v10337_v63  ;;  %v16447_v48 = vld [vmem:[#allocation72_spill] sm:$0xff]  ;;  %v16449_v31 = vld [vmem:[#allocation79_spill] sm:$0xff] }
 0x591   :  { %v11436_v9 = vpop.eup %11435  ;;  %v8584_v3 = vadd.f32 %v8459_v4, %v8360_v36  ;;  %11441 = vrcp.f32 %v8827_v22  ;;  %v14448_v14 = vrot.slane %v16447_v48, 1  ;;  %v7284_v8 = vadd.f32 %v16449_v31, %v6995_v57  ;;  %v16451_v22 = vld [vmem:[#allocation104_spill] sm:$0xff]  ;;  %v16455_v31 = vld [vmem:[#allocation127_spill] sm:$0xff] }
 0x592   :  { %v14440_v23 = vpop.permute.xlu0 %7843  ;;  %v8828_v2 = vadd.f32 1.0, %v11436_v9  ;;  %v8461_v47 = vsel %vm7052_vm2, %v8458_v60, %v8460_v6  ;;  %v14444_v35 = vpop.permute.xlu1 %8242  ;;  %6700 = vmatmul.mubr.bf16.gmra.mrb[68].mxu1 %v14411_v59  ;;  %v7285_v51 = vadd.f32 %v16450_v25, %v6996_v41  ;;  %v7957_v60 = vadd.f32 %v16451_v22, %v7669_v49  ;;  %v16452_v6 = vld [vmem:[#allocation74_spill] sm:$0xff]  ;;  %v16453_v9 = vld [vmem:[#allocation92_spill] sm:$0xff] }
 0x593   :  { %16445 = vst [vmem:[#allocation11_spill] sm:$0xff] %v14440_v23  ;;  %v11438_v52 = vpop.eup %11437  ;;  %16448 = vst [vmem:[#allocation52_spill] sm:$0xff] %v14448_v14  ;;  %v8639_v63 = vadd.f32 %v14334_v44, %v8584_v3  ;;  %v8585_v36 = vadd.f32 %v8461_v47, %v8361_v30  ;;  %6706 = vmatprep.mubr.bf16.mxu1 %v14411_v59  ;;  %v7494_v17 = vadd.f32 %v16453_v9, %v7284_v8  ;;  %v16454_v47 = vld [vmem:[#allocation108_spill] sm:$0xff] }
 0x594   :  { %8069 = vrot.lane.b32.xlu0 %v16447_v48, %s11669_s11  ;;  %11443 = vrcp.f32 %v8828_v2  ;;  %v8829_v4 = vadd.f32 1.0, %v11438_v52  ;;  %7195 = vrot.lane.b32.xlu1 %v16452_v6, %s11669_s11  ;;  %v7495_v48 = vadd.f32 %v16454_v47, %v7285_v51  ;;  %v8167_v23 = vadd.f32 %v16455_v31, %v7957_v60  ;;  %v16458_v22 = vld [vmem:[#allocation16_spill] sm:$0xff]  ;;  %v16459_v60 = vld [vmem:[#allocation97_spill] sm:$0xff] }
 0x595   :  { %v10338_v57 = vmul.f32 -1.442695, %v8639_v63  ;;  %v8640_v61 = vadd.f32 %v14334_v44, %v8585_v36  ;;  %v6506_v30 = vpop.f32.mrb[220].mxu1  ;;  %v14470_v8 = vsel %vm1275_vm1, %v14419_v11, %v14448_v14  ;;  %v16457_v63 = vrot.slane %v16434_v32, 1  ;;  %v16460_v6 = vld [vmem:[#allocation33_spill] sm:$0xff]  ;;  %v16472_v11 = vld [vmem:[#allocation75_spill] sm:$0xff] }
 0x596   :  { %v14461_v3 = vpop.permute.xlu0 %7383  ;;  %11445 = vrcp.f32 %v8829_v4  ;;  %v14465_v41 = vpop.permute.xlu1 %8051  ;;  %16456 = vst [vmem:[#allocation12_spill] sm:$0xff] %v14470_v8  ;;  %v8362_v36 = vadd.f32 %v14062_v34, %v8167_v23  ;;  %v6997_v4 = vadd.f32 %v16459_v60, %v16458_v22  ;;  %v7670_v9 = vadd.f32 %v16460_v6, %v7494_v17  ;;  %v16463_v23 = vld [vmem:[#allocation100_spill] sm:$0xff]  ;;  %v16465_v17 = vld [vmem:[#allocation122_spill] sm:$0xff] }
 0x597   :  { %v6507_v49 = vpop.f32.mrb[221].mxu1  ;;  %11447 = vpow2.f32 %v10338_v57  ;;  %v10339_v2 = vmul.f32 -1.442695, %v8640_v61  ;;  %v16461_v61 = vld [vmem:[#allocation31_spill] sm:$0xff]  ;;  %v16468_v6 = vld [vmem:[#allocation132_spill] sm:$0xff] }
 0x598   :  { %v6508_v52 = vpop.f32.mrb[222].mxu1  ;;  %6908 = vrot.lane.b32.xlu0 %v16457_v63, %s11668_s2  ;;  %8262 = vrot.lane.b32.xlu1 %v14470_v8, %s11670_s3  ;;  %v7671_v30 = vadd.f32 %v16461_v61, %v7495_v48  ;;  %v7286_v49 = vadd.f32 %v16463_v23, %v6997_v4  ;;  %v16466_v48 = vld [vmem:[#allocation7_spill] sm:$0xff] }
 0x599   :  { %v8462_v25 = vrot.slane %v6508_v52, 2  ;;  %v6510_v51 = vpop.f32.mrb[223].mxu1  ;;  %11449 = vpow2.f32 %v10339_v2  ;;  %v16464_v52 = vld [vmem:[#allocation119_spill] sm:$0xff] }
 0x59a   :  { %v14481_v57 = vpop.permute.xlu0 %6888  ;;  %v14484_v31 = vpop.permute.xlu1 %6890  ;;  %6707 = vmatmul.mubr.bf16.gmra.mrb[72].mxu1 %v14411_v59  ;;  %v7958_v63 = vadd.f32 %v16464_v52, %v7670_v9  ;;  %v7959_v2 = vadd.f32 %v16465_v17, %v7671_v30  ;;  %v16470_v17 = vld [vmem:[#allocation17_spill] sm:$0xff] }
 0x59b   :  { %v8586_v47 = vadd.f32 %v8462_v25, %v8362_v36  ;;  %16462 = vst [vmem:[#allocation53_spill] sm:$0xff] %v14484_v31  ;;  %v11440_v34 = vpop.eup %11439  ;;  %v16467_v36 = vld [vmem:[#allocation128_spill] sm:$0xff]  ;;  %v16473_v31 = vld [vmem:[#allocation18_spill] sm:$0xff] }
 0x59c   :  { %8264 = vrot.lane.b32.xlu0 %v14448_v14, %s11670_s3  ;;  %v11442_v51 = vpop.eup %11441  ;;  %7865 = vrot.lane.b32.xlu1 %v16466_v48, %s11668_s2  ;;  %v7496_v60 = vadd.f32 %v16467_v36, %v7286_v49  ;;  %v8168_v59 = vadd.f32 %v16468_v6, %v7958_v63  ;;  %v8169_v9 = vadd.f32 %v14072_v5, %v7959_v2  ;;  %v8830_v23 = vadd.f32 1.0, %v11440_v34  ;;  %v16471_v14 = vld [vmem:[#allocation113_spill] sm:$0xff]  ;;  %v16474_v5 = vld [vmem:[#allocation114_spill] sm:$0xff] }
 0x59d   :  { %v8641_v22 = vadd.f32 %v14334_v44, %v8586_v47  ;;  %v6513_v61 = vpop.f32.mrb[224].mxu1  ;;  %v6998_v48 = vadd.f32 %v16471_v14, %v16470_v17  ;;  %v9020_v36 = vrot.slane %v11442_v51, 7  ;;  %v6999_v34 = vadd.f32 %v16474_v5, %v16473_v31  ;;  %v16476_v17 = vld [vmem:[#allocation44_spill] sm:$0xff]  ;;  %v16477_v5 = vld [vmem:[#allocation115_spill] sm:$0xff] }
 0x59e   :  { %v14497_v32 = vpop.permute.xlu0 %7177  ;;  %v11444_v4 = vpop.eup %11443  ;;  %v8463_v8 = vrot.slane %v6513_v61, 2  ;;  %v8363_v49 = vadd.f32 %v14112_v43, %v8168_v59  ;;  %v8364_v2 = vadd.f32 %v14126_v38, %v8169_v9  ;;  %v7672_v31 = vadd.f32 %v16476_v17, %v7496_v60 }
 0x59f   :  { %16469 = vst [vmem:[#allocation19_spill] sm:$0xff] %v14497_v32  ;;  %v10340_v52 = vmul.f32 -1.442695, %v8641_v22  ;;  %v14500_v30 = vpop.permute.xlu1 %8246  ;;  %v6515_v47 = vpop.f32.mrb[225].mxu1  ;;  %v9021_v63 = vrot.slane %v11444_v4, 7 }
 0x5a0   :  { %v6516_v6 = vpop.f32.mrb[226].mxu1  ;;  %7863 = vrot.lane.b32.xlu0 %v16472_v11, %s11668_s2  ;;  %v11446_v32 = vpop.eup %11445  ;;  %v8464_v22 = vsel %vm7052_vm2, %v8462_v25, %v8463_v8  ;;  %v16475_v47 = vld [vmem:[#allocation80_spill] sm:$0xff] }
 0x5a1   :  { %v8465_v61 = vrot.slane %v6516_v6, 2  ;;  %8071 = vrot.lane.b32.xlu1 %v16475_v47, %s11669_s11  ;;  %v6518_v14 = vpop.f32.mrb[227].mxu1  ;;  %v11448_v43 = vpop.eup %11447  ;;  %v9023_v51 = vrot.slane %v11446_v32, 7  ;;  %11451 = vpow2.f32 %v10340_v52  ;;  %v8587_v59 = vadd.f32 %v8464_v22, %v8363_v49  ;;  %v16478_v49 = vld [vmem:[#allocation77_spill] sm:$0xff]  ;;  %v16479_v22 = vld [vmem:[#allocation123_spill] sm:$0xff] }
 0x5a2   :  { %v14513_v4 = vpop.permute.xlu0 %8244  ;;  %v14516_v11 = vsel %vm9019_vm3, %v9020_v36, %v9021_v63  ;;  %11453 = vrcp.f32 %v8830_v23  ;;  %v8831_v38 = vadd.f32 1.0, %v11448_v43  ;;  %v7287_v47 = vadd.f32 %v16477_v5, %v6998_v48  ;;  %v16481_v14 = vld [vmem:[#allocation131_spill] sm:$0xff] }
 0x5a3   :  { %v8466_v25 = vsel %vm7052_vm2, %v8463_v8, %v8465_v61  ;;  %v14520_v9 = vpop.permute.xlu1 %7845  ;;  %v11450_v6 = vpop.eup %11449  ;;  %v8642_v32 = vadd.f32 %v14334_v44, %v8587_v59  ;;  %v14527_v36 = vsel %vm9019_vm3, %v9021_v63, %v9023_v51  ;;  %v7288_v60 = vadd.f32 %v16479_v22, %v6999_v34  ;;  %v16480_v61 = vld [vmem:[#allocation82_spill] sm:$0xff] }
 0x5a4   :  { %v8588_v52 = vadd.f32 %v8466_v25, %v8364_v2  ;;  %7197 = vrot.lane.b32.xlu0 %v16478_v49, %s11669_s11  ;;  %v7960_v23 = vadd.f32 %v14030_v13, %v7672_v31  ;;  %11455 = vrcp.f32 %v8831_v38  ;;  %v8832_v8 = vadd.f32 1.0, %v11450_v6  ;;  %v16482_v25 = vld [vmem:[#allocation78_spill] sm:$0xff]  ;;  %v16486_v49 = vld [vmem:[#allocation49_spill] sm:$0xff] }
 0x5a5   :  { %7405 = vrot.lane.b32.xlu1 %v16480_v61, %s11670_s3  ;;  %v7497_v48 = vadd.f32 %v16481_v14, %v7287_v47  ;;  %v10341_v43 = vmul.f32 -1.442695, %v8642_v32  ;;  %v6521_v59 = vpop.f32.mrb[228].mxu1  ;;  %v7498_v63 = vadd.f32 %v14046_v18, %v7288_v60  ;;  %v16483_v47 = vrot.slane %v16480_v61, 1  ;;  %v16484_v32 = vld [vmem:[#allocation21_spill] sm:$0xff] }
 0x5a6   :  { %v8643_v2 = vadd.f32 %v14334_v44, %v8588_v52  ;;  %v14535_v17 = vpop.permute.xlu0 %7847  ;;  %v8170_v51 = vadd.f32 %v14142_v24, %v7960_v23  ;;  %11457 = vrcp.f32 %v8832_v8  ;;  %v6522_v13 = vpop.f32.mrb[229].mxu1  ;;  %v16485_v24 = vld [vmem:[#allocation136_spill] sm:$0xff]  ;;  %v16487_v23 = vld [vmem:[#allocation47_spill] sm:$0xff] }
 0x5a7   :  { %v14539_v34 = vpop.permute.xlu1 %7179  ;;  %11459 = vpow2.f32 %v10341_v43  ;;  %v6523_v38 = vpop.f32.mrb[230].mxu1  ;;  %v7000_v52 = vadd.f32 %v16485_v24, %v16484_v32  ;;  %v7673_v22 = vadd.f32 %v16486_v49, %v7497_v48  ;;  %v7674_v8 = vadd.f32 %v16487_v23, %v7498_v63  ;;  %v16489_v13 = vld [vmem:[#allocation83_spill] sm:$0xff] }
 0x5a8   :  { %v10342_v31 = vmul.f32 -1.442695, %v8643_v2  ;;  %7403 = vrot.lane.b32.xlu0 %v16482_v25, %s11670_s3  ;;  %v8365_v6 = vadd.f32 %v14198_v33, %v8170_v51  ;;  %v8467_v5 = vrot.slane %v6523_v38, 2  ;;  %v6525_v18 = vpop.f32.mrb[231].mxu1  ;;  %v16488_v2 = vld [vmem:[#allocation140_spill] sm:$0xff]  ;;  %v14565_v63 = vrot.slane %v16489_v13, 1 }
 0x5a9   :  { %6910 = vrot.lane.b32.xlu1 %v16483_v47, %s11668_s2  ;;  %v7289_v59 = vadd.f32 %v16488_v2, %v7000_v52  ;;  %v7961_v51 = vadd.f32 %v14140_v12, %v7673_v22  ;;  %v7962_v47 = vadd.f32 %v14128_v62, %v7674_v8  ;;  %v16493_v2 = vld [vmem:[#allocation145_spill] sm:$0xff] }
 0x5aa   :  { %11461 = vpow2.f32 %v10342_v31  ;;  %v14550_v60 = vpop.permute.xlu0 %8053  ;;  %v8589_v14 = vadd.f32 %v8467_v5, %v8365_v6  ;;  %v16490_v31 = vrot.slane %v16480_v61, 2  ;;  %16491 = vst [vmem:[#allocation55_spill] sm:$0xff] %v14565_v63 }
 0x5ab   :  { %v14553_v43 = vpop.permute.xlu1 %7385  ;;  %v11452_v33 = vpop.eup %11451  ;;  %v7499_v6 = vadd.f32 %v14164_v37, %v7289_v59  ;;  %v8171_v18 = vadd.f32 %v14184_v56, %v7961_v51  ;;  %v8172_v52 = vadd.f32 %v14210_v16, %v7962_v47  ;;  %v16494_v51 = vrot.slane %v16489_v13, 2  ;;  %v16495_v16 = vld [vmem:[#allocation24_spill] sm:$0xff] }
 0x5ac   :  { %8073 = vrot.lane.b32.xlu0 %v16489_v13, %s11669_s11  ;;  %v11454_v38 = vpop.eup %11453  ;;  %v8644_v48 = vadd.f32 %v14334_v44, %v8589_v14  ;;  %v8833_v62 = vadd.f32 1.0, %v11452_v33  ;;  %v16492_v14 = vld [vmem:[#allocation22_spill] sm:$0xff]  ;;  %v7002_v33 = vadd.f32 %v14105_v19, %v16495_v16  ;;  %v16499_v16 = vld [vmem:[#allocation9_spill] sm:$0xff] }
 0x5ad   :  { %7199 = vrot.lane.b32.xlu1 %v16490_v31, %s11669_s11  ;;  %v6528_v12 = vpop.f32.mrb[232].mxu1  ;;  %v7001_v31 = vadd.f32 %v16493_v2, %v16492_v14  ;;  %v8366_v25 = vadd.f32 %v14248_v10, %v8171_v18  ;;  %v9025_v37 = vrot.slane %v11454_v38, 7  ;;  %v8367_v47 = vadd.f32 %v14242_v42, %v8172_v52  ;;  %v16496_v14 = vld [vmem:[#allocation63_spill] sm:$0xff] }
 0x5ae   :  { %v14569_v32 = vpop.permute.xlu0 %7387  ;;  %v11456_v24 = vpop.eup %11455  ;;  %v10343_v49 = vmul.f32 -1.442695, %v8644_v48  ;;  %v8468_v22 = vrot.slane %v6528_v12, 2  ;;  %v7675_v19 = vadd.f32 %v16496_v14, %v7499_v6  ;;  %v7291_v6 = vadd.f32 %v14150_v55, %v7002_v33  ;;  %v16502_v14 = vld [vmem:[#allocation25_spill] sm:$0xff] }
 0x5af   :  { %v14572_v23 = vpop.permute.xlu1 %8055  ;;  %v6530_v8 = vpop.f32.mrb[233].mxu1  ;;  %v9026_v59 = vrot.slane %v11456_v24, 7 }
 0x5b0   :  { %v6531_v56 = vpop.f32.mrb[234].mxu1  ;;  %7867 = vrot.lane.b32.xlu0 %v16494_v51, %s11668_s2  ;;  %v11458_v61 = vpop.eup %11457  ;;  %v8469_v48 = vsel %vm7052_vm2, %v8467_v5, %v8468_v22  ;;  %11463 = vpow2.f32 %v10343_v49 }
 0x5b1   :  { %v8470_v12 = vrot.slane %v6531_v56, 2  ;;  %8266 = vrot.lane.b32.xlu1 %v14565_v63, %s11670_s3  ;;  %v6533_v10 = vpop.f32.mrb[235].mxu1  ;;  %v11460_v38 = vpop.eup %11459  ;;  %v9028_v18 = vrot.slane %v11458_v61, 7  ;;  %v8590_v24 = vadd.f32 %v8469_v48, %v8366_v25  ;;  %v14589_v13 = vsel %vm9019_vm3, %v9025_v37, %v9026_v59  ;;  %v16497_v56 = vld [vmem:[#allocation148_spill] sm:$0xff] }
 0x5b2   :  { %v14586_v8 = vpop.permute.xlu0 %6892  ;;  %11465 = vrcp.f32 %v8833_v62  ;;  %v8834_v42 = vadd.f32 1.0, %v11460_v38  ;;  %v7290_v51 = vadd.f32 %v16497_v56, %v7001_v31  ;;  %v16498_v25 = vld [vmem:[#allocation8_spill] sm:$0xff]  ;;  %v7963_v62 = vadd.f32 %v14196_v7, %v7675_v19  ;;  %v16503_v19 = vld [vmem:[#allocation162_spill] sm:$0xff]  ;;  %v16505_v56 = vld [vmem:[#allocation81_spill] sm:$0xff] }
 0x5b3   :  { %v8471_v5 = vsel %vm7052_vm2, %v8468_v22, %v8470_v12  ;;  %v14593_v52 = vpop.permute.xlu1 %7849  ;;  %v8645_v61 = vadd.f32 %v14334_v44, %v8590_v24  ;;  %v14600_v37 = vsel %vm9019_vm3, %v9026_v59, %v9028_v18  ;;  %v7501_v59 = vadd.f32 %v14207_v46, %v7291_v6  ;;  %v16500_v24 = vld [vmem:[#allocation85_spill] sm:$0xff] }
 0x5b4   :  { %v11462_v2 = vpop.eup %11461  ;;  %v8591_v49 = vadd.f32 %v8471_v5, %v8367_v47  ;;  %7407 = vrot.lane.b32.xlu0 %v16498_v25, %s11670_s3  ;;  %11467 = vrcp.f32 %v8834_v42  ;;  %v7500_v31 = vadd.f32 %v14152_v29, %v7290_v51  ;;  %v8173_v38 = vadd.f32 %v14265_v58, %v7963_v62  ;;  %v16507_v62 = vld [vmem:[#allocation76_spill] sm:$0xff] }
 0x5b5   :  { %v8835_v22 = vadd.f32 1.0, %v11462_v2  ;;  %8075 = vrot.lane.b32.xlu1 %v16499_v16, %s11669_s11  ;;  %v10344_v48 = vmul.f32 -1.442695, %v8645_v61  ;;  %v6536_v12 = vpop.f32.mrb[236].mxu1  ;;  %v14617_v29 = vrot.slane %v16499_v16, 1  ;;  %v7003_v42 = vadd.f32 %v16503_v19, %v16502_v14 }
 0x5b6   :  { %v8646_v47 = vadd.f32 %v14334_v44, %v8591_v49  ;;  %v14608_v10 = vpop.permute.xlu0 %7181  ;;  %v6537_v7 = vpop.f32.mrb[237].mxu1  ;;  %v8368_v46 = vadd.f32 %v14303_v54, %v8173_v38  ;;  %v16504_v58 = vrot.slane %v16498_v25, 1  ;;  %v7676_v51 = vadd.f32 %v16505_v56, %v7500_v31  ;;  %v16506_v49 = vld [vmem:[#allocation165_spill] sm:$0xff]  ;;  %v16508_v54 = vld [vmem:[#allocation26_spill] sm:$0xff] }
 0x5b7   :  { %11469 = vrcp.f32 %v8835_v22  ;;  %v14612_v55 = vpop.permute.xlu1 %7389  ;;  %v6538_v18 = vpop.f32.mrb[238].mxu1  ;;  %16501 = vst [vmem:[#allocation68_spill] sm:$0xff] %v14617_v29  ;;  %v7292_v6 = vadd.f32 %v16506_v49, %v7003_v42  ;;  %v7677_v22 = vadd.f32 %v16507_v62, %v7501_v59  ;;  %v7004_v12 = vadd.f32 %v14225_v26, %v16508_v54  ;;  %v16509_v7 = vld [vmem:[#allocation86_spill] sm:$0xff]  ;;  %v16511_v26 = vld [vmem:[#allocation27_spill] sm:$0xff]  ;;  %v16544_v25 = vld [vmem:[#allocation129_spill] sm:$0xff] }
 0x5b8   :  { %11471 = vpow2.f32 %v10344_v48  ;;  %v10345_v33 = vmul.f32 -1.442695, %v8646_v47  ;;  %6912 = vrot.lane.b32.xlu0 %v16500_v24, %s11668_s2  ;;  %v8472_v5 = vrot.slane %v6538_v18, 2  ;;  %v6540_v2 = vpop.f32.mrb[239].mxu1  ;;  %v7964_v38 = vadd.f32 %v14250_v20, %v7676_v51 }
 0x5b9   :  { %6914 = vrot.lane.b32.xlu1 %v16504_v58, %s11668_s2  ;;  %v7502_v18 = vadd.f32 %v14267_v50, %v7292_v6  ;;  %v14645_v59 = vsel %vm1275_vm1, %v14565_v63, %v14617_v29  ;;  %v7005_v20 = vadd.f32 %v14234_v27, %v16511_v26  ;;  %v7293_v14 = vadd.f32 %v14240_v0, %v7004_v12  ;;  %v16513_v27 = vld [vmem:[#allocation172_spill] sm:$0xff]  ;;  %v16514_v0 = vld [vmem:[#allocation10_spill] sm:$0xff] }
 0x5ba   :  { %11473 = vpow2.f32 %v10345_v33  ;;  %v14626_v61 = vpop.permute.xlu0 %8248  ;;  %v8592_v16 = vadd.f32 %v8472_v5, %v8368_v46  ;;  %v11464_v47 = vpop.eup %11463  ;;  %v7965_v33 = vadd.f32 %v14256_v21, %v7677_v22  ;;  %16510 = vst [vmem:[#allocation58_spill] sm:$0xff] %v14645_v59  ;;  %v8174_v19 = vadd.f32 %v14279_v1, %v7964_v38 }
 0x5bb   :  { %v14630_v48 = vpop.permute.xlu1 %6894  ;;  %v11671_v50 = vmov 1983009808   ;;  %v8836_v56 = vadd.f32 1.0, %v11464_v47  ;;  %v7294_v22 = vadd.f32 %v16513_v27, %v7005_v20 }
 0x5bc   :  { %7201 = vrot.lane.b32.xlu0 %v16509_v7, %s11669_s11  ;;  %v11466_v31 = vpop.eup %11465  ;;  %v8647_v24 = vadd.f32 %v14334_v44, %v8592_v16  ;;  %v14653_v46 = vunpack.c.l.s4 %v11671_v50  ;;  %v8175_v2 = vadd.f32 %v14316_v45, %v7965_v33  ;;  %v8369_v16 = vadd.f32 %v16514_v0, %v8174_v19  ;;  %v16515_v7 = vld [vmem:[#allocation98_spill] sm:$0xff]  ;;  %v16516_v45 = vld [vmem:[#allocation60_spill] sm:$0xff] }
 0x5bd   :  { %8270 = vrot.lane.b32.xlu1 %v14617_v29, %s11670_s3  ;;  %v6543_v21 = vpop.f32.mrb[240].mxu1  ;;  %v9030_v1 = vrot.slane %v11466_v31, 7  ;;  %v7678_v26 = vadd.f32 %v16515_v7, %v7502_v18 }
 0x5be   :  { %v14651_v42 = vpop.permute.xlu0 %8057  ;;  %v11468_v58 = vpop.eup %11467  ;;  %v10346_v51 = vmul.f32 -1.442695, %v8647_v24  ;;  %v8473_v49 = vrot.slane %v6543_v21, 2  ;;  %v8370_v47 = vadd.f32 %v16516_v45, %v8175_v2  ;;  %v16517_v21 = vld [vmem:[#allocation87_spill] sm:$0xff] }
 0x5bf   :  { %v14656_v6 = vpop.permute.xlu1 %7183  ;;  %v6545_v62 = vpop.f32.mrb[241].mxu1  ;;  %v9031_v54 = vrot.slane %v11468_v58, 7 }
 0x5c0   :  { %16512 = vst [vmem:[#allocation62_spill] sm:$0xff] %v14656_v6  ;;  %v6546_v12 = vpop.f32.mrb[242].mxu1  ;;  %8268 = vrot.lane.b32.xlu0 %v14645_v59, %s11670_s3  ;;  %v8474_v33 = vsel %vm7052_vm2, %v8472_v5, %v8473_v49  ;;  %11475 = vpow2.f32 %v10346_v51  ;;  %v16535_v5 = vld [vmem:[#allocation32_spill] sm:$0xff] }
 0x5c1   :  { %v11470_v38 = vpop.eup %11469  ;;  %v8475_v24 = vrot.slane %v6546_v12, 2  ;;  %7869 = vrot.lane.b32.xlu1 %v16517_v21, %s11668_s2  ;;  %v6548_v20 = vpop.f32.mrb[243].mxu1  ;;  %v8593_v31 = vadd.f32 %v8474_v33, %v8369_v16  ;;  %v14670_v62 = vsel %vm9019_vm3, %v9030_v1, %v9031_v54  ;;  %11477 = vrcp.f32 %v8836_v56  ;;  %v16518_v12 = vld [vmem:[#allocation173_spill] sm:$0xff]  ;;  %v16520_v1 = vld [vmem:[#allocation176_spill] sm:$0xff]  ;;  %v16523_v21 = vld [vmem:[#allocation175_spill] sm:$0xff] }
 0x5c2   :  { %v11472_v50 = vpop.eup %11471  ;;  %v9033_v19 = vrot.slane %v11470_v38, 7  ;;  %v14667_v58 = vpop.permute.xlu0 %6896  ;;  %v7503_v7 = vadd.f32 %v16518_v12, %v7293_v14  ;;  %v16519_v38 = vld [vmem:[#allocation89_spill] sm:$0xff]  ;;  %v7966_v45 = vadd.f32 %v16520_v1, %v7678_v26  ;;  %v16521_v33 = vld [vmem:[#allocation88_spill] sm:$0xff]  ;;  %v16532_v26 = vld [vmem:[#allocation95_spill] sm:$0xff] }
 0x5c3   :  { %v8837_v18 = vadd.f32 1.0, %v11472_v50  ;;  %v8476_v2 = vsel %vm7052_vm2, %v8473_v49, %v8475_v24  ;;  %v14673_v27 = vpop.permute.xlu1 %8250  ;;  %v8648_v51 = vadd.f32 %v14334_v44, %v8593_v31  ;;  %v16522_v14 = vld [vmem:[#allocation29_spill] sm:$0xff] }
 0x5c4   :  { %v11474_v0 = vpop.eup %11473  ;;  %v8594_v16 = vadd.f32 %v8476_v2, %v8370_v47  ;;  %7871 = vrot.lane.b32.xlu0 %v16519_v38, %s11668_s2  ;;  %v14687_v24 = vsel %vm9019_vm3, %v9031_v54, %v9033_v19  ;;  %v7006_v20 = vadd.f32 %v16523_v21, %v16522_v14  ;;  %v8176_v12 = vadd.f32 %v14374_v15, %v7966_v45  ;;  %v16526_v14 = vld [vmem:[#allocation93_spill] sm:$0xff]  ;;  %v16527_v15 = vld [vmem:[#allocation90_spill] sm:$0xff]  ;;  %v16530_v19 = vld [vmem:[#allocation111_spill] sm:$0xff] }
 0x5c5   :  { %11479 = vrcp.f32 %v8837_v18  ;;  %v8838_v49 = vadd.f32 1.0, %v11474_v0  ;;  %7203 = vrot.lane.b32.xlu1 %v16521_v33, %s11669_s11  ;;  %v10347_v47 = vmul.f32 -1.442695, %v8648_v51  ;;  %v6551_v31 = vpop.f32.mrb[244].mxu1  ;;  %v16524_v18 = vld [vmem:[#allocation178_spill] sm:$0xff]  ;;  %v16525_v51 = vld [vmem:[#allocation177_spill] sm:$0xff] }
 0x5c6   :  { %v8649_v50 = vadd.f32 %v14334_v44, %v8594_v16  ;;  %v14692_v2 = vpop.permute.xlu0 %8252  ;;  %v7504_v0 = vadd.f32 %v16524_v18, %v7294_v22  ;;  %v6552_v54 = vpop.f32.mrb[245].mxu1  ;;  %v7295_v1 = vadd.f32 %v16525_v51, %v7006_v20  ;;  %v8371_v21 = vadd.f32 %v14444_v35, %v8176_v12  ;;  %v16528_v31 = vld [vmem:[#allocation30_spill] sm:$0xff]  ;;  %v16529_v18 = vld [vmem:[#allocation180_spill] sm:$0xff] }
 0x5c7   :  { %11481 = vrcp.f32 %v8838_v49  ;;  %v14698_v38 = vpop.permute.xlu1 %7853  ;;  %v6553_v33 = vpop.f32.mrb[246].mxu1  ;;  %v9136_v49 = vunpack.c.0.s8 %v14653_v46  ;;  %v7007_v54 = vadd.f32 %v16529_v18, %v16528_v31  ;;  %v7679_v20 = vadd.f32 %v16530_v19, %v7503_v7  ;;  %v16531_v51 = vld [vmem:[#allocation34_spill] sm:$0xff]  ;;  %v16534_v46 = vld [vmem:[#allocation181_spill] sm:$0xff]  ;;  %v16536_v31 = vld [vmem:[#allocation183_spill] sm:$0xff] }
 0x5c8   :  { %11483 = vpow2.f32 %v10347_v47  ;;  %v10348_v16 = vmul.f32 -1.442695, %v8649_v50  ;;  %8077 = vrot.lane.b32.xlu0 %v16526_v14, %s11669_s11  ;;  %v8477_v22 = vrot.slane %v6553_v33, 2  ;;  %v6555_v45 = vpop.f32.mrb[247].mxu1  ;;  %v7505_v47 = vadd.f32 %v14400_v40, %v7295_v1  ;;  %v16537_v40 = vld [vmem:[#allocation94_spill] sm:$0xff]  ;;  %v16538_v1 = vld [vmem:[#allocation101_spill] sm:$0xff] }
 0x5c9   :  { %7409 = vrot.lane.b32.xlu1 %v16527_v15, %s11670_s3  ;;  %v7680_v14 = vadd.f32 %v16531_v51, %v7504_v0  ;;  %v14719_v45 = vrot.slane %v16532_v26, 1  ;;  %v7296_v56 = vadd.f32 %v16534_v46, %v7007_v54  ;;  %v7008_v18 = vadd.f32 %v16536_v31, %v16535_v5  ;;  %v16541_v54 = vld [vmem:[#allocation5_spill] sm:$0xff] }
 0x5ca   :  { %11485 = vpow2.f32 %v10348_v16  ;;  %v14713_v50 = vpop.permute.xlu0 %7851  ;;  %v8595_v35 = vadd.f32 %v8477_v22, %v8371_v21  ;;  %v11476_v33 = vpop.eup %11475  ;;  %v7967_v7 = vadd.f32 %v14368_v28, %v7679_v20  ;;  %v14728_v0 = vrot.slane %v16538_v1, 1  ;;  %v16540_v16 = vld [vmem:[#allocation50_spill] sm:$0xff]  ;;  %v16543_v20 = vld [vmem:[#allocation59_spill] sm:$0xff] }
 0x5cb   :  { %v14716_v12 = vpop.permute.xlu1 %8059  ;;  %16533 = vst [vmem:[#allocation71_spill] sm:$0xff] %v14719_v45  ;;  %v11478_v19 = vpop.eup %11477  ;;  %v7968_v21 = vadd.f32 %v16540_v16, %v7680_v14  ;;  %v14735_v46 = vsub.s32 %v9136_v49, %v16541_v54  ;;  %v14738_v5 = vadd.f32 %v14389_v53, %v7296_v56  ;;  %v7297_v28 = vadd.f32 %v14386_v39, %v7008_v18  ;;  %v16545_v53 = vld [vmem:[#allocation11_spill] sm:$0xff] }
 0x5cc   :  { %7411 = vrot.lane.b32.xlu0 %v16537_v40, %s11670_s3  ;;  %16539 = vst [vmem:[#allocation23_spill] sm:$0xff] %v14728_v0  ;;  %v8650_v51 = vadd.f32 %v14334_v44, %v8595_v35  ;;  %v8177_v31 = vadd.f32 %v16543_v20, %v7967_v7  ;;  %v7681_v15 = vadd.f32 %v16544_v25, %v7505_v47  ;;  %v8839_v16 = vadd.f32 1.0, %v11476_v33 }
 0x5cd   :  { %8079 = vrot.lane.b32.xlu1 %v16532_v26, %s11669_s11  ;;  %16542 = vst [vmem:[#allocation13_spill] sm:$0xff] %v14735_v46  ;;  %v6558_v29 = vpop.f32.mrb[248].mxu1  ;;  %v8178_v35 = vadd.f32 %v14465_v41, %v7968_v21  ;;  %v9035_v18 = vrot.slane %v11478_v19, 7  ;;  %v16546_v25 = vrot.slane %v16537_v40, 1  ;;  %v7507_v41 = vadd.f32 %v14461_v3, %v7297_v28 }
 0x5ce   :  { %v14743_v59 = vpop.permute.xlu0 %7185  ;;  %v10349_v63 = vmul.f32 -1.442695, %v8650_v51  ;;  %v8478_v6 = vrot.slane %v6558_v29, 2  ;;  %v6560_v54 = vpop.f32.mrb[249].mxu1  ;;  %v7969_v56 = vadd.f32 %v16545_v53, %v7681_v15  ;;  %v8372_v39 = vadd.f32 %v14513_v4, %v8177_v31 }
 0x5cf   :  { %v11480_v14 = vpop.eup %11479  ;;  %v14746_v49 = vpop.permute.xlu1 %7393  ;;  %v8373_v33 = vadd.f32 %v14500_v30, %v8178_v35  ;;  %v16547_v15 = vrot.slane %v16532_v26, 2 }
 0x5d0   :  { %v9036_v7 = vrot.slane %v11480_v14, 7  ;;  %v6561_v20 = vpop.f32.mrb[250].mxu1  ;;  %6916 = vrot.lane.b32.xlu0 %v16546_v25, %s11668_s2  ;;  %v8479_v29 = vsel %vm7052_vm2, %v8477_v22, %v8478_v6  ;;  %11487 = vpow2.f32 %v10349_v63  ;;  %v16548_v63 = vrot.slane %v16537_v40, 2 }
 0x5d1   :  { %v11482_v47 = vpop.eup %11481  ;;  %v8480_v21 = vrot.slane %v6561_v20, 2  ;;  %7873 = vrot.lane.b32.xlu1 %v16547_v15, %s11668_s2  ;;  %v6563_v4 = vpop.f32.mrb[251].mxu1  ;;  %v8596_v54 = vadd.f32 %v8479_v29, %v8372_v39  ;;  %11489 = vrcp.f32 %v8839_v16  ;;  %v16549_v39 = vcombine.low %v14516_v11, %v14670_v62  ;;  %v16550_v20 = vld [vmem:[#allocation99_spill] sm:$0xff] }
 0x5d2   :  { %v11484_v19 = vpop.eup %11483  ;;  %v9038_v51 = vrot.slane %v11482_v47, 7  ;;  %v14759_v31 = vpop.permute.xlu0 %7391  ;;  %v9037_v14 = vsel %vm9019_vm3, %v9035_v18, %v9036_v7  ;;  %v16551_v47 = vcombine.high %v14516_v11, %v14670_v62 }
 0x5d3   :  { %v8840_v3 = vadd.f32 1.0, %v11484_v19  ;;  %v8481_v30 = vsel %vm7052_vm2, %v8478_v6, %v8480_v21  ;;  %v14763_v28 = vpop.permute.xlu1 %6898  ;;  %v9148_v22 = vcombine.low %v14589_v13, %v9037_v14  ;;  %v8651_v26 = vadd.f32 %v14334_v44, %v8596_v54 }
 0x5d4   :  { %v11486_v35 = vpop.eup %11485  ;;  %v8597_v53 = vadd.f32 %v8481_v30, %v8373_v33  ;;  %7205 = vrot.lane.b32.xlu0 %v16548_v63, %s11669_s11  ;;  %v14774_v16 = vrot.slane %v16549_v39, %v14735_v46  ;;  %v9149_v6 = vcombine.high %v14589_v13, %v9037_v14  ;;  %v14786_v33 = vrot.slane %v16551_v47, %v14735_v46  ;;  %v16556_v47 = vld [vmem:[#allocation144_spill] sm:$0xff] }
 0x5d5   :  { %11491 = vrcp.f32 %v8840_v3  ;;  %v8841_v18 = vadd.f32 1.0, %v11486_v35  ;;  %7413 = vrot.lane.b32.xlu1 %v16550_v20, %s11670_s3  ;;  %v14780_v25 = vrot.slane %v9148_v22, %v14735_v46  ;;  %v10350_v29 = vmul.f32 -1.442695, %v8651_v26  ;;  %v6566_v15 = vpop.f32.mrb[252].mxu1  ;;  %v16554_v26 = vld [vmem:[#allocation147_spill] sm:$0xff] }
 0x5d6   :  { %v8652_v21 = vadd.f32 %v14334_v44, %v8597_v53  ;;  %v14789_v4 = vpop.permute.xlu0 %8061  ;;  %v14792_v13 = vrot.slane %v9149_v6, %v14735_v46  ;;  %v9039_v19 = vsel %vm9019_vm3, %v9036_v7, %v9038_v51  ;;  %v8179_v54 = vadd.f32 %v14550_v60, %v7969_v56  ;;  %v6567_v3 = vpop.f32.mrb[253].mxu1  ;;  %v16552_v7 = vld [vmem:[#allocation39_spill] sm:$0xff]  ;;  %v16553_v51 = vld [vmem:[#allocation57_spill] sm:$0xff]  ;;  %v16555_v6 = vld [vmem:[#allocation102_spill] sm:$0xff] }
 0x5d7   :  { %11493 = vrcp.f32 %v8841_v18  ;;  %v14796_v14 = vpop.permute.xlu1 %7187  ;;  %v6568_v22 = vpop.f32.mrb[254].mxu1  ;;  %v14807_v60 = vsel %vm1275_vm1, %v14719_v45, %v14728_v0  ;;  %v7009_v35 = vadd.f32 %v16553_v51, %v16552_v7  ;;  %v7682_v53 = vadd.f32 %v16554_v26, %v14738_v5  ;;  %v16557_v7 = vld [vmem:[#allocation65_spill] sm:$0xff] }
 0x5d8   :  { %11495 = vpow2.f32 %v10350_v29  ;;  %v10351_v30 = vmul.f32 -1.442695, %v8652_v21  ;;  %8272 = vrot.lane.b32.xlu0 %v14719_v45, %s11670_s3  ;;  %v8374_v63 = vadd.f32 %v14626_v61, %v8179_v54  ;;  %v8482_v39 = vrot.slane %v6568_v22, 2  ;;  %v6570_v18 = vpop.f32.mrb[255].mxu1  ;;  %v16558_v5 = vld [vmem:[#allocation41_spill] sm:$0xff] }
 0x5d9   :  { %6918 = vrot.lane.b32.xlu1 %v16555_v6, %s11668_s2  ;;  %v7683_v29 = vadd.f32 %v16556_v47, %v7507_v41  ;;  %v9420_v3 = vcombine.low %v14600_v37, %v9039_v19  ;;  %v7298_v51 = vadd.f32 %v16557_v7, %v7009_v35  ;;  %v7010_v61 = vadd.f32 %v14481_v57, %v16558_v5 }
 0x5da   :  { %11497 = vpow2.f32 %v10351_v30  ;;  %v14819_v21 = vpop.permute.xlu0 %7855  ;;  %v8598_v54 = vadd.f32 %v8482_v39, %v8374_v63  ;;  %v9421_v26 = vcombine.high %v14600_v37, %v9039_v19  ;;  %v11488_v6 = vpop.eup %11487  ;;  %v7970_v41 = vadd.f32 %v14520_v9, %v7682_v53  ;;  %v16560_v9 = vld [vmem:[#allocation103_spill] sm:$0xff] }
 0x5db   :  { %v14827_v22 = vpop.permute.xlu1 %8254  ;;  %v7971_v30 = vadd.f32 %v14535_v17, %v7683_v29  ;;  %v16559_v35 = vcombine.low %v14527_v36, %v14687_v24  ;;  %v14841_v57 = vrot.slane %v9420_v3, %v14735_v46  ;;  %v11490_v63 = vpop.eup %11489  ;;  %v7508_v37 = vadd.f32 %v14553_v43, %v7298_v51 }
 0x5dc   :  { %8081 = vrot.lane.b32.xlu0 %v16538_v1, %s11669_s11  ;;  %v8653_v19 = vadd.f32 %v14334_v44, %v8598_v54  ;;  %v16561_v17 = vcombine.high %v14527_v36, %v14687_v24  ;;  %v14854_v53 = vrot.slane %v9421_v26, %v14735_v46  ;;  %v8180_v47 = vadd.f32 %v14572_v23, %v7970_v41  ;;  %v16563_v41 = vld [vmem:[#allocation53_spill] sm:$0xff] }
 0x5dd   :  { %v14838_v18 = vrot.slane %v16559_v35, %v14735_v46  ;;  %7207 = vrot.lane.b32.xlu1 %v16560_v9, %s11669_s11  ;;  %v8181_v29 = vadd.f32 %v14651_v42, %v7971_v30  ;;  %v6573_v3 = vpop.f32.mrb[0].mxu1  ;;  %v8842_v36 = vadd.f32 1.0, %v11488_v6  ;;  %v16562_v42 = vld [vmem:[#allocation42_spill] sm:$0xff]  ;;  %v9040_v35 = vrot.slane %v11490_v63, 7 }
 0x5de   :  { %v14851_v1 = vrot.slane %v16561_v17, %v14735_v46  ;;  %v14858_v43 = vpop.permute.xlu0 %7395  ;;  %v10352_v24 = vmul.f32 -1.442695, %v8653_v19  ;;  %v8483_v5 = vrot.slane %v6573_v3, 2  ;;  %v6575_v26 = vpop.f32.mrb[1].mxu1  ;;  %v7011_v30 = vadd.f32 %v16563_v41, %v16562_v42  ;;  %v16565_v19 = vld [vmem:[#allocation164_spill] sm:$0xff]  ;;  %v16566_v41 = vld [vmem:[#allocation19_spill] sm:$0xff] }
 0x5df   :  { %v11492_v51 = vpop.eup %11491  ;;  %v14864_v54 = vpop.permute.xlu1 %8063  ;;  %v8375_v17 = vadd.f32 %v14673_v27, %v8180_v47  ;;  %v16564_v7 = vrot.slane %v16550_v20, 1  ;;  %v7684_v3 = vadd.f32 %v16565_v19, %v7508_v37  ;;  %v8376_v26 = vadd.f32 %v14692_v2, %v8181_v29 }
 0x5e0   :  { %v9041_v9 = vrot.slane %v11492_v51, 7  ;;  %v6576_v44 = vpop.f32.mrb[2].mxu1  ;;  %v8484_v15 = vsel %vm7052_vm2, %v8482_v39, %v8483_v5  ;;  %11499 = vpow2.f32 %v10352_v24  ;;  %v7299_v19 = vadd.f32 %v16566_v41, %v7010_v61  ;;  %v16567_v61 = vld [vmem:[#allocation107_spill] sm:$0xff] }
 0x5e1   :  { %6920 = vrot.lane.b32.xlu0 %v16564_v7, %s11668_s2  ;;  %v11494_v6 = vpop.eup %11493  ;;  %v8485_v23 = vrot.slane %v6576_v44, 2  ;;  %8274 = vrot.lane.b32.xlu1 %v14807_v60, %s11670_s3  ;;  %v6578_v63 = vpop.f32.mrb[3].mxu1  ;;  %v8599_v27 = vadd.f32 %v8484_v15, %v8375_v17  ;;  %11501 = vrcp.f32 %v8842_v36  ;;  %v14893_v15 = vld [vmem:[%s15940_s4] ss:$0 sm:$0xff]  ;;  %v7300_v17 = vadd.f32 %v14539_v34, %v7011_v30  ;;  %v16568_v34 = vld [vmem:[#allocation105_spill] sm:$0xff] }
 0x5e2   :  { %v11496_v51 = vpop.eup %11495  ;;  %v9043_v42 = vrot.slane %v11494_v6, 7  ;;  %v14879_v47 = vpop.permute.xlu0 %6900  ;;  %v14882_v7 = vsel %vm9019_vm3, %v9040_v35, %v9041_v9  ;;  %v7509_v6 = vadd.f32 %v14569_v32, %v7299_v19  ;;  %v16570_v19 = vld [vmem:[#allocation170_spill] sm:$0xff] }
 0x5e3   :  { %v8843_v37 = vadd.f32 1.0, %v11496_v51  ;;  %v8486_v2 = vsel %vm7052_vm2, %v8483_v5, %v8485_v23  ;;  %v14885_v29 = vpop.permute.xlu1 %6902  ;;  %v8654_v24 = vadd.f32 %v14893_v15, %v8599_v27  ;;  %v7972_v5 = vadd.f32 %v14593_v52, %v7684_v3 }
 0x5e4   :  { %v11498_v44 = vpop.eup %11497  ;;  %v8600_v35 = vadd.f32 %v8486_v2, %v8376_v26  ;;  %v14899_v36 = vsel %vm9019_vm3, %v9041_v9, %v9043_v42  ;;  %v7510_v3 = vadd.f32 %v14612_v55, %v7300_v17 }
 0x5e5   :  { %8276 = vrot.lane.b32.xlu0 %v14728_v0, %s11670_s3  ;;  %11503 = vrcp.f32 %v8843_v37  ;;  %v8844_v23 = vadd.f32 1.0, %v11498_v44  ;;  %7877 = vrot.lane.b32.xlu1 %v16567_v61, %s11668_s2  ;;  %v10353_v63 = vmul.f32 -1.442695, %v8654_v24  ;;  %v6581_v51 = vpop.f32.mrb[4].mxu1  ;;  %v8182_v9 = vadd.f32 %v14716_v12, %v7972_v5  ;;  %v16569_v44 = vld [vmem:[#allocation109_spill] sm:$0xff] }
 0x5e6   :  { %v8655_v26 = vadd.f32 %v14893_v15, %v8600_v35  ;;  %v14907_v27 = vpop.permute.xlu0 %7189  ;;  %v6582_v52 = vpop.f32.mrb[5].mxu1  ;;  %v7685_v12 = vadd.f32 %v16570_v19, %v7509_v6  ;;  %v16573_v51 = vld [vmem:[#allocation110_spill] sm:$0xff] }
 0x5e7   :  { %11505 = vrcp.f32 %v8844_v23  ;;  %v8259_v42 = vpop.permute.xlu1 %8258  ;;  %v6583_v2 = vpop.f32.mrb[6].mxu1  ;;  %v8377_v32 = vadd.f32 %v14827_v22, %v8182_v9  ;;  %v16571_v23 = vld [vmem:[#allocation168_spill] sm:$0xff] }
 0x5e8   :  { %11507 = vpow2.f32 %v10353_v63  ;;  %v10354_v37 = vmul.f32 -1.442695, %v8655_v26  ;;  %v8487_v30 = vrot.slane %v6583_v2, 2  ;;  %v6585_v41 = vpop.f32.mrb[7].mxu1  ;;  %v7686_v61 = vadd.f32 %v16571_v23, %v7510_v3  ;;  %v16572_v63 = vld [vmem:[#allocation106_spill] sm:$0xff] }
 0x5e9   :  { %7875 = vrot.lane.b32.xlu0 %v16568_v34, %s11668_s2  ;;  %8083 = vrot.lane.b32.xlu1 %v16569_v44, %s11669_s11  ;;  %v7973_v17 = vadd.f32 %v14713_v50, %v7685_v12 }
 0x5ea   :  { %11509 = vpow2.f32 %v10354_v37  ;;  %v8257_v24 = vpop.permute.xlu0 %8256  ;;  %v8601_v35 = vadd.f32 %v8487_v30, %v8377_v32  ;;  %v11500_v55 = vpop.eup %11499  ;;  %v7974_v6 = vadd.f32 %v14698_v38, %v7686_v61  ;;  %v16574_v38 = vld [vmem:[#allocation35_spill] sm:$0xff] }
 0x5eb   :  { %v14917_v5 = vpop.permute.xlu1 %7857  ;;  %v11502_v22 = vpop.eup %11501  ;;  %v8183_v9 = vadd.f32 %v14789_v4, %v7973_v17  ;;  %v8845_v3 = vadd.f32 1.0, %v11500_v55  ;;  %v16575_v55 = vrot.slane %v16573_v51, 1 }
 0x5ec   :  { %v8656_v26 = vadd.f32 %v14893_v15, %v8601_v35  ;;  %v9045_v41 = vrot.slane %v11502_v22, 7  ;;  %v8184_v12 = vadd.f32 %v14864_v54, %v7974_v6 }
 0x5ed   :  { %7209 = vrot.lane.b32.xlu0 %v16572_v63, %s11669_s11  ;;  %7417 = vrot.lane.b32.xlu1 %v16573_v51, %s11670_s3  ;;  %v6588_v52 = vpop.f32.mrb[8].mxu1  ;;  %v8378_v35 = vadd.f32 %v8257_v24, %v8183_v9 }
 0x5ee   :  { %v14928_v37 = vpop.permute.xlu0 %7859  ;;  %v10355_v34 = vmul.f32 -1.442695, %v8656_v26  ;;  %v8488_v50 = vrot.slane %v6588_v52, 2  ;;  %v6590_v44 = vpop.f32.mrb[9].mxu1  ;;  %v8379_v52 = vadd.f32 %v8259_v42, %v8184_v12  ;;  %v16577_v12 = vld [vmem:[#allocation45_spill] sm:$0xff] }
 0x5ef   :  { %v11504_v2 = vpop.eup %11503  ;;  %v14930_v32 = vpop.permute.xlu1 %7191 }
 0x5f0   :  { %v9046_v19 = vrot.slane %v11504_v2, 7  ;;  %v6591_v23 = vpop.f32.mrb[10].mxu1  ;;  %11511 = vpow2.f32 %v10355_v34  ;;  %v8489_v61 = vsel %vm7052_vm2, %v8487_v30, %v8488_v50 }
 0x5f1   :  { %7415 = vrot.lane.b32.xlu0 %v16574_v38, %s11670_s3  ;;  %v11506_v4 = vpop.eup %11505  ;;  %v8490_v17 = vrot.slane %v6591_v23, 2  ;;  %6922 = vrot.lane.b32.xlu1 %v16575_v55, %s11668_s2  ;;  %v6593_v63 = vpop.f32.mrb[11].mxu1  ;;  %v8602_v2 = vadd.f32 %v8489_v61, %v8378_v35  ;;  %11513 = vrcp.f32 %v8845_v3  ;;  %v16576_v55 = vld [vmem:[#allocation112_spill] sm:$0xff] }
 0x5f2   :  { %v11508_v26 = vpop.eup %11507  ;;  %v9048_v22 = vrot.slane %v11506_v4, 7  ;;  %v8066_v54 = vpop.permute.xlu0 %8065  ;;  %v14940_v24 = vsel %vm9019_vm3, %v9045_v41, %v9046_v19  ;;  %v7012_v41 = vadd.f32 %v14586_v8, %v16577_v12  ;;  %v14960_v63 = vrot.slane %v16576_v55, 1 }
 0x5f3   :  { %v8846_v6 = vadd.f32 1.0, %v11508_v26  ;;  %v8491_v9 = vsel %vm7052_vm2, %v8488_v50, %v8490_v17  ;;  %v14943_v34 = vpop.permute.xlu1 %7397  ;;  %v8657_v44 = vadd.f32 %v14893_v15, %v8602_v2  ;;  %v16578_v50 = vrot.slane %v16573_v51, 2 }
 0x5f4   :  { %v11510_v30 = vpop.eup %11509  ;;  %v8603_v23 = vadd.f32 %v8491_v9, %v8379_v52  ;;  %v14949_v42 = vsel %vm9019_vm3, %v9046_v19, %v9048_v22  ;;  %v7301_v19 = vadd.f32 %v14608_v10, %v7012_v41  ;;  %v16579_v2 = vrot.slane %v16576_v55, 2  ;;  %v16581_v41 = vld [vmem:[#allocation174_spill] sm:$0xff] }
 0x5f5   :  { %8085 = vrot.lane.b32.xlu0 %v16576_v55, %s11669_s11  ;;  %11515 = vrcp.f32 %v8846_v6  ;;  %v8847_v3 = vadd.f32 1.0, %v11510_v30  ;;  %7211 = vrot.lane.b32.xlu1 %v16578_v50, %s11669_s11  ;;  %v10356_v35 = vmul.f32 -1.442695, %v8657_v44  ;;  %v6596_v61 = vpop.f32.mrb[12].mxu1  ;;  %v16582_v55 = vld [vmem:[#allocation117_spill] sm:$0xff]  ;;  %v16583_v50 = vld [vmem:[#allocation46_spill] sm:$0xff] }
 0x5f6   :  { %v8658_v4 = vadd.f32 %v14893_v15, %v8603_v23  ;;  %v14957_v17 = vpop.permute.xlu0 %7399  ;;  %v6597_v8 = vpop.f32.mrb[13].mxu1  ;;  %v7511_v6 = vadd.f32 %v14759_v31, %v7301_v19  ;;  %v16580_v23 = vld [vmem:[#allocation38_spill] sm:$0xff]  ;;  %v14981_v31 = vrot.slane %v16582_v55, 1 }
 0x5f7   :  { %11517 = vrcp.f32 %v8847_v3  ;;  %v14963_v26 = vpop.permute.xlu1 %8067  ;;  %v6598_v52 = vpop.f32.mrb[14].mxu1 }
 0x5f8   :  { %11519 = vpow2.f32 %v10356_v35  ;;  %v10357_v22 = vmul.f32 -1.442695, %v8658_v4  ;;  %v6600_v9 = vpop.f32.mrb[15].mxu1  ;;  %v7687_v3 = vadd.f32 %v16581_v41, %v7511_v6  ;;  %v7013_v35 = vadd.f32 %v14630_v48, %v16583_v50 }
 0x5f9   :  { %7879 = vrot.lane.b32.xlu0 %v16579_v2, %s11668_s2  ;;  %8278 = vrot.lane.b32.xlu1 %v14960_v63, %s11670_s3  ;;  %v8492_v6 = vrot.slane %v6598_v52, 2  ;;  %v11672_v50 = vmov 1934713408   ;;  %v16587_v52 = vrot.slane %v16580_v23, 1 }
 0x5fa   :  { %11521 = vpow2.f32 %v10357_v22  ;;  %v14971_v30 = vpop.permute.xlu0 %6904  ;;  %v11512_v10 = vpop.eup %11511  ;;  %v16584_v22 = vld [vmem:[#allocation48_spill] sm:$0xff]  ;;  %v7975_v9 = vadd.f32 %v14819_v21, %v7687_v3  ;;  %v9199_v0 = vunpack.c.l.s4 %v11672_v50 }
 0x5fb   :  { %v14973_v44 = vpop.permute.xlu1 %7861  ;;  %v11514_v12 = vpop.eup %11513  ;;  %v8848_v4 = vadd.f32 1.0, %v11512_v10  ;;  %v7014_v2 = vadd.f32 %v14667_v58, %v16584_v22  ;;  %v16586_v10 = vld [vmem:[#allocation36_spill] sm:$0xff] }
 0x5fc   :  { %v9050_v11 = vrot.slane %v11514_v12, 7  ;;  %v8185_v22 = vadd.f32 %v8066_v54, %v7975_v9  ;;  %v16588_v50 = vld [vmem:[#allocation40_spill] sm:$0xff] }
 0x5fd   :  { %7419 = vrot.lane.b32.xlu0 %v16580_v23, %s11670_s3  ;;  %8087 = vrot.lane.b32.xlu1 %v16582_v55, %s11669_s11  ;;  %v6603_v61 = vpop.f32.mrb[16].mxu1  ;;  %v16585_v55 = vld [vmem:[#allocation62_spill] sm:$0xff]  ;;  %v7303_v58 = vadd.f32 %v14743_v59, %v7014_v2  ;;  %11523 = vrcp.f32 %v8848_v4 }
 0x5fe   :  { %v14985_v19 = vpop.permute.xlu0 %7193  ;;  %v8493_v41 = vrot.slane %v6603_v61, 2  ;;  %v6605_v56 = vpop.f32.mrb[17].mxu1  ;;  %v7302_v62 = vadd.f32 %v16585_v55, %v7013_v35 }
 0x5ff   :  { %v11516_v8 = vpop.eup %11515  ;;  %v14990_v39 = vpop.permute.xlu1 %7401 }
 0x600   :  { %v9051_v51 = vrot.slane %v11516_v8, 7  ;;  %v6606_v48 = vpop.f32.mrb[18].mxu1  ;;  %v8494_v3 = vsel %vm7052_vm2, %v8492_v6, %v8493_v41  ;;  %v7512_v35 = vadd.f32 %v14746_v49, %v7302_v62 }
 0x601   :  { %6924 = vrot.lane.b32.xlu0 %v16586_v10, %s11668_s2  ;;  %v11518_v45 = vpop.eup %11517  ;;  %v8495_v21 = vrot.slane %v6606_v48, 2  ;;  %6926 = vrot.lane.b32.xlu1 %v16587_v52, %s11668_s2  ;;  %v6608_v56 = vpop.f32.mrb[19].mxu1 }
 0x602   :  { %v11520_v12 = vpop.eup %11519  ;;  %v9053_v61 = vrot.slane %v11518_v45, 7  ;;  %v8261_v8 = vpop.permute.xlu0 %8260  ;;  %v15002_v55 = vsel %vm9019_vm3, %v9050_v11, %v9051_v51  ;;  %v7513_v11 = vadd.f32 %v14858_v43, %v7303_v58 }
 0x603   :  { %v8849_v10 = vadd.f32 1.0, %v11520_v12  ;;  %v15004_v59 = vpop.permute.xlu1 %6906  ;;  %v8380_v54 = vadd.f32 %v8261_v8, %v8185_v22  ;;  %v8496_v2 = vsel %vm7052_vm2, %v8493_v41, %v8495_v21  ;;  %v9164_v9 = vcombine.low %v14882_v7, %v15002_v55  ;;  %v16589_v41 = vld [vmem:[#allocation182_spill] sm:$0xff]  ;;  %v16594_v12 = vld [vmem:[#allocation51_spill] sm:$0xff] }
 0x604   :  { %v11522_v48 = vpop.eup %11521  ;;  %v15014_v49 = vsel %vm9019_vm3, %v9051_v51, %v9053_v61  ;;  %v7688_v22 = vadd.f32 %v16589_v41, %v7512_v35  ;;  %v9200_v35 = vunpack.c.0.s8 %v9199_v0  ;;  %v7015_v56 = vadd.f32 %v14763_v28, %v16594_v12 }
 0x605   :  { %7213 = vrot.lane.b32.xlu0 %v16588_v50, %s11669_s11  ;;  %11525 = vrcp.f32 %v8849_v10  ;;  %v8850_v62 = vadd.f32 1.0, %v11522_v48  ;;  %v8604_v4 = vadd.f32 %v8492_v6, %v8380_v54  ;;  %8282 = vrot.lane.b32.xlu1 %v14981_v31, %s11670_s3  ;;  %v6611_v21 = vpop.f32.mrb[20].mxu1  ;;  %v15030_v6 = vsel %vm1275_vm1, %v14960_v63, %v14981_v31  ;;  %v16590_v10 = vld [vmem:[#allocation179_spill] sm:$0xff]  ;;  %v16591_v50 = vld [vmem:[#allocation118_spill] sm:$0xff] }
 0x606   :  { %v8070_v52 = vpop.permute.xlu0 %8069  ;;  %v6612_v58 = vpop.f32.mrb[21].mxu1  ;;  %v7976_v61 = vadd.f32 %v14917_v5, %v7688_v22  ;;  %v7689_v54 = vadd.f32 %v16590_v10, %v7513_v11  ;;  %v16592_v5 = vld [vmem:[#allocation5_spill] sm:$0xff] }
 0x607   :  { %11527 = vrcp.f32 %v8850_v62  ;;  %v8659_v51 = vadd.f32 %v14893_v15, %v8604_v4  ;;  %v15025_v43 = vpop.permute.xlu1 %7195  ;;  %v15033_v8 = vpop.f32.mrb[22].mxu1  ;;  %v15045_v22 = vsub.s32 %v9200_v35, %v16592_v5 }
 0x608   :  { %v6615_v62 = vpop.f32.mrb[23].mxu1  ;;  %v8186_v4 = vadd.f32 %v14963_v26, %v7976_v61  ;;  %v7977_v0 = vadd.f32 %v14928_v37, %v7689_v54  ;;  %v11524_v58 = vpop.eup %11523  ;;  %v16596_v26 = vld [vmem:[#allocation120_spill] sm:$0xff]  ;;  %v16597_v61 = vld [vmem:[#allocation126_spill] sm:$0xff]  ;;  %v7304_v37 = vadd.f32 %v14796_v14, %v7015_v56  ;;  %v16104_v28 = vrot.slane %v15033_v8, 2 }
 0x609   :  { %8280 = vrot.lane.b32.xlu0 %v15030_v6, %s11670_s3  ;;  %v10358_v48 = vmul.f32 -1.442695, %v8659_v51  ;;  %7881 = vrot.lane.b32.xlu1 %v16591_v50, %s11668_s2  ;;  %16593 = vst [vmem:[#allocation67_spill] sm:$0xff] %v15045_v22  ;;  %v16595_v51 = vld [vmem:[#allocation37_spill] sm:$0xff]  ;;  %v15054_v50 = vrot.slane %v16597_v61, 1  ;;  %v16599_v56 = vld [vmem:[#allocation124_spill] sm:$0xff] }
 0x60a   :  { %v15041_v41 = vpop.permute.xlu0 %6908  ;;  %v8187_v10 = vadd.f32 %v8070_v52, %v7977_v0  ;;  %v16598_v52 = vcombine.low %v14774_v16, %v14780_v25 }
 0x60b   :  { %v8263_v21 = vpop.permute.xlu1 %8262  ;;  %11529 = vpow2.f32 %v10358_v48 }
 0x60c   :  { %v8381_v11 = vadd.f32 %v8263_v21, %v8186_v4  ;;  %v15064_v0 = vrot.slane %v16598_v52, %v15045_v22  ;;  %v16601_v52 = vld [vmem:[#allocation121_spill] sm:$0xff] }
 0x60d   :  { %7883 = vrot.lane.b32.xlu0 %v16595_v51, %s11668_s2  ;;  %7215 = vrot.lane.b32.xlu1 %v16596_v26, %s11669_s11  ;;  %v6618_v54 = vpop.f32.mrb[24].mxu1  ;;  %v9055_v51 = vrot.slane %v11524_v58, 7 }
 0x60e   :  { %v8605_v35 = vadd.f32 %v8494_v3, %v8381_v11  ;;  %v8265_v62 = vpop.permute.xlu0 %8264  ;;  %v8498_v12 = vrot.slane %v6618_v54, 2  ;;  %v6620_v21 = vpop.f32.mrb[25].mxu1  ;;  %v16600_v11 = vcombine.high %v14774_v16, %v14780_v25 }
 0x60f   :  { %v11526_v5 = vpop.eup %11525  ;;  %v15058_v4 = vpop.permute.xlu1 %7865  ;;  %v8382_v48 = vadd.f32 %v8265_v62, %v8187_v10 }
 0x610   :  { %v9056_v26 = vrot.slane %v11526_v5, 7  ;;  %v8660_v14 = vadd.f32 %v14893_v15, %v8605_v35  ;;  %v6621_v3 = vpop.f32.mrb[26].mxu1  ;;  %v15073_v54 = vrot.slane %v16600_v11, %v15045_v22  ;;  %v15080_v35 = vsel %vm7052_vm2, %v16104_v28, %v8498_v12 }
 0x611   :  { %8089 = vrot.lane.b32.xlu0 %v16599_v56, %s11669_s11  ;;  %v11528_v10 = vpop.eup %11527  ;;  %v8500_v62 = vrot.slane %v6621_v3, 2  ;;  %v8606_v21 = vadd.f32 %v8496_v2, %v8382_v48  ;;  %7421 = vrot.lane.b32.xlu1 %v16601_v52, %s11670_s3  ;;  %v6623_v58 = vpop.f32.mrb[27].mxu1  ;;  %v16602_v5 = vcombine.low %v14786_v33, %v14792_v13  ;;  %v16603_v48 = vcombine.high %v14786_v33, %v14792_v13 }
 0x612   :  { %v9058_v16 = vrot.slane %v11528_v10, 7  ;;  %v10359_v25 = vmul.f32 -1.442695, %v8660_v14  ;;  %v15088_v11 = vpop.permute.xlu0 %7863  ;;  %v9057_v2 = vsel %vm9019_vm3, %v9055_v51, %v9056_v26  ;;  %v7514_v58 = vadd.f32 %v14943_v34, %v7304_v37  ;;  %v16605_v51 = vld [vmem:[#allocation125_spill] sm:$0xff] }
 0x613   :  { %v15086_v56 = vrot.slane %v16602_v5, %v15045_v22  ;;  %v15095_v3 = vrot.slane %v16603_v48, %v15045_v22  ;;  %v8661_v28 = vadd.f32 %v14893_v15, %v8606_v21  ;;  %v15099_v45 = vpop.permute.xlu1 %8071  ;;  %v15102_v5 = vsel %vm7052_vm2, %v8498_v12, %v8500_v62 }
 0x614   :  { %v9180_v14 = vcombine.low %v14940_v24, %v9057_v2  ;;  %11531 = vpow2.f32 %v10359_v25  ;;  %v9172_v33 = vrot.slane %v9164_v9, %v14735_v46  ;;  %v9181_v13 = vcombine.high %v14940_v24, %v9057_v2 }
 0x615   :  { %16604 = vst [vmem:[#allocation20_spill] sm:$0xff] %v15095_v3  ;;  %7423 = vrot.lane.b32.xlu0 %v16605_v51, %s11670_s3  ;;  %v9059_v34 = vsel %vm9019_vm3, %v9056_v26, %v9058_v16  ;;  %v10360_v37 = vmul.f32 -1.442695, %v8661_v28  ;;  %8091 = vrot.lane.b32.xlu1 %v16597_v61, %s11669_s11  ;;  %v6626_v21 = vpop.f32.mrb[28].mxu1  ;;  %v16606_v9 = vcombine.high %v14882_v7, %v15002_v55  ;;  %v11530_v48 = vpop.eup %11529 }
 0x616   :  { %v9188_v12 = vrot.slane %v9180_v14, %v14735_v46  ;;  %v9452_v10 = vcombine.low %v14949_v42, %v9059_v34  ;;  %v9453_v62 = vcombine.high %v14949_v42, %v9059_v34  ;;  %v15118_v25 = vpop.permute.xlu0 %7197  ;;  %v9195_v26 = vrot.slane %v9181_v13, %v14735_v46  ;;  %v6627_v7 = vpop.f32.mrb[29].mxu1 }
 0x617   :  { %v9179_v24 = vrot.slane %v16606_v9, %v14735_v46  ;;  %v16607_v28 = vcombine.low %v14838_v18, %v14841_v57  ;;  %v16608_v42 = vcombine.high %v14838_v18, %v14841_v57  ;;  %11533 = vpow2.f32 %v10360_v37  ;;  %v15137_v14 = vpop.permute.xlu1 %7405  ;;  %v16612_v9 = vld [vmem:[#allocation56_spill] sm:$0xff] }
 0x618   :  { %v9228_v55 = vcombine.low %v9172_v33, %v9188_v12  ;;  %v9229_v34 = vcombine.high %v9172_v33, %v9188_v12  ;;  %v16610_v13 = vcombine.low %v14851_v1, %v14854_v53  ;;  %v16613_v18 = vld [vmem:[#allocation64_spill] sm:$0xff]  ;;  %v16614_v37 = vrot.slane %v16605_v51, 1 }
 0x619   :  { %v15129_v16 = vrot.slane %v16607_v28, %v15045_v22  ;;  %v15135_v2 = vrot.slane %v16608_v42, %v15045_v22  ;;  %v15147_v28 = vadd.f32 %v14885_v29, %v16612_v9  ;;  %v7690_v57 = vadd.f32 %v16613_v18, %v7514_v58  ;;  %v15150_v42 = vpop.f32.mrb[30].mxu1 }
 0x61a   :  { %v15143_v21 = vrot.slane %v16610_v13, %v15045_v22  ;;  %6928 = vrot.lane.b32.xlu0 %v16614_v37, %s11668_s2  ;;  %v9244_v7 = vcombine.low %v9179_v24, %v9195_v26  ;;  %v9245_v33 = vcombine.high %v9179_v24, %v9195_v26  ;;  %v16615_v12 = vrot.slane %v16597_v61, 2  ;;  %v6630_v13 = vpop.f32.mrb[31].mxu1  ;;  %v15169_v24 = vpop.permute.xlu0 %7403 }
 0x61b   :  { %16609 = vst [vmem:[#allocation70_spill] sm:$0xff] %v15135_v2  ;;  %v15159_v52 = vrot.slane %v9228_v55, %v15045_v22  ;;  %v15162_v29 = vrot.slane %v9229_v34, %v15045_v22  ;;  %v16616_v58 = vcombine.low %v14899_v36, %v15014_v49  ;;  %v9460_v18 = vrot.slane %v9452_v10, %v14735_v46  ;;  %v15178_v34 = vpop.permute.xlu1 %6910 }
 0x61c   :  { %16611 = vst [vmem:[#allocation96_spill] sm:$0xff] %v15143_v21  ;;  %7885 = vrot.lane.b32.xlu1 %v16615_v12, %s11668_s2  ;;  %v8851_v37 = vadd.f32 1.0, %v11530_v48  ;;  %v15172_v61 = vrot.slane %v9244_v7, %v15045_v22  ;;  %v15175_v26 = vrot.slane %v9245_v33, %v15045_v22  ;;  %v9467_v55 = vrot.slane %v9453_v62, %v14735_v46 }
 0x61d   :  { %v9444_v9 = vrot.slane %v16616_v58, %v14735_v46  ;;  %v16618_v48 = vcombine.high %v14899_v36, %v15014_v49  ;;  %v16619_v33 = vrot.slane %v16605_v51, 2  ;;  %v16620_v10 = vcombine.high %v14851_v1, %v14854_v53  ;;  %v16622_v49 = vld [vmem:[#allocation130_spill] sm:$0xff]  ;;  %v6633_v58 = vpop.f32.mrb[32].mxu1 }
 0x61e   :  { %16617 = vst [vmem:[#allocation14_spill] sm:$0xff] %v15175_v26  ;;  %v7978_v36 = vadd.f32 %v14973_v44, %v7690_v57  ;;  %11535 = vrcp.f32 %v8851_v37  ;;  %v15208_v51 = vpop.permute.xlu0 %8073  ;;  %v16112_v44 = vrot.slane %v15150_v42, 2  ;;  %v8503_v57 = vrot.slane %v6633_v58, 2  ;;  %v6635_v3 = vpop.f32.mrb[33].mxu1 }
 0x61f   :  { %v9451_v7 = vrot.slane %v16618_v48, %v14735_v46  ;;  %7217 = vrot.lane.b32.xlu0 %v16619_v33, %s11669_s11  ;;  %v15203_v12 = vrot.slane %v16620_v10, %v15045_v22  ;;  %v9500_v48 = vcombine.low %v9444_v9, %v9460_v18  ;;  %v9501_v62 = vcombine.high %v9444_v9, %v9460_v18  ;;  %v11532_v46 = vpop.eup %11531  ;;  %v15215_v10 = vpop.permute.xlu1 %7199 }
 0x620   :  { %7425 = vrot.lane.b32.xlu1 %v16622_v49, %s11670_s3  ;;  %v8852_v53 = vadd.f32 1.0, %v11532_v46  ;;  %v8188_v18 = vadd.f32 %v15099_v45, %v7978_v36  ;;  %v6636_v37 = vpop.f32.mrb[34].mxu1  ;;  %v15237_v36 = vsel %vm7052_vm2, %v16112_v44, %v8503_v57  ;;  %v7306_v26 = vadd.f32 %v14930_v32, %v15147_v28  ;;  %v16631_v28 = vld [vmem:[#allocation135_spill] sm:$0xff] }
 0x621   :  { %16621 = vst [vmem:[#allocation6_spill] sm:$0xff] %v15203_v12  ;;  %v9516_v33 = vcombine.low %v9451_v7, %v9467_v55  ;;  %v9517_v13 = vcombine.high %v9451_v7, %v9467_v55  ;;  %v15218_v9 = vrot.slane %v9500_v48, %v15045_v22  ;;  %v15227_v46 = vrot.slane %v9501_v62, %v15045_v22  ;;  %v11534_v58 = vpop.eup %11533  ;;  %v16627_v48 = vld [vmem:[#allocation134_spill] sm:$0xff]  ;;  %v6638_v45 = vpop.f32.mrb[35].mxu1 }
 0x622   :  { %11537 = vrcp.f32 %v8852_v53  ;;  %v8505_v3 = vrot.slane %v6636_v37, 2  ;;  %v8853_v62 = vadd.f32 1.0, %v11534_v58  ;;  %v15241_v1 = vpop.permute.xlu0 %7867 }
 0x623   :  { %16623 = vst [vmem:[#allocation73_spill] sm:$0xff] %v15218_v9  ;;  %8284 = vrot.lane.b32.xlu0 %v15054_v50, %s11670_s3  ;;  %v15224_v55 = vrot.slane %v9516_v33, %v15045_v22  ;;  %16625 = vst [vmem:[#allocation84_spill] sm:$0xff] %v15227_v46  ;;  %v15230_v7 = vrot.slane %v9517_v13, %v15045_v22  ;;  %v8267_v44 = vpop.permute.xlu1 %8266  ;;  %v16630_v22 = vld [vmem:[#allocation54_spill] sm:$0xff]  ;;  %v16656_v9 = vld [vmem:[#allocation69_spill] sm:$0xff] }
 0x624   :  { %6930 = vrot.lane.b32.xlu1 %v16627_v48, %s11668_s2  ;;  %v16628_v48 = vld [vmem:[#allocation133_spill] sm:$0xff]  ;;  %v15255_v58 = vsel %vm7052_vm2, %v8503_v57, %v8505_v3  ;;  %11539 = vrcp.f32 %v8853_v62  ;;  %v8383_v13 = vadd.f32 %v8267_v44, %v8188_v18  ;;  %v7016_v32 = vadd.f32 %v14879_v47, %v16630_v22 }
 0x625   :  { %16624 = vst [vmem:[#allocation15_spill] sm:$0xff] %v15224_v55  ;;  %16626 = vst [vmem:[#allocation116_spill] sm:$0xff] %v15230_v7  ;;  %v15250_v45 = vrot.slane %v16628_v48, 1  ;;  %v7516_v44 = vadd.f32 %v14990_v39, %v7306_v26  ;;  %v16632_v18 = vrot.slane %v15033_v8, 2  ;;  %v6641_v62 = vpop.f32.mrb[36].mxu1  ;;  %v16634_v39 = vrot.slane %v16622_v49, 1 }
 0x626   :  { %v7305_v37 = vadd.f32 %v14907_v27, %v7016_v32  ;;  %v6642_v33 = vpop.f32.mrb[37].mxu1  ;;  %v16635_v26 = vld [vmem:[#allocation52_spill] sm:$0xff] }
 0x627   :  { %16629 = vst [vmem:[#allocation28_spill] sm:$0xff] %v15250_v45  ;;  %8093 = vrot.lane.b32.xlu0 %v16628_v48, %s11669_s11  ;;  %v8607_v3 = vadd.f32 %v16632_v18, %v8383_v13  ;;  %v15274_v48 = vpop.permute.xlu0 %7407  ;;  %v8076_v53 = vpop.permute.xlu1 %8075  ;;  %v15282_v22 = vsel %vm1275_vm1, %v15054_v50, %v15250_v45  ;;  %v7692_v33 = vadd.f32 %v16635_v26, %v7516_v44 }
 0x628   :  { %7219 = vrot.lane.b32.xlu1 %v16631_v28, %s11669_s11  ;;  %v11536_v7 = vpop.eup %11535  ;;  %v15277_v47 = vpop.f32.mrb[38].mxu1  ;;  %16633 = vst [vmem:[#allocation72_spill] sm:$0xff] %v15282_v22  ;;  %v7515_v8 = vadd.f32 %v14957_v17, %v7305_v37  ;;  %v16636_v17 = vld [vmem:[#allocation12_spill] sm:$0xff] }
 0x629   :  { %v6645_v27 = vpop.f32.mrb[39].mxu1  ;;  %v9060_v18 = vrot.slane %v11536_v7, 7  ;;  %v7980_v57 = vadd.f32 %v15058_v4, %v7692_v33  ;;  %v8662_v12 = vadd.f32 %v14893_v15, %v8607_v3  ;;  %v16124_v3 = vrot.slane %v15277_v47, 2 }
 0x62a   :  { %v7691_v37 = vadd.f32 %v16636_v17, %v7515_v8 }
 0x62b   :  { %6932 = vrot.lane.b32.xlu0 %v16634_v39, %s11668_s2  ;;  %v15291_v13 = vpop.permute.xlu0 %6912  ;;  %v15293_v28 = vpop.permute.xlu1 %6914  ;;  %v16637_v39 = vld [vmem:[#allocation139_spill] sm:$0xff]  ;;  %v8190_v27 = vadd.f32 %v8076_v53, %v7980_v57  ;;  %v10361_v8 = vmul.f32 -1.442695, %v8662_v12 }
 0x62c   :  { %8286 = vrot.lane.b32.xlu1 %v15282_v22, %s11670_s3  ;;  %v11538_v32 = vpop.eup %11537  ;;  %v7979_v4 = vadd.f32 %v15088_v11, %v7691_v37 }
 0x62d   :  { %v9061_v62 = vrot.slane %v11538_v32, 7  ;;  %v6648_v26 = vpop.f32.mrb[40].mxu1  ;;  %11541 = vpow2.f32 %v10361_v8 }
 0x62e   :  { %v11540_v44 = vpop.eup %11539  ;;  %v8508_v33 = vrot.slane %v6648_v26, 2  ;;  %v6650_v49 = vpop.f32.mrb[41].mxu1  ;;  %v8189_v53 = vadd.f32 %v15208_v51, %v7979_v4  ;;  %v16640_v26 = vld [vmem:[#allocation138_spill] sm:$0xff] }
 0x62f   :  { %8288 = vrot.lane.b32.xlu0 %v15250_v45, %s11670_s3  ;;  %v15302_v22 = vpop.permute.xlu0 %7201  ;;  %v15305_v7 = vsel %vm9019_vm3, %v9060_v18, %v9061_v62  ;;  %v9063_v32 = vrot.slane %v11540_v44, 7  ;;  %v8271_v45 = vpop.permute.xlu1 %8270  ;;  %v16639_v18 = vld [vmem:[#allocation141_spill] sm:$0xff] }
 0x630   :  { %7889 = vrot.lane.b32.xlu1 %v16637_v39, %s11668_s2  ;;  %v8385_v17 = vadd.f32 %v8271_v45, %v8190_v27  ;;  %v6651_v46 = vpop.f32.mrb[42].mxu1  ;;  %v16638_v39 = vld [vmem:[#allocation137_spill] sm:$0xff]  ;;  %v15317_v11 = vsel %vm7052_vm2, %v16124_v3, %v8508_v33 }
 0x631   :  { %v8510_v57 = vrot.slane %v6651_v46, 2  ;;  %v6653_v44 = vpop.f32.mrb[43].mxu1  ;;  %v15320_v49 = vsel %vm9019_vm3, %v9061_v62, %v9063_v32  ;;  %v16641_v62 = vld [vmem:[#allocation142_spill] sm:$0xff] }
 0x632   :  { %v8609_v12 = vadd.f32 %v15102_v5, %v8385_v17 }
 0x633   :  { %7887 = vrot.lane.b32.xlu0 %v16638_v39, %s11668_s2  ;;  %v8269_v45 = vpop.permute.xlu0 %8268  ;;  %v15323_v37 = vpop.permute.xlu1 %7869  ;;  %v15326_v51 = vsel %vm7052_vm2, %v8508_v33, %v8510_v57  ;;  %v16643_v57 = vld [vmem:[#allocation43_spill] sm:$0xff] }
 0x634   :  { %8095 = vrot.lane.b32.xlu1 %v16639_v18, %s11669_s11  ;;  %v8384_v27 = vadd.f32 %v8269_v45, %v8189_v53  ;;  %v8664_v46 = vadd.f32 %v14893_v15, %v8609_v12 }
 0x635   :  { %v6656_v5 = vpop.f32.mrb[44].mxu1 }
 0x636   :  { %v8608_v4 = vadd.f32 %v15080_v35, %v8384_v27  ;;  %v10363_v32 = vmul.f32 -1.442695, %v8664_v46  ;;  %v6657_v33 = vpop.f32.mrb[45].mxu1  ;;  %v16644_v35 = vrot.slane %v16641_v62, 1  ;;  %v16645_v27 = vld [vmem:[#allocation143_spill] sm:$0xff]  ;;  %v16646_v46 = vld [vmem:[#allocation61_spill] sm:$0xff] }
 0x637   :  { %7221 = vrot.lane.b32.xlu0 %v16640_v26, %s11669_s11  ;;  %v15334_v17 = vpop.permute.xlu0 %7871  ;;  %v15337_v53 = vpop.permute.xlu1 %7203  ;;  %v7018_v26 = vadd.f32 %v14971_v30, %v16646_v46  ;;  %v15358_v33 = vrot.slane %v16645_v27, 1  ;;  %v16649_v46 = vrot.slane %v16645_v27, 2 }
 0x638   :  { %7429 = vrot.lane.b32.xlu1 %v16641_v62, %s11670_s3  ;;  %v8663_v39 = vadd.f32 %v14893_v15, %v8608_v4  ;;  %11543 = vpow2.f32 %v10363_v32  ;;  %v15339_v8 = vpop.f32.mrb[46].mxu1  ;;  %v16647_v4 = vrot.slane %v16641_v62, 2  ;;  %v11542_v32 = vpop.eup %11541 }
 0x639   :  { %16642 = vst [vmem:[#allocation79_spill] sm:$0xff] %v15339_v8  ;;  %v6660_v44 = vpop.f32.mrb[47].mxu1  ;;  %16648 = vst [vmem:[#allocation91_spill] sm:$0xff] %v15358_v33  ;;  %v8854_v62 = vadd.f32 1.0, %v11542_v32 }
 0x63a   :  { %v10362_v18 = vmul.f32 -1.442695, %v8663_v39 }
 0x63b   :  { %7427 = vrot.lane.b32.xlu0 %v16643_v57, %s11670_s3  ;;  %v8078_v12 = vpop.permute.xlu0 %8077  ;;  %v15346_v45 = vpop.permute.xlu1 %7409 }
 0x63c   :  { %6934 = vrot.lane.b32.xlu1 %v16644_v35, %s11668_s2  ;;  %11545 = vpow2.f32 %v10362_v18  ;;  %v7307_v18 = vadd.f32 %v14985_v19, %v7018_v26  ;;  %v16132_v35 = vrot.slane %v15339_v8, 2 }
 0x63d   :  { %v6663_v5 = vpop.f32.mrb[48].mxu1  ;;  %11547 = vrcp.f32 %v8854_v62 }
 0x63e   :  { %v8513_v44 = vrot.slane %v6663_v5, 2  ;;  %v6665_v57 = vpop.f32.mrb[49].mxu1 }
 0x63f   :  { %8097 = vrot.lane.b32.xlu0 %v16645_v27, %s11669_s11  ;;  %v15355_v39 = vpop.permute.xlu0 %7411  ;;  %v15362_v3 = vpop.permute.xlu1 %8079 }
 0x640   :  { %7223 = vrot.lane.b32.xlu1 %v16647_v4, %s11669_s11  ;;  %v6666_v30 = vpop.f32.mrb[50].mxu1  ;;  %v7517_v4 = vadd.f32 %v15169_v24, %v7307_v18  ;;  %v15373_v19 = vsel %vm7052_vm2, %v16132_v35, %v8513_v44  ;;  %v16652_v24 = vld [vmem:[#allocation146_spill] sm:$0xff] }
 0x641   :  { %v8515_v2 = vrot.slane %v6666_v30, 2  ;;  %v6668_v55 = vpop.f32.mrb[51].mxu1  ;;  %16650 = vst [vmem:[#allocation104_spill] sm:$0xff] %v15373_v19  ;;  %v16654_v30 = vld [vmem:[#allocation149_spill] sm:$0xff] }
 0x642   :  { %v11544_v26 = vpop.eup %11543  ;;  %v16653_v55 = vld [vmem:[#allocation55_spill] sm:$0xff] }
 0x643   :  { %7891 = vrot.lane.b32.xlu0 %v16649_v46, %s11668_s2  ;;  %v15375_v57 = vpop.permute.xlu0 %6916  ;;  %v8856_v5 = vadd.f32 1.0, %v11544_v26  ;;  %v15377_v21 = vpop.permute.xlu1 %7873  ;;  %v15380_v27 = vsel %vm7052_vm2, %v8513_v44, %v8515_v2  ;;  %v7693_v18 = vadd.f32 %v16653_v55, %v7517_v4  ;;  %v16655_v46 = vld [vmem:[#allocation66_spill] sm:$0xff]  ;;  %v7020_v4 = vadd.f32 %v15041_v41, %v16656_v9 }
 0x644   :  { %8290 = vrot.lane.b32.xlu1 %v15358_v33, %s11670_s3  ;;  %16651 = vst [vmem:[#allocation74_spill] sm:$0xff] %v15380_v27  ;;  %v7019_v35 = vadd.f32 %v15004_v59, %v16655_v46  ;;  %v16657_v59 = vld [vmem:[#allocation150_spill] sm:$0xff]  ;;  %v16661_v46 = vrot.slane %v15150_v42, 2 }
 0x645   :  { %11549 = vrcp.f32 %v8856_v5  ;;  %v6671_v19 = vpop.f32.mrb[52].mxu1  ;;  %v7981_v2 = vadd.f32 %v15241_v1, %v7693_v18 }
 0x646   :  { %v11546_v32 = vpop.eup %11545  ;;  %v6672_v27 = vpop.f32.mrb[53].mxu1  ;;  %v7308_v62 = vadd.f32 %v15025_v43, %v7019_v35  ;;  %v16658_v19 = vrot.slane %v16652_v24, 1  ;;  %v15407_v35 = vrot.slane %v16654_v30, 1 }
 0x647   :  { %7431 = vrot.lane.b32.xlu0 %v16652_v24, %s11670_s3  ;;  %v8855_v26 = vadd.f32 1.0, %v11546_v32  ;;  %v15389_v8 = vpop.permute.xlu0 %7205  ;;  %v15392_v44 = vpop.permute.xlu1 %7413  ;;  %v8191_v5 = vadd.f32 %v8078_v12, %v7981_v2  ;;  %v7309_v27 = vadd.f32 %v15118_v25, %v7020_v4  ;;  %v16660_v12 = vld [vmem:[#allocation151_spill] sm:$0xff] }
 0x648   :  { %8099 = vrot.lane.b32.xlu1 %v16654_v30, %s11669_s11  ;;  %v15397_v55 = vpop.f32.mrb[54].mxu1  ;;  %v7518_v32 = vadd.f32 %v15137_v14, %v7308_v62  ;;  %16659 = vst [vmem:[#allocation92_spill] sm:$0xff] %v15407_v35  ;;  %v16662_v14 = vld [vmem:[#allocation58_spill] sm:$0xff]  ;;  %v11548_v30 = vpop.eup %11547  ;;  %v15424_v42 = vsel %vm1275_vm1, %v15358_v33, %v15407_v35 }
 0x649   :  { %11551 = vrcp.f32 %v8855_v26  ;;  %v6675_v1 = vpop.f32.mrb[55].mxu1  ;;  %v7519_v18 = vadd.f32 %v15274_v48, %v7309_v27  ;;  %v16139_v4 = vrot.slane %v15397_v55, 2  ;;  %16663 = vst [vmem:[#allocation108_spill] sm:$0xff] %v15424_v42  ;;  %v16664_v27 = vld [vmem:[#allocation82_spill] sm:$0xff] }
 0x64a   :  { %v7694_v25 = vadd.f32 %v16662_v14, %v7518_v32  ;;  %v16666_v14 = vld [vmem:[#allocation152_spill] sm:$0xff] }
 0x64b   :  { %6936 = vrot.lane.b32.xlu0 %v16657_v59, %s11668_s2  ;;  %v8273_v43 = vpop.permute.xlu0 %8272  ;;  %v15409_v41 = vpop.permute.xlu1 %6918 }
 0x64c   :  { %6938 = vrot.lane.b32.xlu1 %v16658_v19, %s11668_s2  ;;  %v8386_v9 = vadd.f32 %v8273_v43, %v8191_v5  ;;  %v7022_v43 = vadd.f32 %v15291_v13, %v16664_v27  ;;  %v7982_v32 = vadd.f32 %v15323_v37, %v7694_v25 }
 0x64d   :  { %v6678_v2 = vpop.f32.mrb[56].mxu1 }
 0x64e   :  { %v8610_v26 = vadd.f32 %v16661_v46, %v8386_v9  ;;  %v8518_v5 = vrot.slane %v6678_v2, 2  ;;  %v6680_v19 = vpop.f32.mrb[57].mxu1  ;;  %v16665_v9 = vld [vmem:[#allocation68_spill] sm:$0xff]  ;;  %v7311_v13 = vadd.f32 %v15302_v22, %v7022_v43 }
 0x64f   :  { %7225 = vrot.lane.b32.xlu0 %v16660_v12, %s11669_s11  ;;  %v8082_v62 = vpop.permute.xlu0 %8081  ;;  %v7208_v48 = vpop.permute.xlu1 %7207  ;;  %v7695_v12 = vadd.f32 %v16665_v9, %v7519_v18  ;;  %v8192_v18 = vadd.f32 %v15362_v3, %v7982_v32  ;;  %v9065_v9 = vrot.slane %v11548_v30, 7  ;;  %v16669_v43 = vld [vmem:[#allocation156_spill] sm:$0xff] }
 0x650   :  { %8294 = vrot.lane.b32.xlu1 %v15407_v35, %s11670_s3  ;;  %v8665_v59 = vadd.f32 %v14893_v15, %v8610_v26  ;;  %v11550_v1 = vpop.eup %11549  ;;  %v6681_v46 = vpop.f32.mrb[58].mxu1  ;;  %v15437_v19 = vsel %vm7052_vm2, %v16139_v4, %v8518_v5  ;;  %v16667_v4 = vld [vmem:[#allocation154_spill] sm:$0xff]  ;;  %v7521_v33 = vadd.f32 %v15355_v39, %v7311_v13 }
 0x651   :  { %v8520_v26 = vrot.slane %v6681_v46, 2  ;;  %v6683_v2 = vpop.f32.mrb[59].mxu1  ;;  %v7983_v37 = vadd.f32 %v15334_v17, %v7695_v12  ;;  %v9068_v46 = vrot.slane %v11550_v1, 7  ;;  %v16668_v17 = vld [vmem:[#allocation153_spill] sm:$0xff] }
 0x652   :  { %v10364_v25 = vmul.f32 -1.442695, %v8665_v59 }
 0x653   :  { %8292 = vrot.lane.b32.xlu0 %v15424_v42, %s11670_s3  ;;  %v11552_v24 = vpop.eup %11551  ;;  %v6921_v27 = vpop.permute.xlu0 %6920  ;;  %v8193_v22 = vadd.f32 %v8082_v62, %v7983_v37 }
 0x654   :  { %7893 = vrot.lane.b32.xlu1 %v16666_v14, %s11668_s2  ;;  %v9066_v42 = vrot.slane %v11552_v24, 7  ;;  %v8275_v35 = vpop.permute.xlu1 %8274  ;;  %v15443_v14 = vsel %vm7052_vm2, %v8518_v5, %v8520_v26  ;;  %11553 = vpow2.f32 %v10364_v25 }
 0x655   :  { %v8387_v2 = vadd.f32 %v8275_v35, %v8192_v18  ;;  %v6686_v59 = vpop.f32.mrb[60].mxu1 }
 0x656   :  { %v15451_v3 = vsel %vm9019_vm3, %v9065_v9, %v9066_v42  ;;  %v15454_v30 = vsel %vm9019_vm3, %v9066_v42, %v9068_v46  ;;  %v16670_v42 = vld [vmem:[#allocation155_spill] sm:$0xff]  ;;  %v7025_v9 = vadd.f32 %v15409_v41, %v16537_v40  ;;  %v16671_v46 = vld [vmem:[#allocation157_spill] sm:$0xff] }
 0x657   :  { %7895 = vrot.lane.b32.xlu0 %v16667_v4, %s11668_s2  ;;  %v8611_v24 = vadd.f32 %v15237_v36, %v8387_v2  ;;  %v8277_v35 = vpop.permute.xlu0 %8276  ;;  %v6687_v4 = vpop.f32.mrb[61].mxu1  ;;  %v7697_v36 = vadd.f32 %v14807_v60, %v7521_v33 }
 0x658   :  { %7227 = vrot.lane.b32.xlu1 %v16668_v17, %s11669_s11  ;;  %v15457_v5 = vpop.permute.xlu1 %7877  ;;  %v8388_v1 = vadd.f32 %v8277_v35, %v8193_v22  ;;  %v15460_v62 = vpop.f32.mrb[62].mxu1  ;;  %v16672_v22 = vld [vmem:[#allocation158_spill] sm:$0xff]  ;;  %v7314_v40 = vadd.f32 %v7208_v48, %v7025_v9 }
 0x659   :  { %v8666_v39 = vadd.f32 %v14893_v15, %v8611_v24  ;;  %v6690_v12 = vpop.f32.mrb[63].mxu1  ;;  %v15479_v60 = vrot.slane %v16672_v22, 1  ;;  %v16674_v17 = vld [vmem:[#allocation90_spill] sm:$0xff]  ;;  %v8522_v35 = vrot.slane %v15460_v62, 2  ;;  %v16675_v48 = vrot.slane %v16672_v22, 2 }
 0x65a   :  { %v8612_v32 = vadd.f32 %v15255_v58, %v8388_v1  ;;  %v7026_v58 = vadd.f32 %v6921_v27, %v16550_v20  ;;  %v7024_v24 = vadd.f32 %v15375_v57, %v16674_v17 }
 0x65b   :  { %8101 = vrot.lane.b32.xlu0 %v16669_v43, %s11669_s11  ;;  %v10365_v26 = vmul.f32 -1.442695, %v8666_v39  ;;  %v7876_v13 = vpop.permute.xlu0 %7875 }
 0x65c   :  { %7433 = vrot.lane.b32.xlu1 %v16670_v42, %s11670_s3  ;;  %v8667_v37 = vadd.f32 %v14893_v15, %v8612_v32  ;;  %v15469_v18 = vpop.permute.xlu1 %8083  ;;  %v7985_v25 = vadd.f32 %v7876_v13, %v7697_v36  ;;  %v16673_v15 = vld [vmem:[#allocation78_spill] sm:$0xff] }
 0x65d   :  { %11555 = vpow2.f32 %v10365_v26  ;;  %v7021_v33 = vadd.f32 %v15178_v34, %v16673_v15  ;;  %v6693_v41 = vpop.f32.mrb[64].mxu1  ;;  %v7313_v34 = vadd.f32 %v15389_v8, %v7024_v24  ;;  %v16676_v8 = vld [vmem:[#allocation160_spill] sm:$0xff]  ;;  %v16679_v24 = vld [vmem:[#allocation71_spill] sm:$0xff] }
 0x65e   :  { %v10366_v2 = vmul.f32 -1.442695, %v8667_v37  ;;  %v8523_v20 = vrot.slane %v6693_v41, 2  ;;  %v6695_v4 = vpop.f32.mrb[65].mxu1  ;;  %v11554_v39 = vpop.eup %11553 }
 0x65f   :  { %7435 = vrot.lane.b32.xlu0 %v16671_v46, %s11670_s3  ;;  %v7210_v59 = vpop.permute.xlu0 %7209  ;;  %v7310_v43 = vadd.f32 %v15215_v10, %v7021_v33  ;;  %v6696_v42 = vpop.f32.mrb[66].mxu1  ;;  %v8857_v13 = vadd.f32 1.0, %v11554_v39 }
 0x660   :  { %8103 = vrot.lane.b32.xlu1 %v16672_v22, %s11669_s11  ;;  %11557 = vpow2.f32 %v10366_v2  ;;  %v7418_v27 = vpop.permute.xlu1 %7417  ;;  %v7315_v1 = vadd.f32 %v7210_v59, %v7026_v58  ;;  %v8525_v57 = vrot.slane %v6696_v42, 2  ;;  %v6698_v12 = vpop.f32.mrb[67].mxu1  ;;  %v15498_v36 = vsel %vm7052_vm2, %v8522_v35, %v8523_v20  ;;  %v16677_v2 = vld [vmem:[#allocation8_spill] sm:$0xff] }
 0x661   :  { %v15487_v32 = vadd.f32 %v7418_v27, %v7314_v40  ;;  %v7520_v10 = vadd.f32 %v15346_v45, %v7310_v43  ;;  %v15505_v58 = vrot.slane %v16676_v8, 1  ;;  %v7023_v22 = vadd.f32 %v15293_v28, %v16677_v2  ;;  %v16678_v45 = vld [vmem:[#allocation159_spill] sm:$0xff] }
 0x662   :  { %v15502_v46 = vsel %vm7052_vm2, %v8523_v20, %v8525_v57  ;;  %11559 = vrcp.f32 %v8857_v13  ;;  %v16682_v2 = vld [vmem:[#allocation163_spill] sm:$0xff] }
 0x663   :  { %8296 = vrot.lane.b32.xlu0 %v15479_v60, %s11670_s3  ;;  %v7416_v26 = vpop.permute.xlu0 %7415  ;;  %v7312_v17 = vadd.f32 %v15337_v53, %v7023_v22  ;;  %v7696_v40 = vadd.f32 %v16679_v24, %v7520_v10  ;;  %v15525_v53 = vsel %vm1275_vm1, %v15479_v60, %v15505_v58 }
 0x664   :  { %7897 = vrot.lane.b32.xlu1 %v16675_v48, %s11668_s2  ;;  %v6923_v37 = vpop.permute.xlu1 %6922  ;;  %v7523_v9 = vadd.f32 %v7416_v26, %v7313_v34  ;;  %v16680_v26 = vld [vmem:[#allocation23_spill] sm:$0xff] }
 0x665   :  { %v7027_v15 = vadd.f32 %v6923_v37, %v16574_v38  ;;  %v6701_v59 = vpop.f32.mrb[68].mxu1  ;;  %v7984_v38 = vadd.f32 %v15377_v21, %v7696_v40  ;;  %v7522_v39 = vadd.f32 %v15392_v44, %v7312_v17 }
 0x666   :  { %v6702_v28 = vpop.f32.mrb[69].mxu1  ;;  %v7699_v21 = vadd.f32 %v14960_v63, %v7523_v9  ;;  %v16684_v59 = vld [vmem:[#allocation167_spill] sm:$0xff] }
 0x667   :  { %8105 = vrot.lane.b32.xlu0 %v16676_v8, %s11669_s11  ;;  %v11556_v33 = vpop.eup %11555  ;;  %v8086_v41 = vpop.permute.xlu0 %8085  ;;  %v8194_v57 = vadd.f32 %v15469_v18, %v7984_v38  ;;  %v7698_v13 = vadd.f32 %v16680_v26, %v7522_v39  ;;  %v16681_v8 = vld [vmem:[#allocation161_spill] sm:$0xff]  ;;  %v16683_v18 = vrot.slane %v15277_v47, 2  ;;  %v16685_v28 = vld [vmem:[#allocation166_spill] sm:$0xff] }
 0x668   :  { %7437 = vrot.lane.b32.xlu1 %v16678_v45, %s11670_s3  ;;  %v8858_v20 = vadd.f32 1.0, %v11556_v33  ;;  %v7212_v27 = vpop.permute.xlu1 %7211  ;;  %v15516_v4 = vadd.f32 %v8086_v41, %v7985_v25  ;;  %v15529_v42 = vpop.f32.mrb[70].mxu1 }
 0x669   :  { %v15520_v43 = vadd.f32 %v7212_v27, %v7027_v15  ;;  %v6705_v44 = vpop.f32.mrb[71].mxu1  ;;  %v8527_v63 = vrot.slane %v15529_v42, 2  ;;  %v7986_v9 = vadd.f32 %v15457_v5, %v7698_v13 }
 0x66a   :  { %v11558_v34 = vpop.eup %11557  ;;  %11561 = vrcp.f32 %v8858_v20 }
 0x66b   :  { %8300 = vrot.lane.b32.xlu0 %v15505_v58, %s11670_s3  ;;  %v8859_v25 = vadd.f32 1.0, %v11558_v34  ;;  %v7880_v48 = vpop.permute.xlu0 %7879 }
 0x66c   :  { %8298 = vrot.lane.b32.xlu1 %v15525_v53, %s11670_s3  ;;  %v8279_v12 = vpop.permute.xlu1 %8278  ;;  %v15535_v10 = vadd.f32 %v7880_v48, %v7699_v21  ;;  %v11560_v27 = vpop.eup %11559  ;;  %v16686_v21 = vld [vmem:[#allocation110_spill] sm:$0xff] }
 0x66d   :  { %11563 = vrcp.f32 %v8859_v25  ;;  %v8389_v37 = vadd.f32 %v8279_v12, %v8194_v57  ;;  %v6708_v45 = vpop.f32.mrb[72].mxu1  ;;  %v9070_v57 = vrot.slane %v11560_v27, 7  ;;  %v15562_v12 = vld [vmem:[%s15940_s4] ss:$0 sm:$0xff]  ;;  %v16690_v27 = vld [vmem:[#allocation169_spill] sm:$0xff] }
 0x66e   :  { %v8528_v24 = vrot.slane %v6708_v45, 2  ;;  %v6710_v40 = vpop.f32.mrb[73].mxu1 }
 0x66f   :  { %7899 = vrot.lane.b32.xlu0 %v16681_v8, %s11668_s2  ;;  %v8613_v22 = vadd.f32 %v16683_v18, %v8389_v37  ;;  %v7420_v15 = vpop.permute.xlu0 %7419  ;;  %v6711_v20 = vpop.f32.mrb[74].mxu1  ;;  %v16687_v37 = vld [vmem:[#allocation171_spill] sm:$0xff]  ;;  %v16688_v8 = vrot.slane %v16684_v59, 1 }
 0x670   :  { %7901 = vrot.lane.b32.xlu1 %v16682_v2, %s11668_s2  ;;  %v8088_v33 = vpop.permute.xlu1 %8087  ;;  %v7525_v17 = vadd.f32 %v7420_v15, %v7315_v1  ;;  %v8530_v38 = vrot.slane %v6711_v20, 2  ;;  %v15553_v47 = vsel %vm7052_vm2, %v8527_v63, %v8528_v24  ;;  %v6713_v5 = vpop.f32.mrb[75].mxu1 }
 0x671   :  { %v8196_v41 = vadd.f32 %v8088_v33, %v7986_v9  ;;  %v8668_v26 = vadd.f32 %v15562_v12, %v8613_v22 }
 0x672   :  { %v15557_v25 = vsel %vm7052_vm2, %v8528_v24, %v8530_v38  ;;  %v7700_v38 = vadd.f32 %v15030_v6, %v15487_v32  ;;  %v16692_v32 = vrot.slane %v16690_v27, 1 }
 0x673   :  { %8109 = vrot.lane.b32.xlu0 %v16684_v59, %s11669_s11  ;;  %v6925_v39 = vpop.permute.xlu0 %6924  ;;  %v10367_v24 = vmul.f32 -1.442695, %v8668_v26  ;;  %v16689_v59 = vcombine.high %v15064_v0, %v15159_v52 }
 0x674   :  { %8107 = vrot.lane.b32.xlu1 %v16685_v28, %s11669_s11  ;;  %v11562_v1 = vpop.eup %11561  ;;  %v6927_v34 = vpop.permute.xlu1 %6926  ;;  %v7028_v44 = vadd.f32 %v6925_v39, %v16686_v21 }
 0x675   :  { %v9071_v48 = vrot.slane %v11562_v1, 7  ;;  %v7029_v13 = vadd.f32 %v6927_v34, %v16580_v23  ;;  %11565 = vpow2.f32 %v10367_v24 }
 0x677   :  { %8304 = vrot.lane.b32.xlu0 %v16687_v37, %s11670_s3  ;;  %v11564_v2 = vpop.eup %11563  ;;  %v7214_v9 = vpop.permute.xlu0 %7213  ;;  %v15572_v18 = vsel %vm9019_vm3, %v9070_v57, %v9071_v48  ;;  %v7701_v57 = vadd.f32 %v14981_v31, %v7525_v17  ;;  %v16694_v17 = vld [vmem:[#allocation20_spill] sm:$0xff] }
 0x678   :  { %8302 = vrot.lane.b32.xlu1 %v16688_v8, %s11670_s3  ;;  %v9073_v15 = vrot.slane %v11564_v2, 7  ;;  %v8283_v45 = vpop.permute.xlu1 %8282  ;;  %v7317_v33 = vadd.f32 %v7214_v9, %v7028_v44  ;;  %v9268_v22 = vcombine.low %v15305_v7, %v15572_v18  ;;  %v9269_v23 = vcombine.high %v15305_v7, %v15572_v18 }
 0x679   :  { %v8391_v40 = vadd.f32 %v8283_v45, %v8196_v41  ;;  %v16693_v9 = vcombine.low %v15073_v54, %v15162_v29 }
 0x67a   :  { %v15583_v20 = vsel %vm9019_vm3, %v9071_v48, %v9073_v15 }
 0x67b   :  { %9678 = vrot.lane.b32.xlu0 %v16689_v59, %s11670_s3  ;;  %v8615_v28 = vadd.f32 %v15326_v51, %v8391_v40  ;;  %v8281_v5 = vpop.permute.xlu0 %8280  ;;  %v9540_v41 = vcombine.low %v15320_v49, %v15583_v20  ;;  %v9541_v39 = vcombine.high %v15320_v49, %v15583_v20  ;;  %v16691_v51 = vcombine.high %v15086_v56, %v15172_v61  ;;  %v16695_v40 = vld [vmem:[#allocation14_spill] sm:$0xff] }
 0x67c   :  { %8111 = vrot.lane.b32.xlu1 %v16690_v27, %s11669_s11  ;;  %v7882_v1 = vpop.permute.xlu1 %7881  ;;  %v8390_v34 = vadd.f32 %v8281_v5, %v15516_v4  ;;  %v16696_v59 = vcombine.low %v16694_v17, %v16695_v40 }
 0x67d   :  { %v8670_v21 = vadd.f32 %v15562_v12, %v8615_v28  ;;  %v7988_v44 = vadd.f32 %v7882_v1, %v7700_v38  ;;  %v16697_v1 = vcombine.high %v15073_v54, %v15162_v29 }
 0x67e   :  { %v8614_v6 = vadd.f32 %v15317_v11, %v8390_v34 }
 0x67f   :  { %9702 = vrot.lane.b32.xlu0 %v16691_v51, %s11670_s3  ;;  %v10369_v48 = vmul.f32 -1.442695, %v8670_v21  ;;  %v7884_v26 = vpop.permute.xlu0 %7883  ;;  %v11566_v27 = vpop.eup %11565 }
 0x680   :  { %8306 = vrot.lane.b32.xlu1 %v16692_v32, %s11670_s3  ;;  %v8669_v4 = vadd.f32 %v15562_v12, %v8614_v6  ;;  %v7216_v37 = vpop.permute.xlu1 %7215  ;;  %v7989_v8 = vadd.f32 %v7884_v26, %v7701_v57  ;;  %v8860_v34 = vadd.f32 1.0, %v11566_v27  ;;  %v16698_v32 = vld [vmem:[#allocation121_spill] sm:$0xff] }
 0x681   :  { %11567 = vpow2.f32 %v10369_v48  ;;  %v7318_v2 = vadd.f32 %v7216_v37, %v7029_v13  ;;  %v16700_v37 = vld [vmem:[#allocation73_spill] sm:$0xff] }
 0x682   :  { %v10368_v11 = vmul.f32 -1.442695, %v8669_v4 }
 0x683   :  { %9686 = vrot.lane.b32.xlu0 %v16693_v9, %s11669_s11  ;;  %v8090_v15 = vpop.permute.xlu0 %8089  ;;  %v16701_v9 = vcombine.high %v15129_v16, %v16700_v37 }
 0x684   :  { %11569 = vpow2.f32 %v10368_v11  ;;  %v7422_v45 = vpop.permute.xlu1 %7421  ;;  %v8197_v24 = vadd.f32 %v8090_v15, %v15535_v10 }
 0x685   :  { %v7526_v31 = vadd.f32 %v7422_v45, %v15520_v43  ;;  %11571 = vrcp.f32 %v8860_v34 }
 0x687   :  { %9710 = vrot.lane.b32.xlu0 %v16696_v59, %s11669_s11  ;;  %v7424_v13 = vpop.permute.xlu0 %7423  ;;  %v7702_v43 = vadd.f32 %v15054_v50, %v7526_v31  ;;  %v16702_v31 = vld [vmem:[#allocation125_spill] sm:$0xff]  ;;  %v16704_v59 = vld [vmem:[#allocation15_spill] sm:$0xff] }
 0x688   :  { %v8092_v28 = vpop.permute.xlu1 %8091  ;;  %v15616_v38 = vadd.f32 %v7424_v13, %v7317_v33  ;;  %v16699_v33 = vcombine.high %v16694_v17, %v16695_v40  ;;  %v16703_v40 = vld [vmem:[#allocation96_spill] sm:$0xff]  ;;  %v16706_v13 = vld [vmem:[#allocation79_spill] sm:$0xff] }
 0x689   :  { %v8198_v5 = vadd.f32 %v8092_v28, %v7988_v44  ;;  %v16705_v27 = vcombine.high %v16703_v40, %v16704_v59  ;;  %v16707_v28 = vrot.slane %v16706_v13, 2  ;;  %v16715_v13 = vld [vmem:[#allocation13_spill] sm:$0xff] }
 0x68b   :  { %9694 = vrot.lane.b32.xlu0 %v16697_v1, %s11668_s2  ;;  %v11568_v10 = vpop.eup %11567 }
 0x68c   :  { %v6929_v21 = vpop.permute.xlu0 %6928  ;;  %v8862_v51 = vadd.f32 1.0, %v11568_v10 }
 0x68d   :  { %v7030_v57 = vadd.f32 %v6929_v21, %v16698_v32  ;;  %v16709_v32 = vld [vmem:[#allocation84_spill] sm:$0xff] }
 0x68e   :  { %v7886_v6 = vpop.permute.xlu1 %7885  ;;  %v11570_v44 = vpop.eup %11569  ;;  %11573 = vrcp.f32 %v8862_v51 }
 0x68f   :  { %v15624_v48 = vadd.f32 %v7886_v6, %v7702_v43  ;;  %9718 = vrot.lane.b32.xlu0 %v16699_v33, %s11668_s2  ;;  %v8861_v54 = vadd.f32 1.0, %v11570_v44 }
 0x691   :  { %v7218_v29 = vpop.permute.xlu0 %7217  ;;  %11575 = vrcp.f32 %v8861_v54 }
 0x692   :  { %v7426_v26 = vpop.permute.xlu1 %7425  ;;  %v15630_v4 = vadd.f32 %v7218_v29, %v7030_v57 }
 0x693   :  { %v7528_v50 = vadd.f32 %v7426_v26, %v7318_v2  ;;  %9726 = vrot.lane.b32.xlu0 %v16701_v9, %s11670_s3  ;;  %v11572_v2 = vpop.eup %11571 }
 0x694   :  { %v9075_v29 = vrot.slane %v11572_v2, 7  ;;  %v16716_v2 = vld [vmem:[#allocation28_spill] sm:$0xff] }
 0x695   :  { %v8285_v11 = vpop.permute.xlu0 %8284 }
 0x696   :  { %v6931_v15 = vpop.permute.xlu1 %6930  ;;  %v8392_v45 = vadd.f32 %v8285_v11, %v8197_v24  ;;  %v16708_v24 = vld [vmem:[#allocation70_spill] sm:$0xff] }
 0x697   :  { %v7031_v17 = vadd.f32 %v6931_v15, %v16702_v31  ;;  %9750 = vrot.lane.b32.xlu0 %v16705_v27, %s11670_s3  ;;  %v16710_v57 = vcombine.low %v16708_v24, %v16709_v32  ;;  %v16711_v15 = vld [vmem:[#allocation130_spill] sm:$0xff]  ;;  %v16713_v27 = vld [vmem:[#allocation116_spill] sm:$0xff] }
 0x698   :  { %v8616_v1 = vadd.f32 %v16707_v28, %v8392_v45  ;;  %v11574_v51 = vpop.eup %11573  ;;  %v15659_v28 = vrot.slane %v9268_v22, %v16715_v13  ;;  %v15672_v22 = vrot.slane %v9269_v23, %v16715_v13  ;;  %v16719_v23 = vld [vmem:[#allocation74_spill] sm:$0xff] }
 0x699   :  { %v8094_v34 = vpop.permute.xlu0 %8093  ;;  %v9078_v26 = vrot.slane %v11574_v51, 7 }
 0x69a   :  { %v8671_v10 = vadd.f32 %v15562_v12, %v8616_v1  ;;  %v7220_v43 = vpop.permute.xlu1 %7219  ;;  %v8199_v21 = vadd.f32 %v8094_v34, %v7989_v8  ;;  %v16712_v8 = vld [vmem:[#allocation6_spill] sm:$0xff] }
 0x69b   :  { %v15644_v6 = vadd.f32 %v7220_v43, %v7031_v17  ;;  %9734 = vrot.lane.b32.xlu0 %v16710_v57, %s11669_s11  ;;  %v11576_v44 = vpop.eup %11575  ;;  %v16714_v17 = vcombine.low %v16712_v8, %v16713_v27  ;;  %v16717_v43 = vld [vmem:[#allocation104_spill] sm:$0xff] }
 0x69c   :  { %v10370_v33 = vmul.f32 -1.442695, %v8671_v10  ;;  %v9076_v9 = vrot.slane %v11576_v44, 7  ;;  %v7704_v10 = vadd.f32 %v16716_v2, %v7528_v50  ;;  %v15678_v50 = vrot.slane %v9540_v41, %v16715_v13  ;;  %v16720_v41 = vld [vmem:[#allocation72_spill] sm:$0xff] }
 0x69d   :  { %v6933_v54 = vpop.permute.xlu0 %6932 }
 0x69e   :  { %v8287_v11 = vpop.permute.xlu1 %8286  ;;  %v7032_v45 = vadd.f32 %v6933_v54, %v16711_v15  ;;  %v9077_v1 = vsel %vm9019_vm3, %v9075_v29, %v9076_v9  ;;  %v9079_v34 = vsel %vm9019_vm3, %v9076_v9, %v9078_v26  ;;  %11577 = vpow2.f32 %v10370_v33 }
 0x69f   :  { %v8393_v31 = vadd.f32 %v8287_v11, %v8198_v5  ;;  %9758 = vrot.lane.b32.xlu0 %v16714_v17, %s11669_s11  ;;  %v9284_v57 = vcombine.low %v15451_v3, %v9077_v1  ;;  %v9285_v44 = vcombine.high %v15451_v3, %v9077_v1  ;;  %v9556_v54 = vcombine.low %v15454_v30, %v9079_v34 }
 0x6a0   :  { %v9557_v33 = vcombine.high %v15454_v30, %v9079_v34  ;;  %v7703_v9 = vadd.f32 %v16720_v41, %v15616_v38 }
 0x6a1   :  { %v8617_v5 = vadd.f32 %v16717_v43, %v8393_v31  ;;  %v8289_v51 = vpop.permute.xlu0 %8288  ;;  %v15687_v7 = vrot.slane %v9284_v57, %v16715_v13  ;;  %v15690_v18 = vrot.slane %v9285_v44, %v16715_v13  ;;  %v15696_v30 = vrot.slane %v9556_v54, %v16715_v13 }
 0x6a2   :  { %v7890_v11 = vpop.permute.xlu1 %7889  ;;  %v8394_v15 = vadd.f32 %v8289_v51, %v8199_v21  ;;  %v16718_v21 = vcombine.high %v16708_v24, %v16709_v32  ;;  %v15699_v31 = vrot.slane %v9557_v33, %v16715_v13  ;;  %v16721_v57 = vcombine.high %v16712_v8, %v16713_v27  ;;  %v16727_v32 = vld [vmem:[#allocation43_spill] sm:$0xff] }
 0x6a3   :  { %v8672_v3 = vadd.f32 %v15562_v12, %v8617_v5  ;;  %v7992_v29 = vadd.f32 %v7890_v11, %v7704_v10  ;;  %v15721_v44 = vrot.slane %v9541_v39, %v16715_v13 }
 0x6a4   :  { %9742 = vrot.lane.b32.xlu0 %v16718_v21, %s11668_s2  ;;  %v8618_v26 = vadd.f32 %v16719_v23, %v8394_v15 }
 0x6a5   :  { %v10371_v17 = vmul.f32 -1.442695, %v8672_v3  ;;  %v7888_v24 = vpop.permute.xlu0 %7887 }
 0x6a6   :  { %v8673_v2 = vadd.f32 %v15562_v12, %v8618_v26  ;;  %v8096_v38 = vpop.permute.xlu1 %8095  ;;  %v7991_v10 = vadd.f32 %v7888_v24, %v7703_v9 }
 0x6a7   :  { %11579 = vpow2.f32 %v10371_v17  ;;  %v8200_v51 = vadd.f32 %v8096_v38, %v15624_v48 }
 0x6a8   :  { %9766 = vrot.lane.b32.xlu0 %v16721_v57, %s11668_s2  ;;  %v10372_v54 = vmul.f32 -1.442695, %v8673_v2  ;;  %v11578_v3 = vpop.eup %11577  ;;  %v16722_v57 = vrot.slane %v15397_v55, 2 }
 0x6a9   :  { %v7222_v11 = vpop.permute.xlu0 %7221  ;;  %v8863_v49 = vadd.f32 1.0, %v11578_v3 }
 0x6aa   :  { %11581 = vpow2.f32 %v10372_v54  ;;  %v15729_v8 = vpop.permute.xlu1 %7429  ;;  %v7321_v27 = vadd.f32 %v7222_v11, %v7032_v45 }
 0x6ab   :  { %11583 = vrcp.f32 %v8863_v49 }
 0x6ad   :  { %v7428_v21 = vpop.permute.xlu0 %7427 }
 0x6ae   :  { %v15731_v20 = vpop.permute.xlu1 %6934 }
 0x6b1   :  { %v11580_v39 = vpop.eup %11579  ;;  %v8098_v23 = vpop.permute.xlu0 %8097 }
 0x6b2   :  { %v8864_v26 = vadd.f32 1.0, %v11580_v39  ;;  %v15733_v41 = vpop.permute.xlu1 %7223 }
 0x6b4   :  { %v11582_v9 = vpop.eup %11581  ;;  %11585 = vrcp.f32 %v8864_v26 }
 0x6b5   :  { %v8865_v17 = vadd.f32 1.0, %v11582_v9  ;;  %v7892_v24 = vpop.permute.xlu0 %7891  ;;  %v11584_v33 = vpop.eup %11583 }
 0x6b6   :  { %v8291_v2 = vpop.permute.xlu1 %8290  ;;  %v9080_v5 = vrot.slane %v11584_v33, 7 }
 0x6b7   :  { %11587 = vrcp.f32 %v8865_v17  ;;  %v8395_v38 = vadd.f32 %v8291_v2, %v8200_v51 }
 0x6b9   :  { %v8619_v45 = vadd.f32 %v16722_v57, %v8395_v38  ;;  %v7432_v54 = vpop.permute.xlu0 %7431 }
 0x6ba   :  { %v8100_v11 = vpop.permute.xlu1 %8099  ;;  %v7531_v3 = vadd.f32 %v7432_v54, %v7321_v27  ;;  %v8201_v27 = vadd.f32 %v8098_v23, %v7991_v10  ;;  %v16723_v23 = vld [vmem:[#allocation91_spill] sm:$0xff] }
 0x6bb   :  { %v8202_v48 = vadd.f32 %v8100_v11, %v7992_v29  ;;  %v8674_v26 = vadd.f32 %v15562_v12, %v8619_v45 }
 0x6bd   :  { %v6937_v15 = vpop.permute.xlu0 %6936  ;;  %v10373_v38 = vmul.f32 -1.442695, %v8674_v26 }
 0x6be   :  { %v11586_v49 = vpop.eup %11585  ;;  %v15737_v39 = vpop.permute.xlu1 %6938 }
 0x6bf   :  { %v9081_v43 = vrot.slane %v11586_v49, 7  ;;  %11589 = vpow2.f32 %v10373_v38 }
 0x6c1   :  { %v11588_v9 = vpop.eup %11587  ;;  %v15741_v17 = vsel %vm9019_vm3, %v9080_v5, %v9081_v43  ;;  %v7226_v51 = vpop.permute.xlu0 %7225 }
 0x6c2   :  { %v9083_v55 = vrot.slane %v11588_v9, 7  ;;  %v8295_v2 = vpop.permute.xlu1 %8294 }
 0x6c3   :  { %v8397_v57 = vadd.f32 %v8295_v2, %v8202_v48 }
 0x6c4   :  { %v15744_v29 = vsel %vm9019_vm3, %v9081_v43, %v9083_v55  ;;  %v7529_v43 = vadd.f32 %v7428_v21, %v15630_v4 }
 0x6c5   :  { %v8621_v54 = vadd.f32 %v15443_v14, %v8397_v57  ;;  %v8293_v11 = vpop.permute.xlu0 %8292 }
 0x6c6   :  { %v7894_v33 = vpop.permute.xlu1 %7893  ;;  %v8396_v49 = vadd.f32 %v8293_v11, %v8201_v27  ;;  %v7705_v55 = vadd.f32 %v16723_v23, %v7529_v43 }
 0x6c7   :  { %v8676_v45 = vadd.f32 %v15562_v12, %v8621_v54 }
 0x6c8   :  { %v8620_v5 = vadd.f32 %v15437_v19, %v8396_v49  ;;  %v7993_v57 = vadd.f32 %v7892_v24, %v7705_v55  ;;  %v7530_v49 = vadd.f32 %v15729_v8, %v15644_v6  ;;  %v16725_v24 = vld [vmem:[#allocation108_spill] sm:$0xff] }
 0x6c9   :  { %v10375_v34 = vmul.f32 -1.442695, %v8676_v45  ;;  %v7896_v1 = vpop.permute.xlu0 %7895  ;;  %v11590_v2 = vpop.eup %11589 }
 0x6ca   :  { %v8675_v9 = vadd.f32 %v15562_v12, %v8620_v5  ;;  %v15750_v26 = vpop.permute.xlu1 %7227  ;;  %v8866_v19 = vadd.f32 1.0, %v11590_v2  ;;  %v7706_v23 = vadd.f32 %v16725_v24, %v7530_v49 }
 0x6cb   :  { %11591 = vpow2.f32 %v10375_v34 }
 0x6cc   :  { %v10374_v10 = vmul.f32 -1.442695, %v8675_v9  ;;  %v16724_v9 = vld [vmem:[#allocation92_spill] sm:$0xff]  ;;  %v7994_v8 = vadd.f32 %v7894_v33, %v7706_v23 }
 0x6cd   :  { %v8102_v48 = vpop.permute.xlu0 %8101 }
 0x6ce   :  { %11593 = vpow2.f32 %v10374_v10  ;;  %v7434_v14 = vpop.permute.xlu1 %7433  ;;  %v8203_v54 = vadd.f32 %v8102_v48, %v7993_v57  ;;  %v7707_v10 = vadd.f32 %v16724_v9, %v7531_v3  ;;  %v7033_v3 = vadd.f32 %v15731_v20, %v16727_v32 }
 0x6cf   :  { %11595 = vrcp.f32 %v8866_v19 }
 0x6d0   :  { %v7995_v2 = vadd.f32 %v7896_v1, %v7707_v10 }
 0x6d1   :  { %v7436_v38 = vpop.permute.xlu0 %7435 }
 0x6d2   :  { %v8104_v27 = vpop.permute.xlu1 %8103 }
 0x6d3   :  { %v8204_v62 = vadd.f32 %v8104_v27, %v7994_v8 }
 0x6d5   :  { %v11592_v11 = vpop.eup %11591  ;;  %v8297_v45 = vpop.permute.xlu0 %8296 }
 0x6d6   :  { %v8868_v34 = vadd.f32 1.0, %v11592_v11  ;;  %v7898_v5 = vpop.permute.xlu1 %7897  ;;  %v8398_v4 = vadd.f32 %v8297_v45, %v8203_v54  ;;  %v16726_v11 = vld [vmem:[#allocation142_spill] sm:$0xff] }
 0x6d7   :  { %v7034_v54 = vadd.f32 %v6937_v15, %v16726_v11 }
 0x6d8   :  { %v11594_v21 = vpop.eup %11593  ;;  %v8622_v43 = vadd.f32 %v8522_v35, %v8398_v4  ;;  %11597 = vrcp.f32 %v8868_v34 }
 0x6d9   :  { %v8867_v55 = vadd.f32 1.0, %v11594_v21  ;;  %v8106_v48 = vpop.permute.xlu0 %8105  ;;  %v7323_v34 = vadd.f32 %v7226_v51, %v7034_v54  ;;  %v7322_v21 = vadd.f32 %v15733_v41, %v7033_v3  ;;  %v11596_v24 = vpop.eup %11595 }
 0x6da   :  { %v8677_v57 = vadd.f32 %v15562_v12, %v8622_v43  ;;  %v7438_v6 = vpop.permute.xlu1 %7437  ;;  %v8205_v19 = vadd.f32 %v8106_v48, %v7995_v2  ;;  %v9085_v48 = vrot.slane %v11596_v24, 7 }
 0x6db   :  { %11599 = vrcp.f32 %v8867_v55  ;;  %v7533_v9 = vadd.f32 %v7436_v38, %v7323_v34  ;;  %v7532_v10 = vadd.f32 %v7434_v14, %v7322_v21  ;;  %v16728_v38 = vld [vmem:[#allocation146_spill] sm:$0xff] }
 0x6dc   :  { %v10376_v45 = vmul.f32 -1.442695, %v8677_v57  ;;  %v7035_v2 = vadd.f32 %v15737_v39, %v16728_v38 }
 0x6dd   :  { %v8301_v35 = vpop.permute.xlu0 %8300  ;;  %v7709_v55 = vadd.f32 %v15525_v53, %v7533_v9 }
 0x6de   :  { %v8299_v4 = vpop.permute.xlu1 %8298  ;;  %v8400_v49 = vadd.f32 %v8301_v35, %v8205_v19  ;;  %11601 = vpow2.f32 %v10376_v45  ;;  %v7324_v45 = vadd.f32 %v15750_v26, %v7035_v2 }
 0x6df   :  { %v8399_v1 = vadd.f32 %v8299_v4, %v8204_v62 }
 0x6e0   :  { %v8624_v33 = vadd.f32 %v15502_v46, %v8400_v49  ;;  %v7708_v46 = vadd.f32 %v15479_v60, %v7532_v10  ;;  %v7534_v62 = vadd.f32 %v7438_v6, %v7324_v45 }
 0x6e1   :  { %v8623_v15 = vadd.f32 %v15498_v36, %v8399_v1  ;;  %v7900_v43 = vpop.permute.xlu0 %7899 }
 0x6e2   :  { %v8679_v23 = vadd.f32 %v15562_v12, %v8624_v33  ;;  %v7902_v32 = vpop.permute.xlu1 %7901  ;;  %v11598_v20 = vpop.eup %11597  ;;  %v7997_v11 = vadd.f32 %v7900_v43, %v7709_v55  ;;  %v7996_v19 = vadd.f32 %v7898_v5, %v7708_v46  ;;  %v7710_v26 = vadd.f32 %v15505_v58, %v7534_v62 }
 0x6e3   :  { %v8678_v51 = vadd.f32 %v15562_v12, %v8623_v15  ;;  %v9088_v57 = vrot.slane %v11598_v20, 7 }
 0x6e4   :  { %v10378_v27 = vmul.f32 -1.442695, %v8679_v23  ;;  %v7998_v43 = vadd.f32 %v7902_v32, %v7710_v26 }
 0x6e5   :  { %v11600_v41 = vpop.eup %11599  ;;  %v10377_v14 = vmul.f32 -1.442695, %v8678_v51  ;;  %v8110_v36 = vpop.permute.xlu0 %8109 }
 0x6e6   :  { %v9086_v8 = vrot.slane %v11600_v41, 7  ;;  %11603 = vpow2.f32 %v10378_v27  ;;  %v8108_v54 = vpop.permute.xlu1 %8107  ;;  %v8207_v39 = vadd.f32 %v8110_v36, %v7997_v11  ;;  %v16729_v36 = vcombine.low %v15064_v0, %v15159_v52 }
 0x6e7   :  { %11605 = vpow2.f32 %v10377_v14  ;;  %v8206_v60 = vadd.f32 %v8108_v54, %v7996_v19  ;;  %v16730_v52 = vcombine.low %v15086_v56, %v15172_v61 }
 0x6e8   :  { %v15775_v53 = vsel %vm9019_vm3, %v9085_v48, %v9086_v8  ;;  %v15778_v3 = vsel %vm9019_vm3, %v9086_v8, %v9088_v57  ;;  %v11602_v34 = vpop.eup %11601 }
 0x6e9   :  { %v8305_v35 = vpop.permute.xlu0 %8304  ;;  %v8869_v9 = vadd.f32 1.0, %v11602_v34 }
 0x6ea   :  { %v8303_v4 = vpop.permute.xlu1 %8302  ;;  %v8402_v49 = vadd.f32 %v8305_v35, %v8207_v39 }
 0x6eb   :  { %v8401_v21 = vadd.f32 %v8303_v4, %v8206_v60  ;;  %11607 = vrcp.f32 %v8869_v9 }
 0x6ec   :  { %v8626_v1 = vadd.f32 %v15553_v47, %v8402_v49 }
 0x6ed   :  { %v8625_v5 = vadd.f32 %v8527_v63, %v8401_v21  ;;  %v9679_v33 = vpop.permute.xlu0 %9678 }
 0x6ee   :  { %v8681_v10 = vadd.f32 %v15562_v12, %v8626_v1  ;;  %v8112_v15 = vpop.permute.xlu1 %8111  ;;  %v9773_v57 = vsel %vm9772_vm4, %v16729_v36, %v9679_v33  ;;  %v16735_v36 = vcombine.low %v15129_v16, %v16700_v37 }
 0x6ef   :  { %v8680_v6 = vadd.f32 %v15562_v12, %v8625_v5  ;;  %v8208_v47 = vadd.f32 %v8112_v15, %v7998_v43 }
 0x6f0   :  { %v11604_v24 = vpop.eup %11603  ;;  %v10380_v23 = vmul.f32 -1.442695, %v8681_v10 }
 0x6f1   :  { %v11606_v20 = vpop.eup %11605  ;;  %v8871_v51 = vadd.f32 1.0, %v11604_v24  ;;  %v10379_v27 = vmul.f32 -1.442695, %v8680_v6  ;;  %v9703_v55 = vpop.permute.xlu0 %9702 }
 0x6f2   :  { %v8870_v41 = vadd.f32 1.0, %v11606_v20  ;;  %11609 = vpow2.f32 %v10380_v23  ;;  %v8307_v58 = vpop.permute.xlu1 %8306  ;;  %v9781_v35 = vsel %vm9772_vm4, %v16730_v52, %v9703_v55  ;;  %v16731_v55 = vld [vmem:[#allocation67_spill] sm:$0xff] }
 0x6f3   :  { %11611 = vrcp.f32 %v8871_v51  ;;  %v8403_v42 = vadd.f32 %v8307_v58, %v8208_v47  ;;  %v16733_v58 = vcombine.low %v15672_v22, %v15690_v18 }
 0x6f4   :  { %11613 = vrcp.f32 %v8870_v41 }
 0x6f5   :  { %11615 = vpow2.f32 %v10379_v27  ;;  %v8627_v63 = vadd.f32 %v15557_v25, %v8403_v42  ;;  %v9687_v32 = vpop.permute.xlu0 %9686  ;;  %v11608_v46 = vpop.eup %11607  ;;  %v15825_v42 = vrot.slane %v16733_v58, %v16731_v55 }
 0x6f6   :  { %v9776_v25 = vsel %vm9775_vm5, %v9773_v57, %v9687_v32  ;;  %v9090_v62 = vrot.slane %v11608_v46, 7 }
 0x6f7   :  { %v8682_v48 = vadd.f32 %v15562_v12, %v8627_v63  ;;  %v16734_v63 = vcombine.high %v15659_v28, %v15687_v7 }
 0x6f9   :  { %v10381_v38 = vmul.f32 -1.442695, %v8682_v48  ;;  %v9711_v2 = vpop.permute.xlu0 %9710  ;;  %v15831_v32 = vrot.slane %v16734_v63, %v16731_v55 }
 0x6fa   :  { %v9783_v49 = vsel %vm9775_vm5, %v9781_v35, %v9711_v2 }
 0x6fb   :  { %11617 = vpow2.f32 %v10381_v38 }
 0x6fc   :  { %v11610_v14 = vpop.eup %11609 }
 0x6fd   :  { %v11612_v8 = vpop.eup %11611  ;;  %v8873_v11 = vadd.f32 1.0, %v11610_v14  ;;  %v9695_v54 = vpop.permute.xlu0 %9694 }
 0x6fe   :  { %v11614_v45 = vpop.eup %11613  ;;  %v9093_v12 = vrot.slane %v11612_v8, 7  ;;  %v9779_v19 = vsel %vm9778_vm6, %v9776_v25, %v9695_v54 }
 0x6ff   :  { %v11616_v39 = vpop.eup %11615  ;;  %v9091_v60 = vrot.slane %v11614_v45, 7  ;;  %11619 = vrcp.f32 %v8873_v11  ;;  %9799 = vst [vmem:[%s15941_s5] sm:$0xff] %v9779_v19  ;;  %v16737_v19 = vcombine.low %v16703_v40, %v16704_v59 }
 0x700   :  { %v8872_v0 = vadd.f32 1.0, %v11616_v39 }
 0x701   :  { %v9092_v34 = vsel %vm9019_vm3, %v9090_v62, %v9091_v60  ;;  %v9094_v4 = vsel %vm9019_vm3, %v9091_v60, %v9093_v12  ;;  %v9719_v21 = vpop.permute.xlu0 %9718 }
 0x702   :  { %11621 = vrcp.f32 %v8872_v0  ;;  %v9785_v1 = vsel %vm9778_vm6, %v9783_v49, %v9719_v21  ;;  %v9300_v9 = vcombine.low %v15741_v17, %v9092_v34  ;;  %v9301_v26 = vcombine.high %v15741_v17, %v9092_v34 }
 0x703   :  { %9800 = vst [vmem:[%s15941_s5 + $0x8] sm:$0xff] %v9785_v1  ;;  %v9572_v56 = vcombine.low %v15744_v29, %v9094_v4  ;;  %v9573_v61 = vcombine.high %v15744_v29, %v9094_v4  ;;  %v16732_v29 = vcombine.low %v15659_v28, %v15687_v7  ;;  %v16736_v28 = vcombine.high %v15672_v22, %v15690_v18 }
 0x704   :  { %v9308_v48 = vrot.slane %v9300_v9, %v16715_v13  ;;  %v9315_v2 = vrot.slane %v9301_v26, %v16715_v13 }
 0x705   :  { %v11618_v5 = vpop.eup %11617  ;;  %v9727_v33 = vpop.permute.xlu0 %9726  ;;  %v15819_v41 = vrot.slane %v16732_v29, %v16731_v55  ;;  %v9363_v7 = vrot.slane %v16736_v28, %v16731_v55  ;;  %v9580_v8 = vrot.slane %v9572_v56, %v16715_v13  ;;  %v9587_v62 = vrot.slane %v9573_v61, %v16715_v13 }
 0x706   :  { %v8874_v10 = vadd.f32 1.0, %v11618_v5  ;;  %v9787_v57 = vsel %vm9772_vm4, %v16735_v36, %v9727_v33 }
 0x708   :  { %11623 = vrcp.f32 %v8874_v10 }
 0x709   :  { %v11620_v15 = vpop.eup %11619  ;;  %v9751_v43 = vpop.permute.xlu0 %9750 }
 0x70a   :  { %v9096_v6 = vrot.slane %v11620_v15, 7  ;;  %v9793_v16 = vsel %vm9772_vm4, %v16737_v19, %v9751_v43 }
 0x70c   :  { %v11622_v24 = vpop.eup %11621 }
 0x70d   :  { %v9095_v23 = vrot.slane %v11622_v24, 7  ;;  %v9735_v20 = vpop.permute.xlu0 %9734 }
 0x70e   :  { %v9789_v37 = vsel %vm9775_vm5, %v9787_v57, %v9735_v20 }
 0x70f   :  { %v9097_v17 = vsel %vm9019_vm3, %v9095_v23, %v9096_v6  ;;  %v16739_v23 = vcombine.low %v15721_v44, %v15699_v31 }
 0x710   :  { %v9316_v51 = vcombine.low %v15775_v53, %v9097_v17  ;;  %v9317_v27 = vcombine.high %v15775_v53, %v9097_v17  ;;  %v16740_v17 = vcombine.high %v15678_v50, %v15696_v30 }
 0x711   :  { %v9759_v47 = vpop.permute.xlu0 %9758  ;;  %v9628_v20 = vrot.slane %v16739_v23, %v16731_v55 }
 0x712   :  { %v11624_v53 = vpop.eup %11623  ;;  %v9324_v38 = vrot.slane %v9316_v51, %v16715_v13  ;;  %v9331_v46 = vrot.slane %v9317_v27, %v16715_v13  ;;  %v9795_v52 = vsel %vm9775_vm5, %v9793_v16, %v9759_v47  ;;  %v9619_v51 = vrot.slane %v16740_v17, %v16731_v55 }
 0x713   :  { %v9098_v14 = vrot.slane %v11624_v53, 7  ;;  %v16741_v27 = vcombine.high %v15721_v44, %v15699_v31 }
 0x714   :  { %v9364_v11 = vcombine.low %v9308_v48, %v9324_v38  ;;  %v9380_v25 = vcombine.low %v9315_v2, %v9331_v46  ;;  %v9365_v54 = vcombine.high %v9308_v48, %v9324_v38  ;;  %v9381_v45 = vcombine.high %v9315_v2, %v9331_v46 }
 0x715   :  { %v9099_v12 = vsel %vm9019_vm3, %v9096_v6, %v9098_v14  ;;  %v9635_v47 = vrot.slane %v16741_v27, %v16731_v55 }
 0x716   :  { %v9743_v39 = vpop.permute.xlu0 %9742  ;;  %v9372_v18 = vrot.slane %v9364_v11, %v16731_v55  ;;  %v15856_v60 = vrot.slane %v9380_v25, %v16731_v55  ;;  %v9379_v0 = vrot.slane %v9365_v54, %v16731_v55  ;;  %v9395_v40 = vrot.slane %v9381_v45, %v16731_v55 }
 0x717   :  { %v9791_v22 = vsel %vm9778_vm6, %v9789_v37, %v9743_v39  ;;  %v9588_v59 = vcombine.low %v15778_v3, %v9099_v12  ;;  %v9589_v35 = vcombine.high %v15778_v3, %v9099_v12 }
 0x718   :  { %9801 = vst [vmem:[%s15941_s5 + $0x10] sm:$0xff] %v9791_v22  ;;  %v9397_v34 = vcombine.high %v15819_v41, %v9372_v18  ;;  %v9401_v4 = vcombine.high %v15825_v42, %v15856_v60  ;;  %v9398_v49 = vcombine.low %v15831_v32, %v9379_v0  ;;  %v9399_v21 = vcombine.high %v15831_v32, %v9379_v0 }
 0x719   :  { %v9402_v9 = vcombine.low %v9363_v7, %v9395_v40  ;;  %v9403_v26 = vcombine.high %v9363_v7, %v9395_v40  ;;  %v9596_v56 = vrot.slane %v9588_v59, %v16715_v13  ;;  %v9603_v61 = vrot.slane %v9589_v35, %v16715_v13 }
 0x71a   :  { %v9767_v1 = vpop.permute.xlu0 %9766  ;;  %9680 = vrot.lane.b32.xlu1 %v9397_v34, %s11670_s3  ;;  %v9396_v5 = vcombine.low %v15819_v41, %v9372_v18  ;;  %v9400_v33 = vcombine.low %v15825_v42, %v15856_v60  ;;  %v16738_v13 = vcombine.low %v15678_v50, %v15696_v30 }
 0x71b   :  { %v9797_v3 = vsel %vm9778_vm6, %v9795_v52, %v9767_v1  ;;  %v9636_v10 = vcombine.low %v9580_v8, %v9596_v56  ;;  %v9652_v15 = vcombine.low %v9587_v62, %v9603_v61  ;;  %v9637_v43 = vcombine.high %v9580_v8, %v9596_v56 }
 0x71c   :  { %9802 = vst [vmem:[%s15941_s5 + $0x18] sm:$0xff] %v9797_v3  ;;  %v9653_v6 = vcombine.high %v9587_v62, %v9603_v61  ;;  %v9612_v24 = vrot.slane %v16738_v13, %v16731_v55 }
 0x71d   :  { %v9644_v29 = vrot.slane %v9636_v10, %v16731_v55  ;;  %v9660_v41 = vrot.slane %v9652_v15, %v16731_v55  ;;  %v9651_v58 = vrot.slane %v9637_v43, %v16731_v55 }
 0x71e   :  { %v9667_v42 = vrot.slane %v9653_v6, %v16731_v55  ;;  %9704 = vrot.lane.b32.xlu1 %v9401_v4, %s11670_s3 }
 0x71f   :  { %v9669_v63 = vcombine.high %v9612_v24, %v9644_v29  ;;  %v9673_v32 = vcombine.high %v9628_v20, %v9660_v41  ;;  %v9670_v53 = vcombine.low %v9619_v51, %v9651_v58  ;;  %v9671_v30 = vcombine.high %v9619_v51, %v9651_v58 }
 0x720   :  { %v9674_v50 = vcombine.low %v9635_v47, %v9667_v42  ;;  %v9675_v48 = vcombine.high %v9635_v47, %v9667_v42  ;;  %v9668_v38 = vcombine.low %v9612_v24, %v9644_v29  ;;  %v9672_v2 = vcombine.low %v9628_v20, %v9660_v41 }
 0x722   :  { %9688 = vrot.lane.b32.xlu1 %v9398_v49, %s11669_s11 }
 0x726   :  { %9712 = vrot.lane.b32.xlu1 %v9402_v9, %s11669_s11 }
 0x72a   :  { %9696 = vrot.lane.b32.xlu1 %v9399_v21, %s11668_s2 }
 0x72e   :  { %9720 = vrot.lane.b32.xlu1 %v9403_v26, %s11668_s2 }
 0x732   :  { %9728 = vrot.lane.b32.xlu1 %v9669_v63, %s11670_s3 }
 0x736   :  { %9752 = vrot.lane.b32.xlu1 %v9673_v32, %s11670_s3 }
 0x73a   :  { %9736 = vrot.lane.b32.xlu1 %v9670_v53, %s11669_s11 }
 0x73e   :  { %9760 = vrot.lane.b32.xlu1 %v9674_v50, %s11669_s11 }
 0x742   :  { %9744 = vrot.lane.b32.xlu1 %v9671_v30, %s11668_s2 }
 0x746   :  { %9768 = vrot.lane.b32.xlu1 %v9675_v48, %s11668_s2 }
 0x78c   :  { %v9681_v31 = vpop.permute.xlu1 %9680 }
 0x78d   :  { %v9774_v14 = vsel %vm9772_vm4, %v9396_v5, %v9681_v31 }
 0x790   :  { %v9705_v44 = vpop.permute.xlu1 %9704 }
 0x791   :  { %v9782_v7 = vsel %vm9772_vm4, %v9400_v33, %v9705_v44 }
 0x794   :  { %v9689_v55 = vpop.permute.xlu1 %9688 }
 0x795   :  { %v9777_v36 = vsel %vm9775_vm5, %v9774_v14, %v9689_v55 }
 0x798   :  { %v9713_v46 = vpop.permute.xlu1 %9712 }
 0x799   :  { %v9784_v8 = vsel %vm9775_vm5, %v9782_v7, %v9713_v46 }
 0x79c   :  { %v9697_v57 = vpop.permute.xlu1 %9696 }
 0x79d   :  { %v9780_v28 = vsel %vm9778_vm6, %v9777_v36, %v9697_v57 }
 0x79e   :  { %9803 = vst [vmem:[%s15941_s5 + $0x20] sm:$0xff] %v9780_v28 }
 0x7a0   :  { %v9721_v11 = vpop.permute.xlu1 %9720 }
 0x7a1   :  { %v9786_v25 = vsel %vm9778_vm6, %v9784_v8, %v9721_v11 }
 0x7a2   :  { %9804 = vst [vmem:[%s15941_s5 + $0x28] sm:$0xff] %v9786_v25 }
 0x7a4   :  { %v9729_v54 = vpop.permute.xlu1 %9728 }
 0x7a5   :  { %v9788_v16 = vsel %vm9772_vm4, %v9668_v38, %v9729_v54 }
 0x7a8   :  { %v9753_v45 = vpop.permute.xlu1 %9752 }
 0x7a9   :  { %v9794_v22 = vsel %vm9772_vm4, %v9672_v2, %v9753_v45 }
 0x7ac   :  { %v9737_v12 = vpop.permute.xlu1 %9736 }
 0x7ad   :  { %v9790_v37 = vsel %vm9775_vm5, %v9788_v16, %v9737_v12 }
 0x7b0   :  { %v9761_v19 = vpop.permute.xlu1 %9760 }
 0x7b1   :  { %v9796_v18 = vsel %vm9775_vm5, %v9794_v22, %v9761_v19 }
 0x7b4   :  { %v9745_v39 = vpop.permute.xlu1 %9744 }
 0x7b5   :  { %v9792_v62 = vsel %vm9778_vm6, %v9790_v37, %v9745_v39 }
 0x7b6   :  { %9805 = vst [vmem:[%s15941_s5 + $0x30] sm:$0xff] %v9792_v62 }
 0x7b8   :  { %v9769_v60 = vpop.permute.xlu1 %9768 }
 0x7b9   :  { %v9798_v0 = vsel %vm9778_vm6, %v9796_v18, %v9769_v60 }
 0x7ba   :  { %9806 = vst [vmem:[%s15941_s5 + $0x38] sm:$0xff] %v9798_v0 }

</bundles_post_ra>
